<compile_context>
chip_gen: v5e
topology: v5e:2x2
jax: 0.10.0
libtpu: 0.0.40
codegen_flags: <defaults>
</compile_context>

<pallas_src>
import functools

import jax
import jax.numpy as jnp
from jax.experimental import pallas as pl
from jax.experimental.pallas import tpu as pltpu


# ----------------------------- Pallas kernels ------------------------------

def _mm_bias_relu_kernel(x_ref, w_ref, b_ref, o_ref):
    # x: [M, K] bf16, w: [K, N] bf16, b: [1, N] f32 -> o: [M, N] bf16
    acc = jnp.dot(x_ref[...], w_ref[...], preferred_element_type=jnp.float32)
    o_ref[...] = jnp.maximum(acc + b_ref[...], 0.0).astype(o_ref.dtype)


# Below this M a single VMEM block beats any grid split: v5e/v6e are single-TC
# (the 'parallel' axis is just a serial loop + ~0.35us/step overhead) and even
# on v7x a sub-MFLOP half-tile is dominated by per-core launch cost.
_TILE_M_THRESHOLD = 2048
_TILE_M = 256  # 128/256-aligned tiles keep MXU passes full and stores unmasked.


def conv_matmul_relu(cols, w, b):
    """Conv-as-matmul: bf16 [M, K] @ [K, OC] (f32 acc) + bias, ReLU -> bf16.

    Single VMEM block for small M (the B=2 case).  For large M, M is tiled on a
    'parallel' grid axis with 256-aligned tiles and a ragged last tile."""
    M, K = cols.shape
    _, N = w.shape
    b2 = b.reshape(1, N)
    cost = pl.CostEstimate(flops=2 * M * K * N, transcendentals=0,
                           bytes_accessed=2 * (M * K + K * N + M * N) + 4 * N)
    if M <= _TILE_M_THRESHOLD:
        return pl.pallas_call(
            _mm_bias_relu_kernel,
            out_shape=jax.ShapeDtypeStruct((M, N), jnp.bfloat16),
            in_specs=[pl.BlockSpec(memory_space=pltpu.MemorySpace.VMEM)] * 3,
            out_specs=pl.BlockSpec(memory_space=pltpu.MemorySpace.VMEM),
            cost_estimate=cost,
        )(cols, w, b2)
    tm = _TILE_M
    return pl.pallas_call(
        _mm_bias_relu_kernel,
        out_shape=jax.ShapeDtypeStruct((M, N), jnp.bfloat16),
        grid=(pl.cdiv(M, tm),),
        in_specs=[pl.BlockSpec((tm, K), lambda i: (i, 0)),
                  pl.BlockSpec((K, N), lambda i: (0, 0)),
                  pl.BlockSpec((1, N), lambda i: (0, 0))],
        out_specs=pl.BlockSpec((tm, N), lambda i: (i, 0)),
        compiler_params=pltpu.CompilerParams(
            dimension_semantics=("parallel",)),
        cost_estimate=cost,
    )(cols, w, b2)


def _conv3_fc_dueling_kernel(p_ref, w3_ref, b3_ref, w1_ref, b1_ref,
                             w2_ref, b2_ref, o_ref, a3_ref, *,
                             batch, n_action):
    # conv3 as ONE patch-matmul over all (spatial, batch) rows:
    #   p: [49*B, 576] bf16 (spatial-major rows), w3: [576, 64] bf16.
    # Result (bias + ReLU, f32) is stashed in a VMEM scratch so the weight is
    # pushed to the MXU only once and rows can be re-sliced per position.
    a3 = jnp.dot(p_ref[...], w3_ref[...], preferred_element_type=jnp.float32)
    a3_ref[...] = jnp.maximum(a3 + b3_ref[...], 0.0)              # [49*B, 64]

    # fc1_val|fc1_adv: one partial matmul per conv3 spatial position.  Rows of
    # a3 are spatial-major (s, b), so position s is the contiguous row block
    # [s*B, (s+1)*B) and w1 is pre-laid-out as [49, 64, 512] — no in-kernel
    # [49*B,64] -> [B,3136] reshape is needed.
    n_pos = w1_ref.shape[0]                                       # 49
    hidden = w1_ref.shape[2]                                      # 512
    acc = jnp.zeros((batch, hidden), jnp.float32)
    for s in range(n_pos):
        a_s = a3_ref[s * batch:(s + 1) * batch, :].astype(jnp.bfloat16)
        acc = acc + jnp.dot(a_s, w1_ref[s],
                            preferred_element_type=jnp.float32)
    h = jnp.maximum(acc + b1_ref[...], 0.0)                       # [B, 512] f32

    # fc2_val|fc2_adv as one block-diagonal bf16 matmul, then dueling combine.
    q = jnp.dot(h.astype(jnp.bfloat16), w2_ref[...],
                preferred_element_type=jnp.float32) + b2_ref[...]  # [B, A+1]
    val = q[:, :n_action]                                         # [B, A]
    adv = q[:, n_action:]                                         # [B, 1]
    o_ref[...] = val + adv - jnp.mean(adv, axis=1, keepdims=True)


def conv3_fc_dueling_head(p3, w3, b3, w1, b1, w2, b2, batch, n_action):
    S, C3, H = w1.shape          # 49, 64, 512
    K3 = w3.shape[0]             # 576
    cost = pl.CostEstimate(
        flops=2 * batch * S * (K3 * C3 + C3 * H)
              + 2 * batch * H * (n_action + 1),
        transcendentals=0,
        bytes_accessed=2 * (batch * S * K3 + K3 * C3 + S * C3 * H
                            + H * (n_action + 1)) + 4 * batch * n_action)
    return pl.pallas_call(
        functools.partial(_conv3_fc_dueling_kernel, batch=batch,
                          n_action=n_action),
        out_shape=jax.ShapeDtypeStruct((batch, n_action), jnp.float32),
        in_specs=[pl.BlockSpec(memory_space=pltpu.MemorySpace.VMEM)] * 7,
        out_specs=pl.BlockSpec(memory_space=pltpu.MemorySpace.VMEM),
        scratch_shapes=[pltpu.VMEM((S * batch, C3), jnp.float32)],
        cost_estimate=cost,
    )(p3, w3, b3, w1, b1, w2, b2)


# ------------------------------ JAX glue ------------------------------------

def _patches_nhwc(x, kh, kw, stride, lhs_layout):
    """Single-XLA-op im2col. Output [B, OH, OW, C*kh*kw]; feature dim is
    channel-major then (ki, kj), matching torch weight.view(OC, C*kh*kw)."""
    return jax.lax.conv_general_dilated_patches(
        x, filter_shape=(kh, kw), window_strides=(stride, stride),
        padding="VALID", dimension_numbers=(lhs_layout, "OIHW", "NHWC"))


def dueling_qnet_forward(prep, x, n_action):
    B = x.shape[0]
    xb = x.astype(jnp.bfloat16)
    # conv1: 1 -> 32, 8x8 stride 4   (84 -> 20)
    p = _patches_nhwc(xb, 8, 8, 4, "NCHW").reshape(B * 400, 64)
    a = conv_matmul_relu(p, prep["conv1_w"], prep["conv1_b"])   # bf16 [B*400,32]
    # conv2: 32 -> 64, 4x4 stride 2  (20 -> 9)
    p = _patches_nhwc(a.reshape(B, 20, 20, 32), 4, 4, 2,
                      "NHWC").reshape(B * 81, 512)
    a = conv_matmul_relu(p, prep["conv2_w"], prep["conv2_b"])   # bf16 [B*81,64]
    # conv3 patches, laid out spatial-major (s, b) so the fused head can read
    # each spatial position as a contiguous row block (no in-kernel reshape).
    p = _patches_nhwc(a.reshape(B, 9, 9, 64), 3, 3, 1, "NHWC")  # [B,7,7,576]
    p = p.transpose(1, 2, 0, 3).reshape(49 * B, 576)            # bf16 [49B,576]
    # Fused conv3 matmul + fc1 + fc2 + dueling combine (one pallas_call).
    return conv3_fc_dueling_head(p, prep["conv3_w"], prep["conv3_b"],
                                 prep["fc1_w"], prep["fc1_b"],
                                 prep["fc2_w"], prep["fc2_b"], B, n_action)


def prepare_params(p, n_action):
    """One-time weight re-layout + bf16 cast (nothing re-laid-out per step)."""
    A = n_action
    prep = {}
    # Conv weights -> bf16 [C*kh*kw, OC] patch-matmul form (channel-major order,
    # identical to conv_general_dilated_patches feature order); biases f32.
    prep["conv1_w"] = p["conv1_w"].reshape(32, 64).T.astype(jnp.bfloat16)
    prep["conv1_b"] = p["conv1_b"].reshape(1, 32)
    prep["conv2_w"] = p["conv2_w"].reshape(64, 512).T.astype(jnp.bfloat16)
    prep["conv2_b"] = p["conv2_b"].reshape(1, 64)
    prep["conv3_w"] = p["conv3_w"].reshape(64, 576).T.astype(jnp.bfloat16)
    prep["conv3_b"] = p["conv3_b"].reshape(1, 64)

    # fc1: permute columns from torch's (c, h, w) flatten order into a
    # per-spatial-position [49, 64, 512] (s, c, n) block layout, val||adv
    # fused along n, cast to bf16.
    def fc1_blocks(w):  # [256, 3136] -> [49, 64, 256] with blocks (h*7+w, c, n)
        return w.reshape(256, 64, 7, 7).transpose(2, 3, 1, 0).reshape(49, 64, 256)

    prep["fc1_w"] = jnp.concatenate(
        [fc1_blocks(p["fc1_val_w"]), fc1_blocks(p["fc1_adv_w"])],
        axis=2).astype(jnp.bfloat16)                               # [49,64,512]
    prep["fc1_b"] = jnp.concatenate(
        [p["fc1_val_b"], p["fc1_adv_b"]]).reshape(1, 512).astype(jnp.float32)

    # fc2: block-diagonal bf16 [512, A+1]; columns :A read the "val" half of h,
    # column A reads the "adv" half (matches the module's wiring).
    w2 = jnp.zeros((512, A + 1), jnp.float32)
    w2 = w2.at[:256, :A].set(p["fc2_val_w"].T)
    w2 = w2.at[256:, A].set(p["fc2_adv_w"][0])
    prep["fc2_w"] = w2.astype(jnp.bfloat16)
    prep["fc2_b"] = jnp.concatenate(
        [p["fc2_val_b"], p["fc2_adv_b"]]).reshape(1, A + 1)
    return prep


# Pure-JAX reference (literal PyTorch math, original f32 weights).
def ref_forward(params, x, n_action):
    def conv(x, w, b, s):
        y = jax.lax.conv_general_dilated(
            x, w, (s, s), "VALID",
            dimension_numbers=("NCHW", "OIHW", "NCHW"),
            precision=jax.lax.Precision.HIGHEST)
        return jax.nn.relu(y + b[None, :, None, None])
    t = conv(x, params["conv1_w"], params["conv1_b"], 4)
    t = conv(t, params["conv2_w"], params["conv2_b"], 2)
    t = conv(t, params["conv3_w"], params["conv3_b"], 1)
    t = t.reshape(x.shape[0], -1)
    mm = functools.partial(jnp.matmul, precision=jax.lax.Precision.HIGHEST)
    valh = jax.nn.relu(mm(t, params["fc1_val_w"].T) + params["fc1_val_b"])
    advh = jax.nn.relu(mm(t, params["fc1_adv_w"].T) + params["fc1_adv_b"])
    val = mm(valh, params["fc2_val_w"].T) + params["fc2_val_b"]
    adv = mm(advh, params["fc2_adv_w"].T) + params["fc2_adv_b"]
    return val + adv - jnp.mean(adv, axis=1, keepdims=True)


def init_params(key, n_action):
    """Deterministic init; PyTorch Conv/Linear-style uniform(+-1/sqrt(fan_in)).
    Weight shapes mirror the PyTorch module exactly."""
    ks = jax.random.split(key, 14)

    def u(k, shape, fan_in):
        bound = 1.0 / (fan_in ** 0.5)
        return jax.random.uniform(k, shape, jnp.float32, -bound, bound)

    p = {}
    p["conv1_w"] = u(ks[0], (32, 1, 8, 8), 1 * 8 * 8)
    p["conv1_b"] = u(ks[1], (32,), 1 * 8 * 8)
    p["conv2_w"] = u(ks[2], (64, 32, 4, 4), 32 * 4 * 4)
    p["conv2_b"] = u(ks[3], (64,), 32 * 4 * 4)
    p["conv3_w"] = u(ks[4], (64, 64, 3, 3), 64 * 3 * 3)
    p["conv3_b"] = u(ks[5], (64,), 64 * 3 * 3)
    p["fc1_adv_w"] = u(ks[6], (256, 7 * 7 * 64), 7 * 7 * 64)
    p["fc1_adv_b"] = u(ks[7], (256,), 7 * 7 * 64)
    p["fc1_val_w"] = u(ks[8], (256, 7 * 7 * 64), 7 * 7 * 64)
    p["fc1_val_b"] = u(ks[9], (256,), 7 * 7 * 64)
    p["fc2_adv_w"] = u(ks[10], (1, 256), 256)
    p["fc2_adv_b"] = u(ks[11], (1,), 256)
    p["fc2_val_w"] = u(ks[12], (n_action, 256), 256)
    p["fc2_val_b"] = u(ks[13], (n_action,), 256)
    return p


if __name__ == "__main__":
    n_action = 6
    B = 2
    key = jax.random.PRNGKey(0)
    kp, kx = jax.random.split(key)
    params = init_params(kp, n_action)
    prep = prepare_params(params, n_action)       # one-time weight re-layout
    x = jax.random.uniform(kx, (B, 1, 84, 84), jnp.float32)  # NCHW, like PyTorch

    fwd = jax.jit(functools.partial(dueling_qnet_forward, n_action=n_action))
    out = fwd(prep, x)
    jax.block_until_ready(out)

    ref = ref_forward(params, x, n_action)
    assert out.shape == (B, n_action), out.shape
    max_err = float(jnp.max(jnp.abs(out - ref)))
    assert jnp.allclose(out, ref, atol=5e-2, rtol=5e-2), (
        "mismatch vs reference", max_err)

    print("KERNEL_OK")
</pallas_src>

<mosaic_0001>
module attributes {stable_mosaic.version = 11 : i64} {
  func.func @_mm_bias_relu_kernel(%arg0: memref<800x64xbf16, #tpu.memory_space<vmem>>, %arg1: memref<64x32xbf16, #tpu.memory_space<vmem>>, %arg2: memref<1x32xf32, #tpu.memory_space<vmem>>, %arg3: memref<800x32xbf16, #tpu.memory_space<vmem>>) attributes {dimension_semantics = [], scalar_prefetch = 0 : i64, scratch_operands = 0 : i64, tpu.core_type = #tpu.core_type<tc>} {
    %c0 = arith.constant 0 : index
    %c0_0 = arith.constant 0 : index
    %0 = vector.load %arg0[%c0, %c0_0] : memref<800x64xbf16, #tpu.memory_space<vmem>>, vector<800x64xbf16>
    %c0_1 = arith.constant 0 : index
    %c0_2 = arith.constant 0 : index
    %1 = vector.load %arg1[%c0_1, %c0_2] : memref<64x32xbf16, #tpu.memory_space<vmem>>, vector<64x32xbf16>
    %cst = arith.constant dense<0.000000e+00> : vector<800x32xf32>
    %2 = tpu.matmul %0, %1, %cst {dimension_numbers = #tpu.dot_dimension_numbers<[1], [0], [0], [1], [0, 0, 1, 1], [], []>} : vector<800x64xbf16>, vector<64x32xbf16>, vector<800x32xf32> -> vector<800x32xf32>
    %c0_3 = arith.constant 0 : index
    %c0_4 = arith.constant 0 : index
    %3 = vector.load %arg2[%c0_3, %c0_4] : memref<1x32xf32, #tpu.memory_space<vmem>>, vector<1x32xf32>
    %4 = vector.broadcast %3 : vector<1x32xf32> to vector<800x32xf32>
    %5 = arith.addf %2, %4 : vector<800x32xf32>
    %cst_5 = arith.constant 0.000000e+00 : f32
    %6 = vector.broadcast %cst_5 : f32 to vector<800x32xf32>
    %7 = arith.maximumf %5, %6 : vector<800x32xf32>
    %8 = arith.truncf %7 : vector<800x32xf32> to vector<800x32xbf16>
    %c0_6 = arith.constant 0 : index
    %c0_7 = arith.constant 0 : index
    %9 = vector.load %arg3[%c0_6, %c0_7] : memref<800x32xbf16, #tpu.memory_space<vmem>>, vector<800x32xbf16>
    tpu.vector_store %arg3[%c0_6, %c0_7], %8 {strides = array<i32>} : memref<800x32xbf16, #tpu.memory_space<vmem>>, vector<800x32xbf16>,
    return
  }
}

module attributes {stable_mosaic.version = 11 : i64} {
  func.func @_mm_bias_relu_kernel(%arg0: memref<162x512xbf16, #tpu.memory_space<vmem>>, %arg1: memref<512x64xbf16, #tpu.memory_space<vmem>>, %arg2: memref<1x64xf32, #tpu.memory_space<vmem>>, %arg3: memref<162x64xbf16, #tpu.memory_space<vmem>>) attributes {dimension_semantics = [], scalar_prefetch = 0 : i64, scratch_operands = 0 : i64, tpu.core_type = #tpu.core_type<tc>} {
    %c0 = arith.constant 0 : index
    %c0_0 = arith.constant 0 : index
    %0 = vector.load %arg0[%c0, %c0_0] : memref<162x512xbf16, #tpu.memory_space<vmem>>, vector<162x512xbf16>
    %c0_1 = arith.constant 0 : index
    %c0_2 = arith.constant 0 : index
    %1 = vector.load %arg1[%c0_1, %c0_2] : memref<512x64xbf16, #tpu.memory_space<vmem>>, vector<512x64xbf16>
    %cst = arith.constant dense<0.000000e+00> : vector<162x64xf32>
    %2 = tpu.matmul %0, %1, %cst {dimension_numbers = #tpu.dot_dimension_numbers<[1], [0], [0], [1], [0, 0, 1, 1], [], []>} : vector<162x512xbf16>, vector<512x64xbf16>, vector<162x64xf32> -> vector<162x64xf32>
    %c0_3 = arith.constant 0 : index
    %c0_4 = arith.constant 0 : index
    %3 = vector.load %arg2[%c0_3, %c0_4] : memref<1x64xf32, #tpu.memory_space<vmem>>, vector<1x64xf32>
    %4 = vector.broadcast %3 : vector<1x64xf32> to vector<162x64xf32>
    %5 = arith.addf %2, %4 : vector<162x64xf32>
    %cst_5 = arith.constant 0.000000e+00 : f32
    %6 = vector.broadcast %cst_5 : f32 to vector<162x64xf32>
    %7 = arith.maximumf %5, %6 : vector<162x64xf32>
    %8 = arith.truncf %7 : vector<162x64xf32> to vector<162x64xbf16>
    %c0_6 = arith.constant 0 : index
    %c0_7 = arith.constant 0 : index
    %9 = vector.load %arg3[%c0_6, %c0_7] : memref<162x64xbf16, #tpu.memory_space<vmem>>, vector<162x64xbf16>
    tpu.vector_store %arg3[%c0_6, %c0_7], %8 {strides = array<i32>} : memref<162x64xbf16, #tpu.memory_space<vmem>>, vector<162x64xbf16>,
    return
  }
}

module attributes {stable_mosaic.version = 11 : i64} {
  func.func @_conv3_fc_dueling_kernel(%arg0: memref<98x576xbf16, #tpu.memory_space<vmem>>, %arg1: memref<576x64xbf16, #tpu.memory_space<vmem>>, %arg2: memref<1x64xf32, #tpu.memory_space<vmem>>, %arg3: memref<49x64x512xbf16, #tpu.memory_space<vmem>>, %arg4: memref<1x512xf32, #tpu.memory_space<vmem>>, %arg5: memref<512x7xbf16, #tpu.memory_space<vmem>>, %arg6: memref<1x7xf32, #tpu.memory_space<vmem>>, %arg7: memref<2x6xf32, #tpu.memory_space<vmem>>, %arg8: memref<98x64xf32, #tpu.memory_space<vmem>>) attributes {dimension_semantics = [], scalar_prefetch = 0 : i64, scratch_operands = 1 : i64, tpu.core_type = #tpu.core_type<tc>} {
    %c0 = arith.constant 0 : index
    %c0_0 = arith.constant 0 : index
    %0 = vector.load %arg0[%c0, %c0_0] : memref<98x576xbf16, #tpu.memory_space<vmem>>, vector<98x576xbf16>
    %c0_1 = arith.constant 0 : index
    %c0_2 = arith.constant 0 : index
    %1 = vector.load %arg1[%c0_1, %c0_2] : memref<576x64xbf16, #tpu.memory_space<vmem>>, vector<576x64xbf16>
    %cst = arith.constant dense<0.000000e+00> : vector<98x64xf32>
    %2 = tpu.matmul %0, %1, %cst {dimension_numbers = #tpu.dot_dimension_numbers<[1], [0], [0], [1], [0, 0, 1, 1], [], []>} : vector<98x576xbf16>, vector<576x64xbf16>, vector<98x64xf32> -> vector<98x64xf32>
    %c0_3 = arith.constant 0 : index
    %c0_4 = arith.constant 0 : index
    %3 = vector.load %arg2[%c0_3, %c0_4] : memref<1x64xf32, #tpu.memory_space<vmem>>, vector<1x64xf32>
    %4 = vector.broadcast %3 : vector<1x64xf32> to vector<98x64xf32>
    %5 = arith.addf %2, %4 : vector<98x64xf32>
    %cst_5 = arith.constant 0.000000e+00 : f32
    %6 = vector.broadcast %cst_5 : f32 to vector<98x64xf32>
    %7 = arith.maximumf %5, %6 : vector<98x64xf32>
    %c0_6 = arith.constant 0 : index
    %c0_7 = arith.constant 0 : index
    %8 = vector.load %arg8[%c0_6, %c0_7] : memref<98x64xf32, #tpu.memory_space<vmem>>, vector<98x64xf32>
    tpu.vector_store %arg8[%c0_6, %c0_7], %7 {strides = array<i32>} : memref<98x64xf32, #tpu.memory_space<vmem>>, vector<98x64xf32>,
    %cst_8 = arith.constant 0.000000e+00 : f32
    %9 = vector.broadcast %cst_8 : f32 to vector<2x512xf32>
    %c0_9 = arith.constant 0 : index
    %c0_10 = arith.constant 0 : index
    %10 = vector.load %arg8[%c0_9, %c0_10] : memref<98x64xf32, #tpu.memory_space<vmem>>, vector<2x64xf32>
    %11 = arith.truncf %10 : vector<2x64xf32> to vector<2x64xbf16>
    %c0_11 = arith.constant 0 : index
    %c0_12 = arith.constant 0 : index
    %c0_13 = arith.constant 0 : index
    %12 = vector.load %arg3[%c0_11, %c0_12, %c0_13] : memref<49x64x512xbf16, #tpu.memory_space<vmem>>, vector<1x64x512xbf16>
    %13 = vector.shape_cast %12 : vector<1x64x512xbf16> to vector<64x512xbf16>
    %cst_14 = arith.constant dense<0.000000e+00> : vector<2x512xf32>
    %14 = tpu.matmul %11, %13, %cst_14 {dimension_numbers = #tpu.dot_dimension_numbers<[1], [0], [0], [1], [0, 0, 1, 1], [], []>} : vector<2x64xbf16>, vector<64x512xbf16>, vector<2x512xf32> -> vector<2x512xf32>
    %15 = arith.addf %9, %14 : vector<2x512xf32>
    %c2 = arith.constant 2 : index
    %c0_15 = arith.constant 0 : index
    %16 = vector.load %arg8[%c2, %c0_15] : memref<98x64xf32, #tpu.memory_space<vmem>>, vector<2x64xf32>
    %17 = arith.truncf %16 : vector<2x64xf32> to vector<2x64xbf16>
    %c1 = arith.constant 1 : index
    %c0_16 = arith.constant 0 : index
    %c0_17 = arith.constant 0 : index
    %18 = vector.load %arg3[%c1, %c0_16, %c0_17] : memref<49x64x512xbf16, #tpu.memory_space<vmem>>, vector<1x64x512xbf16>
    %19 = vector.shape_cast %18 : vector<1x64x512xbf16> to vector<64x512xbf16>
    %cst_18 = arith.constant dense<0.000000e+00> : vector<2x512xf32>
    %20 = tpu.matmul %17, %19, %cst_18 {dimension_numbers = #tpu.dot_dimension_numbers<[1], [0], [0], [1], [0, 0, 1, 1], [], []>} : vector<2x64xbf16>, vector<64x512xbf16>, vector<2x512xf32> -> vector<2x512xf32>
    %21 = arith.addf %15, %20 : vector<2x512xf32>
    %c4 = arith.constant 4 : index
    %c0_19 = arith.constant 0 : index
    %22 = vector.load %arg8[%c4, %c0_19] : memref<98x64xf32, #tpu.memory_space<vmem>>, vector<2x64xf32>
    %23 = arith.truncf %22 : vector<2x64xf32> to vector<2x64xbf16>
    %c2_20 = arith.constant 2 : index
    %c0_21 = arith.constant 0 : index
    %c0_22 = arith.constant 0 : index
    %24 = vector.load %arg3[%c2_20, %c0_21, %c0_22] : memref<49x64x512xbf16, #tpu.memory_space<vmem>>, vector<1x64x512xbf16>
    %25 = vector.shape_cast %24 : vector<1x64x512xbf16> to vector<64x512xbf16>
    %cst_23 = arith.constant dense<0.000000e+00> : vector<2x512xf32>
    %26 = tpu.matmul %23, %25, %cst_23 {dimension_numbers = #tpu.dot_dimension_numbers<[1], [0], [0], [1], [0, 0, 1, 1], [], []>} : vector<2x64xbf16>, vector<64x512xbf16>, vector<2x512xf32> -> vector<2x512xf32>
    %27 = arith.addf %21, %26 : vector<2x512xf32>
    %c6 = arith.constant 6 : index
    %c0_24 = arith.constant 0 : index
    %28 = vector.load %arg8[%c6, %c0_24] : memref<98x64xf32, #tpu.memory_space<vmem>>, vector<2x64xf32>
    %29 = arith.truncf %28 : vector<2x64xf32> to vector<2x64xbf16>
    %c3 = arith.constant 3 : index
    %c0_25 = arith.constant 0 : index
    %c0_26 = arith.constant 0 : index
    %30 = vector.load %arg3[%c3, %c0_25, %c0_26] : memref<49x64x512xbf16, #tpu.memory_space<vmem>>, vector<1x64x512xbf16>
    %31 = vector.shape_cast %30 : vector<1x64x512xbf16> to vector<64x512xbf16>
    %cst_27 = arith.constant dense<0.000000e+00> : vector<2x512xf32>
    %32 = tpu.matmul %29, %31, %cst_27 {dimension_numbers = #tpu.dot_dimension_numbers<[1], [0], [0], [1], [0, 0, 1, 1], [], []>} : vector<2x64xbf16>, vector<64x512xbf16>, vector<2x512xf32> -> vector<2x512xf32>
    %33 = arith.addf %27, %32 : vector<2x512xf32>
    %c8 = arith.constant 8 : index
    %c0_28 = arith.constant 0 : index
    %34 = vector.load %arg8[%c8, %c0_28] : memref<98x64xf32, #tpu.memory_space<vmem>>, vector<2x64xf32>
    %35 = arith.truncf %34 : vector<2x64xf32> to vector<2x64xbf16>
    %c4_29 = arith.constant 4 : index
    %c0_30 = arith.constant 0 : index
    %c0_31 = arith.constant 0 : index
    %36 = vector.load %arg3[%c4_29, %c0_30, %c0_31] : memref<49x64x512xbf16, #tpu.memory_space<vmem>>, vector<1x64x512xbf16>
    %37 = vector.shape_cast %36 : vector<1x64x512xbf16> to vector<64x512xbf16>
    %cst_32 = arith.constant dense<0.000000e+00> : vector<2x512xf32>
    %38 = tpu.matmul %35, %37, %cst_32 {dimension_numbers = #tpu.dot_dimension_numbers<[1], [0], [0], [1], [0, 0, 1, 1], [], []>} : vector<2x64xbf16>, vector<64x512xbf16>, vector<2x512xf32> -> vector<2x512xf32>
    %39 = arith.addf %33, %38 : vector<2x512xf32>
    %c10 = arith.constant 10 : index
    %c0_33 = arith.constant 0 : index
    %40 = vector.load %arg8[%c10, %c0_33] : memref<98x64xf32, #tpu.memory_space<vmem>>, vector<2x64xf32>
    %41 = arith.truncf %40 : vector<2x64xf32> to vector<2x64xbf16>
    %c5 = arith.constant 5 : index
    %c0_34 = arith.constant 0 : index
    %c0_35 = arith.constant 0 : index
    %42 = vector.load %arg3[%c5, %c0_34, %c0_35] : memref<49x64x512xbf16, #tpu.memory_space<vmem>>, vector<1x64x512xbf16>
    %43 = vector.shape_cast %42 : vector<1x64x512xbf16> to vector<64x512xbf16>
    %cst_36 = arith.constant dense<0.000000e+00> : vector<2x512xf32>
    %44 = tpu.matmul %41, %43, %cst_36 {dimension_numbers = #tpu.dot_dimension_numbers<[1], [0], [0], [1], [0, 0, 1, 1], [], []>} : vector<2x64xbf16>, vector<64x512xbf16>, vector<2x512xf32> -> vector<2x512xf32>
    %45 = arith.addf %39, %44 : vector<2x512xf32>
    %c12 = arith.constant 12 : index
    %c0_37 = arith.constant 0 : index
    %46 = vector.load %arg8[%c12, %c0_37] : memref<98x64xf32, #tpu.memory_space<vmem>>, vector<2x64xf32>
    %47 = arith.truncf %46 : vector<2x64xf32> to vector<2x64xbf16>
    %c6_38 = arith.constant 6 : index
    %c0_39 = arith.constant 0 : index
    %c0_40 = arith.constant 0 : index
    %48 = vector.load %arg3[%c6_38, %c0_39, %c0_40] : memref<49x64x512xbf16, #tpu.memory_space<vmem>>, vector<1x64x512xbf16>
    %49 = vector.shape_cast %48 : vector<1x64x512xbf16> to vector<64x512xbf16>
    %cst_41 = arith.constant dense<0.000000e+00> : vector<2x512xf32>
    %50 = tpu.matmul %47, %49, %cst_41 {dimension_numbers = #tpu.dot_dimension_numbers<[1], [0], [0], [1], [0, 0, 1, 1], [], []>} : vector<2x64xbf16>, vector<64x512xbf16>, vector<2x512xf32> -> vector<2x512xf32>
    %51 = arith.addf %45, %50 : vector<2x512xf32>
    %c14 = arith.constant 14 : index
    %c0_42 = arith.constant 0 : index
    %52 = vector.load %arg8[%c14, %c0_42] : memref<98x64xf32, #tpu.memory_space<vmem>>, vector<2x64xf32>
    %53 = arith.truncf %52 : vector<2x64xf32> to vector<2x64xbf16>
    %c7 = arith.constant 7 : index
    %c0_43 = arith.constant 0 : index
    %c0_44 = arith.constant 0 : index
    %54 = vector.load %arg3[%c7, %c0_43, %c0_44] : memref<49x64x512xbf16, #tpu.memory_space<vmem>>, vector<1x64x512xbf16>
    %55 = vector.shape_cast %54 : vector<1x64x512xbf16> to vector<64x512xbf16>
    %cst_45 = arith.constant dense<0.000000e+00> : vector<2x512xf32>
    %56 = tpu.matmul %53, %55, %cst_45 {dimension_numbers = #tpu.dot_dimension_numbers<[1], [0], [0], [1], [0, 0, 1, 1], [], []>} : vector<2x64xbf16>, vector<64x512xbf16>, vector<2x512xf32> -> vector<2x512xf32>
    %57 = arith.addf %51, %56 : vector<2x512xf32>
    %c16 = arith.constant 16 : index
    %c0_46 = arith.constant 0 : index
    %58 = vector.load %arg8[%c16, %c0_46] : memref<98x64xf32, #tpu.memory_space<vmem>>, vector<2x64xf32>
    %59 = arith.truncf %58 : vector<2x64xf32> to vector<2x64xbf16>
    %c8_47 = arith.constant 8 : index
    %c0_48 = arith.constant 0 : index
    %c0_49 = arith.constant 0 : index
    %60 = vector.load %arg3[%c8_47, %c0_48, %c0_49] : memref<49x64x512xbf16, #tpu.memory_space<vmem>>, vector<1x64x512xbf16>
    %61 = vector.shape_cast %60 : vector<1x64x512xbf16> to vector<64x512xbf16>
    %cst_50 = arith.constant dense<0.000000e+00> : vector<2x512xf32>
    %62 = tpu.matmul %59, %61, %cst_50 {dimension_numbers = #tpu.dot_dimension_numbers<[1], [0], [0], [1], [0, 0, 1, 1], [], []>} : vector<2x64xbf16>, vector<64x512xbf16>, vector<2x512xf32> -> vector<2x512xf32>
    %63 = arith.addf %57, %62 : vector<2x512xf32>
    %c18 = arith.constant 18 : index
    %c0_51 = arith.constant 0 : index
    %64 = vector.load %arg8[%c18, %c0_51] : memref<98x64xf32, #tpu.memory_space<vmem>>, vector<2x64xf32>
    %65 = arith.truncf %64 : vector<2x64xf32> to vector<2x64xbf16>
    %c9 = arith.constant 9 : index
    %c0_52 = arith.constant 0 : index
    %c0_53 = arith.constant 0 : index
    %66 = vector.load %arg3[%c9, %c0_52, %c0_53] : memref<49x64x512xbf16, #tpu.memory_space<vmem>>, vector<1x64x512xbf16>
    %67 = vector.shape_cast %66 : vector<1x64x512xbf16> to vector<64x512xbf16>
    %cst_54 = arith.constant dense<0.000000e+00> : vector<2x512xf32>
    %68 = tpu.matmul %65, %67, %cst_54 {dimension_numbers = #tpu.dot_dimension_numbers<[1], [0], [0], [1], [0, 0, 1, 1], [], []>} : vector<2x64xbf16>, vector<64x512xbf16>, vector<2x512xf32> -> vector<2x512xf32>
    %69 = arith.addf %63, %68 : vector<2x512xf32>
    %c20 = arith.constant 20 : index
    %c0_55 = arith.constant 0 : index
    %70 = vector.load %arg8[%c20, %c0_55] : memref<98x64xf32, #tpu.memory_space<vmem>>, vector<2x64xf32>
    %71 = arith.truncf %70 : vector<2x64xf32> to vector<2x64xbf16>
    %c10_56 = arith.constant 10 : index
    %c0_57 = arith.constant 0 : index
    %c0_58 = arith.constant 0 : index
    %72 = vector.load %arg3[%c10_56, %c0_57, %c0_58] : memref<49x64x512xbf16, #tpu.memory_space<vmem>>, vector<1x64x512xbf16>
    %73 = vector.shape_cast %72 : vector<1x64x512xbf16> to vector<64x512xbf16>
    %cst_59 = arith.constant dense<0.000000e+00> : vector<2x512xf32>
    %74 = tpu.matmul %71, %73, %cst_59 {dimension_numbers = #tpu.dot_dimension_numbers<[1], [0], [0], [1], [0, 0, 1, 1], [], []>} : vector<2x64xbf16>, vector<64x512xbf16>, vector<2x512xf32> -> vector<2x512xf32>
    %75 = arith.addf %69, %74 : vector<2x512xf32>
    %c22 = arith.constant 22 : index
    %c0_60 = arith.constant 0 : index
    %76 = vector.load %arg8[%c22, %c0_60] : memref<98x64xf32, #tpu.memory_space<vmem>>, vector<2x64xf32>
    %77 = arith.truncf %76 : vector<2x64xf32> to vector<2x64xbf16>
    %c11 = arith.constant 11 : index
    %c0_61 = arith.constant 0 : index
    %c0_62 = arith.constant 0 : index
    %78 = vector.load %arg3[%c11, %c0_61, %c0_62] : memref<49x64x512xbf16, #tpu.memory_space<vmem>>, vector<1x64x512xbf16>
    %79 = vector.shape_cast %78 : vector<1x64x512xbf16> to vector<64x512xbf16>
    %cst_63 = arith.constant dense<0.000000e+00> : vector<2x512xf32>
    %80 = tpu.matmul %77, %79, %cst_63 {dimension_numbers = #tpu.dot_dimension_numbers<[1], [0], [0], [1], [0, 0, 1, 1], [], []>} : vector<2x64xbf16>, vector<64x512xbf16>, vector<2x512xf32> -> vector<2x512xf32>
    %81 = arith.addf %75, %80 : vector<2x512xf32>
    %c24 = arith.constant 24 : index
    %c0_64 = arith.constant 0 : index
    %82 = vector.load %arg8[%c24, %c0_64] : memref<98x64xf32, #tpu.memory_space<vmem>>, vector<2x64xf32>
    %83 = arith.truncf %82 : vector<2x64xf32> to vector<2x64xbf16>
    %c12_65 = arith.constant 12 : index
    %c0_66 = arith.constant 0 : index
    %c0_67 = arith.constant 0 : index
    %84 = vector.load %arg3[%c12_65, %c0_66, %c0_67] : memref<49x64x512xbf16, #tpu.memory_space<vmem>>, vector<1x64x512xbf16>
    %85 = vector.shape_cast %84 : vector<1x64x512xbf16> to vector<64x512xbf16>
    %cst_68 = arith.constant dense<0.000000e+00> : vector<2x512xf32>
    %86 = tpu.matmul %83, %85, %cst_68 {dimension_numbers = #tpu.dot_dimension_numbers<[1], [0], [0], [1], [0, 0, 1, 1], [], []>} : vector<2x64xbf16>, vector<64x512xbf16>, vector<2x512xf32> -> vector<2x512xf32>
    %87 = arith.addf %81, %86 : vector<2x512xf32>
    %c26 = arith.constant 26 : index
    %c0_69 = arith.constant 0 : index
    %88 = vector.load %arg8[%c26, %c0_69] : memref<98x64xf32, #tpu.memory_space<vmem>>, vector<2x64xf32>
    %89 = arith.truncf %88 : vector<2x64xf32> to vector<2x64xbf16>
    %c13 = arith.constant 13 : index
    %c0_70 = arith.constant 0 : index
    %c0_71 = arith.constant 0 : index
    %90 = vector.load %arg3[%c13, %c0_70, %c0_71] : memref<49x64x512xbf16, #tpu.memory_space<vmem>>, vector<1x64x512xbf16>
    %91 = vector.shape_cast %90 : vector<1x64x512xbf16> to vector<64x512xbf16>
    %cst_72 = arith.constant dense<0.000000e+00> : vector<2x512xf32>
    %92 = tpu.matmul %89, %91, %cst_72 {dimension_numbers = #tpu.dot_dimension_numbers<[1], [0], [0], [1], [0, 0, 1, 1], [], []>} : vector<2x64xbf16>, vector<64x512xbf16>, vector<2x512xf32> -> vector<2x512xf32>
    %93 = arith.addf %87, %92 : vector<2x512xf32>
    %c28 = arith.constant 28 : index
    %c0_73 = arith.constant 0 : index
    %94 = vector.load %arg8[%c28, %c0_73] : memref<98x64xf32, #tpu.memory_space<vmem>>, vector<2x64xf32>
    %95 = arith.truncf %94 : vector<2x64xf32> to vector<2x64xbf16>
    %c14_74 = arith.constant 14 : index
    %c0_75 = arith.constant 0 : index
    %c0_76 = arith.constant 0 : index
    %96 = vector.load %arg3[%c14_74, %c0_75, %c0_76] : memref<49x64x512xbf16, #tpu.memory_space<vmem>>, vector<1x64x512xbf16>
    %97 = vector.shape_cast %96 : vector<1x64x512xbf16> to vector<64x512xbf16>
    %cst_77 = arith.constant dense<0.000000e+00> : vector<2x512xf32>
    %98 = tpu.matmul %95, %97, %cst_77 {dimension_numbers = #tpu.dot_dimension_numbers<[1], [0], [0], [1], [0, 0, 1, 1], [], []>} : vector<2x64xbf16>, vector<64x512xbf16>, vector<2x512xf32> -> vector<2x512xf32>
    %99 = arith.addf %93, %98 : vector<2x512xf32>
    %c30 = arith.constant 30 : index
    %c0_78 = arith.constant 0 : index
    %100 = vector.load %arg8[%c30, %c0_78] : memref<98x64xf32, #tpu.memory_space<vmem>>, vector<2x64xf32>
    %101 = arith.truncf %100 : vector<2x64xf32> to vector<2x64xbf16>
    %c15 = arith.constant 15 : index
    %c0_79 = arith.constant 0 : index
    %c0_80 = arith.constant 0 : index
    %102 = vector.load %arg3[%c15, %c0_79, %c0_80] : memref<49x64x512xbf16, #tpu.memory_space<vmem>>, vector<1x64x512xbf16>
    %103 = vector.shape_cast %102 : vector<1x64x512xbf16> to vector<64x512xbf16>
    %cst_81 = arith.constant dense<0.000000e+00> : vector<2x512xf32>
    %104 = tpu.matmul %101, %103, %cst_81 {dimension_numbers = #tpu.dot_dimension_numbers<[1], [0], [0], [1], [0, 0, 1, 1], [], []>} : vector<2x64xbf16>, vector<64x512xbf16>, vector<2x512xf32> -> vector<2x512xf32>
    %105 = arith.addf %99, %104 : vector<2x512xf32>
    %c32 = arith.constant 32 : index
    %c0_82 = arith.constant 0 : index
    %106 = vector.load %arg8[%c32, %c0_82] : memref<98x64xf32, #tpu.memory_space<vmem>>, vector<2x64xf32>
    %107 = arith.truncf %106 : vector<2x64xf32> to vector<2x64xbf16>
    %c16_83 = arith.constant 16 : index
    %c0_84 = arith.constant 0 : index
    %c0_85 = arith.constant 0 : index
    %108 = vector.load %arg3[%c16_83, %c0_84, %c0_85] : memref<49x64x512xbf16, #tpu.memory_space<vmem>>, vector<1x64x512xbf16>
    %109 = vector.shape_cast %108 : vector<1x64x512xbf16> to vector<64x512xbf16>
    %cst_86 = arith.constant dense<0.000000e+00> : vector<2x512xf32>
    %110 = tpu.matmul %107, %109, %cst_86 {dimension_numbers = #tpu.dot_dimension_numbers<[1], [0], [0], [1], [0, 0, 1, 1], [], []>} : vector<2x64xbf16>, vector<64x512xbf16>, vector<2x512xf32> -> vector<2x512xf32>
    %111 = arith.addf %105, %110 : vector<2x512xf32>
    %c34 = arith.constant 34 : index
    %c0_87 = arith.constant 0 : index
    %112 = vector.load %arg8[%c34, %c0_87] : memref<98x64xf32, #tpu.memory_space<vmem>>, vector<2x64xf32>
    %113 = arith.truncf %112 : vector<2x64xf32> to vector<2x64xbf16>
    %c17 = arith.constant 17 : index
    %c0_88 = arith.constant 0 : index
    %c0_89 = arith.constant 0 : index
    %114 = vector.load %arg3[%c17, %c0_88, %c0_89] : memref<49x64x512xbf16, #tpu.memory_space<vmem>>, vector<1x64x512xbf16>
    %115 = vector.shape_cast %114 : vector<1x64x512xbf16> to vector<64x512xbf16>
    %cst_90 = arith.constant dense<0.000000e+00> : vector<2x512xf32>
    %116 = tpu.matmul %113, %115, %cst_90 {dimension_numbers = #tpu.dot_dimension_numbers<[1], [0], [0], [1], [0, 0, 1, 1], [], []>} : vector<2x64xbf16>, vector<64x512xbf16>, vector<2x512xf32> -> vector<2x512xf32>
    %117 = arith.addf %111, %116 : vector<2x512xf32>
    %c36 = arith.constant 36 : index
    %c0_91 = arith.constant 0 : index
    %118 = vector.load %arg8[%c36, %c0_91] : memref<98x64xf32, #tpu.memory_space<vmem>>, vector<2x64xf32>
    %119 = arith.truncf %118 : vector<2x64xf32> to vector<2x64xbf16>
    %c18_92 = arith.constant 18 : index
    %c0_93 = arith.constant 0 : index
    %c0_94 = arith.constant 0 : index
    %120 = vector.load %arg3[%c18_92, %c0_93, %c0_94] : memref<49x64x512xbf16, #tpu.memory_space<vmem>>, vector<1x64x512xbf16>
    %121 = vector.shape_cast %120 : vector<1x64x512xbf16> to vector<64x512xbf16>
    %cst_95 = arith.constant dense<0.000000e+00> : vector<2x512xf32>
    %122 = tpu.matmul %119, %121, %cst_95 {dimension_numbers = #tpu.dot_dimension_numbers<[1], [0], [0], [1], [0, 0, 1, 1], [], []>} : vector<2x64xbf16>, vector<64x512xbf16>, vector<2x512xf32> -> vector<2x512xf32>
    %123 = arith.addf %117, %122 : vector<2x512xf32>
    %c38 = arith.constant 38 : index
    %c0_96 = arith.constant 0 : index
    %124 = vector.load %arg8[%c38, %c0_96] : memref<98x64xf32, #tpu.memory_space<vmem>>, vector<2x64xf32>
    %125 = arith.truncf %124 : vector<2x64xf32> to vector<2x64xbf16>
    %c19 = arith.constant 19 : index
    %c0_97 = arith.constant 0 : index
    %c0_98 = arith.constant 0 : index
    %126 = vector.load %arg3[%c19, %c0_97, %c0_98] : memref<49x64x512xbf16, #tpu.memory_space<vmem>>, vector<1x64x512xbf16>
    %127 = vector.shape_cast %126 : vector<1x64x512xbf16> to vector<64x512xbf16>
    %cst_99 = arith.constant dense<0.000000e+00> : vector<2x512xf32>
    %128 = tpu.matmul %125, %127, %cst_99 {dimension_numbers = #tpu.dot_dimension_numbers<[1], [0], [0], [1], [0, 0, 1, 1], [], []>} : vector<2x64xbf16>, vector<64x512xbf16>, vector<2x512xf32> -> vector<2x512xf32>
    %129 = arith.addf %123, %128 : vector<2x512xf32>
    %c40 = arith.constant 40 : index
    %c0_100 = arith.constant 0 : index
    %130 = vector.load %arg8[%c40, %c0_100] : memref<98x64xf32, #tpu.memory_space<vmem>>, vector<2x64xf32>
    %131 = arith.truncf %130 : vector<2x64xf32> to vector<2x64xbf16>
    %c20_101 = arith.constant 20 : index
    %c0_102 = arith.constant 0 : index
    %c0_103 = arith.constant 0 : index
    %132 = vector.load %arg3[%c20_101, %c0_102, %c0_103] : memref<49x64x512xbf16, #tpu.memory_space<vmem>>, vector<1x64x512xbf16>
    %133 = vector.shape_cast %132 : vector<1x64x512xbf16> to vector<64x512xbf16>
    %cst_104 = arith.constant dense<0.000000e+00> : vector<2x512xf32>
    %134 = tpu.matmul %131, %133, %cst_104 {dimension_numbers = #tpu.dot_dimension_numbers<[1], [0], [0], [1], [0, 0, 1, 1], [], []>} : vector<2x64xbf16>, vector<64x512xbf16>, vector<2x512xf32> -> vector<2x512xf32>
    %135 = arith.addf %129, %134 : vector<2x512xf32>
    %c42 = arith.constant 42 : index
    %c0_105 = arith.constant 0 : index
    %136 = vector.load %arg8[%c42, %c0_105] : memref<98x64xf32, #tpu.memory_space<vmem>>, vector<2x64xf32>
    %137 = arith.truncf %136 : vector<2x64xf32> to vector<2x64xbf16>
    %c21 = arith.constant 21 : index
    %c0_106 = arith.constant 0 : index
    %c0_107 = arith.constant 0 : index
    %138 = vector.load %arg3[%c21, %c0_106, %c0_107] : memref<49x64x512xbf16, #tpu.memory_space<vmem>>, vector<1x64x512xbf16>
    %139 = vector.shape_cast %138 : vector<1x64x512xbf16> to vector<64x512xbf16>
    %cst_108 = arith.constant dense<0.000000e+00> : vector<2x512xf32>
    %140 = tpu.matmul %137, %139, %cst_108 {dimension_numbers = #tpu.dot_dimension_numbers<[1], [0], [0], [1], [0, 0, 1, 1], [], []>} : vector<2x64xbf16>, vector<64x512xbf16>, vector<2x512xf32> -> vector<2x512xf32>
    %141 = arith.addf %135, %140 : vector<2x512xf32>
    %c44 = arith.constant 44 : index
    %c0_109 = arith.constant 0 : index
    %142 = vector.load %arg8[%c44, %c0_109] : memref<98x64xf32, #tpu.memory_space<vmem>>, vector<2x64xf32>
    %143 = arith.truncf %142 : vector<2x64xf32> to vector<2x64xbf16>
    %c22_110 = arith.constant 22 : index
    %c0_111 = arith.constant 0 : index
    %c0_112 = arith.constant 0 : index
    %144 = vector.load %arg3[%c22_110, %c0_111, %c0_112] : memref<49x64x512xbf16, #tpu.memory_space<vmem>>, vector<1x64x512xbf16>
    %145 = vector.shape_cast %144 : vector<1x64x512xbf16> to vector<64x512xbf16>
    %cst_113 = arith.constant dense<0.000000e+00> : vector<2x512xf32>
    %146 = tpu.matmul %143, %145, %cst_113 {dimension_numbers = #tpu.dot_dimension_numbers<[1], [0], [0], [1], [0, 0, 1, 1], [], []>} : vector<2x64xbf16>, vector<64x512xbf16>, vector<2x512xf32> -> vector<2x512xf32>
    %147 = arith.addf %141, %146 : vector<2x512xf32>
    %c46 = arith.constant 46 : index
    %c0_114 = arith.constant 0 : index
    %148 = vector.load %arg8[%c46, %c0_114] : memref<98x64xf32, #tpu.memory_space<vmem>>, vector<2x64xf32>
    %149 = arith.truncf %148 : vector<2x64xf32> to vector<2x64xbf16>
    %c23 = arith.constant 23 : index
    %c0_115 = arith.constant 0 : index
    %c0_116 = arith.constant 0 : index
    %150 = vector.load %arg3[%c23, %c0_115, %c0_116] : memref<49x64x512xbf16, #tpu.memory_space<vmem>>, vector<1x64x512xbf16>
    %151 = vector.shape_cast %150 : vector<1x64x512xbf16> to vector<64x512xbf16>
    %cst_117 = arith.constant dense<0.000000e+00> : vector<2x512xf32>
    %152 = tpu.matmul %149, %151, %cst_117 {dimension_numbers = #tpu.dot_dimension_numbers<[1], [0], [0], [1], [0, 0, 1, 1], [], []>} : vector<2x64xbf16>, vector<64x512xbf16>, vector<2x512xf32> -> vector<2x512xf32>
    %153 = arith.addf %147, %152 : vector<2x512xf32>
    %c48 = arith.constant 48 : index
    %c0_118 = arith.constant 0 : index
    %154 = vector.load %arg8[%c48, %c0_118] : memref<98x64xf32, #tpu.memory_space<vmem>>, vector<2x64xf32>
    %155 = arith.truncf %154 : vector<2x64xf32> to vector<2x64xbf16>
    %c24_119 = arith.constant 24 : index
    %c0_120 = arith.constant 0 : index
    %c0_121 = arith.constant 0 : index
    %156 = vector.load %arg3[%c24_119, %c0_120, %c0_121] : memref<49x64x512xbf16, #tpu.memory_space<vmem>>, vector<1x64x512xbf16>
    %157 = vector.shape_cast %156 : vector<1x64x512xbf16> to vector<64x512xbf16>
    %cst_122 = arith.constant dense<0.000000e+00> : vector<2x512xf32>
    %158 = tpu.matmul %155, %157, %cst_122 {dimension_numbers = #tpu.dot_dimension_numbers<[1], [0], [0], [1], [0, 0, 1, 1], [], []>} : vector<2x64xbf16>, vector<64x512xbf16>, vector<2x512xf32> -> vector<2x512xf32>
    %159 = arith.addf %153, %158 : vector<2x512xf32>
    %c50 = arith.constant 50 : index
    %c0_123 = arith.constant 0 : index
    %160 = vector.load %arg8[%c50, %c0_123] : memref<98x64xf32, #tpu.memory_space<vmem>>, vector<2x64xf32>
    %161 = arith.truncf %160 : vector<2x64xf32> to vector<2x64xbf16>
    %c25 = arith.constant 25 : index
    %c0_124 = arith.constant 0 : index
    %c0_125 = arith.constant 0 : index
    %162 = vector.load %arg3[%c25, %c0_124, %c0_125] : memref<49x64x512xbf16, #tpu.memory_space<vmem>>, vector<1x64x512xbf16>
    %163 = vector.shape_cast %162 : vector<1x64x512xbf16> to vector<64x512xbf16>
    %cst_126 = arith.constant dense<0.000000e+00> : vector<2x512xf32>
    %164 = tpu.matmul %161, %163, %cst_126 {dimension_numbers = #tpu.dot_dimension_numbers<[1], [0], [0], [1], [0, 0, 1, 1], [], []>} : vector<2x64xbf16>, vector<64x512xbf16>, vector<2x512xf32> -> vector<2x512xf32>
    %165 = arith.addf %159, %164 : vector<2x512xf32>
    %c52 = arith.constant 52 : index
    %c0_127 = arith.constant 0 : index
    %166 = vector.load %arg8[%c52, %c0_127] : memref<98x64xf32, #tpu.memory_space<vmem>>, vector<2x64xf32>
    %167 = arith.truncf %166 : vector<2x64xf32> to vector<2x64xbf16>
    %c26_128 = arith.constant 26 : index
    %c0_129 = arith.constant 0 : index
    %c0_130 = arith.constant 0 : index
    %168 = vector.load %arg3[%c26_128, %c0_129, %c0_130] : memref<49x64x512xbf16, #tpu.memory_space<vmem>>, vector<1x64x512xbf16>
    %169 = vector.shape_cast %168 : vector<1x64x512xbf16> to vector<64x512xbf16>
    %cst_131 = arith.constant dense<0.000000e+00> : vector<2x512xf32>
    %170 = tpu.matmul %167, %169, %cst_131 {dimension_numbers = #tpu.dot_dimension_numbers<[1], [0], [0], [1], [0, 0, 1, 1], [], []>} : vector<2x64xbf16>, vector<64x512xbf16>, vector<2x512xf32> -> vector<2x512xf32>
    %171 = arith.addf %165, %170 : vector<2x512xf32>
    %c54 = arith.constant 54 : index
    %c0_132 = arith.constant 0 : index
    %172 = vector.load %arg8[%c54, %c0_132] : memref<98x64xf32, #tpu.memory_space<vmem>>, vector<2x64xf32>
    %173 = arith.truncf %172 : vector<2x64xf32> to vector<2x64xbf16>
    %c27 = arith.constant 27 : index
    %c0_133 = arith.constant 0 : index
    %c0_134 = arith.constant 0 : index
    %174 = vector.load %arg3[%c27, %c0_133, %c0_134] : memref<49x64x512xbf16, #tpu.memory_space<vmem>>, vector<1x64x512xbf16>
    %175 = vector.shape_cast %174 : vector<1x64x512xbf16> to vector<64x512xbf16>
    %cst_135 = arith.constant dense<0.000000e+00> : vector<2x512xf32>
    %176 = tpu.matmul %173, %175, %cst_135 {dimension_numbers = #tpu.dot_dimension_numbers<[1], [0], [0], [1], [0, 0, 1, 1], [], []>} : vector<2x64xbf16>, vector<64x512xbf16>, vector<2x512xf32> -> vector<2x512xf32>
    %177 = arith.addf %171, %176 : vector<2x512xf32>
    %c56 = arith.constant 56 : index
    %c0_136 = arith.constant 0 : index
    %178 = vector.load %arg8[%c56, %c0_136] : memref<98x64xf32, #tpu.memory_space<vmem>>, vector<2x64xf32>
    %179 = arith.truncf %178 : vector<2x64xf32> to vector<2x64xbf16>
    %c28_137 = arith.constant 28 : index
    %c0_138 = arith.constant 0 : index
    %c0_139 = arith.constant 0 : index
    %180 = vector.load %arg3[%c28_137, %c0_138, %c0_139] : memref<49x64x512xbf16, #tpu.memory_space<vmem>>, vector<1x64x512xbf16>
    %181 = vector.shape_cast %180 : vector<1x64x512xbf16> to vector<64x512xbf16>
    %cst_140 = arith.constant dense<0.000000e+00> : vector<2x512xf32>
    %182 = tpu.matmul %179, %181, %cst_140 {dimension_numbers = #tpu.dot_dimension_numbers<[1], [0], [0], [1], [0, 0, 1, 1], [], []>} : vector<2x64xbf16>, vector<64x512xbf16>, vector<2x512xf32> -> vector<2x512xf32>
    %183 = arith.addf %177, %182 : vector<2x512xf32>
    %c58 = arith.constant 58 : index
    %c0_141 = arith.constant 0 : index
    %184 = vector.load %arg8[%c58, %c0_141] : memref<98x64xf32, #tpu.memory_space<vmem>>, vector<2x64xf32>
    %185 = arith.truncf %184 : vector<2x64xf32> to vector<2x64xbf16>
    %c29 = arith.constant 29 : index
    %c0_142 = arith.constant 0 : index
    %c0_143 = arith.constant 0 : index
    %186 = vector.load %arg3[%c29, %c0_142, %c0_143] : memref<49x64x512xbf16, #tpu.memory_space<vmem>>, vector<1x64x512xbf16>
    %187 = vector.shape_cast %186 : vector<1x64x512xbf16> to vector<64x512xbf16>
    %cst_144 = arith.constant dense<0.000000e+00> : vector<2x512xf32>
    %188 = tpu.matmul %185, %187, %cst_144 {dimension_numbers = #tpu.dot_dimension_numbers<[1], [0], [0], [1], [0, 0, 1, 1], [], []>} : vector<2x64xbf16>, vector<64x512xbf16>, vector<2x512xf32> -> vector<2x512xf32>
    %189 = arith.addf %183, %188 : vector<2x512xf32>
    %c60 = arith.constant 60 : index
    %c0_145 = arith.constant 0 : index
    %190 = vector.load %arg8[%c60, %c0_145] : memref<98x64xf32, #tpu.memory_space<vmem>>, vector<2x64xf32>
    %191 = arith.truncf %190 : vector<2x64xf32> to vector<2x64xbf16>
    %c30_146 = arith.constant 30 : index
    %c0_147 = arith.constant 0 : index
    %c0_148 = arith.constant 0 : index
    %192 = vector.load %arg3[%c30_146, %c0_147, %c0_148] : memref<49x64x512xbf16, #tpu.memory_space<vmem>>, vector<1x64x512xbf16>
    %193 = vector.shape_cast %192 : vector<1x64x512xbf16> to vector<64x512xbf16>
    %cst_149 = arith.constant dense<0.000000e+00> : vector<2x512xf32>
    %194 = tpu.matmul %191, %193, %cst_149 {dimension_numbers = #tpu.dot_dimension_numbers<[1], [0], [0], [1], [0, 0, 1, 1], [], []>} : vector<2x64xbf16>, vector<64x512xbf16>, vector<2x512xf32> -> vector<2x512xf32>
    %195 = arith.addf %189, %194 : vector<2x512xf32>
    %c62 = arith.constant 62 : index
    %c0_150 = arith.constant 0 : index
    %196 = vector.load %arg8[%c62, %c0_150] : memref<98x64xf32, #tpu.memory_space<vmem>>, vector<2x64xf32>
    %197 = arith.truncf %196 : vector<2x64xf32> to vector<2x64xbf16>
    %c31 = arith.constant 31 : index
    %c0_151 = arith.constant 0 : index
    %c0_152 = arith.constant 0 : index
    %198 = vector.load %arg3[%c31, %c0_151, %c0_152] : memref<49x64x512xbf16, #tpu.memory_space<vmem>>, vector<1x64x512xbf16>
    %199 = vector.shape_cast %198 : vector<1x64x512xbf16> to vector<64x512xbf16>
    %cst_153 = arith.constant dense<0.000000e+00> : vector<2x512xf32>
    %200 = tpu.matmul %197, %199, %cst_153 {dimension_numbers = #tpu.dot_dimension_numbers<[1], [0], [0], [1], [0, 0, 1, 1], [], []>} : vector<2x64xbf16>, vector<64x512xbf16>, vector<2x512xf32> -> vector<2x512xf32>
    %201 = arith.addf %195, %200 : vector<2x512xf32>
    %c64 = arith.constant 64 : index
    %c0_154 = arith.constant 0 : index
    %202 = vector.load %arg8[%c64, %c0_154] : memref<98x64xf32, #tpu.memory_space<vmem>>, vector<2x64xf32>
    %203 = arith.truncf %202 : vector<2x64xf32> to vector<2x64xbf16>
    %c32_155 = arith.constant 32 : index
    %c0_156 = arith.constant 0 : index
    %c0_157 = arith.constant 0 : index
    %204 = vector.load %arg3[%c32_155, %c0_156, %c0_157] : memref<49x64x512xbf16, #tpu.memory_space<vmem>>, vector<1x64x512xbf16>
    %205 = vector.shape_cast %204 : vector<1x64x512xbf16> to vector<64x512xbf16>
    %cst_158 = arith.constant dense<0.000000e+00> : vector<2x512xf32>
    %206 = tpu.matmul %203, %205, %cst_158 {dimension_numbers = #tpu.dot_dimension_numbers<[1], [0], [0], [1], [0, 0, 1, 1], [], []>} : vector<2x64xbf16>, vector<64x512xbf16>, vector<2x512xf32> -> vector<2x512xf32>
    %207 = arith.addf %201, %206 : vector<2x512xf32>
    %c66 = arith.constant 66 : index
    %c0_159 = arith.constant 0 : index
    %208 = vector.load %arg8[%c66, %c0_159] : memref<98x64xf32, #tpu.memory_space<vmem>>, vector<2x64xf32>
    %209 = arith.truncf %208 : vector<2x64xf32> to vector<2x64xbf16>
    %c33 = arith.constant 33 : index
    %c0_160 = arith.constant 0 : index
    %c0_161 = arith.constant 0 : index
    %210 = vector.load %arg3[%c33, %c0_160, %c0_161] : memref<49x64x512xbf16, #tpu.memory_space<vmem>>, vector<1x64x512xbf16>
    %211 = vector.shape_cast %210 : vector<1x64x512xbf16> to vector<64x512xbf16>
    %cst_162 = arith.constant dense<0.000000e+00> : vector<2x512xf32>
    %212 = tpu.matmul %209, %211, %cst_162 {dimension_numbers = #tpu.dot_dimension_numbers<[1], [0], [0], [1], [0, 0, 1, 1], [], []>} : vector<2x64xbf16>, vector<64x512xbf16>, vector<2x512xf32> -> vector<2x512xf32>
    %213 = arith.addf %207, %212 : vector<2x512xf32>
    %c68 = arith.constant 68 : index
    %c0_163 = arith.constant 0 : index
    %214 = vector.load %arg8[%c68, %c0_163] : memref<98x64xf32, #tpu.memory_space<vmem>>, vector<2x64xf32>
    %215 = arith.truncf %214 : vector<2x64xf32> to vector<2x64xbf16>
    %c34_164 = arith.constant 34 : index
    %c0_165 = arith.constant 0 : index
    %c0_166 = arith.constant 0 : index
    %216 = vector.load %arg3[%c34_164, %c0_165, %c0_166] : memref<49x64x512xbf16, #tpu.memory_space<vmem>>, vector<1x64x512xbf16>
    %217 = vector.shape_cast %216 : vector<1x64x512xbf16> to vector<64x512xbf16>
    %cst_167 = arith.constant dense<0.000000e+00> : vector<2x512xf32>
    %218 = tpu.matmul %215, %217, %cst_167 {dimension_numbers = #tpu.dot_dimension_numbers<[1], [0], [0], [1], [0, 0, 1, 1], [], []>} : vector<2x64xbf16>, vector<64x512xbf16>, vector<2x512xf32> -> vector<2x512xf32>
    %219 = arith.addf %213, %218 : vector<2x512xf32>
    %c70 = arith.constant 70 : index
    %c0_168 = arith.constant 0 : index
    %220 = vector.load %arg8[%c70, %c0_168] : memref<98x64xf32, #tpu.memory_space<vmem>>, vector<2x64xf32>
    %221 = arith.truncf %220 : vector<2x64xf32> to vector<2x64xbf16>
    %c35 = arith.constant 35 : index
    %c0_169 = arith.constant 0 : index
    %c0_170 = arith.constant 0 : index
    %222 = vector.load %arg3[%c35, %c0_169, %c0_170] : memref<49x64x512xbf16, #tpu.memory_space<vmem>>, vector<1x64x512xbf16>
    %223 = vector.shape_cast %222 : vector<1x64x512xbf16> to vector<64x512xbf16>
    %cst_171 = arith.constant dense<0.000000e+00> : vector<2x512xf32>
    %224 = tpu.matmul %221, %223, %cst_171 {dimension_numbers = #tpu.dot_dimension_numbers<[1], [0], [0], [1], [0, 0, 1, 1], [], []>} : vector<2x64xbf16>, vector<64x512xbf16>, vector<2x512xf32> -> vector<2x512xf32>
    %225 = arith.addf %219, %224 : vector<2x512xf32>
    %c72 = arith.constant 72 : index
    %c0_172 = arith.constant 0 : index
    %226 = vector.load %arg8[%c72, %c0_172] : memref<98x64xf32, #tpu.memory_space<vmem>>, vector<2x64xf32>
    %227 = arith.truncf %226 : vector<2x64xf32> to vector<2x64xbf16>
    %c36_173 = arith.constant 36 : index
    %c0_174 = arith.constant 0 : index
    %c0_175 = arith.constant 0 : index
    %228 = vector.load %arg3[%c36_173, %c0_174, %c0_175] : memref<49x64x512xbf16, #tpu.memory_space<vmem>>, vector<1x64x512xbf16>
    %229 = vector.shape_cast %228 : vector<1x64x512xbf16> to vector<64x512xbf16>
    %cst_176 = arith.constant dense<0.000000e+00> : vector<2x512xf32>
    %230 = tpu.matmul %227, %229, %cst_176 {dimension_numbers = #tpu.dot_dimension_numbers<[1], [0], [0], [1], [0, 0, 1, 1], [], []>} : vector<2x64xbf16>, vector<64x512xbf16>, vector<2x512xf32> -> vector<2x512xf32>
    %231 = arith.addf %225, %230 : vector<2x512xf32>
    %c74 = arith.constant 74 : index
    %c0_177 = arith.constant 0 : index
    %232 = vector.load %arg8[%c74, %c0_177] : memref<98x64xf32, #tpu.memory_space<vmem>>, vector<2x64xf32>
    %233 = arith.truncf %232 : vector<2x64xf32> to vector<2x64xbf16>
    %c37 = arith.constant 37 : index
    %c0_178 = arith.constant 0 : index
    %c0_179 = arith.constant 0 : index
    %234 = vector.load %arg3[%c37, %c0_178, %c0_179] : memref<49x64x512xbf16, #tpu.memory_space<vmem>>, vector<1x64x512xbf16>
    %235 = vector.shape_cast %234 : vector<1x64x512xbf16> to vector<64x512xbf16>
    %cst_180 = arith.constant dense<0.000000e+00> : vector<2x512xf32>
    %236 = tpu.matmul %233, %235, %cst_180 {dimension_numbers = #tpu.dot_dimension_numbers<[1], [0], [0], [1], [0, 0, 1, 1], [], []>} : vector<2x64xbf16>, vector<64x512xbf16>, vector<2x512xf32> -> vector<2x512xf32>
    %237 = arith.addf %231, %236 : vector<2x512xf32>
    %c76 = arith.constant 76 : index
    %c0_181 = arith.constant 0 : index
    %238 = vector.load %arg8[%c76, %c0_181] : memref<98x64xf32, #tpu.memory_space<vmem>>, vector<2x64xf32>
    %239 = arith.truncf %238 : vector<2x64xf32> to vector<2x64xbf16>
    %c38_182 = arith.constant 38 : index
    %c0_183 = arith.constant 0 : index
    %c0_184 = arith.constant 0 : index
    %240 = vector.load %arg3[%c38_182, %c0_183, %c0_184] : memref<49x64x512xbf16, #tpu.memory_space<vmem>>, vector<1x64x512xbf16>
    %241 = vector.shape_cast %240 : vector<1x64x512xbf16> to vector<64x512xbf16>
    %cst_185 = arith.constant dense<0.000000e+00> : vector<2x512xf32>
    %242 = tpu.matmul %239, %241, %cst_185 {dimension_numbers = #tpu.dot_dimension_numbers<[1], [0], [0], [1], [0, 0, 1, 1], [], []>} : vector<2x64xbf16>, vector<64x512xbf16>, vector<2x512xf32> -> vector<2x512xf32>
    %243 = arith.addf %237, %242 : vector<2x512xf32>
    %c78 = arith.constant 78 : index
    %c0_186 = arith.constant 0 : index
    %244 = vector.load %arg8[%c78, %c0_186] : memref<98x64xf32, #tpu.memory_space<vmem>>, vector<2x64xf32>
    %245 = arith.truncf %244 : vector<2x64xf32> to vector<2x64xbf16>
    %c39 = arith.constant 39 : index
    %c0_187 = arith.constant 0 : index
    %c0_188 = arith.constant 0 : index
    %246 = vector.load %arg3[%c39, %c0_187, %c0_188] : memref<49x64x512xbf16, #tpu.memory_space<vmem>>, vector<1x64x512xbf16>
    %247 = vector.shape_cast %246 : vector<1x64x512xbf16> to vector<64x512xbf16>
    %cst_189 = arith.constant dense<0.000000e+00> : vector<2x512xf32>
    %248 = tpu.matmul %245, %247, %cst_189 {dimension_numbers = #tpu.dot_dimension_numbers<[1], [0], [0], [1], [0, 0, 1, 1], [], []>} : vector<2x64xbf16>, vector<64x512xbf16>, vector<2x512xf32> -> vector<2x512xf32>
    %249 = arith.addf %243, %248 : vector<2x512xf32>
    %c80 = arith.constant 80 : index
    %c0_190 = arith.constant 0 : index
    %250 = vector.load %arg8[%c80, %c0_190] : memref<98x64xf32, #tpu.memory_space<vmem>>, vector<2x64xf32>
    %251 = arith.truncf %250 : vector<2x64xf32> to vector<2x64xbf16>
    %c40_191 = arith.constant 40 : index
    %c0_192 = arith.constant 0 : index
    %c0_193 = arith.constant 0 : index
    %252 = vector.load %arg3[%c40_191, %c0_192, %c0_193] : memref<49x64x512xbf16, #tpu.memory_space<vmem>>, vector<1x64x512xbf16>
    %253 = vector.shape_cast %252 : vector<1x64x512xbf16> to vector<64x512xbf16>
    %cst_194 = arith.constant dense<0.000000e+00> : vector<2x512xf32>
    %254 = tpu.matmul %251, %253, %cst_194 {dimension_numbers = #tpu.dot_dimension_numbers<[1], [0], [0], [1], [0, 0, 1, 1], [], []>} : vector<2x64xbf16>, vector<64x512xbf16>, vector<2x512xf32> -> vector<2x512xf32>
    %255 = arith.addf %249, %254 : vector<2x512xf32>
    %c82 = arith.constant 82 : index
    %c0_195 = arith.constant 0 : index
    %256 = vector.load %arg8[%c82, %c0_195] : memref<98x64xf32, #tpu.memory_space<vmem>>, vector<2x64xf32>
    %257 = arith.truncf %256 : vector<2x64xf32> to vector<2x64xbf16>
    %c41 = arith.constant 41 : index
    %c0_196 = arith.constant 0 : index
    %c0_197 = arith.constant 0 : index
    %258 = vector.load %arg3[%c41, %c0_196, %c0_197] : memref<49x64x512xbf16, #tpu.memory_space<vmem>>, vector<1x64x512xbf16>
    %259 = vector.shape_cast %258 : vector<1x64x512xbf16> to vector<64x512xbf16>
    %cst_198 = arith.constant dense<0.000000e+00> : vector<2x512xf32>
    %260 = tpu.matmul %257, %259, %cst_198 {dimension_numbers = #tpu.dot_dimension_numbers<[1], [0], [0], [1], [0, 0, 1, 1], [], []>} : vector<2x64xbf16>, vector<64x512xbf16>, vector<2x512xf32> -> vector<2x512xf32>
    %261 = arith.addf %255, %260 : vector<2x512xf32>
    %c84 = arith.constant 84 : index
    %c0_199 = arith.constant 0 : index
    %262 = vector.load %arg8[%c84, %c0_199] : memref<98x64xf32, #tpu.memory_space<vmem>>, vector<2x64xf32>
    %263 = arith.truncf %262 : vector<2x64xf32> to vector<2x64xbf16>
    %c42_200 = arith.constant 42 : index
    %c0_201 = arith.constant 0 : index
    %c0_202 = arith.constant 0 : index
    %264 = vector.load %arg3[%c42_200, %c0_201, %c0_202] : memref<49x64x512xbf16, #tpu.memory_space<vmem>>, vector<1x64x512xbf16>
    %265 = vector.shape_cast %264 : vector<1x64x512xbf16> to vector<64x512xbf16>
    %cst_203 = arith.constant dense<0.000000e+00> : vector<2x512xf32>
    %266 = tpu.matmul %263, %265, %cst_203 {dimension_numbers = #tpu.dot_dimension_numbers<[1], [0], [0], [1], [0, 0, 1, 1], [], []>} : vector<2x64xbf16>, vector<64x512xbf16>, vector<2x512xf32> -> vector<2x512xf32>
    %267 = arith.addf %261, %266 : vector<2x512xf32>
    %c86 = arith.constant 86 : index
    %c0_204 = arith.constant 0 : index
    %268 = vector.load %arg8[%c86, %c0_204] : memref<98x64xf32, #tpu.memory_space<vmem>>, vector<2x64xf32>
    %269 = arith.truncf %268 : vector<2x64xf32> to vector<2x64xbf16>
    %c43 = arith.constant 43 : index
    %c0_205 = arith.constant 0 : index
    %c0_206 = arith.constant 0 : index
    %270 = vector.load %arg3[%c43, %c0_205, %c0_206] : memref<49x64x512xbf16, #tpu.memory_space<vmem>>, vector<1x64x512xbf16>
    %271 = vector.shape_cast %270 : vector<1x64x512xbf16> to vector<64x512xbf16>
    %cst_207 = arith.constant dense<0.000000e+00> : vector<2x512xf32>
    %272 = tpu.matmul %269, %271, %cst_207 {dimension_numbers = #tpu.dot_dimension_numbers<[1], [0], [0], [1], [0, 0, 1, 1], [], []>} : vector<2x64xbf16>, vector<64x512xbf16>, vector<2x512xf32> -> vector<2x512xf32>
    %273 = arith.addf %267, %272 : vector<2x512xf32>
    %c88 = arith.constant 88 : index
    %c0_208 = arith.constant 0 : index
    %274 = vector.load %arg8[%c88, %c0_208] : memref<98x64xf32, #tpu.memory_space<vmem>>, vector<2x64xf32>
    %275 = arith.truncf %274 : vector<2x64xf32> to vector<2x64xbf16>
    %c44_209 = arith.constant 44 : index
    %c0_210 = arith.constant 0 : index
    %c0_211 = arith.constant 0 : index
    %276 = vector.load %arg3[%c44_209, %c0_210, %c0_211] : memref<49x64x512xbf16, #tpu.memory_space<vmem>>, vector<1x64x512xbf16>
    %277 = vector.shape_cast %276 : vector<1x64x512xbf16> to vector<64x512xbf16>
    %cst_212 = arith.constant dense<0.000000e+00> : vector<2x512xf32>
    %278 = tpu.matmul %275, %277, %cst_212 {dimension_numbers = #tpu.dot_dimension_numbers<[1], [0], [0], [1], [0, 0, 1, 1], [], []>} : vector<2x64xbf16>, vector<64x512xbf16>, vector<2x512xf32> -> vector<2x512xf32>
    %279 = arith.addf %273, %278 : vector<2x512xf32>
    %c90 = arith.constant 90 : index
    %c0_213 = arith.constant 0 : index
    %280 = vector.load %arg8[%c90, %c0_213] : memref<98x64xf32, #tpu.memory_space<vmem>>, vector<2x64xf32>
    %281 = arith.truncf %280 : vector<2x64xf32> to vector<2x64xbf16>
    %c45 = arith.constant 45 : index
    %c0_214 = arith.constant 0 : index
    %c0_215 = arith.constant 0 : index
    %282 = vector.load %arg3[%c45, %c0_214, %c0_215] : memref<49x64x512xbf16, #tpu.memory_space<vmem>>, vector<1x64x512xbf16>
    %283 = vector.shape_cast %282 : vector<1x64x512xbf16> to vector<64x512xbf16>
    %cst_216 = arith.constant dense<0.000000e+00> : vector<2x512xf32>
    %284 = tpu.matmul %281, %283, %cst_216 {dimension_numbers = #tpu.dot_dimension_numbers<[1], [0], [0], [1], [0, 0, 1, 1], [], []>} : vector<2x64xbf16>, vector<64x512xbf16>, vector<2x512xf32> -> vector<2x512xf32>
    %285 = arith.addf %279, %284 : vector<2x512xf32>
    %c92 = arith.constant 92 : index
    %c0_217 = arith.constant 0 : index
    %286 = vector.load %arg8[%c92, %c0_217] : memref<98x64xf32, #tpu.memory_space<vmem>>, vector<2x64xf32>
    %287 = arith.truncf %286 : vector<2x64xf32> to vector<2x64xbf16>
    %c46_218 = arith.constant 46 : index
    %c0_219 = arith.constant 0 : index
    %c0_220 = arith.constant 0 : index
    %288 = vector.load %arg3[%c46_218, %c0_219, %c0_220] : memref<49x64x512xbf16, #tpu.memory_space<vmem>>, vector<1x64x512xbf16>
    %289 = vector.shape_cast %288 : vector<1x64x512xbf16> to vector<64x512xbf16>
    %cst_221 = arith.constant dense<0.000000e+00> : vector<2x512xf32>
    %290 = tpu.matmul %287, %289, %cst_221 {dimension_numbers = #tpu.dot_dimension_numbers<[1], [0], [0], [1], [0, 0, 1, 1], [], []>} : vector<2x64xbf16>, vector<64x512xbf16>, vector<2x512xf32> -> vector<2x512xf32>
    %291 = arith.addf %285, %290 : vector<2x512xf32>
    %c94 = arith.constant 94 : index
    %c0_222 = arith.constant 0 : index
    %292 = vector.load %arg8[%c94, %c0_222] : memref<98x64xf32, #tpu.memory_space<vmem>>, vector<2x64xf32>
    %293 = arith.truncf %292 : vector<2x64xf32> to vector<2x64xbf16>
    %c47 = arith.constant 47 : index
    %c0_223 = arith.constant 0 : index
    %c0_224 = arith.constant 0 : index
    %294 = vector.load %arg3[%c47, %c0_223, %c0_224] : memref<49x64x512xbf16, #tpu.memory_space<vmem>>, vector<1x64x512xbf16>
    %295 = vector.shape_cast %294 : vector<1x64x512xbf16> to vector<64x512xbf16>
    %cst_225 = arith.constant dense<0.000000e+00> : vector<2x512xf32>
    %296 = tpu.matmul %293, %295, %cst_225 {dimension_numbers = #tpu.dot_dimension_numbers<[1], [0], [0], [1], [0, 0, 1, 1], [], []>} : vector<2x64xbf16>, vector<64x512xbf16>, vector<2x512xf32> -> vector<2x512xf32>
    %297 = arith.addf %291, %296 : vector<2x512xf32>
    %c96 = arith.constant 96 : index
    %c0_226 = arith.constant 0 : index
    %298 = vector.load %arg8[%c96, %c0_226] : memref<98x64xf32, #tpu.memory_space<vmem>>, vector<2x64xf32>
    %299 = arith.truncf %298 : vector<2x64xf32> to vector<2x64xbf16>
    %c48_227 = arith.constant 48 : index
    %c0_228 = arith.constant 0 : index
    %c0_229 = arith.constant 0 : index
    %300 = vector.load %arg3[%c48_227, %c0_228, %c0_229] : memref<49x64x512xbf16, #tpu.memory_space<vmem>>, vector<1x64x512xbf16>
    %301 = vector.shape_cast %300 : vector<1x64x512xbf16> to vector<64x512xbf16>
    %cst_230 = arith.constant dense<0.000000e+00> : vector<2x512xf32>
    %302 = tpu.matmul %299, %301, %cst_230 {dimension_numbers = #tpu.dot_dimension_numbers<[1], [0], [0], [1], [0, 0, 1, 1], [], []>} : vector<2x64xbf16>, vector<64x512xbf16>, vector<2x512xf32> -> vector<2x512xf32>
    %303 = arith.addf %297, %302 : vector<2x512xf32>
    %c0_231 = arith.constant 0 : index
    %c0_232 = arith.constant 0 : index
    %304 = vector.load %arg4[%c0_231, %c0_232] : memref<1x512xf32, #tpu.memory_space<vmem>>, vector<1x512xf32>
    %305 = vector.broadcast %304 : vector<1x512xf32> to vector<2x512xf32>
    %306 = arith.addf %303, %305 : vector<2x512xf32>
    %cst_233 = arith.constant 0.000000e+00 : f32
    %307 = vector.broadcast %cst_233 : f32 to vector<2x512xf32>
    %308 = arith.maximumf %306, %307 : vector<2x512xf32>
    %309 = arith.truncf %308 : vector<2x512xf32> to vector<2x512xbf16>
    %c0_234 = arith.constant 0 : index
    %c0_235 = arith.constant 0 : index
    %310 = vector.load %arg5[%c0_234, %c0_235] : memref<512x7xbf16, #tpu.memory_space<vmem>>, vector<512x7xbf16>
    %cst_236 = arith.constant dense<0.000000e+00> : vector<2x7xf32>
    %311 = tpu.matmul %309, %310, %cst_236 {dimension_numbers = #tpu.dot_dimension_numbers<[1], [0], [0], [1], [0, 0, 1, 1], [], []>} : vector<2x512xbf16>, vector<512x7xbf16>, vector<2x7xf32> -> vector<2x7xf32>
    %c0_237 = arith.constant 0 : index
    %c0_238 = arith.constant 0 : index
    %312 = vector.load %arg6[%c0_237, %c0_238] : memref<1x7xf32, #tpu.memory_space<vmem>>, vector<1x7xf32>
    %313 = vector.broadcast %312 : vector<1x7xf32> to vector<2x7xf32>
    %314 = arith.addf %311, %313 : vector<2x7xf32>
    %315 = vector.extract_strided_slice %314 {offsets = [0, 0], sizes = [2, 6], strides = [1, 1]} : vector<2x7xf32> to vector<2x6xf32>
    %316 = vector.extract_strided_slice %314 {offsets = [0, 6], sizes = [2, 1], strides = [1, 1]} : vector<2x7xf32> to vector<2x1xf32>
    %317 = vector.broadcast %316 : vector<2x1xf32> to vector<2x6xf32>
    %318 = arith.addf %315, %317 : vector<2x6xf32>
    %cst_239 = arith.constant dense<0.000000e+00> : vector<2xf32>
    %319 = vector.multi_reduction <add>, %316, %cst_239 [1] : vector<2x1xf32> to vector<2xf32>
    %320 = vector.shape_cast %319 : vector<2xf32> to vector<2x1xf32>
    %cst_240 = arith.constant 1.000000e+00 : f32
    %321 = vector.broadcast %cst_240 : f32 to vector<2x1xf32>
    %322 = arith.divf %320, %321 : vector<2x1xf32>
    %323 = vector.broadcast %322 : vector<2x1xf32> to vector<2x6xf32>
    %324 = arith.subf %318, %323 : vector<2x6xf32>
    %c0_241 = arith.constant 0 : index
    %c0_242 = arith.constant 0 : index
    %325 = vector.load %arg7[%c0_241, %c0_242] : memref<2x6xf32, #tpu.memory_space<vmem>>, vector<2x6xf32>
    tpu.vector_store %arg7[%c0_241, %c0_242], %324 {strides = array<i32>} : memref<2x6xf32, #tpu.memory_space<vmem>>, vector<2x6xf32>,
    return
  }
}

</mosaic_0001>

<bundles_post_ra>
// kernel: dueling_qnet_forward.3
= control target key start
LH: loop header
LB: loop body
LE: loop exit
PB: predicated region body
PF: predicated region fallthrough
CT: control target
= control target key end

     0   :  { %vm401_vm0 = vcmask 523264   ;;  %vm1011_vm1 = vcmask 257024   ;;  %s2185_s1 = inlined_call_operand.vmem [shape: bf16[64,32], index: 1, kind: input, shape index: {}]   ;;  %s2186_s2 = inlined_call_operand.vmem [shape: f32[1,32], index: 2, kind: input, shape index: {}]   ;;  %s2187_s0 = inlined_call_operand.vmem [shape: bf16[800,64], index: 0, kind: input, shape index: {}]   ;;  %s2188_s3 = inlined_call_operand.vmem [shape: bf16[800,32], index: 3, kind: output, shape index: {}]  }
   0x1   :  { %v1435_v0 = vld [vmem:[%s2185_s1 + $0x18] sm:$0xff]  ;;  %v1434_v1 = vld [vmem:[%s2185_s1 + $0x10] sm:$0xff]  ;;  %v1433_v2 = vld [vmem:[%s2185_s1 + $0x8] sm:$0xff] }
   0x2   :  { %1436 = vmatpush.bf16.msra.mxu1 %v1435_v0  ;;  %1437 = vmatpush.bf16.msra.mxu2 %v1435_v0  ;;  %v1432_v3 = vld [vmem:[%s2185_s1] sm:$0xff]  ;;  %v1407_v5 = vld [vmem:[%s2187_s0 + $0xc8] sm:$0xff]  ;;  %v1420_v6 = vld [vmem:[%s2187_s0 + $0x130] sm:$0xff] }
   0x3   :  { %1438 = vmatpush.bf16.msra.mxu3 %v1435_v0  ;;  %556 = vmatpush.bf16.msra.mxu0 %v1435_v0  ;;  %v1394_v4 = vld [vmem:[%s2187_s0 + $0x60] sm:$0xff]  ;;  %v1395_v8 = vld [vmem:[%s2187_s0 + $0x68] sm:$0xff]  ;;  %v1408_v9 = vld [vmem:[%s2187_s0 + $0xd0] sm:$0xff] }
   0x4   :  { %v1382_v7 = vld [vmem:[%s2187_s0] sm:$0xff]  ;;  %v1421_v10 = vld [vmem:[%s2187_s0 + $0x138] sm:$0xff]  ;;  %v1383_v11 = vld [vmem:[%s2187_s0 + $0x8] sm:$0xff] }
   0x5   :  { %v1396_v12 = vld [vmem:[%s2187_s0 + $0x70] sm:$0xff]  ;;  %v1409_v13 = vld [vmem:[%s2187_s0 + $0xd8] sm:$0xff]  ;;  %v1422_v14 = vld [vmem:[%s2187_s0 + $0x140] sm:$0xff] }
   0x6   :  { %1439 = vmatpush.bf16.msra.mxu1 %v1434_v1  ;;  %1440 = vmatpush.bf16.msra.mxu2 %v1434_v1  ;;  %v1384_v15 = vld [vmem:[%s2187_s0 + $0x10] sm:$0xff]  ;;  %v1397_v16 = vld [vmem:[%s2187_s0 + $0x78] sm:$0xff]  ;;  %v1410_v17 = vld [vmem:[%s2187_s0 + $0xe0] sm:$0xff] }
   0x7   :  { %1441 = vmatpush.bf16.msra.mxu3 %v1434_v1  ;;  %557 = vmatpush.bf16.msra.mxu0 %v1434_v1  ;;  %v1423_v18 = vld [vmem:[%s2187_s0 + $0x148] sm:$0xff]  ;;  %v1385_v19 = vld [vmem:[%s2187_s0 + $0x18] sm:$0xff]  ;;  %v1398_v20 = vld [vmem:[%s2187_s0 + $0x80] sm:$0xff] }
   0x8   :  { %v1411_v21 = vld [vmem:[%s2187_s0 + $0xe8] sm:$0xff]  ;;  %v1424_v22 = vld [vmem:[%s2187_s0 + $0x150] sm:$0xff]  ;;  %v1386_v23 = vld [vmem:[%s2187_s0 + $0x20] sm:$0xff] }
   0x9   :  { %v1399_v24 = vld [vmem:[%s2187_s0 + $0x88] sm:$0xff]  ;;  %v1412_v25 = vld [vmem:[%s2187_s0 + $0xf0] sm:$0xff]  ;;  %v1425_v26 = vld [vmem:[%s2187_s0 + $0x158] sm:$0xff] }
   0xa   :  { %1442 = vmatpush.bf16.msra.mxu1 %v1433_v2  ;;  %1443 = vmatpush.bf16.msra.mxu2 %v1433_v2  ;;  %v1387_v27 = vld [vmem:[%s2187_s0 + $0x28] sm:$0xff]  ;;  %v1400_v28 = vld [vmem:[%s2187_s0 + $0x90] sm:$0xff]  ;;  %v1413_v29 = vld [vmem:[%s2187_s0 + $0xf8] sm:$0xff] }
   0xb   :  { %1444 = vmatpush.bf16.msra.mxu3 %v1433_v2  ;;  %558 = vmatpush.bf16.msra.mxu0 %v1433_v2  ;;  %v1426_v30 = vld [vmem:[%s2187_s0 + $0x160] sm:$0xff]  ;;  %v1388_v31 = vld [vmem:[%s2187_s0 + $0x30] sm:$0xff]  ;;  %v1401_v32 = vld [vmem:[%s2187_s0 + $0x98] sm:$0xff] }
   0xc   :  { %v1414_v33 = vld [vmem:[%s2187_s0 + $0x100] sm:$0xff]  ;;  %v1427_v34 = vld [vmem:[%s2187_s0 + $0x168] sm:$0xff]  ;;  %v1389_v35 = vld [vmem:[%s2187_s0 + $0x38] sm:$0xff] }
   0xd   :  { %v1613_v36 = vld [vmem:[%s2186_s2] ss:$0 sm:$0xff]  ;;  %v1415_v38 = vld [vmem:[%s2187_s0 + $0x108] sm:$0xff]  ;;  %v1428_v40 = vld [vmem:[%s2187_s0 + $0x170] sm:$0xff] }
   0xe   :  { %1445 = vmatpush.bf16.msra.mxu1 %v1432_v3  ;;  %1446 = vmatpush.bf16.msra.mxu2 %v1432_v3  ;;  %v1402_v37 = vld [vmem:[%s2187_s0 + $0xa0] sm:$0xff] }
   0xf   :  { %1447 = vmatpush.bf16.msra.mxu3 %v1432_v3  ;;  %559 = vmatpush.bf16.msra.mxu0 %v1432_v3  ;;  %v1390_v41 = vld [vmem:[%s2187_s0 + $0x40] sm:$0xff]  ;;  %v1403_v3 = vld [vmem:[%s2187_s0 + $0xa8] sm:$0xff] }
  0x11   :  { %1344 = vmatmul.msk.bf16.vlgmr.msra.gmra.mxu1 %vm401_vm0, %v1394_v4  ;;  %1357 = vmatmul.msk.bf16.vlgmr.msra.gmra.mxu2 %vm401_vm0, %v1407_v5  ;;  %v1416_v4 = vld [vmem:[%s2187_s0 + $0x110] sm:$0xff] }
  0x12   :  { %1370 = vmatmul.msk.bf16.vlgmr.msra.gmra.mxu3 %vm401_vm0, %v1420_v6  ;;  %1332 = vmatmul.msk.bf16.vlgmr.msra.gmra.mxu0 %vm401_vm0, %v1382_v7 }
  0x21   :  { %1345 = vmatmul.msk.bf16.gmra.mxu1 %vm401_vm0, %v1395_v8  ;;  %1358 = vmatmul.msk.bf16.gmra.mxu2 %vm401_vm0, %v1408_v9  ;;  %v1429_v8 = vld [vmem:[%s2187_s0 + $0x178] sm:$0xff]  ;;  %v1391_v9 = vld [vmem:[%s2187_s0 + $0x48] sm:$0xff] }
  0x22   :  { %1371 = vmatmul.msk.bf16.gmra.mxu3 %vm401_vm0, %v1421_v10  ;;  %1333 = vmatmul.msk.bf16.gmra.mxu0 %vm401_vm0, %v1383_v11 }
  0x31   :  { %1346 = vmatmul.msk.bf16.gmra.mxu1 %vm401_vm0, %v1396_v12  ;;  %1359 = vmatmul.msk.bf16.gmra.mxu2 %vm401_vm0, %v1409_v13 }
  0x32   :  { %1372 = vmatmul.msk.bf16.gmra.mxu3 %vm401_vm0, %v1422_v14  ;;  %1334 = vmatmul.msk.bf16.gmra.mxu0 %vm401_vm0, %v1384_v15 }
  0x41   :  { %1347 = vmatmul.msk.bf16.gmra.mxu1 %vm401_vm0, %v1397_v16  ;;  %1360 = vmatmul.msk.bf16.gmra.mxu2 %vm401_vm0, %v1410_v17 }
  0x42   :  { %1373 = vmatmul.msk.bf16.gmra.mxu3 %vm401_vm0, %v1423_v18  ;;  %1335 = vmatmul.msk.bf16.gmra.mxu0 %vm401_vm0, %v1385_v19 }
  0x51   :  { %1348 = vmatmul.msk.bf16.gmra.mxu1 %vm401_vm0, %v1398_v20  ;;  %1361 = vmatmul.msk.bf16.gmra.mxu2 %vm401_vm0, %v1411_v21 }
  0x52   :  { %1374 = vmatmul.msk.bf16.gmra.mxu3 %vm401_vm0, %v1424_v22  ;;  %1336 = vmatmul.msk.bf16.gmra.mxu0 %vm401_vm0, %v1386_v23 }
  0x61   :  { %1349 = vmatmul.msk.bf16.gmra.mxu1 %vm401_vm0, %v1399_v24  ;;  %1362 = vmatmul.msk.bf16.gmra.mxu2 %vm401_vm0, %v1412_v25 }
  0x62   :  { %1375 = vmatmul.msk.bf16.gmra.mxu3 %vm401_vm0, %v1425_v26  ;;  %1337 = vmatmul.msk.bf16.gmra.mxu0 %vm401_vm0, %v1387_v27 }
  0x71   :  { %1350 = vmatmul.msk.bf16.gmra.mxu1 %vm401_vm0, %v1400_v28  ;;  %1363 = vmatmul.msk.bf16.gmra.mxu2 %vm401_vm0, %v1413_v29 }
  0x72   :  { %1376 = vmatmul.msk.bf16.gmra.mxu3 %vm401_vm0, %v1426_v30  ;;  %1338 = vmatmul.msk.bf16.gmra.mxu0 %vm401_vm0, %v1388_v31 }
  0x81   :  { %1351 = vmatmul.msk.bf16.gmra.mxu1 %vm401_vm0, %v1401_v32  ;;  %1364 = vmatmul.msk.bf16.gmra.mxu2 %vm401_vm0, %v1414_v33 }
  0x82   :  { %1377 = vmatmul.msk.bf16.gmra.mxu3 %vm401_vm0, %v1427_v34  ;;  %1339 = vmatmul.msk.bf16.gmra.mxu0 %vm401_vm0, %v1389_v35 }
  0x8e   :  { %v621_v39 = vpop.f32.mrf.mxu1 }
  0x8f   :  { %v622_v42 = vadd.f32 %v1613_v36, %v621_v39  ;;  %v561_v43 = vpop.f32.mrf.mxu0 }
  0x90   :  { %v562_v44 = vadd.f32 %v1613_v36, %v561_v43 }
  0x91   :  { %v835_v45 = vmax.f32 %v622_v42, 0.0  ;;  %1352 = vmatmul.msk.bf16.gmra.mxu1 %vm401_vm0, %v1402_v37  ;;  %1365 = vmatmul.msk.bf16.gmra.mxu2 %vm401_vm0, %v1415_v38 }
  0x92   :  { %1378 = vmatmul.msk.bf16.gmra.mxu3 %vm401_vm0, %v1428_v40  ;;  %v811_v46 = vmax.f32 %v562_v44, 0.0  ;;  %1340 = vmatmul.msk.bf16.gmra.mxu0 %vm401_vm0, %v1390_v41  ;;  %v1404_v40 = vld [vmem:[%s2187_s0 + $0xb0] sm:$0xff]  ;;  %v1417_v41 = vld [vmem:[%s2187_s0 + $0x118] sm:$0xff] }
  0x93   :  { %v935_v47 = vpack.c.bf16 %v835_v45, %v835_v45  ;;  %v1430_v45 = vld [vmem:[%s2187_s0 + $0x180] sm:$0xff] }
  0x94   :  { %v686_v48 = vpop.f32.mrf.mxu2  ;;  %v911_v49 = vpack.c.bf16 %v811_v46, %v811_v46  ;;  %v1392_v46 = vld [vmem:[%s2187_s0 + $0x50] sm:$0xff] }
  0x95   :  { %1036 = vst.msk [vmem:[%s2188_s3 + $0x60] sm:$0xf] %vm1011_vm1, %v935_v47  ;;  %v687_v50 = vadd.f32 %v1613_v36, %v686_v48  ;;  %v751_v51 = vpop.f32.mrf.mxu3 }
  0x96   :  { %v623_v52 = vpop.f32.mrf.mxu1  ;;  %1012 = vst.msk [vmem:[%s2188_s3] sm:$0xf] %vm1011_vm1, %v911_v49  ;;  %v752_v53 = vadd.f32 %v1613_v36, %v751_v51 }
  0x97   :  { %v861_v54 = vmax.f32 %v687_v50, 0.0  ;;  %v624_v55 = vadd.f32 %v1613_v36, %v623_v52  ;;  %v563_v56 = vpop.f32.mrf.mxu0 }
  0x98   :  { %v887_v57 = vmax.f32 %v752_v53, 0.0  ;;  %v564_v58 = vadd.f32 %v1613_v36, %v563_v56 }
  0x99   :  { %v961_v59 = vpack.c.bf16 %v861_v54, %v861_v54  ;;  %v836_v60 = vmax.f32 %v624_v55, 0.0 }
  0x9a   :  { %v987_v61 = vpack.c.bf16 %v887_v57, %v887_v57  ;;  %v812_v62 = vmax.f32 %v564_v58, 0.0 }
  0x9b   :  { %1062 = vst.msk [vmem:[%s2188_s3 + $0xc8] sm:$0xf] %vm1011_vm1, %v961_v59  ;;  %v936_v63 = vpack.c.bf16 %v836_v60, %v836_v60 }
  0x9c   :  { %v688_v0 = vpop.f32.mrf.mxu2  ;;  %1088 = vst.msk [vmem:[%s2188_s3 + $0x130] sm:$0xf] %vm1011_vm1, %v987_v61  ;;  %v912_v1 = vpack.c.bf16 %v812_v62, %v812_v62 }
  0x9d   :  { %1037 = vst.msk [vmem:[%s2188_s3 + $0x64] sm:$0xf] %vm1011_vm1, %v936_v63  ;;  %v689_v2 = vadd.f32 %v1613_v36, %v688_v0  ;;  %v753_v5 = vpop.f32.mrf.mxu3 }
  0x9e   :  { %v626_v6 = vpop.f32.mrf.mxu1  ;;  %1013 = vst.msk [vmem:[%s2188_s3 + $0x4] sm:$0xf] %vm1011_vm1, %v912_v1  ;;  %v754_v7 = vadd.f32 %v1613_v36, %v753_v5 }
  0x9f   :  { %v862_v10 = vmax.f32 %v689_v2, 0.0  ;;  %v627_v11 = vadd.f32 %v1613_v36, %v626_v6  ;;  %v566_v12 = vpop.f32.mrf.mxu0 }
  0xa0   :  { %v888_v13 = vmax.f32 %v754_v7, 0.0  ;;  %v567_v14 = vadd.f32 %v1613_v36, %v566_v12  ;;  %v1405_v12 = vld [vmem:[%s2187_s0 + $0xb8] sm:$0xff] }
  0xa1   :  { %v962_v15 = vpack.c.bf16 %v862_v10, %v862_v10  ;;  %v837_v16 = vmax.f32 %v627_v11, 0.0  ;;  %1353 = vmatmul.msk.bf16.gmra.mxu1 %vm401_vm0, %v1403_v3  ;;  %1366 = vmatmul.msk.bf16.gmra.mxu2 %vm401_vm0, %v1416_v4 }
  0xa2   :  { %v988_v17 = vpack.c.bf16 %v888_v13, %v888_v13  ;;  %1379 = vmatmul.msk.bf16.gmra.mxu3 %vm401_vm0, %v1429_v8  ;;  %v813_v18 = vmax.f32 %v567_v14, 0.0  ;;  %1341 = vmatmul.msk.bf16.gmra.mxu0 %vm401_vm0, %v1391_v9  ;;  %v1418_v13 = vld [vmem:[%s2187_s0 + $0x120] sm:$0xff] }
  0xa3   :  { %1063 = vst.msk [vmem:[%s2188_s3 + $0xcc] sm:$0xf] %vm1011_vm1, %v962_v15  ;;  %v937_v19 = vpack.c.bf16 %v837_v16, %v837_v16 }
  0xa4   :  { %v691_v20 = vpop.f32.mrf.mxu2  ;;  %1089 = vst.msk [vmem:[%s2188_s3 + $0x134] sm:$0xf] %vm1011_vm1, %v988_v17  ;;  %v913_v21 = vpack.c.bf16 %v813_v18, %v813_v18  ;;  %v1431_v17 = vld [vmem:[%s2187_s0 + $0x188] sm:$0xff]  ;;  %v1393_v18 = vld [vmem:[%s2187_s0 + $0x58] sm:$0xff] }
  0xa5   :  { %1038 = vst.msk [vmem:[%s2188_s3 + $0x68] sm:$0xf] %vm1011_vm1, %v937_v19  ;;  %v692_v22 = vadd.f32 %v1613_v36, %v691_v20  ;;  %v756_v23 = vpop.f32.mrf.mxu3 }
  0xa6   :  { %v628_v24 = vpop.f32.mrf.mxu1  ;;  %1014 = vst.msk [vmem:[%s2188_s3 + $0x8] sm:$0xf] %vm1011_vm1, %v913_v21  ;;  %v757_v25 = vadd.f32 %v1613_v36, %v756_v23 }
  0xa7   :  { %v863_v26 = vmax.f32 %v692_v22, 0.0  ;;  %v629_v27 = vadd.f32 %v1613_v36, %v628_v24  ;;  %v568_v28 = vpop.f32.mrf.mxu0 }
  0xa8   :  { %v889_v29 = vmax.f32 %v757_v25, 0.0  ;;  %v569_v30 = vadd.f32 %v1613_v36, %v568_v28 }
  0xa9   :  { %v963_v31 = vpack.c.bf16 %v863_v26, %v863_v26  ;;  %v838_v32 = vmax.f32 %v629_v27, 0.0 }
  0xaa   :  { %v989_v33 = vpack.c.bf16 %v889_v29, %v889_v29  ;;  %v814_v34 = vmax.f32 %v569_v30, 0.0 }
  0xab   :  { %1064 = vst.msk [vmem:[%s2188_s3 + $0xd0] sm:$0xf] %vm1011_vm1, %v963_v31  ;;  %v938_v35 = vpack.c.bf16 %v838_v32, %v838_v32 }
  0xac   :  { %v693_v37 = vpop.f32.mrf.mxu2  ;;  %1090 = vst.msk [vmem:[%s2188_s3 + $0x138] sm:$0xf] %vm1011_vm1, %v989_v33  ;;  %v914_v38 = vpack.c.bf16 %v814_v34, %v814_v34 }
  0xad   :  { %1039 = vst.msk [vmem:[%s2188_s3 + $0x6c] sm:$0xf] %vm1011_vm1, %v938_v35  ;;  %v694_v39 = vadd.f32 %v1613_v36, %v693_v37  ;;  %v758_v42 = vpop.f32.mrf.mxu3 }
  0xae   :  { %v631_v43 = vpop.f32.mrf.mxu1  ;;  %1015 = vst.msk [vmem:[%s2188_s3 + $0xc] sm:$0xf] %vm1011_vm1, %v914_v38  ;;  %v759_v44 = vadd.f32 %v1613_v36, %v758_v42 }
  0xaf   :  { %v864_v47 = vmax.f32 %v694_v39, 0.0  ;;  %v632_v48 = vadd.f32 %v1613_v36, %v631_v43  ;;  %v571_v49 = vpop.f32.mrf.mxu0 }
  0xb0   :  { %v890_v50 = vmax.f32 %v759_v44, 0.0  ;;  %v572_v51 = vadd.f32 %v1613_v36, %v571_v49  ;;  %v1406_v49 = vld [vmem:[%s2187_s0 + $0xc0] sm:$0xff] }
  0xb1   :  { %v964_v52 = vpack.c.bf16 %v864_v47, %v864_v47  ;;  %v839_v53 = vmax.f32 %v632_v48, 0.0  ;;  %1354 = vmatmul.msk.bf16.gmra.mxu1 %vm401_vm0, %v1404_v40  ;;  %1367 = vmatmul.msk.bf16.gmra.mxu2 %vm401_vm0, %v1417_v41 }
  0xb2   :  { %v990_v54 = vpack.c.bf16 %v890_v50, %v890_v50  ;;  %1380 = vmatmul.msk.bf16.gmra.mxu3 %vm401_vm0, %v1430_v45  ;;  %v815_v55 = vmax.f32 %v572_v51, 0.0  ;;  %1342 = vmatmul.msk.bf16.gmra.mxu0 %vm401_vm0, %v1392_v46  ;;  %v1419_v50 = vld [vmem:[%s2187_s0 + $0x128] sm:$0xff] }
  0xb3   :  { %1065 = vst.msk [vmem:[%s2188_s3 + $0xd4] sm:$0xf] %vm1011_vm1, %v964_v52  ;;  %v939_v56 = vpack.c.bf16 %v839_v53, %v839_v53 }
  0xb4   :  { %v696_v57 = vpop.f32.mrf.mxu2  ;;  %1091 = vst.msk [vmem:[%s2188_s3 + $0x13c] sm:$0xf] %vm1011_vm1, %v990_v54  ;;  %v915_v58 = vpack.c.bf16 %v815_v55, %v815_v55 }
  0xb5   :  { %1040 = vst.msk [vmem:[%s2188_s3 + $0x70] sm:$0xf] %vm1011_vm1, %v939_v56  ;;  %v697_v59 = vadd.f32 %v1613_v36, %v696_v57  ;;  %v761_v60 = vpop.f32.mrf.mxu3 }
  0xb6   :  { %v633_v61 = vpop.f32.mrf.mxu1  ;;  %1016 = vst.msk [vmem:[%s2188_s3 + $0x10] sm:$0xf] %vm1011_vm1, %v915_v58  ;;  %v762_v62 = vadd.f32 %v1613_v36, %v761_v60 }
  0xb7   :  { %v865_v63 = vmax.f32 %v697_v59, 0.0  ;;  %v634_v0 = vadd.f32 %v1613_v36, %v633_v61  ;;  %v573_v1 = vpop.f32.mrf.mxu0 }
  0xb8   :  { %v891_v2 = vmax.f32 %v762_v62, 0.0  ;;  %v574_v3 = vadd.f32 %v1613_v36, %v573_v1 }
  0xb9   :  { %v965_v4 = vpack.c.bf16 %v865_v63, %v865_v63  ;;  %v840_v5 = vmax.f32 %v634_v0, 0.0 }
  0xba   :  { %v991_v6 = vpack.c.bf16 %v891_v2, %v891_v2  ;;  %v816_v7 = vmax.f32 %v574_v3, 0.0 }
  0xbb   :  { %1066 = vst.msk [vmem:[%s2188_s3 + $0xd8] sm:$0xf] %vm1011_vm1, %v965_v4  ;;  %v940_v8 = vpack.c.bf16 %v840_v5, %v840_v5 }
  0xbc   :  { %v698_v9 = vpop.f32.mrf.mxu2  ;;  %1092 = vst.msk [vmem:[%s2188_s3 + $0x140] sm:$0xf] %vm1011_vm1, %v991_v6  ;;  %v916_v10 = vpack.c.bf16 %v816_v7, %v816_v7 }
  0xbd   :  { %1041 = vst.msk [vmem:[%s2188_s3 + $0x74] sm:$0xf] %vm1011_vm1, %v940_v8  ;;  %v699_v11 = vadd.f32 %v1613_v36, %v698_v9  ;;  %v763_v14 = vpop.f32.mrf.mxu3 }
  0xbe   :  { %v636_v15 = vpop.f32.mrf.mxu1  ;;  %1017 = vst.msk [vmem:[%s2188_s3 + $0x14] sm:$0xf] %vm1011_vm1, %v916_v10  ;;  %v764_v16 = vadd.f32 %v1613_v36, %v763_v14 }
  0xbf   :  { %v866_v19 = vmax.f32 %v699_v11, 0.0  ;;  %v637_v20 = vadd.f32 %v1613_v36, %v636_v15  ;;  %v576_v21 = vpop.f32.mrf.mxu0 }
  0xc0   :  { %v892_v22 = vmax.f32 %v764_v16, 0.0  ;;  %v577_v23 = vadd.f32 %v1613_v36, %v576_v21 }
  0xc1   :  { %v966_v24 = vpack.c.bf16 %v866_v19, %v866_v19  ;;  %v841_v25 = vmax.f32 %v637_v20, 0.0  ;;  %1355 = vmatmul.msk.bf16.gmra.mxu1 %vm401_vm0, %v1405_v12  ;;  %1368 = vmatmul.msk.bf16.gmra.mxu2 %vm401_vm0, %v1418_v13 }
  0xc2   :  { %v992_v26 = vpack.c.bf16 %v892_v22, %v892_v22  ;;  %1381 = vmatmul.msk.bf16.gmra.mxu3 %vm401_vm0, %v1431_v17  ;;  %v817_v27 = vmax.f32 %v577_v23, 0.0  ;;  %1343 = vmatmul.msk.bf16.gmra.mxu0 %vm401_vm0, %v1393_v18 }
  0xc3   :  { %1067 = vst.msk [vmem:[%s2188_s3 + $0xdc] sm:$0xf] %vm1011_vm1, %v966_v24  ;;  %v941_v28 = vpack.c.bf16 %v841_v25, %v841_v25 }
  0xc4   :  { %v701_v29 = vpop.f32.mrf.mxu2  ;;  %1093 = vst.msk [vmem:[%s2188_s3 + $0x144] sm:$0xf] %vm1011_vm1, %v992_v26  ;;  %v917_v30 = vpack.c.bf16 %v817_v27, %v817_v27 }
  0xc5   :  { %1042 = vst.msk [vmem:[%s2188_s3 + $0x78] sm:$0xf] %vm1011_vm1, %v941_v28  ;;  %v702_v31 = vadd.f32 %v1613_v36, %v701_v29  ;;  %v766_v32 = vpop.f32.mrf.mxu3 }
  0xc6   :  { %v638_v33 = vpop.f32.mrf.mxu1  ;;  %1018 = vst.msk [vmem:[%s2188_s3 + $0x18] sm:$0xf] %vm1011_vm1, %v917_v30  ;;  %v767_v34 = vadd.f32 %v1613_v36, %v766_v32 }
  0xc7   :  { %v867_v35 = vmax.f32 %v702_v31, 0.0  ;;  %v639_v37 = vadd.f32 %v1613_v36, %v638_v33  ;;  %v578_v38 = vpop.f32.mrf.mxu0 }
  0xc8   :  { %v893_v39 = vmax.f32 %v767_v34, 0.0  ;;  %v579_v40 = vadd.f32 %v1613_v36, %v578_v38 }
  0xc9   :  { %v967_v41 = vpack.c.bf16 %v867_v35, %v867_v35  ;;  %v842_v42 = vmax.f32 %v639_v37, 0.0 }
  0xca   :  { %v993_v43 = vpack.c.bf16 %v893_v39, %v893_v39  ;;  %v818_v44 = vmax.f32 %v579_v40, 0.0 }
  0xcb   :  { %1068 = vst.msk [vmem:[%s2188_s3 + $0xe0] sm:$0xf] %vm1011_vm1, %v967_v41  ;;  %v942_v45 = vpack.c.bf16 %v842_v42, %v842_v42 }
  0xcc   :  { %v703_v46 = vpop.f32.mrf.mxu2  ;;  %1094 = vst.msk [vmem:[%s2188_s3 + $0x148] sm:$0xf] %vm1011_vm1, %v993_v43  ;;  %v918_v47 = vpack.c.bf16 %v818_v44, %v818_v44 }
  0xcd   :  { %1043 = vst.msk [vmem:[%s2188_s3 + $0x7c] sm:$0xf] %vm1011_vm1, %v942_v45  ;;  %v704_v48 = vadd.f32 %v1613_v36, %v703_v46  ;;  %v768_v51 = vpop.f32.mrf.mxu3 }
  0xce   :  { %v641_v52 = vpop.f32.mrf.mxu1  ;;  %1019 = vst.msk [vmem:[%s2188_s3 + $0x1c] sm:$0xf] %vm1011_vm1, %v918_v47  ;;  %v769_v53 = vadd.f32 %v1613_v36, %v768_v51 }
  0xcf   :  { %v868_v54 = vmax.f32 %v704_v48, 0.0  ;;  %v642_v55 = vadd.f32 %v1613_v36, %v641_v52  ;;  %v581_v56 = vpop.f32.mrf.mxu0 }
  0xd0   :  { %v894_v57 = vmax.f32 %v769_v53, 0.0  ;;  %v582_v58 = vadd.f32 %v1613_v36, %v581_v56 }
  0xd1   :  { %v968_v59 = vpack.c.bf16 %v868_v54, %v868_v54  ;;  %v843_v60 = vmax.f32 %v642_v55, 0.0  ;;  %1356 = vmatmul.msk.bf16.gmra.mxu1 %vm401_vm0, %v1406_v49  ;;  %1369 = vmatmul.msk.bf16.gmra.mxu2 %vm401_vm0, %v1419_v50 }
  0xd2   :  { %v994_v61 = vpack.c.bf16 %v894_v57, %v894_v57  ;;  %v819_v62 = vmax.f32 %v582_v58, 0.0 }
  0xd3   :  { %1069 = vst.msk [vmem:[%s2188_s3 + $0xe4] sm:$0xf] %vm1011_vm1, %v968_v59  ;;  %v943_v63 = vpack.c.bf16 %v843_v60, %v843_v60 }
  0xd4   :  { %v706_v0 = vpop.f32.mrf.mxu2  ;;  %1095 = vst.msk [vmem:[%s2188_s3 + $0x14c] sm:$0xf] %vm1011_vm1, %v994_v61  ;;  %v919_v1 = vpack.c.bf16 %v819_v62, %v819_v62 }
  0xd5   :  { %1044 = vst.msk [vmem:[%s2188_s3 + $0x80] sm:$0xf] %vm1011_vm1, %v943_v63  ;;  %v707_v2 = vadd.f32 %v1613_v36, %v706_v0  ;;  %v771_v3 = vpop.f32.mrf.mxu3 }
  0xd6   :  { %v643_v4 = vpop.f32.mrf.mxu1  ;;  %1020 = vst.msk [vmem:[%s2188_s3 + $0x20] sm:$0xf] %vm1011_vm1, %v919_v1  ;;  %v772_v5 = vadd.f32 %v1613_v36, %v771_v3 }
  0xd7   :  { %v869_v6 = vmax.f32 %v707_v2, 0.0  ;;  %v644_v7 = vadd.f32 %v1613_v36, %v643_v4  ;;  %v583_v8 = vpop.f32.mrf.mxu0 }
  0xd8   :  { %v895_v9 = vmax.f32 %v772_v5, 0.0  ;;  %v584_v10 = vadd.f32 %v1613_v36, %v583_v8 }
  0xd9   :  { %v969_v11 = vpack.c.bf16 %v869_v6, %v869_v6  ;;  %v844_v12 = vmax.f32 %v644_v7, 0.0 }
  0xda   :  { %v995_v13 = vpack.c.bf16 %v895_v9, %v895_v9  ;;  %v820_v14 = vmax.f32 %v584_v10, 0.0 }
  0xdb   :  { %1070 = vst.msk [vmem:[%s2188_s3 + $0xe8] sm:$0xf] %vm1011_vm1, %v969_v11  ;;  %v944_v15 = vpack.c.bf16 %v844_v12, %v844_v12 }
  0xdc   :  { %v708_v16 = vpop.f32.mrf.mxu2  ;;  %1096 = vst.msk [vmem:[%s2188_s3 + $0x150] sm:$0xf] %vm1011_vm1, %v995_v13  ;;  %v920_v17 = vpack.c.bf16 %v820_v14, %v820_v14 }
  0xdd   :  { %1045 = vst.msk [vmem:[%s2188_s3 + $0x84] sm:$0xf] %vm1011_vm1, %v944_v15  ;;  %v709_v18 = vadd.f32 %v1613_v36, %v708_v16  ;;  %v773_v19 = vpop.f32.mrf.mxu3 }
  0xde   :  { %v646_v20 = vpop.f32.mrf.mxu1  ;;  %1021 = vst.msk [vmem:[%s2188_s3 + $0x24] sm:$0xf] %vm1011_vm1, %v920_v17  ;;  %v774_v21 = vadd.f32 %v1613_v36, %v773_v19 }
  0xdf   :  { %v870_v22 = vmax.f32 %v709_v18, 0.0  ;;  %v647_v23 = vadd.f32 %v1613_v36, %v646_v20  ;;  %v586_v24 = vpop.f32.mrf.mxu0 }
  0xe0   :  { %v896_v25 = vmax.f32 %v774_v21, 0.0  ;;  %v587_v26 = vadd.f32 %v1613_v36, %v586_v24 }
  0xe1   :  { %v970_v27 = vpack.c.bf16 %v870_v22, %v870_v22  ;;  %v845_v28 = vmax.f32 %v647_v23, 0.0 }
  0xe2   :  { %v996_v29 = vpack.c.bf16 %v896_v25, %v896_v25  ;;  %v821_v30 = vmax.f32 %v587_v26, 0.0 }
  0xe3   :  { %1071 = vst.msk [vmem:[%s2188_s3 + $0xec] sm:$0xf] %vm1011_vm1, %v970_v27  ;;  %v945_v31 = vpack.c.bf16 %v845_v28, %v845_v28 }
  0xe4   :  { %v711_v32 = vpop.f32.mrf.mxu2  ;;  %1097 = vst.msk [vmem:[%s2188_s3 + $0x154] sm:$0xf] %vm1011_vm1, %v996_v29  ;;  %v921_v33 = vpack.c.bf16 %v821_v30, %v821_v30 }
  0xe5   :  { %1046 = vst.msk [vmem:[%s2188_s3 + $0x88] sm:$0xf] %vm1011_vm1, %v945_v31  ;;  %v712_v34 = vadd.f32 %v1613_v36, %v711_v32  ;;  %v776_v35 = vpop.f32.mrf.mxu3 }
  0xe6   :  { %v648_v37 = vpop.f32.mrf.mxu1  ;;  %1022 = vst.msk [vmem:[%s2188_s3 + $0x28] sm:$0xf] %vm1011_vm1, %v921_v33  ;;  %v777_v38 = vadd.f32 %v1613_v36, %v776_v35 }
  0xe7   :  { %v871_v39 = vmax.f32 %v712_v34, 0.0  ;;  %v649_v40 = vadd.f32 %v1613_v36, %v648_v37  ;;  %v588_v41 = vpop.f32.mrf.mxu0 }
  0xe8   :  { %v897_v42 = vmax.f32 %v777_v38, 0.0  ;;  %v589_v43 = vadd.f32 %v1613_v36, %v588_v41 }
  0xe9   :  { %v971_v44 = vpack.c.bf16 %v871_v39, %v871_v39  ;;  %v846_v45 = vmax.f32 %v649_v40, 0.0 }
  0xea   :  { %v997_v46 = vpack.c.bf16 %v897_v42, %v897_v42  ;;  %v822_v47 = vmax.f32 %v589_v43, 0.0 }
  0xeb   :  { %1072 = vst.msk [vmem:[%s2188_s3 + $0xf0] sm:$0xf] %vm1011_vm1, %v971_v44  ;;  %v946_v48 = vpack.c.bf16 %v846_v45, %v846_v45 }
  0xec   :  { %v713_v49 = vpop.f32.mrf.mxu2  ;;  %1098 = vst.msk [vmem:[%s2188_s3 + $0x158] sm:$0xf] %vm1011_vm1, %v997_v46  ;;  %v922_v50 = vpack.c.bf16 %v822_v47, %v822_v47 }
  0xed   :  { %1047 = vst.msk [vmem:[%s2188_s3 + $0x8c] sm:$0xf] %vm1011_vm1, %v946_v48  ;;  %v714_v51 = vadd.f32 %v1613_v36, %v713_v49  ;;  %v778_v52 = vpop.f32.mrf.mxu3 }
  0xee   :  { %v651_v53 = vpop.f32.mrf.mxu1  ;;  %1023 = vst.msk [vmem:[%s2188_s3 + $0x2c] sm:$0xf] %vm1011_vm1, %v922_v50  ;;  %v779_v54 = vadd.f32 %v1613_v36, %v778_v52 }
  0xef   :  { %v872_v55 = vmax.f32 %v714_v51, 0.0  ;;  %v652_v56 = vadd.f32 %v1613_v36, %v651_v53  ;;  %v591_v57 = vpop.f32.mrf.mxu0 }
  0xf0   :  { %v898_v58 = vmax.f32 %v779_v54, 0.0  ;;  %v592_v59 = vadd.f32 %v1613_v36, %v591_v57 }
  0xf1   :  { %v972_v60 = vpack.c.bf16 %v872_v55, %v872_v55  ;;  %v847_v61 = vmax.f32 %v652_v56, 0.0 }
  0xf2   :  { %v998_v62 = vpack.c.bf16 %v898_v58, %v898_v58  ;;  %v823_v63 = vmax.f32 %v592_v59, 0.0 }
  0xf3   :  { %1073 = vst.msk [vmem:[%s2188_s3 + $0xf4] sm:$0xf] %vm1011_vm1, %v972_v60  ;;  %v947_v0 = vpack.c.bf16 %v847_v61, %v847_v61 }
  0xf4   :  { %v716_v1 = vpop.f32.mrf.mxu2  ;;  %1099 = vst.msk [vmem:[%s2188_s3 + $0x15c] sm:$0xf] %vm1011_vm1, %v998_v62  ;;  %v923_v2 = vpack.c.bf16 %v823_v63, %v823_v63 }
  0xf5   :  { %1048 = vst.msk [vmem:[%s2188_s3 + $0x90] sm:$0xf] %vm1011_vm1, %v947_v0  ;;  %v717_v3 = vadd.f32 %v1613_v36, %v716_v1  ;;  %v781_v4 = vpop.f32.mrf.mxu3 }
  0xf6   :  { %v653_v5 = vpop.f32.mrf.mxu1  ;;  %1024 = vst.msk [vmem:[%s2188_s3 + $0x30] sm:$0xf] %vm1011_vm1, %v923_v2  ;;  %v782_v6 = vadd.f32 %v1613_v36, %v781_v4 }
  0xf7   :  { %v873_v7 = vmax.f32 %v717_v3, 0.0  ;;  %v654_v8 = vadd.f32 %v1613_v36, %v653_v5  ;;  %v593_v9 = vpop.f32.mrf.mxu0 }
  0xf8   :  { %v899_v10 = vmax.f32 %v782_v6, 0.0  ;;  %v594_v11 = vadd.f32 %v1613_v36, %v593_v9 }
  0xf9   :  { %v973_v12 = vpack.c.bf16 %v873_v7, %v873_v7  ;;  %v848_v13 = vmax.f32 %v654_v8, 0.0 }
  0xfa   :  { %v999_v14 = vpack.c.bf16 %v899_v10, %v899_v10  ;;  %v824_v15 = vmax.f32 %v594_v11, 0.0 }
  0xfb   :  { %1074 = vst.msk [vmem:[%s2188_s3 + $0xf8] sm:$0xf] %vm1011_vm1, %v973_v12  ;;  %v948_v16 = vpack.c.bf16 %v848_v13, %v848_v13 }
  0xfc   :  { %v718_v17 = vpop.f32.mrf.mxu2  ;;  %1100 = vst.msk [vmem:[%s2188_s3 + $0x160] sm:$0xf] %vm1011_vm1, %v999_v14  ;;  %v924_v18 = vpack.c.bf16 %v824_v15, %v824_v15 }
  0xfd   :  { %1049 = vst.msk [vmem:[%s2188_s3 + $0x94] sm:$0xf] %vm1011_vm1, %v948_v16  ;;  %v719_v19 = vadd.f32 %v1613_v36, %v718_v17  ;;  %v783_v20 = vpop.f32.mrf.mxu3 }
  0xfe   :  { %v656_v21 = vpop.f32.mrf.mxu1  ;;  %1025 = vst.msk [vmem:[%s2188_s3 + $0x34] sm:$0xf] %vm1011_vm1, %v924_v18  ;;  %v784_v22 = vadd.f32 %v1613_v36, %v783_v20 }
  0xff   :  { %v874_v23 = vmax.f32 %v719_v19, 0.0  ;;  %v657_v24 = vadd.f32 %v1613_v36, %v656_v21  ;;  %v596_v25 = vpop.f32.mrf.mxu0 }
 0x100   :  { %v900_v26 = vmax.f32 %v784_v22, 0.0  ;;  %v597_v27 = vadd.f32 %v1613_v36, %v596_v25 }
 0x101   :  { %v974_v28 = vpack.c.bf16 %v874_v23, %v874_v23  ;;  %v849_v29 = vmax.f32 %v657_v24, 0.0 }
 0x102   :  { %v1000_v30 = vpack.c.bf16 %v900_v26, %v900_v26  ;;  %v825_v31 = vmax.f32 %v597_v27, 0.0 }
 0x103   :  { %1075 = vst.msk [vmem:[%s2188_s3 + $0xfc] sm:$0xf] %vm1011_vm1, %v974_v28  ;;  %v949_v32 = vpack.c.bf16 %v849_v29, %v849_v29 }
 0x104   :  { %v721_v33 = vpop.f32.mrf.mxu2  ;;  %1101 = vst.msk [vmem:[%s2188_s3 + $0x164] sm:$0xf] %vm1011_vm1, %v1000_v30  ;;  %v925_v34 = vpack.c.bf16 %v825_v31, %v825_v31 }
 0x105   :  { %1050 = vst.msk [vmem:[%s2188_s3 + $0x98] sm:$0xf] %vm1011_vm1, %v949_v32  ;;  %v722_v35 = vadd.f32 %v1613_v36, %v721_v33  ;;  %v786_v37 = vpop.f32.mrf.mxu3 }
 0x106   :  { %v658_v38 = vpop.f32.mrf.mxu1  ;;  %1026 = vst.msk [vmem:[%s2188_s3 + $0x38] sm:$0xf] %vm1011_vm1, %v925_v34  ;;  %v787_v39 = vadd.f32 %v1613_v36, %v786_v37 }
 0x107   :  { %v875_v40 = vmax.f32 %v722_v35, 0.0  ;;  %v659_v41 = vadd.f32 %v1613_v36, %v658_v38  ;;  %v598_v42 = vpop.f32.mrf.mxu0 }
 0x108   :  { %v901_v43 = vmax.f32 %v787_v39, 0.0  ;;  %v599_v44 = vadd.f32 %v1613_v36, %v598_v42 }
 0x109   :  { %v975_v45 = vpack.c.bf16 %v875_v40, %v875_v40  ;;  %v850_v46 = vmax.f32 %v659_v41, 0.0 }
 0x10a   :  { %v1001_v47 = vpack.c.bf16 %v901_v43, %v901_v43  ;;  %v826_v48 = vmax.f32 %v599_v44, 0.0 }
 0x10b   :  { %1076 = vst.msk [vmem:[%s2188_s3 + $0x100] sm:$0xf] %vm1011_vm1, %v975_v45  ;;  %v950_v49 = vpack.c.bf16 %v850_v46, %v850_v46 }
 0x10c   :  { %v723_v50 = vpop.f32.mrf.mxu2  ;;  %1102 = vst.msk [vmem:[%s2188_s3 + $0x168] sm:$0xf] %vm1011_vm1, %v1001_v47  ;;  %v926_v51 = vpack.c.bf16 %v826_v48, %v826_v48 }
 0x10d   :  { %1051 = vst.msk [vmem:[%s2188_s3 + $0x9c] sm:$0xf] %vm1011_vm1, %v950_v49  ;;  %v724_v52 = vadd.f32 %v1613_v36, %v723_v50  ;;  %v788_v53 = vpop.f32.mrf.mxu3 }
 0x10e   :  { %v661_v54 = vpop.f32.mrf.mxu1  ;;  %1027 = vst.msk [vmem:[%s2188_s3 + $0x3c] sm:$0xf] %vm1011_vm1, %v926_v51  ;;  %v789_v55 = vadd.f32 %v1613_v36, %v788_v53 }
 0x10f   :  { %v876_v56 = vmax.f32 %v724_v52, 0.0  ;;  %v662_v57 = vadd.f32 %v1613_v36, %v661_v54  ;;  %v601_v58 = vpop.f32.mrf.mxu0 }
 0x110   :  { %v902_v59 = vmax.f32 %v789_v55, 0.0  ;;  %v602_v60 = vadd.f32 %v1613_v36, %v601_v58 }
 0x111   :  { %v976_v61 = vpack.c.bf16 %v876_v56, %v876_v56  ;;  %v851_v62 = vmax.f32 %v662_v57, 0.0 }
 0x112   :  { %v1002_v63 = vpack.c.bf16 %v902_v59, %v902_v59  ;;  %v827_v0 = vmax.f32 %v602_v60, 0.0 }
 0x113   :  { %1077 = vst.msk [vmem:[%s2188_s3 + $0x104] sm:$0xf] %vm1011_vm1, %v976_v61  ;;  %v951_v1 = vpack.c.bf16 %v851_v62, %v851_v62 }
 0x114   :  { %v726_v2 = vpop.f32.mrf.mxu2  ;;  %1103 = vst.msk [vmem:[%s2188_s3 + $0x16c] sm:$0xf] %vm1011_vm1, %v1002_v63  ;;  %v927_v3 = vpack.c.bf16 %v827_v0, %v827_v0 }
 0x115   :  { %1052 = vst.msk [vmem:[%s2188_s3 + $0xa0] sm:$0xf] %vm1011_vm1, %v951_v1  ;;  %v727_v4 = vadd.f32 %v1613_v36, %v726_v2  ;;  %v791_v5 = vpop.f32.mrf.mxu3 }
 0x116   :  { %v663_v6 = vpop.f32.mrf.mxu1  ;;  %1028 = vst.msk [vmem:[%s2188_s3 + $0x40] sm:$0xf] %vm1011_vm1, %v927_v3  ;;  %v792_v7 = vadd.f32 %v1613_v36, %v791_v5 }
 0x117   :  { %v877_v8 = vmax.f32 %v727_v4, 0.0  ;;  %v664_v9 = vadd.f32 %v1613_v36, %v663_v6  ;;  %v603_v10 = vpop.f32.mrf.mxu0 }
 0x118   :  { %v903_v11 = vmax.f32 %v792_v7, 0.0  ;;  %v604_v12 = vadd.f32 %v1613_v36, %v603_v10 }
 0x119   :  { %v977_v13 = vpack.c.bf16 %v877_v8, %v877_v8  ;;  %v852_v14 = vmax.f32 %v664_v9, 0.0 }
 0x11a   :  { %v1003_v15 = vpack.c.bf16 %v903_v11, %v903_v11  ;;  %v828_v16 = vmax.f32 %v604_v12, 0.0 }
 0x11b   :  { %1078 = vst.msk [vmem:[%s2188_s3 + $0x108] sm:$0xf] %vm1011_vm1, %v977_v13  ;;  %v952_v17 = vpack.c.bf16 %v852_v14, %v852_v14 }
 0x11c   :  { %v728_v18 = vpop.f32.mrf.mxu2  ;;  %1104 = vst.msk [vmem:[%s2188_s3 + $0x170] sm:$0xf] %vm1011_vm1, %v1003_v15  ;;  %v928_v19 = vpack.c.bf16 %v828_v16, %v828_v16 }
 0x11d   :  { %1053 = vst.msk [vmem:[%s2188_s3 + $0xa4] sm:$0xf] %vm1011_vm1, %v952_v17  ;;  %v729_v20 = vadd.f32 %v1613_v36, %v728_v18  ;;  %v793_v21 = vpop.f32.mrf.mxu3 }
 0x11e   :  { %v666_v22 = vpop.f32.mrf.mxu1  ;;  %1029 = vst.msk [vmem:[%s2188_s3 + $0x44] sm:$0xf] %vm1011_vm1, %v928_v19  ;;  %v794_v23 = vadd.f32 %v1613_v36, %v793_v21 }
 0x11f   :  { %v878_v24 = vmax.f32 %v729_v20, 0.0  ;;  %v667_v25 = vadd.f32 %v1613_v36, %v666_v22  ;;  %v606_v26 = vpop.f32.mrf.mxu0 }
 0x120   :  { %v904_v27 = vmax.f32 %v794_v23, 0.0  ;;  %v607_v28 = vadd.f32 %v1613_v36, %v606_v26 }
 0x121   :  { %v978_v29 = vpack.c.bf16 %v878_v24, %v878_v24  ;;  %v853_v30 = vmax.f32 %v667_v25, 0.0 }
 0x122   :  { %v1004_v31 = vpack.c.bf16 %v904_v27, %v904_v27  ;;  %v829_v32 = vmax.f32 %v607_v28, 0.0 }
 0x123   :  { %1079 = vst.msk [vmem:[%s2188_s3 + $0x10c] sm:$0xf] %vm1011_vm1, %v978_v29  ;;  %v953_v33 = vpack.c.bf16 %v853_v30, %v853_v30 }
 0x124   :  { %v731_v34 = vpop.f32.mrf.mxu2  ;;  %1105 = vst.msk [vmem:[%s2188_s3 + $0x174] sm:$0xf] %vm1011_vm1, %v1004_v31  ;;  %v929_v35 = vpack.c.bf16 %v829_v32, %v829_v32 }
 0x125   :  { %1054 = vst.msk [vmem:[%s2188_s3 + $0xa8] sm:$0xf] %vm1011_vm1, %v953_v33  ;;  %v732_v37 = vadd.f32 %v1613_v36, %v731_v34  ;;  %v796_v38 = vpop.f32.mrf.mxu3 }
 0x126   :  { %v668_v39 = vpop.f32.mrf.mxu1  ;;  %1030 = vst.msk [vmem:[%s2188_s3 + $0x48] sm:$0xf] %vm1011_vm1, %v929_v35  ;;  %v797_v40 = vadd.f32 %v1613_v36, %v796_v38 }
 0x127   :  { %v879_v41 = vmax.f32 %v732_v37, 0.0  ;;  %v669_v42 = vadd.f32 %v1613_v36, %v668_v39  ;;  %v608_v43 = vpop.f32.mrf.mxu0 }
 0x128   :  { %v905_v44 = vmax.f32 %v797_v40, 0.0  ;;  %v609_v45 = vadd.f32 %v1613_v36, %v608_v43 }
 0x129   :  { %v979_v46 = vpack.c.bf16 %v879_v41, %v879_v41  ;;  %v854_v47 = vmax.f32 %v669_v42, 0.0 }
 0x12a   :  { %v1005_v48 = vpack.c.bf16 %v905_v44, %v905_v44  ;;  %v830_v49 = vmax.f32 %v609_v45, 0.0 }
 0x12b   :  { %1080 = vst.msk [vmem:[%s2188_s3 + $0x110] sm:$0xf] %vm1011_vm1, %v979_v46  ;;  %v954_v50 = vpack.c.bf16 %v854_v47, %v854_v47 }
 0x12c   :  { %v733_v51 = vpop.f32.mrf.mxu2  ;;  %1106 = vst.msk [vmem:[%s2188_s3 + $0x178] sm:$0xf] %vm1011_vm1, %v1005_v48  ;;  %v930_v52 = vpack.c.bf16 %v830_v49, %v830_v49 }
 0x12d   :  { %1055 = vst.msk [vmem:[%s2188_s3 + $0xac] sm:$0xf] %vm1011_vm1, %v954_v50  ;;  %v734_v53 = vadd.f32 %v1613_v36, %v733_v51  ;;  %v798_v54 = vpop.f32.mrf.mxu3 }
 0x12e   :  { %v671_v55 = vpop.f32.mrf.mxu1  ;;  %1031 = vst.msk [vmem:[%s2188_s3 + $0x4c] sm:$0xf] %vm1011_vm1, %v930_v52  ;;  %v799_v56 = vadd.f32 %v1613_v36, %v798_v54 }
 0x12f   :  { %v880_v57 = vmax.f32 %v734_v53, 0.0  ;;  %v672_v58 = vadd.f32 %v1613_v36, %v671_v55  ;;  %v611_v59 = vpop.f32.mrf.mxu0 }
 0x130   :  { %v906_v60 = vmax.f32 %v799_v56, 0.0  ;;  %v612_v61 = vadd.f32 %v1613_v36, %v611_v59 }
 0x131   :  { %v980_v62 = vpack.c.bf16 %v880_v57, %v880_v57  ;;  %v855_v63 = vmax.f32 %v672_v58, 0.0  ;;  %v1449_v57 = vld [vmem:[%s2186_s2] ss:$0 sm:$0xff] }
 0x132   :  { %v1006_v0 = vpack.c.bf16 %v906_v60, %v906_v60  ;;  %v831_v1 = vmax.f32 %v612_v61, 0.0 }
 0x133   :  { %1081 = vst.msk [vmem:[%s2188_s3 + $0x114] sm:$0xf] %vm1011_vm1, %v980_v62  ;;  %v955_v2 = vpack.c.bf16 %v855_v63, %v855_v63 }
 0x134   :  { %v736_v3 = vpop.f32.mrf.mxu2  ;;  %1107 = vst.msk [vmem:[%s2188_s3 + $0x17c] sm:$0xf] %vm1011_vm1, %v1006_v0  ;;  %v931_v4 = vpack.c.bf16 %v831_v1, %v831_v1 }
 0x135   :  { %1056 = vst.msk [vmem:[%s2188_s3 + $0xb0] sm:$0xf] %vm1011_vm1, %v955_v2  ;;  %v737_v5 = vadd.f32 %v1613_v36, %v736_v3  ;;  %v801_v6 = vpop.f32.mrf.mxu3 }
 0x136   :  { %v673_v7 = vpop.f32.mrf.mxu1  ;;  %1032 = vst.msk [vmem:[%s2188_s3 + $0x50] sm:$0xf] %vm1011_vm1, %v931_v4  ;;  %v802_v8 = vadd.f32 %v1613_v36, %v801_v6 }
 0x137   :  { %v881_v9 = vmax.f32 %v737_v5, 0.0  ;;  %v674_v10 = vadd.f32 %v1613_v36, %v673_v7  ;;  %v613_v11 = vpop.f32.mrf.mxu0 }
 0x138   :  { %v907_v12 = vmax.f32 %v802_v8, 0.0  ;;  %v614_v13 = vadd.f32 %v1613_v36, %v613_v11 }
 0x139   :  { %v981_v14 = vpack.c.bf16 %v881_v9, %v881_v9  ;;  %v856_v15 = vmax.f32 %v674_v10, 0.0 }
 0x13a   :  { %v1007_v16 = vpack.c.bf16 %v907_v12, %v907_v12  ;;  %v832_v17 = vmax.f32 %v614_v13, 0.0 }
 0x13b   :  { %1082 = vst.msk [vmem:[%s2188_s3 + $0x118] sm:$0xf] %vm1011_vm1, %v981_v14  ;;  %v956_v18 = vpack.c.bf16 %v856_v15, %v856_v15 }
 0x13c   :  { %v738_v19 = vpop.f32.mrf.mxu2  ;;  %1108 = vst.msk [vmem:[%s2188_s3 + $0x180] sm:$0xf] %vm1011_vm1, %v1007_v16  ;;  %v932_v20 = vpack.c.bf16 %v832_v17, %v832_v17 }
 0x13d   :  { %1057 = vst.msk [vmem:[%s2188_s3 + $0xb4] sm:$0xf] %vm1011_vm1, %v956_v18  ;;  %v739_v21 = vadd.f32 %v1613_v36, %v738_v19  ;;  %v803_v22 = vpop.f32.mrf.mxu3 }
 0x13e   :  { %v676_v23 = vpop.f32.mrf.mxu1  ;;  %1033 = vst.msk [vmem:[%s2188_s3 + $0x54] sm:$0xf] %vm1011_vm1, %v932_v20  ;;  %v804_v24 = vadd.f32 %v1613_v36, %v803_v22 }
 0x13f   :  { %v882_v25 = vmax.f32 %v739_v21, 0.0  ;;  %v677_v26 = vadd.f32 %v1613_v36, %v676_v23  ;;  %v616_v27 = vpop.f32.mrf.mxu0 }
 0x140   :  { %v908_v28 = vmax.f32 %v804_v24, 0.0  ;;  %v617_v29 = vadd.f32 %v1613_v36, %v616_v27 }
 0x141   :  { %v982_v30 = vpack.c.bf16 %v882_v25, %v882_v25  ;;  %v857_v31 = vmax.f32 %v677_v26, 0.0 }
 0x142   :  { %v1008_v32 = vpack.c.bf16 %v908_v28, %v908_v28  ;;  %v833_v33 = vmax.f32 %v617_v29, 0.0 }
 0x143   :  { %1083 = vst.msk [vmem:[%s2188_s3 + $0x11c] sm:$0xf] %vm1011_vm1, %v982_v30  ;;  %v957_v34 = vpack.c.bf16 %v857_v31, %v857_v31 }
 0x144   :  { %v741_v35 = vpop.f32.mrf.mxu2  ;;  %1109 = vst.msk [vmem:[%s2188_s3 + $0x184] sm:$0xf] %vm1011_vm1, %v1008_v32  ;;  %v933_v37 = vpack.c.bf16 %v833_v33, %v833_v33 }
 0x145   :  { %1058 = vst.msk [vmem:[%s2188_s3 + $0xb8] sm:$0xf] %vm1011_vm1, %v957_v34  ;;  %v742_v38 = vadd.f32 %v1613_v36, %v741_v35  ;;  %v806_v39 = vpop.f32.mrf.mxu3 }
 0x146   :  { %v678_v40 = vpop.f32.mrf.mxu1  ;;  %1034 = vst.msk [vmem:[%s2188_s3 + $0x58] sm:$0xf] %vm1011_vm1, %v933_v37  ;;  %v807_v41 = vadd.f32 %v1613_v36, %v806_v39 }
 0x147   :  { %v883_v42 = vmax.f32 %v742_v38, 0.0  ;;  %v679_v43 = vadd.f32 %v1613_v36, %v678_v40  ;;  %v618_v44 = vpop.f32.mrf.mxu0 }
 0x148   :  { %v909_v45 = vmax.f32 %v807_v41, 0.0  ;;  %v619_v46 = vadd.f32 %v1613_v36, %v618_v44 }
 0x149   :  { %v983_v47 = vpack.c.bf16 %v883_v42, %v883_v42  ;;  %v858_v48 = vmax.f32 %v679_v43, 0.0 }
 0x14a   :  { %v1009_v49 = vpack.c.bf16 %v909_v45, %v909_v45  ;;  %v834_v50 = vmax.f32 %v619_v46, 0.0 }
 0x14b   :  { %1084 = vst.msk [vmem:[%s2188_s3 + $0x120] sm:$0xf] %vm1011_vm1, %v983_v47  ;;  %v958_v51 = vpack.c.bf16 %v858_v48, %v858_v48 }
 0x14c   :  { %v743_v52 = vpop.f32.mrf.mxu2  ;;  %1110 = vst.msk [vmem:[%s2188_s3 + $0x188] sm:$0xf] %vm1011_vm1, %v1009_v49  ;;  %v934_v53 = vpack.c.bf16 %v834_v50, %v834_v50 }
 0x14d   :  { %1059 = vst.msk [vmem:[%s2188_s3 + $0xbc] sm:$0xf] %vm1011_vm1, %v958_v51  ;;  %v744_v54 = vadd.f32 %v1613_v36, %v743_v52  ;;  %v808_v55 = vpop.f32.mrf.mxu3 }
 0x14e   :  { %v681_v56 = vpop.f32.mrf.mxu1  ;;  %1035 = vst.msk [vmem:[%s2188_s3 + $0x5c] sm:$0xf] %vm1011_vm1, %v934_v53  ;;  %v809_v58 = vadd.f32 %v1449_v57, %v808_v55 }
 0x14f   :  { %v884_v59 = vmax.f32 %v744_v54, 0.0  ;;  %v682_v60 = vadd.f32 %v1449_v57, %v681_v56 }
 0x150   :  { %v910_v61 = vmax.f32 %v809_v58, 0.0 }
 0x151   :  { %v984_v62 = vpack.c.bf16 %v884_v59, %v884_v59  ;;  %v859_v63 = vmax.f32 %v682_v60, 0.0 }
 0x152   :  { %v1010_v0 = vpack.c.bf16 %v910_v61, %v910_v61 }
 0x153   :  { %1085 = vst.msk [vmem:[%s2188_s3 + $0x124] sm:$0xf] %vm1011_vm1, %v984_v62  ;;  %v959_v36 = vpack.c.bf16 %v859_v63, %v859_v63 }
 0x154   :  { %v746_v1 = vpop.f32.mrf.mxu2  ;;  %1111 = vst.msk [vmem:[%s2188_s3 + $0x18c] sm:$0xf] %vm1011_vm1, %v1010_v0 }
 0x155   :  { %1060 = vst.msk [vmem:[%s2188_s3 + $0xc0] sm:$0xf] %vm1011_vm1, %v959_v36  ;;  %v747_v2 = vadd.f32 %v1449_v57, %v746_v1 }
 0x156   :  { %v683_v3 = vpop.f32.mrf.mxu1 }
 0x157   :  { %v885_v4 = vmax.f32 %v747_v2, 0.0  ;;  %v684_v5 = vadd.f32 %v1449_v57, %v683_v3 }
 0x159   :  { %v985_v6 = vpack.c.bf16 %v885_v4, %v885_v4  ;;  %v860_v7 = vmax.f32 %v684_v5, 0.0 }
 0x15b   :  { %1086 = vst.msk [vmem:[%s2188_s3 + $0x128] sm:$0xf] %vm1011_vm1, %v985_v6  ;;  %v960_v8 = vpack.c.bf16 %v860_v7, %v860_v7 }
 0x15c   :  { %v748_v9 = vpop.f32.mrf.mxu2 }
 0x15d   :  { %1061 = vst.msk [vmem:[%s2188_s3 + $0xc4] sm:$0xf] %vm1011_vm1, %v960_v8  ;;  %v749_v10 = vadd.f32 %v1449_v57, %v748_v9 }
 0x15f   :  { %v886_v11 = vmax.f32 %v749_v10, 0.0 }
 0x161   :  { %v986_v12 = vpack.c.bf16 %v886_v11, %v886_v11 }
 0x163   :  { %1087 = vst.msk [vmem:[%s2188_s3 + $0x12c] sm:$0xf] %vm1011_vm1, %v986_v12 }

// kernel: dueling_qnet_forward.4
= control target key start
LH: loop header
LB: loop body
LE: loop exit
PB: predicated region body
PF: predicated region fallthrough
CT: control target
= control target key end

     0   :  { %vm824_vm0 = vcmask 519168   ;;  %vm845_vm1 = vcmask 516096   ;;  %s1683_s1 = inlined_call_operand.vmem [shape: bf16[512,64], index: 1, kind: input, shape index: {}]   ;;  %s1684_s2 = inlined_call_operand.vmem [shape: f32[1,64], index: 2, kind: input, shape index: {}]   ;;  %s1685_s0 = inlined_call_operand.vmem [shape: bf16[162,512], index: 0, kind: input, shape index: {}]   ;;  %s1686_s3 = inlined_call_operand.vmem [shape: bf16[162,64], index: 3, kind: output, shape index: {}]  }
   0x1   :  { %v1186_v0 = vld [vmem:[%s1683_s1 + $0x38] sm:$0xff]  ;;  %v1185_v4 = vld [vmem:[%s1683_s1 + $0x30] sm:$0xff]  ;;  %v1184_v8 = vld [vmem:[%s1683_s1 + $0x28] sm:$0xff] }
   0x2   :  { %v1194_v1 = vld [vmem:[%s1683_s1 + $0x78] sm:$0xff]  ;;  %530 = vmatpush.bf16.msra.mxu0 %v1186_v0  ;;  %v1193_v5 = vld [vmem:[%s1683_s1 + $0x70] sm:$0xff]  ;;  %v1192_v9 = vld [vmem:[%s1683_s1 + $0x68] sm:$0xff] }
   0x3   :  { %v1202_v2 = vld [vmem:[%s1683_s1 + $0xb8] sm:$0xff]  ;;  %593 = vmatpush.bf16.msra.mxu1 %v1194_v1  ;;  %v1201_v6 = vld [vmem:[%s1683_s1 + $0xb0] sm:$0xff]  ;;  %v1200_v10 = vld [vmem:[%s1683_s1 + $0xa8] sm:$0xff] }
   0x4   :  { %v1210_v3 = vld [vmem:[%s1683_s1 + $0xf8] sm:$0xff]  ;;  %656 = vmatpush.bf16.msra.mxu2 %v1202_v2  ;;  %v1209_v7 = vld [vmem:[%s1683_s1 + $0xf0] sm:$0xff]  ;;  %v1208_v11 = vld [vmem:[%s1683_s1 + $0xe8] sm:$0xff] }
   0x5   :  { %719 = vmatpush.bf16.msra.mxu3 %v1210_v3  ;;  %v1183_v12 = vld [vmem:[%s1683_s1 + $0x20] sm:$0xff]  ;;  %v1182_v16 = vld [vmem:[%s1683_s1 + $0x18] sm:$0xff]  ;;  %v1181_v20 = vld [vmem:[%s1683_s1 + $0x10] sm:$0xff] }
   0x6   :  { %531 = vmatpush.bf16.msra.mxu0 %v1185_v4  ;;  %v1191_v13 = vld [vmem:[%s1683_s1 + $0x60] sm:$0xff]  ;;  %v1190_v17 = vld [vmem:[%s1683_s1 + $0x58] sm:$0xff]  ;;  %v1189_v21 = vld [vmem:[%s1683_s1 + $0x50] sm:$0xff] }
   0x7   :  { %594 = vmatpush.bf16.msra.mxu1 %v1193_v5  ;;  %v1199_v14 = vld [vmem:[%s1683_s1 + $0xa0] sm:$0xff]  ;;  %v1198_v18 = vld [vmem:[%s1683_s1 + $0x98] sm:$0xff]  ;;  %v1197_v22 = vld [vmem:[%s1683_s1 + $0x90] sm:$0xff] }
   0x8   :  { %657 = vmatpush.bf16.msra.mxu2 %v1201_v6  ;;  %v1207_v15 = vld [vmem:[%s1683_s1 + $0xe0] sm:$0xff]  ;;  %v1206_v19 = vld [vmem:[%s1683_s1 + $0xd8] sm:$0xff]  ;;  %v1205_v23 = vld [vmem:[%s1683_s1 + $0xd0] sm:$0xff] }
   0x9   :  { %720 = vmatpush.bf16.msra.mxu3 %v1209_v7  ;;  %v1180_v24 = vld [vmem:[%s1683_s1 + $0x8] sm:$0xff]  ;;  %v1179_v28 = vld [vmem:[%s1683_s1] sm:$0xff]  ;;  %v1141_v33 = vld [vmem:[%s1685_s0 + $0xc] sm:$0xf0] }
   0xa   :  { %532 = vmatpush.bf16.msra.mxu0 %v1184_v8  ;;  %v1188_v25 = vld [vmem:[%s1683_s1 + $0x48] sm:$0xff]  ;;  %v1187_v29 = vld [vmem:[%s1683_s1 + $0x40] sm:$0xff]  ;;  %v855_v35 = vld [vmem:[%s1685_s0 + $0x10] sm:$0xf0] }
   0xb   :  { %595 = vmatpush.bf16.msra.mxu1 %v1192_v9  ;;  %v1196_v26 = vld [vmem:[%s1683_s1 + $0x88] sm:$0xff]  ;;  %v1195_v30 = vld [vmem:[%s1683_s1 + $0x80] sm:$0xff]  ;;  %v1142_v37 = vld [vmem:[%s1685_s0 + $0x14] sm:$0xf0] }
   0xc   :  { %658 = vmatpush.bf16.msra.mxu2 %v1200_v10  ;;  %v1204_v27 = vld [vmem:[%s1683_s1 + $0xc8] sm:$0xff]  ;;  %v1203_v31 = vld [vmem:[%s1683_s1 + $0xc0] sm:$0xff]  ;;  %v863_v39 = vld [vmem:[%s1685_s0 + $0x18] sm:$0xf0] }
   0xd   :  { %721 = vmatpush.bf16.msra.mxu3 %v1208_v11  ;;  %v853_v32 = vld [vmem:[%s1685_s0] sm:$0xf]  ;;  %v1139_v34 = vld [vmem:[%s1685_s0 + $0x4] sm:$0xf]  ;;  %v861_v36 = vld [vmem:[%s1685_s0 + $0x8] sm:$0xf] }
   0xe   :  { %533 = vmatpush.bf16.msra.mxu0 %v1183_v12  ;;  %v1140_v38 = vld [vmem:[%s1685_s0 + $0xc] sm:$0xf]  ;;  %v854_v40 = vor.u32 %v1141_v33, %v853_v32  ;;  %v858_v41 = vor.u32 %v1139_v34, %v855_v35  ;;  %v862_v42 = vor.u32 %v1142_v37, %v861_v36  ;;  %v869_v44 = vld [vmem:[%s1685_s0 + $0x20] sm:$0xf]  ;;  %v1145_v45 = vld [vmem:[%s1685_s0 + $0x2c] sm:$0xf0] }
   0xf   :  { %596 = vmatpush.bf16.msra.mxu1 %v1191_v13  ;;  %v866_v43 = vor.u32 %v1140_v38, %v863_v39  ;;  %v1143_v46 = vld [vmem:[%s1685_s0 + $0x24] sm:$0xf]  ;;  %v871_v47 = vld [vmem:[%s1685_s0 + $0x30] sm:$0xf0]  ;;  %v877_v48 = vld [vmem:[%s1685_s0 + $0x28] sm:$0xf]  ;;  %v870_v52 = vor.u32 %v1145_v45, %v869_v44 }
  0x10   :  { %659 = vmatpush.bf16.msra.mxu2 %v1199_v14  ;;  %v1146_v49 = vld [vmem:[%s1685_s0 + $0x34] sm:$0xf0]  ;;  %v1144_v50 = vld [vmem:[%s1685_s0 + $0x2c] sm:$0xf]  ;;  %v879_v51 = vld [vmem:[%s1685_s0 + $0x38] sm:$0xf0]  ;;  %v874_v53 = vor.u32 %v1143_v46, %v871_v47 }
  0x11   :  { %722 = vmatpush.bf16.msra.mxu3 %v1207_v15  ;;  %v878_v54 = vor.u32 %v1146_v49, %v877_v48  ;;  %v882_v55 = vor.u32 %v1144_v50, %v879_v51  ;;  %v885_v56 = vld [vmem:[%s1685_s0 + $0x40] sm:$0xf]  ;;  %v1149_v57 = vld [vmem:[%s1685_s0 + $0x4c] sm:$0xf0]  ;;  %v1147_v58 = vld [vmem:[%s1685_s0 + $0x44] sm:$0xf] }
  0x12   :  { %534 = vmatpush.bf16.msra.mxu0 %v1182_v16  ;;  %v887_v59 = vld [vmem:[%s1685_s0 + $0x50] sm:$0xf0]  ;;  %v893_v60 = vld [vmem:[%s1685_s0 + $0x48] sm:$0xf]  ;;  %v1150_v61 = vld [vmem:[%s1685_s0 + $0x54] sm:$0xf0]  ;;  %v886_v0 = vor.u32 %v1149_v57, %v885_v56 }
  0x13   :  { %597 = vmatpush.bf16.msra.mxu1 %v1190_v17  ;;  %v1148_v62 = vld [vmem:[%s1685_s0 + $0x4c] sm:$0xf]  ;;  %v895_v63 = vld [vmem:[%s1685_s0 + $0x58] sm:$0xf0]  ;;  %v890_v1 = vor.u32 %v1147_v58, %v887_v59  ;;  %v894_v2 = vor.u32 %v1150_v61, %v893_v60  ;;  %v901_v4 = vld [vmem:[%s1685_s0 + $0x60] sm:$0xf] }
  0x14   :  { %660 = vmatpush.bf16.msra.mxu2 %v1198_v18  ;;  %v898_v3 = vor.u32 %v1148_v62, %v895_v63  ;;  %v1153_v5 = vld [vmem:[%s1685_s0 + $0x6c] sm:$0xf0]  ;;  %v1151_v6 = vld [vmem:[%s1685_s0 + $0x64] sm:$0xf]  ;;  %v903_v7 = vld [vmem:[%s1685_s0 + $0x70] sm:$0xf0] }
  0x15   :  { %723 = vmatpush.bf16.msra.mxu3 %v1206_v19  ;;  %v909_v8 = vld [vmem:[%s1685_s0 + $0x68] sm:$0xf]  ;;  %v1154_v9 = vld [vmem:[%s1685_s0 + $0x74] sm:$0xf0]  ;;  %v1152_v10 = vld [vmem:[%s1685_s0 + $0x6c] sm:$0xf]  ;;  %v902_v12 = vor.u32 %v1153_v5, %v901_v4  ;;  %v906_v13 = vor.u32 %v1151_v6, %v903_v7 }
  0x16   :  { %535 = vmatpush.bf16.msra.mxu0 %v1181_v20  ;;  %v911_v11 = vld [vmem:[%s1685_s0 + $0x78] sm:$0xf0]  ;;  %v910_v14 = vor.u32 %v1154_v9, %v909_v8  ;;  %v917_v16 = vld [vmem:[%s1685_s0 + $0x80] sm:$0xf]  ;;  %v1157_v17 = vld [vmem:[%s1685_s0 + $0x8c] sm:$0xf0] }
  0x17   :  { %598 = vmatpush.bf16.msra.mxu1 %v1189_v21  ;;  %v914_v15 = vor.u32 %v1152_v10, %v911_v11  ;;  %v1155_v18 = vld [vmem:[%s1685_s0 + $0x84] sm:$0xf]  ;;  %v919_v19 = vld [vmem:[%s1685_s0 + $0x90] sm:$0xf0]  ;;  %v925_v20 = vld [vmem:[%s1685_s0 + $0x88] sm:$0xf] }
  0x18   :  { %661 = vmatpush.bf16.msra.mxu2 %v1197_v22  ;;  %v1158_v21 = vld [vmem:[%s1685_s0 + $0x94] sm:$0xf0]  ;;  %v1156_v22 = vld [vmem:[%s1685_s0 + $0x8c] sm:$0xf]  ;;  %v941_v32 = vld [vmem:[%s1685_s0 + $0xa8] sm:$0xf] }
  0x19   :  { %724 = vmatpush.bf16.msra.mxu3 %v1205_v23  ;;  %v927_v23 = vld [vmem:[%s1685_s0 + $0x98] sm:$0xf0]  ;;  %v1162_v33 = vld [vmem:[%s1685_s0 + $0xb4] sm:$0xf0]  ;;  %v1160_v34 = vld [vmem:[%s1685_s0 + $0xac] sm:$0xf] }
  0x1a   :  { %536 = vmatpush.bf16.msra.mxu0 %v1180_v24  ;;  %v918_v24 = vor.u32 %v1157_v17, %v917_v16  ;;  %v943_v35 = vld [vmem:[%s1685_s0 + $0xb8] sm:$0xf0]  ;;  %v942_v38 = vor.u32 %v1162_v33, %v941_v32  ;;  %v957_v44 = vld [vmem:[%s1685_s0 + $0xc8] sm:$0xf]  ;;  %v1166_v45 = vld [vmem:[%s1685_s0 + $0xd4] sm:$0xf0] }
  0x1b   :  { %599 = vmatpush.bf16.msra.mxu1 %v1188_v25  ;;  %v922_v25 = vor.u32 %v1155_v18, %v919_v19  ;;  %v946_v39 = vor.u32 %v1160_v34, %v943_v35  ;;  %v1164_v46 = vld [vmem:[%s1685_s0 + $0xcc] sm:$0xf]  ;;  %v959_v47 = vld [vmem:[%s1685_s0 + $0xd8] sm:$0xf0]  ;;  %v958_v50 = vor.u32 %v1166_v45, %v957_v44  ;;  %v973_v56 = vld [vmem:[%s1685_s0 + $0xe8] sm:$0xf] }
  0x1c   :  { %662 = vmatpush.bf16.msra.mxu2 %v1196_v26  ;;  %v926_v26 = vor.u32 %v1158_v21, %v925_v20  ;;  %v962_v51 = vor.u32 %v1164_v46, %v959_v47  ;;  %v1170_v57 = vld [vmem:[%s1685_s0 + $0xf4] sm:$0xf0]  ;;  %v1168_v58 = vld [vmem:[%s1685_s0 + $0xec] sm:$0xf]  ;;  %v975_v59 = vld [vmem:[%s1685_s0 + $0xf8] sm:$0xf0] }
  0x1d   :  { %725 = vmatpush.bf16.msra.mxu3 %v1204_v27  ;;  %v930_v27 = vor.u32 %v1156_v22, %v927_v23  ;;  %v974_v62 = vor.u32 %v1170_v57, %v973_v56  ;;  %v978_v63 = vor.u32 %v1168_v58, %v975_v59  ;;  %v983_v4 = vld [vmem:[%s1685_s0 + $0x110] sm:$0xf0]  ;;  %v989_v5 = vld [vmem:[%s1685_s0 + $0x108] sm:$0xf]  ;;  %v1174_v6 = vld [vmem:[%s1685_s0 + $0x114] sm:$0xf0] }
  0x1e   :  { %537 = vmatpush.bf16.msra.mxu0 %v1179_v28  ;;  %v933_v28 = vld [vmem:[%s1685_s0 + $0xa0] sm:$0xf]  ;;  %v1172_v7 = vld [vmem:[%s1685_s0 + $0x10c] sm:$0xf]  ;;  %v991_v8 = vld [vmem:[%s1685_s0 + $0x118] sm:$0xf0] }
  0x1f   :  { %600 = vmatpush.bf16.msra.mxu1 %v1187_v29  ;;  %v1161_v29 = vld [vmem:[%s1685_s0 + $0xac] sm:$0xf0]  ;;  %v1007_v32 = vld [vmem:[%s1685_s0 + $0x138] sm:$0xf0] }
  0x20   :  { %663 = vmatpush.bf16.msra.mxu2 %v1195_v30  ;;  %v1159_v30 = vld [vmem:[%s1685_s0 + $0xa4] sm:$0xf]  ;;  %v934_v36 = vor.u32 %v1161_v29, %v933_v28  ;;  %v999_v28 = vld [vmem:[%s1685_s0 + $0x130] sm:$0xf0]  ;;  %v1005_v29 = vld [vmem:[%s1685_s0 + $0x128] sm:$0xf] }
  0x21   :  { %726 = vmatpush.bf16.msra.mxu3 %v1203_v31  ;;  %538 = vmatmul.bf16.vlgmr.msra.gmra.mxu0 %v854_v40  ;;  %v935_v31 = vld [vmem:[%s1685_s0 + $0xb0] sm:$0xf0]  ;;  %v949_v40 = vld [vmem:[%s1685_s0 + $0xc0] sm:$0xf] }
  0x22   :  { %601 = vmatmul.bf16.vlgmr.msra.gmra.mxu1 %v858_v41  ;;  %v938_v37 = vor.u32 %v1159_v30, %v935_v31  ;;  %v1165_v41 = vld [vmem:[%s1685_s0 + $0xcc] sm:$0xf0]  ;;  %v1178_v30 = vld [vmem:[%s1685_s0 + $0x134] sm:$0xf0]  ;;  %v1176_v31 = vld [vmem:[%s1685_s0 + $0x12c] sm:$0xf] }
  0x23   :  { %664 = vmatmul.bf16.vlgmr.msra.gmra.mxu2 %v862_v42  ;;  %v1163_v42 = vld [vmem:[%s1685_s0 + $0xc4] sm:$0xf]  ;;  %v950_v48 = vor.u32 %v1165_v41, %v949_v40 }
  0x24   :  { %727 = vmatmul.bf16.vlgmr.msra.gmra.mxu3 %v866_v43  ;;  %v951_v43 = vld [vmem:[%s1685_s0 + $0xd0] sm:$0xf0] }
  0x25   :  { %v954_v49 = vor.u32 %v1163_v42, %v951_v43  ;;  %v1006_v42 = vor.u32 %v1178_v30, %v1005_v29  ;;  %v1010_v43 = vor.u32 %v1176_v31, %v1007_v32 }
  0x31   :  { %543 = vmatmul.bf16.gmra.mxu0 %v870_v52  ;;  %v965_v52 = vld [vmem:[%s1685_s0 + $0xe0] sm:$0xf] }
  0x32   :  { %606 = vmatmul.bf16.gmra.mxu1 %v874_v53  ;;  %v1169_v53 = vld [vmem:[%s1685_s0 + $0xec] sm:$0xf0] }
  0x33   :  { %669 = vmatmul.bf16.gmra.mxu2 %v878_v54  ;;  %v1167_v54 = vld [vmem:[%s1685_s0 + $0xe4] sm:$0xf]  ;;  %v966_v60 = vor.u32 %v1169_v53, %v965_v52 }
  0x34   :  { %732 = vmatmul.bf16.gmra.mxu3 %v882_v55  ;;  %v967_v55 = vld [vmem:[%s1685_s0 + $0xf0] sm:$0xf0] }
  0x35   :  { %v970_v61 = vor.u32 %v1167_v54, %v967_v55  ;;  %v54_v54 = vld [vmem:[%s1685_s0 + $0x140] sm:$0x11]  ;;  %v55_v55 = vld [vmem:[%s1685_s0 + $0x148] sm:$0x11] }
  0x36   :  { %v246_v58 = vunpack.c.l.b16 %v54_v54  ;;  %v247_v59 = vunpack.c.h.b16 %v54_v54 }
  0x41   :  { %548 = vmatmul.bf16.gmra.mxu0 %v886_v0  ;;  %v1523_v0 = vld [vmem:[%s1684_s2] ss:$0 sm:$0xff] }
  0x42   :  { %611 = vmatmul.bf16.gmra.mxu1 %v890_v1  ;;  %v981_v1 = vld [vmem:[%s1685_s0 + $0x100] sm:$0xf] }
  0x43   :  { %674 = vmatmul.bf16.gmra.mxu2 %v894_v2  ;;  %v1173_v2 = vld [vmem:[%s1685_s0 + $0x10c] sm:$0xf0] }
  0x44   :  { %737 = vmatmul.bf16.gmra.mxu3 %v898_v3  ;;  %v1171_v3 = vld [vmem:[%s1685_s0 + $0x104] sm:$0xf]  ;;  %v982_v9 = vor.u32 %v1173_v2, %v981_v1 }
  0x45   :  { %v986_v10 = vor.u32 %v1171_v3, %v983_v4  ;;  %v290_v4 = vpack.c.b16 %v246_v58, %v246_v58 }
  0x51   :  { %553 = vmatmul.bf16.gmra.mxu0 %v902_v12 }
  0x52   :  { %616 = vmatmul.bf16.gmra.mxu1 %v906_v13  ;;  %v990_v13 = vor.u32 %v1174_v6, %v989_v5  ;;  %v291_v5 = vpack.c.b16 %v247_v59, %v247_v59 }
  0x53   :  { %679 = vmatmul.bf16.gmra.mxu2 %v910_v14  ;;  %v994_v14 = vor.u32 %v1172_v7, %v991_v8 }
  0x54   :  { %742 = vmatmul.bf16.gmra.mxu3 %v914_v15 }
  0x61   :  { %558 = vmatmul.bf16.gmra.mxu0 %v918_v24  ;;  %v997_v24 = vld [vmem:[%s1685_s0 + $0x120] sm:$0xf] }
  0x62   :  { %621 = vmatmul.bf16.gmra.mxu1 %v922_v25  ;;  %v1177_v25 = vld [vmem:[%s1685_s0 + $0x12c] sm:$0xf0] }
  0x63   :  { %684 = vmatmul.bf16.gmra.mxu2 %v926_v26  ;;  %v1175_v26 = vld [vmem:[%s1685_s0 + $0x124] sm:$0xf] }
  0x64   :  { %747 = vmatmul.bf16.gmra.mxu3 %v930_v27 }
  0x71   :  { %563 = vmatmul.bf16.gmra.mxu0 %v934_v36 }
  0x72   :  { %626 = vmatmul.bf16.gmra.mxu1 %v938_v37  ;;  %v998_v37 = vor.u32 %v1177_v25, %v997_v24 }
  0x73   :  { %689 = vmatmul.bf16.gmra.mxu2 %v942_v38  ;;  %v1002_v38 = vor.u32 %v1175_v26, %v999_v28 }
  0x74   :  { %752 = vmatmul.bf16.gmra.mxu3 %v946_v39 }
  0x81   :  { %568 = vmatmul.bf16.gmra.mxu0 %v950_v48 }
  0x82   :  { %631 = vmatmul.bf16.gmra.mxu1 %v954_v49 }
  0x83   :  { %694 = vmatmul.bf16.gmra.mxu2 %v958_v50 }
  0x84   :  { %757 = vmatmul.bf16.gmra.mxu3 %v962_v51 }
  0x91   :  { %573 = vmatmul.bf16.gmra.mxu0 %v966_v60 }
  0x92   :  { %636 = vmatmul.bf16.gmra.mxu1 %v970_v61  ;;  %v248_v61 = vunpack.c.l.b16 %v55_v55 }
  0x93   :  { %699 = vmatmul.bf16.gmra.mxu2 %v974_v62  ;;  %v249_v62 = vunpack.c.h.b16 %v55_v55 }
  0x94   :  { %762 = vmatmul.bf16.gmra.mxu3 %v978_v63 }
  0x9e   :  { %v539_v11 = vpop.f32.mrf.mxu0 }
  0x9f   :  { %v602_v12 = vpop.f32.mrf.mxu1  ;;  %v540_v15 = vadd.f32 %v1523_v0, %v539_v11 }
  0xa1   :  { %578 = vmatmul.bf16.gmra.mxu0 %v982_v9  ;;  %v603_v16 = vadd.f32 %v602_v12, %v540_v15  ;;  %v292_v9 = vpack.c.b16 %v248_v61, %v248_v61 }
  0xa2   :  { %641 = vmatmul.bf16.gmra.mxu1 %v986_v10  ;;  %v293_v10 = vpack.c.b16 %v249_v62, %v249_v62 }
  0xa3   :  { %704 = vmatmul.bf16.gmra.mxu2 %v990_v13 }
  0xa4   :  { %767 = vmatmul.bf16.gmra.mxu3 %v994_v14 }
  0xa6   :  { %v665_v17 = vpop.f32.mrf.mxu2  ;;  %v541_v20 = vpop.f32.mrf.mxu0 }
  0xa7   :  { %v728_v18 = vpop.f32.mrf.mxu3  ;;  %v666_v19 = vadd.f32 %v665_v17, %v603_v16  ;;  %v604_v21 = vpop.f32.mrf.mxu1  ;;  %v542_v23 = vadd.f32 %v1523_v0, %v541_v20 }
  0xa9   :  { %v729_v22 = vadd.f32 %v728_v18, %v666_v19  ;;  %v605_v34 = vadd.f32 %v604_v21, %v542_v23 }
  0xab   :  { %v782_v27 = vmax.f32 %v729_v22, 0.0 }
  0xad   :  { %v803_v33 = vpack.c.bf16 %v782_v27, %v782_v27 }
  0xae   :  { %v667_v35 = vpop.f32.mrf.mxu2  ;;  %v544_v40 = vpop.f32.mrf.mxu0 }
  0xaf   :  { %v730_v36 = vpop.f32.mrf.mxu3  ;;  %825 = vst.msk [vmem:[%s1686_s3] sm:$0xf] %vm824_vm0, %v803_v33  ;;  %v668_v39 = vadd.f32 %v667_v35, %v605_v34  ;;  %v607_v41 = vpop.f32.mrf.mxu1  ;;  %v545_v44 = vadd.f32 %v1523_v0, %v544_v40 }
  0xb1   :  { %v731_v45 = vadd.f32 %v730_v36, %v668_v39  ;;  %583 = vmatmul.bf16.gmra.mxu0 %v998_v37  ;;  %v608_v47 = vadd.f32 %v607_v41, %v545_v44 }
  0xb2   :  { %646 = vmatmul.bf16.gmra.mxu1 %v1002_v38 }
  0xb3   :  { %v783_v46 = vmax.f32 %v731_v45, 0.0  ;;  %709 = vmatmul.bf16.gmra.mxu2 %v1006_v42 }
  0xb4   :  { %772 = vmatmul.bf16.gmra.mxu3 %v1010_v43 }
  0xb5   :  { %v804_v48 = vpack.c.bf16 %v783_v46, %v783_v46 }
  0xb6   :  { %v670_v49 = vpop.f32.mrf.mxu2  ;;  %v546_v52 = vpop.f32.mrf.mxu0 }
  0xb7   :  { %v733_v50 = vpop.f32.mrf.mxu3  ;;  %826 = vst.msk [vmem:[%s1686_s3 + $0x4] sm:$0xf] %vm824_vm0, %v804_v48  ;;  %v671_v51 = vadd.f32 %v670_v49, %v608_v47  ;;  %v609_v53 = vpop.f32.mrf.mxu1  ;;  %v547_v57 = vadd.f32 %v1523_v0, %v546_v52 }
  0xb9   :  { %v734_v56 = vadd.f32 %v733_v50, %v671_v51  ;;  %v610_v1 = vadd.f32 %v609_v53, %v547_v57 }
  0xbb   :  { %v784_v60 = vmax.f32 %v734_v56, 0.0 }
  0xbd   :  { %v805_v63 = vpack.c.bf16 %v784_v60, %v784_v60 }
  0xbe   :  { %v672_v2 = vpop.f32.mrf.mxu2  ;;  %v549_v7 = vpop.f32.mrf.mxu0 }
  0xbf   :  { %v735_v3 = vpop.f32.mrf.mxu3  ;;  %827 = vst.msk [vmem:[%s1686_s3 + $0x8] sm:$0xf] %vm824_vm0, %v805_v63  ;;  %v673_v6 = vadd.f32 %v672_v2, %v610_v1  ;;  %v612_v8 = vpop.f32.mrf.mxu1  ;;  %v550_v11 = vadd.f32 %v1523_v0, %v549_v7 }
  0xc1   :  { %v736_v12 = vadd.f32 %v735_v3, %v673_v6  ;;  %588 = vmatmul.bf16.gmra.mxu0 %v290_v4  ;;  %v613_v14 = vadd.f32 %v612_v8, %v550_v11 }
  0xc2   :  { %651 = vmatmul.bf16.gmra.mxu1 %v291_v5 }
  0xc3   :  { %v785_v13 = vmax.f32 %v736_v12, 0.0  ;;  %714 = vmatmul.bf16.gmra.mxu2 %v292_v9 }
  0xc4   :  { %777 = vmatmul.bf16.gmra.mxu3 %v293_v10 }
  0xc5   :  { %v806_v15 = vpack.c.bf16 %v785_v13, %v785_v13 }
  0xc6   :  { %v675_v16 = vpop.f32.mrf.mxu2  ;;  %v551_v19 = vpop.f32.mrf.mxu0 }
  0xc7   :  { %v738_v17 = vpop.f32.mrf.mxu3  ;;  %828 = vst.msk [vmem:[%s1686_s3 + $0xc] sm:$0xf] %vm824_vm0, %v806_v15  ;;  %v676_v18 = vadd.f32 %v675_v16, %v613_v14  ;;  %v614_v20 = vpop.f32.mrf.mxu1  ;;  %v552_v22 = vadd.f32 %v1523_v0, %v551_v19 }
  0xc9   :  { %v739_v21 = vadd.f32 %v738_v17, %v676_v18  ;;  %v615_v25 = vadd.f32 %v614_v20, %v552_v22 }
  0xcb   :  { %v786_v23 = vmax.f32 %v739_v21, 0.0 }
  0xcd   :  { %v807_v24 = vpack.c.bf16 %v786_v23, %v786_v23 }
  0xce   :  { %v677_v26 = vpop.f32.mrf.mxu2  ;;  %v554_v29 = vpop.f32.mrf.mxu0 }
  0xcf   :  { %v740_v27 = vpop.f32.mrf.mxu3  ;;  %829 = vst.msk [vmem:[%s1686_s3 + $0x10] sm:$0xf] %vm824_vm0, %v807_v24  ;;  %v678_v28 = vadd.f32 %v677_v26, %v615_v25  ;;  %v617_v30 = vpop.f32.mrf.mxu1  ;;  %v555_v31 = vadd.f32 %v1523_v0, %v554_v29 }
  0xd1   :  { %v741_v32 = vadd.f32 %v740_v27, %v678_v28  ;;  %v618_v34 = vadd.f32 %v617_v30, %v555_v31 }
  0xd3   :  { %v787_v33 = vmax.f32 %v741_v32, 0.0 }
  0xd5   :  { %v808_v35 = vpack.c.bf16 %v787_v33, %v787_v33 }
  0xd6   :  { %v680_v36 = vpop.f32.mrf.mxu2  ;;  %v556_v39 = vpop.f32.mrf.mxu0 }
  0xd7   :  { %v743_v37 = vpop.f32.mrf.mxu3  ;;  %830 = vst.msk [vmem:[%s1686_s3 + $0x14] sm:$0xf] %vm824_vm0, %v808_v35  ;;  %v681_v38 = vadd.f32 %v680_v36, %v618_v34  ;;  %v619_v40 = vpop.f32.mrf.mxu1  ;;  %v557_v42 = vadd.f32 %v1523_v0, %v556_v39 }
  0xd9   :  { %v744_v41 = vadd.f32 %v743_v37, %v681_v38  ;;  %v620_v45 = vadd.f32 %v619_v40, %v557_v42 }
  0xdb   :  { %v788_v43 = vmax.f32 %v744_v41, 0.0 }
  0xdd   :  { %v809_v44 = vpack.c.bf16 %v788_v43, %v788_v43 }
  0xde   :  { %v682_v46 = vpop.f32.mrf.mxu2  ;;  %v559_v49 = vpop.f32.mrf.mxu0 }
  0xdf   :  { %v745_v47 = vpop.f32.mrf.mxu3  ;;  %831 = vst.msk [vmem:[%s1686_s3 + $0x18] sm:$0xf] %vm824_vm0, %v809_v44  ;;  %v683_v48 = vadd.f32 %v682_v46, %v620_v45  ;;  %v622_v50 = vpop.f32.mrf.mxu1  ;;  %v560_v51 = vadd.f32 %v1523_v0, %v559_v49 }
  0xe1   :  { %v746_v52 = vadd.f32 %v745_v47, %v683_v48  ;;  %v623_v54 = vadd.f32 %v622_v50, %v560_v51 }
  0xe3   :  { %v789_v53 = vmax.f32 %v746_v52, 0.0 }
  0xe5   :  { %v810_v55 = vpack.c.bf16 %v789_v53, %v789_v53 }
  0xe6   :  { %v685_v56 = vpop.f32.mrf.mxu2  ;;  %v561_v59 = vpop.f32.mrf.mxu0 }
  0xe7   :  { %v748_v57 = vpop.f32.mrf.mxu3  ;;  %832 = vst.msk [vmem:[%s1686_s3 + $0x1c] sm:$0xf] %vm824_vm0, %v810_v55  ;;  %v686_v58 = vadd.f32 %v685_v56, %v623_v54  ;;  %v624_v60 = vpop.f32.mrf.mxu1  ;;  %v562_v62 = vadd.f32 %v1523_v0, %v561_v59 }
  0xe9   :  { %v749_v61 = vadd.f32 %v748_v57, %v686_v58  ;;  %v625_v2 = vadd.f32 %v624_v60, %v562_v62 }
  0xeb   :  { %v790_v63 = vmax.f32 %v749_v61, 0.0 }
  0xed   :  { %v811_v1 = vpack.c.bf16 %v790_v63, %v790_v63 }
  0xee   :  { %v687_v3 = vpop.f32.mrf.mxu2  ;;  %v564_v6 = vpop.f32.mrf.mxu0 }
  0xef   :  { %v750_v4 = vpop.f32.mrf.mxu3  ;;  %833 = vst.msk [vmem:[%s1686_s3 + $0x20] sm:$0xf] %vm824_vm0, %v811_v1  ;;  %v688_v5 = vadd.f32 %v687_v3, %v625_v2  ;;  %v627_v7 = vpop.f32.mrf.mxu1  ;;  %v565_v8 = vadd.f32 %v1523_v0, %v564_v6 }
  0xf1   :  { %v751_v9 = vadd.f32 %v750_v4, %v688_v5  ;;  %v628_v11 = vadd.f32 %v627_v7, %v565_v8 }
  0xf3   :  { %v791_v10 = vmax.f32 %v751_v9, 0.0 }
  0xf5   :  { %v812_v12 = vpack.c.bf16 %v791_v10, %v791_v10 }
  0xf6   :  { %v690_v13 = vpop.f32.mrf.mxu2  ;;  %v566_v16 = vpop.f32.mrf.mxu0 }
  0xf7   :  { %v753_v14 = vpop.f32.mrf.mxu3  ;;  %834 = vst.msk [vmem:[%s1686_s3 + $0x24] sm:$0xf] %vm824_vm0, %v812_v12  ;;  %v691_v15 = vadd.f32 %v690_v13, %v628_v11  ;;  %v629_v17 = vpop.f32.mrf.mxu1  ;;  %v567_v19 = vadd.f32 %v1523_v0, %v566_v16 }
  0xf9   :  { %v754_v18 = vadd.f32 %v753_v14, %v691_v15  ;;  %v630_v22 = vadd.f32 %v629_v17, %v567_v19 }
  0xfb   :  { %v792_v20 = vmax.f32 %v754_v18, 0.0 }
  0xfd   :  { %v813_v21 = vpack.c.bf16 %v792_v20, %v792_v20 }
  0xfe   :  { %v692_v23 = vpop.f32.mrf.mxu2  ;;  %v569_v26 = vpop.f32.mrf.mxu0 }
  0xff   :  { %v755_v24 = vpop.f32.mrf.mxu3  ;;  %835 = vst.msk [vmem:[%s1686_s3 + $0x28] sm:$0xf] %vm824_vm0, %v813_v21  ;;  %v693_v25 = vadd.f32 %v692_v23, %v630_v22  ;;  %v632_v27 = vpop.f32.mrf.mxu1  ;;  %v570_v28 = vadd.f32 %v1523_v0, %v569_v26 }
 0x101   :  { %v756_v29 = vadd.f32 %v755_v24, %v693_v25  ;;  %v633_v31 = vadd.f32 %v632_v27, %v570_v28 }
 0x103   :  { %v793_v30 = vmax.f32 %v756_v29, 0.0 }
 0x105   :  { %v814_v32 = vpack.c.bf16 %v793_v30, %v793_v30 }
 0x106   :  { %v695_v33 = vpop.f32.mrf.mxu2  ;;  %v571_v36 = vpop.f32.mrf.mxu0 }
 0x107   :  { %v758_v34 = vpop.f32.mrf.mxu3  ;;  %836 = vst.msk [vmem:[%s1686_s3 + $0x2c] sm:$0xf] %vm824_vm0, %v814_v32  ;;  %v696_v35 = vadd.f32 %v695_v33, %v633_v31  ;;  %v634_v37 = vpop.f32.mrf.mxu1  ;;  %v572_v39 = vadd.f32 %v1523_v0, %v571_v36 }
 0x109   :  { %v759_v38 = vadd.f32 %v758_v34, %v696_v35  ;;  %v635_v42 = vadd.f32 %v634_v37, %v572_v39 }
 0x10b   :  { %v794_v40 = vmax.f32 %v759_v38, 0.0 }
 0x10d   :  { %v815_v41 = vpack.c.bf16 %v794_v40, %v794_v40 }
 0x10e   :  { %v697_v43 = vpop.f32.mrf.mxu2  ;;  %v574_v46 = vpop.f32.mrf.mxu0 }
 0x10f   :  { %v760_v44 = vpop.f32.mrf.mxu3  ;;  %837 = vst.msk [vmem:[%s1686_s3 + $0x30] sm:$0xf] %vm824_vm0, %v815_v41  ;;  %v698_v45 = vadd.f32 %v697_v43, %v635_v42  ;;  %v637_v47 = vpop.f32.mrf.mxu1  ;;  %v575_v48 = vadd.f32 %v1523_v0, %v574_v46 }
 0x111   :  { %v761_v49 = vadd.f32 %v760_v44, %v698_v45  ;;  %v638_v51 = vadd.f32 %v637_v47, %v575_v48 }
 0x113   :  { %v795_v50 = vmax.f32 %v761_v49, 0.0 }
 0x115   :  { %v816_v52 = vpack.c.bf16 %v795_v50, %v795_v50 }
 0x116   :  { %v700_v53 = vpop.f32.mrf.mxu2  ;;  %v576_v56 = vpop.f32.mrf.mxu0 }
 0x117   :  { %v763_v54 = vpop.f32.mrf.mxu3  ;;  %838 = vst.msk [vmem:[%s1686_s3 + $0x34] sm:$0xf] %vm824_vm0, %v816_v52  ;;  %v701_v55 = vadd.f32 %v700_v53, %v638_v51  ;;  %v639_v57 = vpop.f32.mrf.mxu1  ;;  %v577_v59 = vadd.f32 %v1523_v0, %v576_v56 }
 0x119   :  { %v764_v58 = vadd.f32 %v763_v54, %v701_v55  ;;  %v640_v62 = vadd.f32 %v639_v57, %v577_v59 }
 0x11b   :  { %v796_v60 = vmax.f32 %v764_v58, 0.0 }
 0x11d   :  { %v817_v61 = vpack.c.bf16 %v796_v60, %v796_v60 }
 0x11e   :  { %v702_v63 = vpop.f32.mrf.mxu2  ;;  %v579_v3 = vpop.f32.mrf.mxu0 }
 0x11f   :  { %v765_v1 = vpop.f32.mrf.mxu3  ;;  %839 = vst.msk [vmem:[%s1686_s3 + $0x38] sm:$0xf] %vm824_vm0, %v817_v61  ;;  %v703_v2 = vadd.f32 %v702_v63, %v640_v62  ;;  %v642_v4 = vpop.f32.mrf.mxu1  ;;  %v580_v5 = vadd.f32 %v1523_v0, %v579_v3 }
 0x121   :  { %v766_v6 = vadd.f32 %v765_v1, %v703_v2  ;;  %v643_v8 = vadd.f32 %v642_v4, %v580_v5 }
 0x123   :  { %v797_v7 = vmax.f32 %v766_v6, 0.0 }
 0x125   :  { %v818_v9 = vpack.c.bf16 %v797_v7, %v797_v7 }
 0x126   :  { %v705_v10 = vpop.f32.mrf.mxu2  ;;  %v581_v13 = vpop.f32.mrf.mxu0 }
 0x127   :  { %v768_v11 = vpop.f32.mrf.mxu3  ;;  %840 = vst.msk [vmem:[%s1686_s3 + $0x3c] sm:$0xf] %vm824_vm0, %v818_v9  ;;  %v706_v12 = vadd.f32 %v705_v10, %v643_v8  ;;  %v644_v14 = vpop.f32.mrf.mxu1  ;;  %v582_v16 = vadd.f32 %v1523_v0, %v581_v13 }
 0x129   :  { %v769_v15 = vadd.f32 %v768_v11, %v706_v12  ;;  %v645_v19 = vadd.f32 %v644_v14, %v582_v16 }
 0x12b   :  { %v798_v17 = vmax.f32 %v769_v15, 0.0 }
 0x12d   :  { %v819_v18 = vpack.c.bf16 %v798_v17, %v798_v17 }
 0x12e   :  { %v707_v20 = vpop.f32.mrf.mxu2  ;;  %v584_v23 = vpop.f32.mrf.mxu0 }
 0x12f   :  { %v770_v21 = vpop.f32.mrf.mxu3  ;;  %841 = vst.msk [vmem:[%s1686_s3 + $0x40] sm:$0xf] %vm824_vm0, %v819_v18  ;;  %v708_v22 = vadd.f32 %v707_v20, %v645_v19  ;;  %v647_v24 = vpop.f32.mrf.mxu1  ;;  %v585_v25 = vadd.f32 %v1523_v0, %v584_v23 }
 0x131   :  { %v771_v26 = vadd.f32 %v770_v21, %v708_v22  ;;  %v648_v28 = vadd.f32 %v647_v24, %v585_v25 }
 0x133   :  { %v799_v27 = vmax.f32 %v771_v26, 0.0 }
 0x135   :  { %v820_v29 = vpack.c.bf16 %v799_v27, %v799_v27 }
 0x136   :  { %v710_v30 = vpop.f32.mrf.mxu2  ;;  %v586_v33 = vpop.f32.mrf.mxu0 }
 0x137   :  { %v773_v31 = vpop.f32.mrf.mxu3  ;;  %842 = vst.msk [vmem:[%s1686_s3 + $0x44] sm:$0xf] %vm824_vm0, %v820_v29  ;;  %v711_v32 = vadd.f32 %v710_v30, %v648_v28  ;;  %v649_v34 = vpop.f32.mrf.mxu1  ;;  %v587_v36 = vadd.f32 %v1523_v0, %v586_v33 }
 0x139   :  { %v774_v35 = vadd.f32 %v773_v31, %v711_v32  ;;  %v650_v39 = vadd.f32 %v649_v34, %v587_v36 }
 0x13b   :  { %v800_v37 = vmax.f32 %v774_v35, 0.0 }
 0x13d   :  { %v821_v38 = vpack.c.bf16 %v800_v37, %v800_v37 }
 0x13e   :  { %v712_v40 = vpop.f32.mrf.mxu2  ;;  %v589_v43 = vpop.f32.mrf.mxu0 }
 0x13f   :  { %v775_v41 = vpop.f32.mrf.mxu3  ;;  %843 = vst.msk [vmem:[%s1686_s3 + $0x48] sm:$0xf] %vm824_vm0, %v821_v38  ;;  %v713_v42 = vadd.f32 %v712_v40, %v650_v39  ;;  %v652_v44 = vpop.f32.mrf.mxu1  ;;  %v590_v45 = vadd.f32 %v1523_v0, %v589_v43 }
 0x141   :  { %v776_v46 = vadd.f32 %v775_v41, %v713_v42  ;;  %v653_v48 = vadd.f32 %v652_v44, %v590_v45 }
 0x143   :  { %v801_v47 = vmax.f32 %v776_v46, 0.0 }
 0x145   :  { %v822_v49 = vpack.c.bf16 %v801_v47, %v801_v47 }
 0x146   :  { %v715_v50 = vpop.f32.mrf.mxu2  ;;  %v591_v53 = vpop.f32.mrf.mxu0 }
 0x147   :  { %v778_v51 = vpop.f32.mrf.mxu3  ;;  %844 = vst.msk [vmem:[%s1686_s3 + $0x4c] sm:$0xf] %vm824_vm0, %v822_v49  ;;  %v716_v52 = vadd.f32 %v715_v50, %v653_v48  ;;  %v654_v54 = vpop.f32.mrf.mxu1 }
 0x149   :  { %v779_v55 = vadd.f32 %v778_v51, %v716_v52 }
 0x14b   :  { %v802_v56 = vmax.f32 %v779_v55, 0.0 }
 0x14d   :  { %v823_v57 = vpack.c.bf16 %v802_v56, %v802_v56 }
 0x14e   :  { %v717_v58 = vpop.f32.mrf.mxu2 }
 0x14f   :  { %v780_v0 = vpop.f32.mrf.mxu3  ;;  %846 = vst.msk [vmem:[%s1686_s3 + $0x50] sm:$0x1] %vm845_vm1, %v823_v57 }

// kernel: dueling_qnet_forward.5
= control target key start
LH: loop header
LB: loop body
LE: loop exit
PB: predicated region body
PF: predicated region fallthrough
CT: control target
= control target key end

     0   :  { %s20564_s0 = inlined_call_operand.vmem [shape: bf16[98,576], index: 0, kind: input, shape index: {}]   ;;  %s20565_s1 = inlined_call_operand.vmem [shape: bf16[576,64], index: 1, kind: input, shape index: {}]   ;;  %s20566_s2 = inlined_call_operand.vmem [shape: f32[1,64], index: 2, kind: input, shape index: {}]   ;;  %s20567_s3 = inlined_call_operand.vmem [shape: bf16[49,64,512], index: 3, kind: input, shape index: {}]   ;;  %s20568_s4 = inlined_call_operand.vmem [shape: f32[1,512], index: 4, kind: input, shape index: {}]   ;;  %s20569_s5 = inlined_call_operand.vmem [shape: bf16[512,7], index: 5, kind: input, shape index: {}]   ;;  %s20570_s6 = inlined_call_operand.vmem [shape: f32[1,7], index: 6, kind: input, shape index: {}]   ;;  %s20571_s7 = inlined_call_operand.hbm [shape: f32[2,6], index: 7, kind: output, shape index: {}]  }
   0x1   :  { %v13424_v0 = vld [vmem:[%s20565_s1 + $0x38] sm:$0xff]  ;;  %v13423_v4 = vld [vmem:[%s20565_s1 + $0x30] sm:$0xff]  ;;  %v13422_v8 = vld [vmem:[%s20565_s1 + $0x28] sm:$0xff] }
   0x2   :  { %v13440_v1 = vld [vmem:[%s20565_s1 + $0xb8] sm:$0xff]  ;;  %548 = vmatpush.bf16.msra.mxu0 %v13424_v0  ;;  %v13439_v5 = vld [vmem:[%s20565_s1 + $0xb0] sm:$0xff]  ;;  %v13438_v9 = vld [vmem:[%s20565_s1 + $0xa8] sm:$0xff] }
   0x3   :  { %v13432_v2 = vld [vmem:[%s20565_s1 + $0x78] sm:$0xff]  ;;  %634 = vmatpush.bf16.msra.mxu2 %v13440_v1  ;;  %v13431_v6 = vld [vmem:[%s20565_s1 + $0x70] sm:$0xff]  ;;  %v13430_v10 = vld [vmem:[%s20565_s1 + $0x68] sm:$0xff] }
   0x4   :  { %v13448_v3 = vld [vmem:[%s20565_s1 + $0xf8] sm:$0xff]  ;;  %591 = vmatpush.bf16.msra.mxu1 %v13432_v2  ;;  %v13447_v7 = vld [vmem:[%s20565_s1 + $0xf0] sm:$0xff]  ;;  %v13446_v11 = vld [vmem:[%s20565_s1 + $0xe8] sm:$0xff] }
   0x5   :  { %677 = vmatpush.bf16.msra.mxu3 %v13448_v3  ;;  %v13421_v12 = vld [vmem:[%s20565_s1 + $0x20] sm:$0xff]  ;;  %v13420_v16 = vld [vmem:[%s20565_s1 + $0x18] sm:$0xff] }
   0x6   :  { %549 = vmatpush.bf16.msra.mxu0 %v13423_v4  ;;  %v13437_v13 = vld [vmem:[%s20565_s1 + $0xa0] sm:$0xff]  ;;  %v13436_v17 = vld [vmem:[%s20565_s1 + $0x98] sm:$0xff] }
   0x7   :  { %635 = vmatpush.bf16.msra.mxu2 %v13439_v5  ;;  %v13429_v14 = vld [vmem:[%s20565_s1 + $0x60] sm:$0xff]  ;;  %v13428_v18 = vld [vmem:[%s20565_s1 + $0x58] sm:$0xff] }
   0x8   :  { %592 = vmatpush.bf16.msra.mxu1 %v13431_v6  ;;  %v13445_v15 = vld [vmem:[%s20565_s1 + $0xe0] sm:$0xff]  ;;  %v13444_v19 = vld [vmem:[%s20565_s1 + $0xd8] sm:$0xff] }
   0x9   :  { %678 = vmatpush.bf16.msra.mxu3 %v13447_v7 }
   0xa   :  { %550 = vmatpush.bf16.msra.mxu0 %v13422_v8 }
   0xb   :  { %636 = vmatpush.bf16.msra.mxu2 %v13438_v9 }
   0xc   :  { %593 = vmatpush.bf16.msra.mxu1 %v13430_v10 }
   0xd   :  { %679 = vmatpush.bf16.msra.mxu3 %v13446_v11 }
   0xe   :  { %551 = vmatpush.bf16.msra.mxu0 %v13421_v12 }
   0xf   :  { %637 = vmatpush.bf16.msra.mxu2 %v13437_v13 }
  0x10   :  { %594 = vmatpush.bf16.msra.mxu1 %v13429_v14 }
  0x11   :  { %680 = vmatpush.bf16.msra.mxu3 %v13445_v15 }
  0x12   :  { %12 = vsyncpa [#allocation4], 0  ;;  %552 = vmatpush.bf16.msra.mxu0 %v13420_v16  ;;  %v13419_v20 = vld [vmem:[%s20565_s1 + $0x10] sm:$0xff]  ;;  %v13418_v24 = vld [vmem:[%s20565_s1 + $0x8] sm:$0xff]  ;;  %vm526_vm0 = vcmask 523264   ;;  %vm788_vm1 = vcmask 517120  }
  0x13   :  { %638 = vmatpush.bf16.msra.mxu2 %v13436_v17  ;;  %v13435_v21 = vld [vmem:[%s20565_s1 + $0x90] sm:$0xff]  ;;  %v13434_v25 = vld [vmem:[%s20565_s1 + $0x88] sm:$0xff]  ;;  %v13417_v28 = vld [vmem:[%s20565_s1] sm:$0xff]  ;;  %s8879_s12 = sshll.u32 %s20571_s7, 4  ;;  %vm8870_vm2 = vcmask 41984   ;;  %s8880_s12 = int_to_ptr.hbm [resolvable:$true] %s8879_s12 }
  0x14   :  { %595 = vmatpush.bf16.msra.mxu1 %v13428_v18  ;;  %v13427_v22 = vld [vmem:[%s20565_s1 + $0x50] sm:$0xff]  ;;  %v13426_v26 = vld [vmem:[%s20565_s1 + $0x48] sm:$0xff]  ;;  %v13433_v29 = vld [vmem:[%s20565_s1 + $0x80] sm:$0xff] }
  0x15   :  { %681 = vmatpush.bf16.msra.mxu3 %v13444_v19  ;;  %v13443_v23 = vld [vmem:[%s20565_s1 + $0xd0] sm:$0xff]  ;;  %v13442_v27 = vld [vmem:[%s20565_s1 + $0xc8] sm:$0xff]  ;;  %v13425_v30 = vld [vmem:[%s20565_s1 + $0x40] sm:$0xff] }
  0x16   :  { %553 = vmatpush.bf16.msra.mxu0 %v13419_v20  ;;  %v13441_v31 = vld [vmem:[%s20565_s1 + $0xc0] sm:$0xff]  ;;  %v13389_v33 = vld [vmem:[%s20564_s0 + $0x10] sm:$0xf0]  ;;  %v8898_v34 = vld [vmem:[%s20564_s0 + $0x8] sm:$0xf] }
  0x17   :  { %639 = vmatpush.bf16.msra.mxu2 %v13435_v21  ;;  %v8890_v32 = vld [vmem:[%s20564_s0] sm:$0xf]  ;;  %v13390_v35 = vld [vmem:[%s20564_s0 + $0x18] sm:$0xf0]  ;;  %v13387_v36 = vld [vmem:[%s20564_s0 + $0x4] sm:$0xf] }
  0x18   :  { %596 = vmatpush.bf16.msra.mxu1 %v13427_v22  ;;  %v8892_v37 = vld [vmem:[%s20564_s0 + $0x14] sm:$0xf0]  ;;  %v13388_v38 = vld [vmem:[%s20564_s0 + $0xc] sm:$0xf]  ;;  %v8900_v39 = vld [vmem:[%s20564_s0 + $0x1c] sm:$0xf0]  ;;  %v8891_v41 = vor.u32 %v13389_v33, %v8890_v32  ;;  %v8899_v42 = vor.u32 %v13390_v35, %v8898_v34 }
  0x19   :  { %682 = vmatpush.bf16.msra.mxu3 %v13443_v23  ;;  %v13452_v40 = vld [vmem:[%s20565_s1 + $0x118] sm:$0xff]  ;;  %v8895_v43 = vor.u32 %v13387_v36, %v8892_v37  ;;  %v8903_v44 = vor.u32 %v13388_v38, %v8900_v39  ;;  %v13451_v45 = vld [vmem:[%s20565_s1 + $0x110] sm:$0xff]  ;;  %v8910_v46 = vld [vmem:[%s20564_s0 + $0x28] sm:$0xf] }
  0x1a   :  { %554 = vmatpush.bf16.msra.mxu0 %v13418_v24  ;;  %v13394_v47 = vld [vmem:[%s20564_s0 + $0x38] sm:$0xf0]  ;;  %v8918_v48 = vld [vmem:[%s20564_s0 + $0x30] sm:$0xf]  ;;  %v13395_v49 = vld [vmem:[%s20564_s0 + $0x40] sm:$0xf0] }
  0x1b   :  { %640 = vmatpush.bf16.msra.mxu2 %v13434_v25  ;;  %v13392_v50 = vld [vmem:[%s20564_s0 + $0x2c] sm:$0xf]  ;;  %v8912_v51 = vld [vmem:[%s20564_s0 + $0x3c] sm:$0xf0]  ;;  %v13393_v52 = vld [vmem:[%s20564_s0 + $0x34] sm:$0xf]  ;;  %v8911_v54 = vor.u32 %v13394_v47, %v8910_v46  ;;  %v8919_v55 = vor.u32 %v13395_v49, %v8918_v48 }
  0x1c   :  { %597 = vmatpush.bf16.msra.mxu1 %v13426_v26  ;;  %v8920_v53 = vld [vmem:[%s20564_s0 + $0x44] sm:$0xf0]  ;;  %v8915_v56 = vor.u32 %v13392_v50, %v8912_v51  ;;  %v8930_v59 = vld [vmem:[%s20564_s0 + $0x50] sm:$0xf]  ;;  %v13399_v60 = vld [vmem:[%s20564_s0 + $0x60] sm:$0xf0] }
  0x1d   :  { %683 = vmatpush.bf16.msra.mxu3 %v13442_v27  ;;  %v8923_v57 = vor.u32 %v13393_v52, %v8920_v53  ;;  %v13450_v58 = vld [vmem:[%s20565_s1 + $0x108] sm:$0xff]  ;;  %v8938_v61 = vld [vmem:[%s20564_s0 + $0x58] sm:$0xf]  ;;  %v13397_v63 = vld [vmem:[%s20564_s0 + $0x54] sm:$0xf]  ;;  %v8931_v3 = vor.u32 %v13399_v60, %v8930_v59 }
  0x1e   :  { %555 = vmatpush.bf16.msra.mxu0 %v13417_v28  ;;  %v13400_v62 = vld [vmem:[%s20564_s0 + $0x68] sm:$0xf0]  ;;  %v8932_v0 = vld [vmem:[%s20564_s0 + $0x64] sm:$0xf0]  ;;  %v13398_v1 = vld [vmem:[%s20564_s0 + $0x5c] sm:$0xf] }
  0x1f   :  { %641 = vmatpush.bf16.msra.mxu2 %v13433_v29  ;;  %v8940_v2 = vld [vmem:[%s20564_s0 + $0x6c] sm:$0xf0]  ;;  %v8939_v4 = vor.u32 %v13400_v62, %v8938_v61  ;;  %v8935_v5 = vor.u32 %v13397_v63, %v8932_v0  ;;  %v8950_v7 = vld [vmem:[%s20564_s0 + $0x78] sm:$0xf]  ;;  %v13404_v8 = vld [vmem:[%s20564_s0 + $0x88] sm:$0xf0] }
  0x20   :  { %598 = vmatpush.bf16.msra.mxu1 %v13425_v30  ;;  %v8943_v6 = vor.u32 %v13398_v1, %v8940_v2  ;;  %v8958_v9 = vld [vmem:[%s20564_s0 + $0x80] sm:$0xf]  ;;  %v13405_v10 = vld [vmem:[%s20564_s0 + $0x90] sm:$0xf0]  ;;  %v13402_v11 = vld [vmem:[%s20564_s0 + $0x7c] sm:$0xf]  ;;  %v8951_v15 = vor.u32 %v13404_v8, %v8950_v7 }
  0x21   :  { %684 = vmatpush.bf16.msra.mxu3 %v13441_v31  ;;  %556 = vmatmul.bf16.vlgmr.msra.gmra.mxu0 %v8891_v41  ;;  %v8952_v12 = vld [vmem:[%s20564_s0 + $0x8c] sm:$0xf0]  ;;  %v13403_v13 = vld [vmem:[%s20564_s0 + $0x84] sm:$0xf]  ;;  %v8960_v14 = vld [vmem:[%s20564_s0 + $0x94] sm:$0xf0]  ;;  %v8959_v16 = vor.u32 %v13405_v10, %v8958_v9 }
  0x22   :  { %724 = vmatpush.bf16.msrb.mxu0 %v13452_v40  ;;  %642 = vmatmul.bf16.vlgmr.msra.gmra.mxu2 %v8899_v42  ;;  %v8955_v17 = vor.u32 %v13402_v11, %v8952_v12  ;;  %v8963_v18 = vor.u32 %v13403_v13, %v8960_v14  ;;  %v13449_v19 = vld [vmem:[%s20565_s1 + $0x100] sm:$0xff]  ;;  %v13409_v21 = vld [vmem:[%s20564_s0 + $0xb0] sm:$0xf0]  ;;  %v8978_v22 = vld [vmem:[%s20564_s0 + $0xa8] sm:$0xf]  ;;  %s14302_s1 = smov [#allocation3]  }
  0x23   :  { %599 = vmatmul.bf16.vlgmr.msra.gmra.mxu1 %v8895_v43  ;;  %v8970_v20 = vld [vmem:[%s20564_s0 + $0xa0] sm:$0xf]  ;;  %v13410_v23 = vld [vmem:[%s20564_s0 + $0xb8] sm:$0xf0]  ;;  %v13407_v24 = vld [vmem:[%s20564_s0 + $0xa4] sm:$0xf] }
  0x24   :  { %685 = vmatmul.bf16.vlgmr.msra.gmra.mxu3 %v8903_v44  ;;  %v8972_v25 = vld [vmem:[%s20564_s0 + $0xb4] sm:$0xf0]  ;;  %v13408_v26 = vld [vmem:[%s20564_s0 + $0xac] sm:$0xf]  ;;  %v8980_v27 = vld [vmem:[%s20564_s0 + $0xbc] sm:$0xf0]  ;;  %v8971_v28 = vor.u32 %v13409_v21, %v8970_v20  ;;  %v8979_v29 = vor.u32 %v13410_v23, %v8978_v22 }
  0x25   :  { %v8975_v30 = vor.u32 %v13407_v24, %v8972_v25  ;;  %v8983_v31 = vor.u32 %v13408_v26, %v8980_v27  ;;  %v8990_v32 = vld [vmem:[%s20564_s0 + $0xc8] sm:$0xf]  ;;  %v13414_v33 = vld [vmem:[%s20564_s0 + $0xd8] sm:$0xf0]  ;;  %v8998_v34 = vld [vmem:[%s20564_s0 + $0xd0] sm:$0xf] }
  0x26   :  { %725 = vmatpush.bf16.msrb.mxu0 %v13451_v45  ;;  %v13415_v35 = vld [vmem:[%s20564_s0 + $0xe0] sm:$0xf0]  ;;  %v13412_v36 = vld [vmem:[%s20564_s0 + $0xcc] sm:$0xf]  ;;  %v8992_v37 = vld [vmem:[%s20564_s0 + $0xdc] sm:$0xf0]  ;;  %v8991_v40 = vor.u32 %v13414_v33, %v8990_v32 }
  0x27   :  { %v13413_v38 = vld [vmem:[%s20564_s0 + $0xd4] sm:$0xf]  ;;  %v9000_v39 = vld [vmem:[%s20564_s0 + $0xe4] sm:$0xf0]  ;;  %v8999_v41 = vor.u32 %v13415_v35, %v8998_v34  ;;  %v8995_v42 = vor.u32 %v13412_v36, %v8992_v37  ;;  %v65_v45 = vld [vmem:[%s20564_s0 + $0xf8] sm:$0x11] }
  0x28   :  { %v9003_v43 = vor.u32 %v13413_v38, %v9000_v39  ;;  %v64_v44 = vld [vmem:[%s20564_s0 + $0xf0] sm:$0x11]  ;;  %v244_v47 = vunpack.c.l.b16 %v65_v45  ;;  %v245_v49 = vunpack.c.h.b16 %v65_v45  ;;  %v9225_v60 = vld [vmem:[%s20567_s3 + $0xe0] sm:$0xf]  ;;  %v9233_v62 = vld [vmem:[%s20567_s3 + $0xe8] sm:$0xf] }
  0x29   :  { %v242_v46 = vunpack.c.l.b16 %v64_v44  ;;  %v243_v48 = vunpack.c.h.b16 %v64_v44  ;;  %v13483_v61 = vld [vmem:[%s20567_s3 + $0xec] sm:$0xf0]  ;;  %v13484_v0 = vld [vmem:[%s20567_s3 + $0xf4] sm:$0xf0]  ;;  %s8877_s9 = sshll.u32 %s14302_s1, 4  ;;  %s8878_s9 = int_to_ptr.vmem [resolvable:$true] %s8877_s9 }
  0x2a   :  { %726 = vmatpush.bf16.msrb.mxu0 %v13450_v58  ;;  %v279_v51 = vpack.c.b16 %v244_v47, %v244_v47  ;;  %v280_v53 = vpack.c.b16 %v245_v49, %v245_v49  ;;  %v9227_v58 = vld [vmem:[%s20567_s3 + $0xf0] sm:$0xf0]  ;;  %v9226_v63 = vor.u32 %v13483_v61, %v9225_v60  ;;  %v9234_v1 = vor.u32 %v13484_v0, %v9233_v62  ;;  %v8926_v2 = vld [vmem:[%s20564_s0 + $0x38] sm:$0xf] }
  0x2b   :  { %v277_v50 = vpack.c.b16 %v242_v46, %v242_v46  ;;  %v278_v52 = vpack.c.b16 %v243_v48, %v243_v48  ;;  %v13480_v32 = vld [vmem:[%s20567_s3 + $0xd4] sm:$0xf0] }
  0x2c   :  { %914 = vmatpush.bf16.msrb.mxu1 %v9226_v63  ;;  %940 = vmatpush.bf16.msrb.mxu3 %v9234_v1 }
  0x2e   :  { %727 = vmatpush.bf16.msrb.mxu0 %v13449_v19  ;;  %v13401_v19 = vld [vmem:[%s20564_s0 + $0x70] sm:$0xf0] }
  0x31   :  { %561 = vmatmul.bf16.gmra.mxu0 %v8911_v54  ;;  %v8906_v54 = vld [vmem:[%s20564_s0 + $0x10] sm:$0xf] }
  0x32   :  { %647 = vmatmul.bf16.gmra.mxu2 %v8919_v55  ;;  %v13391_v55 = vld [vmem:[%s20564_s0 + $0x20] sm:$0xf0] }
  0x33   :  { %604 = vmatmul.bf16.gmra.mxu1 %v8915_v56  ;;  %v8907_v56 = vor.u32 %v13391_v55, %v8906_v54 }
  0x34   :  { %690 = vmatmul.bf16.gmra.mxu3 %v8923_v57  ;;  %v13481_v57 = vld [vmem:[%s20567_s3 + $0xe4] sm:$0xf] }
  0x35   :  { %v9230_v59 = vor.u32 %v13481_v57, %v9227_v58  ;;  %v8986_v58 = vld [vmem:[%s20564_s0 + $0xb0] sm:$0xf] }
  0x37   :  { %927 = vmatpush.bf16.msrb.mxu2 %v9230_v59  ;;  %v13411_v59 = vld [vmem:[%s20564_s0 + $0xc0] sm:$0xf0] }
  0x38   :  { %v8987_v62 = vor.u32 %v13411_v59, %v8986_v58 }
  0x41   :  { %566 = vmatmul.bf16.gmra.mxu0 %v8931_v3  ;;  %v13396_v3 = vld [vmem:[%s20564_s0 + $0x48] sm:$0xf0] }
  0x42   :  { %652 = vmatmul.bf16.gmra.mxu2 %v8939_v4  ;;  %v14635_v4 = vld [vmem:[%s20566_s2] ss:$0 sm:$0xff] }
  0x43   :  { %609 = vmatmul.bf16.gmra.mxu1 %v8935_v5  ;;  %v8927_v5 = vor.u32 %v13396_v3, %v8926_v2  ;;  %v9193_v2 = vld [vmem:[%s20567_s3 + $0xa0] sm:$0xf]  ;;  %v13475_v3 = vld [vmem:[%s20567_s3 + $0xac] sm:$0xf0] }
  0x44   :  { %695 = vmatmul.bf16.gmra.mxu3 %v8943_v6 }
  0x51   :  { %571 = vmatmul.bf16.gmra.mxu0 %v8951_v15 }
  0x52   :  { %657 = vmatmul.bf16.gmra.mxu2 %v8959_v16  ;;  %v13477_v16 = vld [vmem:[%s20567_s3 + $0xc4] sm:$0xf] }
  0x53   :  { %614 = vmatmul.bf16.gmra.mxu1 %v8955_v17  ;;  %v9211_v17 = vld [vmem:[%s20567_s3 + $0xd0] sm:$0xf0] }
  0x54   :  { %700 = vmatmul.bf16.gmra.mxu3 %v8963_v18  ;;  %v8946_v18 = vld [vmem:[%s20564_s0 + $0x60] sm:$0xf]  ;;  %v9214_v20 = vor.u32 %v13477_v16, %v9211_v17 }
  0x55   :  { %v8947_v23 = vor.u32 %v13401_v19, %v8946_v18  ;;  %v9006_v19 = vld [vmem:[%s20564_s0 + $0xd8] sm:$0xf] }
  0x56   :  { %928 = vmatpush.bf16.msrb.mxu2 %v9214_v20  ;;  %v13416_v20 = vld [vmem:[%s20564_s0 + $0xe8] sm:$0xf0] }
  0x61   :  { %576 = vmatmul.bf16.gmra.mxu0 %v8971_v28  ;;  %v9209_v28 = vld [vmem:[%s20567_s3 + $0xc0] sm:$0xf] }
  0x62   :  { %662 = vmatmul.bf16.gmra.mxu2 %v8979_v29  ;;  %v13479_v29 = vld [vmem:[%s20567_s3 + $0xcc] sm:$0xf0] }
  0x63   :  { %619 = vmatmul.bf16.gmra.mxu1 %v8975_v30  ;;  %v9217_v30 = vld [vmem:[%s20567_s3 + $0xc8] sm:$0xf] }
  0x64   :  { %705 = vmatmul.bf16.gmra.mxu3 %v8983_v31  ;;  %v9210_v31 = vor.u32 %v13479_v29, %v9209_v28  ;;  %v9218_v33 = vor.u32 %v13480_v32, %v9217_v30  ;;  %v13469_v30 = vld [vmem:[%s20567_s3 + $0x84] sm:$0xf] }
  0x66   :  { %915 = vmatpush.bf16.msrb.mxu1 %v9210_v31  ;;  %941 = vmatpush.bf16.msrb.mxu3 %v9218_v33  ;;  %v9179_v31 = vld [vmem:[%s20567_s3 + $0x90] sm:$0xf0] }
  0x67   :  { %v9182_v32 = vor.u32 %v13469_v30, %v9179_v31  ;;  %v13465_v30 = vld [vmem:[%s20567_s3 + $0x64] sm:$0xf]  ;;  %v9295_v31 = vld [vmem:[%s20567_s3 + $0x70] sm:$0xf0] }
  0x71   :  { %581 = vmatmul.bf16.gmra.mxu0 %v8991_v40  ;;  %v8966_v40 = vld [vmem:[%s20564_s0 + $0x88] sm:$0xf] }
  0x72   :  { %667 = vmatmul.bf16.gmra.mxu2 %v8999_v41  ;;  %v13406_v41 = vld [vmem:[%s20564_s0 + $0x98] sm:$0xf0] }
  0x73   :  { %624 = vmatmul.bf16.gmra.mxu1 %v8995_v42  ;;  %v8967_v44 = vor.u32 %v13406_v41, %v8966_v40  ;;  %v66_v40 = vld [vmem:[%s20564_s0 + $0x100] sm:$0x1] }
  0x74   :  { %710 = vmatmul.bf16.gmra.mxu3 %v9003_v43 }
  0x81   :  { %586 = vmatmul.bf16.gmra.mxu0 %v277_v50 }
  0x82   :  { %672 = vmatmul.bf16.gmra.mxu2 %v279_v51 }
  0x83   :  { %629 = vmatmul.bf16.gmra.mxu1 %v278_v52  ;;  %v13473_v52 = vld [vmem:[%s20567_s3 + $0xa4] sm:$0xf] }
  0x84   :  { %715 = vmatmul.bf16.gmra.mxu3 %v280_v53  ;;  %v9195_v53 = vld [vmem:[%s20567_s3 + $0xb0] sm:$0xf0] }
  0x85   :  { %v9198_v55 = vor.u32 %v13473_v52, %v9195_v53 }
  0x87   :  { %929 = vmatpush.bf16.msrb.mxu2 %v9198_v55 }
  0x8b   :  { %930 = vmatpush.bf16.msrb.mxu2 %v9182_v32 }
  0x91   :  { %9152 = vmatmul.msk.bf16.vlgmr.msrb.gmra.mxu0 %vm526_vm0, %v8907_v56 }
  0x9e   :  { %v557_v6 = vpop.f32.mrf.mxu0 }
  0x9f   :  { %v558_v7 = vadd.f32 %v14635_v4, %v557_v6  ;;  %v9194_v6 = vor.u32 %v13475_v3, %v9193_v2 }
  0xa0   :  { %v600_v8 = vpop.f32.mrf.mxu1 }
  0xa1   :  { %v601_v9 = vadd.f32 %v600_v8, %v558_v7  ;;  %9153 = vmatmul.msk.bf16.gmra.mxu0 %vm526_vm0, %v8927_v5  ;;  %v9201_v5 = vld [vmem:[%s20567_s3 + $0xa8] sm:$0xf]  ;;  %v13476_v7 = vld [vmem:[%s20567_s3 + $0xb4] sm:$0xf0]  ;;  %916 = vmatpush.bf16.msrb.mxu1 %v9194_v6 }
  0xa5   :  { %v643_v10 = vpop.f32.mrf.mxu2 }
  0xa6   :  { %v644_v11 = vadd.f32 %v643_v10, %v601_v9  ;;  %v14639_v13 = vpop.f32.mrf.mxu0  ;;  %v9202_v9 = vor.u32 %v13476_v7, %v9201_v5 }
  0xa7   :  { %v686_v12 = vpop.f32.mrf.mxu3 }
  0xa8   :  { %v14641_v14 = vadd.f32 %v686_v12, %v644_v11  ;;  %v14643_v15 = vpop.f32.mrf.mxu1  ;;  %942 = vmatpush.bf16.msrb.mxu3 %v9202_v9 }
  0xad   :  { %v14657_v21 = vpop.f32.mrf.mxu2 }
  0xae   :  { %v562_v24 = vpop.f32.mrf.mxu0 }
  0xaf   :  { %v14659_v22 = vpop.f32.mrf.mxu3  ;;  %v563_v25 = vadd.f32 %v14635_v4, %v562_v24 }
  0xb0   :  { %v605_v26 = vpop.f32.mrf.mxu1 }
  0xb1   :  { %v606_v27 = vadd.f32 %v605_v26, %v563_v25  ;;  %9154 = vmatmul.msk.bf16.gmra.mxu0 %vm526_vm0, %v8947_v23  ;;  %v9007_v25 = vor.u32 %v13416_v20, %v9006_v19  ;;  %v9293_v20 = vld [vmem:[%s20567_s3 + $0x60] sm:$0xf] }
  0xb5   :  { %v648_v34 = vpop.f32.mrf.mxu2 }
  0xb6   :  { %v649_v35 = vadd.f32 %v648_v34, %v606_v27  ;;  %v14675_v37 = vpop.f32.mrf.mxu0 }
  0xb7   :  { %v691_v36 = vpop.f32.mrf.mxu3 }
  0xb8   :  { %v14677_v38 = vadd.f32 %v691_v36, %v649_v35  ;;  %v14679_v39 = vpop.f32.mrf.mxu1 }
  0xbd   :  { %v14687_v42 = vpop.f32.mrf.mxu2 }
  0xbe   :  { %v567_v45 = vpop.f32.mrf.mxu0 }
  0xbf   :  { %v14689_v43 = vpop.f32.mrf.mxu3  ;;  %v568_v46 = vadd.f32 %v14635_v4, %v567_v45  ;;  %v9177_v45 = vld [vmem:[%s20567_s3 + $0x80] sm:$0xf] }
  0xc0   :  { %v610_v47 = vpop.f32.mrf.mxu1 }
  0xc1   :  { %v611_v48 = vadd.f32 %v610_v47, %v568_v46  ;;  %9155 = vmatmul.msk.bf16.gmra.mxu0 %vm526_vm0, %v8967_v44  ;;  %v13471_v46 = vld [vmem:[%s20567_s3 + $0x8c] sm:$0xf0]  ;;  %v9185_v47 = vld [vmem:[%s20567_s3 + $0x88] sm:$0xf] }
  0xc5   :  { %v653_v49 = vpop.f32.mrf.mxu2 }
  0xc6   :  { %v654_v50 = vadd.f32 %v653_v49, %v611_v48  ;;  %v14699_v54 = vpop.f32.mrf.mxu0  ;;  %v9178_v48 = vor.u32 %v13471_v46, %v9177_v45  ;;  %v13472_v49 = vld [vmem:[%s20567_s3 + $0x94] sm:$0xf0] }
  0xc7   :  { %v696_v51 = vpop.f32.mrf.mxu3 }
  0xc8   :  { %v14701_v56 = vadd.f32 %v696_v51, %v654_v50  ;;  %v14703_v57 = vpop.f32.mrf.mxu1  ;;  %v246_v50 = vunpack.c.l.b16 %v66_v40  ;;  %v9186_v51 = vor.u32 %v13472_v49, %v9185_v47  ;;  %917 = vmatpush.bf16.msrb.mxu1 %v9178_v48  ;;  %v9599_v40 = vld [vmem:[%s20567_s3 + $0x2b0] sm:$0xf0]  ;;  %v9277_v48 = vld [vmem:[%s20567_s3 + $0x40] sm:$0xf]  ;;  %v13463_v49 = vld [vmem:[%s20567_s3 + $0x4c] sm:$0xf0] }
  0xca   :  { %943 = vmatpush.bf16.msrb.mxu3 %v9186_v51  ;;  %v281_v55 = vpack.c.b16 %v246_v50, %v246_v50  ;;  %v13478_v50 = vld [vmem:[%s20567_s3 + $0xcc] sm:$0xf] }
  0xcd   :  { %v14711_v60 = vpop.f32.mrf.mxu2 }
  0xce   :  { %v572_v63 = vpop.f32.mrf.mxu0 }
  0xcf   :  { %v14713_v61 = vpop.f32.mrf.mxu3  ;;  %v573_v0 = vadd.f32 %v14635_v4, %v572_v63 }
  0xd0   :  { %v615_v1 = vpop.f32.mrf.mxu1 }
  0xd1   :  { %v616_v8 = vadd.f32 %v615_v1, %v573_v0  ;;  %9156 = vmatmul.msk.bf16.gmra.mxu0 %vm526_vm0, %v8987_v62  ;;  %v13545_v0 = vld [vmem:[%s20567_s3 + $0x2e4] sm:$0xf]  ;;  %v9631_v1 = vld [vmem:[%s20567_s3 + $0x2f0] sm:$0xf0] }
  0xd2   :  { %v9634_v3 = vor.u32 %v13545_v0, %v9631_v1  ;;  %v13533_v1 = vld [vmem:[%s20567_s3 + $0x284] sm:$0xf] }
  0xd4   :  { %1690 = vmatpush.bf16.msra.mxu0 %v9634_v3 }
  0xd5   :  { %v658_v10 = vpop.f32.mrf.mxu2 }
  0xd6   :  { %v659_v11 = vadd.f32 %v658_v10, %v616_v8  ;;  %v14729_v16 = vpop.f32.mrf.mxu0  ;;  %v13541_v10 = vld [vmem:[%s20567_s3 + $0x2c4] sm:$0xf] }
  0xd7   :  { %v701_v12 = vpop.f32.mrf.mxu3 }
  0xd8   :  { %v14731_v17 = vadd.f32 %v701_v12, %v659_v11  ;;  %v14733_v18 = vpop.f32.mrf.mxu1  ;;  %v9615_v11 = vld [vmem:[%s20567_s3 + $0x2d0] sm:$0xf0] }
  0xd9   :  { %v9618_v12 = vor.u32 %v13541_v10, %v9615_v11 }
  0xdb   :  { %1691 = vmatpush.bf16.msra.mxu0 %v9618_v12  ;;  %v13474_v12 = vld [vmem:[%s20567_s3 + $0xac] sm:$0xf] }
  0xdd   :  { %v14741_v23 = vpop.f32.mrf.mxu2 }
  0xde   :  { %v577_v26 = vpop.f32.mrf.mxu0 }
  0xdf   :  { %v14743_v24 = vpop.f32.mrf.mxu3  ;;  %v578_v27 = vadd.f32 %v14635_v4, %v577_v26  ;;  %v13482_v26 = vld [vmem:[%s20567_s3 + $0xec] sm:$0xf] }
  0xe0   :  { %v620_v28 = vpop.f32.mrf.mxu1 }
  0xe1   :  { %v621_v29 = vadd.f32 %v620_v28, %v578_v27  ;;  %9157 = vmatmul.msk.bf16.gmra.mxu0 %vm526_vm0, %v9007_v25  ;;  %v13467_v25 = vld [vmem:[%s20567_s3 + $0x6c] sm:$0xf0] }
  0xe2   :  { %v9294_v28 = vor.u32 %v13467_v25, %v9293_v20  ;;  %v9203_v20 = vld [vmem:[%s20567_s3 + $0xb8] sm:$0xf0]  ;;  %v13457_v25 = vld [vmem:[%s20567_s3 + $0x24] sm:$0xf] }
  0xe4   :  { %1049 = vmatpush.bf16.msra.mxu2 %v9294_v28 }
  0xe5   :  { %v663_v33 = vpop.f32.mrf.mxu2 }
  0xe6   :  { %v664_v34 = vadd.f32 %v663_v33, %v621_v29  ;;  %v14753_v36 = vpop.f32.mrf.mxu0  ;;  %v9235_v29 = vld [vmem:[%s20567_s3 + $0xf8] sm:$0xf0] }
  0xe7   :  { %v706_v35 = vpop.f32.mrf.mxu3  ;;  %v9238_v33 = vor.u32 %v13482_v26, %v9235_v29  ;;  %v9206_v29 = vor.u32 %v13474_v12, %v9203_v20 }
  0xe8   :  { %v14758_v41 = vadd.f32 %v706_v35, %v664_v34  ;;  %v14760_v44 = vpop.f32.mrf.mxu1  ;;  %v9298_v34 = vor.u32 %v13465_v30, %v9295_v31  ;;  %v13537_v35 = vld [vmem:[%s20567_s3 + $0x2a4] sm:$0xf]  ;;  %v9263_v30 = vld [vmem:[%s20567_s3 + $0x30] sm:$0xf0] }
  0xe9   :  { %v9602_v47 = vor.u32 %v13537_v35, %v9599_v40  ;;  %953 = vmatpush.bf16.msra.mxu1 %v9238_v33  ;;  %v13561_v31 = vld [vmem:[%s20567_s3 + $0x364] sm:$0xf] }
  0xea   :  { %1062 = vmatpush.bf16.msra.mxu3 %v9298_v34  ;;  %v9266_v34 = vor.u32 %v13457_v25, %v9263_v30 }
  0xeb   :  { %1692 = vmatpush.bf16.msra.mxu0 %v9602_v47  ;;  %v13455_v47 = vld [vmem:[%s20567_s3 + $0xc] sm:$0xf0] }
  0xed   :  { %v14774_v52 = vpop.f32.mrf.mxu2 }
  0xee   :  { %v582_v58 = vpop.f32.mrf.mxu0 }
  0xef   :  { %v14776_v53 = vpop.f32.mrf.mxu3  ;;  %v583_v59 = vadd.f32 %v14635_v4, %v582_v58  ;;  %v9219_v58 = vld [vmem:[%s20567_s3 + $0xd8] sm:$0xf0] }
  0xf0   :  { %v625_v62 = vpop.f32.mrf.mxu1 }
  0xf1   :  { %v626_v63 = vadd.f32 %v625_v62, %v583_v59  ;;  %9158 = vmatmul.msk.bf16.gmra.mxu0 %vm526_vm0, %v281_v55  ;;  %v9278_v55 = vor.u32 %v13463_v49, %v9277_v48  ;;  %v13461_v59 = vld [vmem:[%s20567_s3 + $0x44] sm:$0xf]  ;;  %v9279_v62 = vld [vmem:[%s20567_s3 + $0x50] sm:$0xf0]  ;;  %v13470_v48 = vld [vmem:[%s20567_s3 + $0x8c] sm:$0xf] }
  0xf2   :  { %v9282_v0 = vor.u32 %v13461_v59, %v9279_v62  ;;  %v13557_v62 = vld [vmem:[%s20567_s3 + $0x344] sm:$0xf] }
  0xf3   :  { %1050 = vmatpush.bf16.msra.mxu2 %v9278_v55  ;;  %v9247_v55 = vld [vmem:[%s20567_s3 + $0x10] sm:$0xf0] }
  0xf4   :  { %1063 = vmatpush.bf16.msra.mxu3 %v9282_v0  ;;  %v560_v0 = vadd.f32 %v14635_v4, %v14639_v13 }
  0xf5   :  { %v668_v2 = vpop.f32.mrf.mxu2 }
  0xf6   :  { %v669_v5 = vadd.f32 %v668_v2, %v626_v63  ;;  %v14786_v7 = vpop.f32.mrf.mxu0  ;;  %v9222_v63 = vor.u32 %v13478_v50, %v9219_v58  ;;  %v9583_v2 = vld [vmem:[%s20567_s3 + $0x290] sm:$0xf0]  ;;  %v9187_v50 = vld [vmem:[%s20567_s3 + $0x98] sm:$0xf0] }
  0xf7   :  { %v711_v6 = vpop.f32.mrf.mxu3  ;;  %v9586_v3 = vor.u32 %v13533_v1, %v9583_v2  ;;  %v9190_v58 = vor.u32 %v13470_v48, %v9187_v50  ;;  %v13462_v48 = vld [vmem:[%s20567_s3 + $0x4c] sm:$0xf] }
  0xf8   :  { %v14788_v8 = vadd.f32 %v711_v6, %v669_v5  ;;  %v14790_v9 = vpop.f32.mrf.mxu1  ;;  %v9261_v5 = vld [vmem:[%s20567_s3 + $0x20] sm:$0xf]  ;;  %v13459_v6 = vld [vmem:[%s20567_s3 + $0x2c] sm:$0xf0]  ;;  %954 = vmatpush.bf16.msra.mxu1 %v9222_v63  ;;  %1064 = vmatpush.bf16.msra.mxu3 %v9266_v34  ;;  %v9699_v63 = vld [vmem:[%s20567_s3 + $0x350] sm:$0xf0] }
  0xf9   :  { %v9262_v11 = vor.u32 %v13459_v6, %v9261_v5  ;;  %1693 = vmatpush.bf16.msra.mxu0 %v9586_v3  ;;  %v9702_v1 = vor.u32 %v13557_v62, %v9699_v63  ;;  %v13553_v6 = vld [vmem:[%s20567_s3 + $0x324] sm:$0xf]  ;;  %v13499_v34 = vld [vmem:[%s20567_s3 + $0x16c] sm:$0xf0] }
  0xfa   :  { %v13495_v62 = vld [vmem:[%s20567_s3 + $0x14c] sm:$0xf0] }
  0xfb   :  { %1051 = vmatpush.bf16.msra.mxu2 %v9262_v11  ;;  %v603_v11 = vadd.f32 %v14643_v15, %v560_v0 }
  0xfc   :  { %955 = vmatpush.bf16.msra.mxu1 %v9206_v29 }
  0xfd   :  { %v14798_v19 = vpop.f32.mrf.mxu2  ;;  %v646_v20 = vadd.f32 %v14657_v21, %v603_v11  ;;  %v13466_v21 = vld [vmem:[%s20567_s3 + $0x6c] sm:$0xf]  ;;  %v13577_v11 = vld [vmem:[%s20567_s3 + $0x3e4] sm:$0xf] }
  0xfe   :  { %v587_v32 = vpop.f32.mrf.mxu0 }
  0xff   :  { %v14809_v27 = vpop.f32.mrf.mxu3  ;;  %v588_v45 = vadd.f32 %v14635_v4, %v587_v32  ;;  %v9715_v32 = vld [vmem:[%s20567_s3 + $0x370] sm:$0xf0]  ;;  %v689_v15 = vadd.f32 %v14659_v22, %v646_v20  ;;  %v9377_v22 = vld [vmem:[%s20567_s3 + $0x160] sm:$0xf]  ;;  %v13491_v20 = vld [vmem:[%s20567_s3 + $0x12c] sm:$0xf0] }
 0x100   :  { %v630_v46 = vpop.f32.mrf.mxu1  ;;  %v9718_v35 = vor.u32 %v13561_v31, %v9715_v32  ;;  %956 = vmatpush.bf16.msra.mxu1 %v9190_v58  ;;  %v9303_v31 = vld [vmem:[%s20567_s3 + $0x78] sm:$0xf0]  ;;  %v9301_v32 = vld [vmem:[%s20567_s3 + $0x68] sm:$0xf]  ;;  %v13464_v58 = vld [vmem:[%s20567_s3 + $0x54] sm:$0xf0] }
 0x101   :  { %v631_v51 = vadd.f32 %v630_v46, %v588_v45  ;;  %v9245_v46 = vld [vmem:[%s20567_s3] sm:$0xf] }
 0x102   :  { %1848 = vmatpush.bf16.msrb.mxu0 %v9718_v35  ;;  %v9246_v49 = vor.u32 %v13455_v47, %v9245_v46  ;;  %v9306_v47 = vor.u32 %v13466_v21, %v9303_v31  ;;  %v9253_v21 = vld [vmem:[%s20567_s3 + $0x8] sm:$0xf] }
 0x104   :  { %1052 = vmatpush.bf16.msra.mxu2 %v9246_v49 }
 0x105   :  { %v673_v10 = vpop.f32.mrf.mxu2 }
 0x106   :  { %v674_v26 = vadd.f32 %v673_v10, %v631_v51  ;;  %v589_v33 = vpop.f32.mrf.mxu0  ;;  %v13453_v51 = vld [vmem:[%s20567_s3 + $0x4] sm:$0xf]  ;;  %1849 = vmatpush.bf16.msrb.mxu0 %v9702_v1  ;;  %v9683_v10 = vld [vmem:[%s20567_s3 + $0x330] sm:$0xf0] }
 0x107   :  { %v716_v28 = vpop.f32.mrf.mxu3  ;;  %v9250_v59 = vor.u32 %v13453_v51, %v9247_v55  ;;  %v9686_v12 = vor.u32 %v13553_v6, %v9683_v10  ;;  %v13468_v33 = vld [vmem:[%s20567_s3 + $0x74] sm:$0xf0]  ;;  %v9378_v51 = vor.u32 %v13499_v34, %v9377_v22  ;;  %v9287_v55 = vld [vmem:[%s20567_s3 + $0x58] sm:$0xf0]  ;;  %v9269_v10 = vld [vmem:[%s20567_s3 + $0x28] sm:$0xf] }
 0x108   :  { %v14875_v40 = vadd.f32 %v716_v28, %v674_v26  ;;  %v632_v45 = vpop.f32.mrf.mxu1  ;;  %v13549_v26 = vld [vmem:[%s20567_s3 + $0x304] sm:$0xf]  ;;  %v9667_v28 = vld [vmem:[%s20567_s3 + $0x310] sm:$0xf0]  ;;  %v9302_v50 = vor.u32 %v13468_v33, %v9301_v32  ;;  %v9290_v1 = vor.u32 %v13462_v48, %v9287_v55  ;;  %v13456_v34 = vld [vmem:[%s20567_s3 + $0x14] sm:$0xf0] }
 0x109   :  { %1065 = vmatpush.bf16.msra.mxu3 %v9250_v59  ;;  %v9670_v29 = vor.u32 %v13549_v26, %v9667_v28  ;;  %v565_v45 = vadd.f32 %v14635_v4, %v14675_v37  ;;  %v9285_v37 = vld [vmem:[%s20567_s3 + $0x48] sm:$0xf]  ;;  %v9361_v59 = vld [vmem:[%s20567_s3 + $0x140] sm:$0xf]  ;;  %v13454_v28 = vld [vmem:[%s20567_s3 + $0xc] sm:$0xf] }
 0x10a   :  { %1850 = vmatpush.bf16.msrb.mxu0 %v9686_v12  ;;  %v9286_v6 = vor.u32 %v13464_v58, %v9285_v37  ;;  %v9345_v12 = vld [vmem:[%s20567_s3 + $0x120] sm:$0xf]  ;;  %v13573_v33 = vld [vmem:[%s20567_s3 + $0x3c4] sm:$0xf]  ;;  %v9783_v22 = vld [vmem:[%s20567_s3 + $0x3d0] sm:$0xf0]  ;;  %v9254_v37 = vor.u32 %v13456_v34, %v9253_v21 }
 0x10b   :  { %v608_v63 = vadd.f32 %v14679_v39, %v565_v45  ;;  %v9362_v39 = vor.u32 %v13495_v62, %v9361_v59  ;;  %v9346_v32 = vor.u32 %v13491_v20, %v9345_v12  ;;  %v13487_v45 = vld [vmem:[%s20567_s3 + $0x10c] sm:$0xf0]  ;;  %v9385_v59 = vld [vmem:[%s20567_s3 + $0x168] sm:$0xf]  ;;  %v13497_v62 = vld [vmem:[%s20567_s3 + $0x164] sm:$0xf] }
 0x10c   :  { %v13496_v12 = vld [vmem:[%s20567_s3 + $0x154] sm:$0xf0]  ;;  %v13489_v34 = vld [vmem:[%s20567_s3 + $0x124] sm:$0xf] }
 0x10d   :  { %v675_v2 = vpop.f32.mrf.mxu2 }
 0x10e   :  { %v729_v5 = vpop.f32.mrf.mxu0  ;;  %1851 = vmatpush.bf16.msrb.mxu0 %v9670_v29  ;;  %v13458_v2 = vld [vmem:[%s20567_s3 + $0x2c] sm:$0xf] }
 0x10f   :  { %v718_v3 = vpop.f32.mrf.mxu3  ;;  %v730_v13 = vadd.f32 %v729_v5, %v14641_v14 }
 0x110   :  { %v9271_v3 = vld [vmem:[%s20567_s3 + $0x38] sm:$0xf0] }
 0x111   :  { %v763_v25 = vmax.f32 %v730_v13, 0.0  ;;  %v9799_v13 = vld [vmem:[%s20567_s3 + $0x3f0] sm:$0xf0] }
 0x113   :  { %776 = vst.msk [vmem:[#allocation2] sm:$0xff] %vm526_vm0, %v763_v25  ;;  %v651_v25 = vadd.f32 %v14687_v42, %v608_v63  ;;  %v9379_v63 = vld [vmem:[%s20567_s3 + $0x170] sm:$0xf0] }
 0x116   :  { %v731_v14 = vpop.f32.mrf.mxu0 }
 0x117   :  { %v732_v30 = vadd.f32 %v731_v14, %v689_v15  ;;  %v9274_v15 = vor.u32 %v13458_v2, %v9271_v3  ;;  %v9802_v14 = vor.u32 %v13577_v11, %v9799_v13  ;;  %v13569_v3 = vld [vmem:[%s20567_s3 + $0x3a4] sm:$0xf]  ;;  %v9382_v13 = vor.u32 %v13497_v62, %v9379_v63 }
 0x119   :  { %v764_v35 = vmax.f32 %v732_v30, 0.0  ;;  %v9255_v30 = vld [vmem:[%s20567_s3 + $0x18] sm:$0xf0] }
 0x11a   :  { %v808_v46 = vld [vmem:[#allocation2 + $0x2] sm:$0x3]  ;;  %v790_v48 = vld [vmem:[#allocation2] sm:$0x3] }
 0x11b   :  { %777 = vst.msk [vmem:[#allocation2 + $0x8] sm:$0xff] %vm526_vm0, %v764_v35  ;;  %v14944_v49 = vpack.c.bf16 %v808_v46, %v808_v46  ;;  %v9329_v35 = vld [vmem:[%s20567_s3 + $0x100] sm:$0xf]  ;;  %v694_v46 = vadd.f32 %v14689_v43, %v651_v25  ;;  %v13500_v43 = vld [vmem:[%s20567_s3 + $0x174] sm:$0xf0]  ;;  %v15054_v11 = vpack.c.bf16 %v790_v48, %v790_v48 }
 0x11c   :  { %v9330_v58 = vor.u32 %v13487_v45, %v9329_v35  ;;  %v9363_v25 = vld [vmem:[%s20567_s3 + $0x150] sm:$0xf0]  ;;  %v13593_v35 = vld [vmem:[%s20567_s3 + $0x464] sm:$0xf]  ;;  %v9355_v48 = vld [vmem:[%s20567_s3 + $0x138] sm:$0xf0] }
 0x11d   :  { %9239 = vmatmul.msk.bf16.vlgmr.msrb.gmra.mxu1 %vm526_vm0, %v14944_v49  ;;  %9240 = vmatmul.msk.bf16.vlgmr.msrb.gmra.mxu2 %vm526_vm0, %v14944_v49  ;;  %v9883_v45 = vld [vmem:[%s20567_s3 + $0x470] sm:$0xf0] }
 0x11e   :  { %9241 = vmatmul.msk.bf16.vlgmr.msrb.gmra.mxu3 %vm526_vm0, %v14944_v49  ;;  %v734_v0 = vpop.f32.mrf.mxu0  ;;  %1088 = vmatpush.bf16.msrb.mxu2 %v9306_v47 }
 0x11f   :  { %v735_v5 = vadd.f32 %v734_v0, %v14677_v38  ;;  %1075 = vmatpush.bf16.msrb.mxu1 %v9302_v50  ;;  %1203 = vmatpush.bf16.msrb.mxu3 %v9378_v51  ;;  %v13460_v38 = vld [vmem:[%s20567_s3 + $0x34] sm:$0xf0]  ;;  %v9258_v50 = vor.u32 %v13454_v28, %v9255_v30  ;;  %v9786_v51 = vor.u32 %v13573_v33, %v9783_v22  ;;  %v13498_v0 = vld [vmem:[%s20567_s3 + $0x16c] sm:$0xf]  ;;  %v9371_v28 = vld [vmem:[%s20567_s3 + $0x158] sm:$0xf0] }
 0x120   :  { %v9270_v31 = vor.u32 %v13460_v38, %v9269_v10  ;;  %v9369_v10 = vld [vmem:[%s20567_s3 + $0x148] sm:$0xf] }
 0x121   :  { %v765_v26 = vmax.f32 %v735_v5, 0.0  ;;  %v9767_v5 = vld [vmem:[%s20567_s3 + $0x3b0] sm:$0xf0] }
 0x122   :  { %v1571_v29 = vld [vmem:[#allocation2 + $0xa] sm:$0x3]  ;;  %1089 = vmatpush.bf16.msrb.mxu2 %v9290_v1  ;;  %v9387_v1 = vld [vmem:[%s20567_s3 + $0x178] sm:$0xf0]  ;;  %v9770_v20 = vor.u32 %v13569_v3, %v9767_v5  ;;  %v1729_v21 = vld [vmem:[#allocation2 + $0xc] sm:$0x3] }
 0x123   :  { %778 = vst.msk [vmem:[#allocation2 + $0x10] sm:$0xff] %vm526_vm0, %v765_v26  ;;  %v15004_v42 = vpack.c.bf16 %v1571_v29, %v1571_v29  ;;  %1076 = vmatpush.bf16.msrb.mxu1 %v9286_v6  ;;  %1204 = vmatpush.bf16.msrb.mxu3 %v9362_v39  ;;  %v570_v6 = vadd.f32 %v14635_v4, %v14699_v54  ;;  %v13493_v54 = vld [vmem:[%s20567_s3 + $0x144] sm:$0xf]  ;;  %v13494_v26 = vld [vmem:[%s20567_s3 + $0x14c] sm:$0xf] }
 0x124   :  { %v9386_v39 = vor.u32 %v13500_v43, %v9385_v59  ;;  %v9390_v38 = vor.u32 %v13498_v0, %v9387_v1  ;;  %v13565_v29 = vld [vmem:[%s20567_s3 + $0x384] sm:$0xf]  ;;  %v9374_v22 = vor.u32 %v13494_v26, %v9371_v28  ;;  %v13488_v59 = vld [vmem:[%s20567_s3 + $0x114] sm:$0xf0]  ;;  %v15120_v62 = vpack.c.bf16 %v1729_v21, %v1729_v21  ;;  %v9867_v1 = vld [vmem:[%s20567_s3 + $0x450] sm:$0xf0] }
 0x125   :  { %9644 = vmatmul.msk.bf16.vlgmr.msra.gmra.mxu0 %vm526_vm0, %v15004_v42  ;;  %v13485_v43 = vld [vmem:[%s20567_s3 + $0x104] sm:$0xf]  ;;  %v13486_v3 = vld [vmem:[%s20567_s3 + $0x10c] sm:$0xf]  ;;  %v9339_v5 = vld [vmem:[%s20567_s3 + $0x118] sm:$0xf0] }
 0x126   :  { %v736_v47 = vpop.f32.mrf.mxu0  ;;  %1090 = vmatpush.bf16.msrb.mxu2 %v9274_v15  ;;  %2006 = vmatpush.bf16.msra.mxu0 %v9802_v14  ;;  %v9751_v15 = vld [vmem:[%s20567_s3 + $0x390] sm:$0xf0]  ;;  %v613_v14 = vadd.f32 %v14703_v57, %v570_v6  ;;  %v9366_v57 = vor.u32 %v13493_v54, %v9363_v25  ;;  %v13589_v0 = vld [vmem:[%s20567_s3 + $0x444] sm:$0xf]  ;;  %v9461_v26 = vld [vmem:[%s20567_s3 + $0x1e0] sm:$0xf] }
 0x127   :  { %v737_v55 = vadd.f32 %v736_v47, %v694_v46  ;;  %1077 = vmatpush.bf16.msrb.mxu1 %v9270_v31  ;;  %1205 = vmatpush.bf16.msrb.mxu3 %v9346_v32  ;;  %v9353_v31 = vld [vmem:[%s20567_s3 + $0x128] sm:$0xf]  ;;  %v13492_v32 = vld [vmem:[%s20567_s3 + $0x134] sm:$0xf0]  ;;  %v9754_v46 = vor.u32 %v13565_v29, %v9751_v15  ;;  %v13490_v47 = vld [vmem:[%s20567_s3 + $0x12c] sm:$0xf] }
 0x128   :  { %v9358_v63 = vor.u32 %v13490_v47, %v9355_v48  ;;  %v13513_v25 = vld [vmem:[%s20567_s3 + $0x1e4] sm:$0xf]  ;;  %v13515_v28 = vld [vmem:[%s20567_s3 + $0x1ec] sm:$0xf0]  ;;  %v9469_v29 = vld [vmem:[%s20567_s3 + $0x1e8] sm:$0xf] }
 0x129   :  { %v766_v2 = vmax.f32 %v737_v55, 0.0  ;;  %v9354_v55 = vor.u32 %v13492_v32, %v9353_v31  ;;  %v13516_v15 = vld [vmem:[%s20567_s3 + $0x1f4] sm:$0xf0]  ;;  %v9851_v21 = vld [vmem:[%s20567_s3 + $0x430] sm:$0xf0] }
 0x12a   :  { %1091 = vmatpush.bf16.msrb.mxu2 %v9258_v50  ;;  %2007 = vmatpush.bf16.msra.mxu0 %v9786_v51  ;;  %v656_v50 = vadd.f32 %v14711_v60, %v613_v14  ;;  %v13509_v32 = vld [vmem:[%s20567_s3 + $0x1c4] sm:$0xf]  ;;  %v9835_v48 = vld [vmem:[%s20567_s3 + $0x410] sm:$0xf0] }
 0x12b   :  { %779 = vst.msk [vmem:[#allocation2 + $0x18] sm:$0xff] %vm526_vm0, %v766_v2  ;;  %1078 = vmatpush.bf16.msrb.mxu1 %v9254_v37  ;;  %1206 = vmatpush.bf16.msrb.mxu3 %v9330_v58  ;;  %v9886_v37 = vor.u32 %v13593_v35, %v9883_v45  ;;  %v9337_v58 = vld [vmem:[%s20567_s3 + $0x108] sm:$0xf]  ;;  %v9331_v2 = vld [vmem:[%s20567_s3 + $0x110] sm:$0xf0] }
 0x12c   :  { %v699_v6 = vadd.f32 %v14713_v61, %v656_v50  ;;  %v9334_v54 = vor.u32 %v13485_v43, %v9331_v2  ;;  %v9463_v61 = vld [vmem:[%s20567_s3 + $0x1f0] sm:$0xf0]  ;;  %v13511_v45 = vld [vmem:[%s20567_s3 + $0x1cc] sm:$0xf0]  ;;  %v13581_v47 = vld [vmem:[%s20567_s3 + $0x404] sm:$0xf] }
 0x12d   :  { %9242 = vmatmul.msk.bf16.vlgmr.msra.gmra.mxu1 %vm526_vm0, %v14944_v49  ;;  %9307 = vmatmul.msk.bf16.vlgmr.msra.gmra.mxu2 %vm526_vm0, %v15054_v11  ;;  %v9370_v49 = vor.u32 %v13496_v12, %v9369_v10  ;;  %v9338_v10 = vor.u32 %v13488_v59, %v9337_v58  ;;  %v1097_v12 = vld [vmem:[#allocation2 + $0x4] sm:$0x3]  ;;  %v9466_v31 = vor.u32 %v13513_v25, %v9463_v61  ;;  %v9431_v58 = vld [vmem:[%s20567_s3 + $0x1b0] sm:$0xf0]  ;;  %v9437_v2 = vld [vmem:[%s20567_s3 + $0x1a8] sm:$0xf] }
 0x12e   :  { %9308 = vmatmul.msk.bf16.vlgmr.msra.gmra.mxu3 %vm526_vm0, %v15054_v11  ;;  %v739_v30 = vpop.f32.mrf.mxu0  ;;  %1229 = vmatpush.bf16.msra.mxu2 %v9386_v39  ;;  %v13605_v25 = vld [vmem:[%s20567_s3 + $0x4c4] sm:$0xf]  ;;  %v9951_v61 = vld [vmem:[%s20567_s3 + $0x4d0] sm:$0xf0] }
 0x12f   :  { %v740_v33 = vadd.f32 %v739_v30, %v14701_v56  ;;  %1216 = vmatpush.bf16.msra.mxu1 %v9382_v13  ;;  %1242 = vmatpush.bf16.msra.mxu3 %v9390_v38  ;;  %v9347_v56 = vld [vmem:[%s20567_s3 + $0x130] sm:$0xf0]  ;;  %v9870_v13 = vor.u32 %v13589_v0, %v9867_v1  ;;  %v13585_v30 = vld [vmem:[%s20567_s3 + $0x424] sm:$0xf]  ;;  %v9838_v1 = vor.u32 %v13581_v47, %v9835_v48 }
 0x130   :  { %2008 = vmatpush.bf16.msra.mxu0 %v9770_v20  ;;  %v9350_v60 = vor.u32 %v13489_v34, %v9347_v56  ;;  %v9342_v20 = vor.u32 %v13486_v3, %v9339_v5  ;;  %v15176_v34 = vpack.c.bf16 %v1097_v12, %v1097_v12  ;;  %v9854_v35 = vor.u32 %v13585_v30, %v9851_v21  ;;  %v13512_v56 = vld [vmem:[%s20567_s3 + $0x1d4] sm:$0xf0]  ;;  %v9967_v0 = vld [vmem:[%s20567_s3 + $0x4f0] sm:$0xf0]  ;;  %v9413_v12 = vld [vmem:[%s20567_s3 + $0x180] sm:$0xf] }
 0x131   :  { %v767_v51 = vmax.f32 %v740_v33, 0.0  ;;  %v9462_v33 = vor.u32 %v13515_v28, %v9461_v26  ;;  %v13508_v3 = vld [vmem:[%s20567_s3 + $0x1b4] sm:$0xf0]  ;;  %v13503_v26 = vld [vmem:[%s20567_s3 + $0x18c] sm:$0xf0]  ;;  %v9954_v21 = vor.u32 %v13605_v25, %v9951_v61  ;;  %v580_v47 = vadd.f32 %v14635_v4, %v14753_v36 }
 0x132   :  { %1230 = vmatpush.bf16.msra.mxu2 %v9370_v49  ;;  %v575_v49 = vadd.f32 %v14635_v4, %v14729_v16  ;;  %v9445_v16 = vld [vmem:[%s20567_s3 + $0x1c0] sm:$0xf]  ;;  %v9421_v28 = vld [vmem:[%s20567_s3 + $0x188] sm:$0xf]  ;;  %v13510_v4 = vld [vmem:[%s20567_s3 + $0x1cc] sm:$0xf] }
 0x133   :  { %780 = vst.msk [vmem:[#allocation2 + $0x20] sm:$0xff] %vm526_vm0, %v767_v51  ;;  %1217 = vmatpush.bf16.msra.mxu1 %v9366_v57  ;;  %1243 = vmatpush.bf16.msra.mxu3 %v9374_v22  ;;  %v9470_v57 = vor.u32 %v13516_v15, %v9469_v29  ;;  %v9447_v22 = vld [vmem:[%s20567_s3 + $0x1d0] sm:$0xf0]  ;;  %v13504_v29 = vld [vmem:[%s20567_s3 + $0x194] sm:$0xf0] }
 0x134   :  { %2009 = vmatpush.bf16.msra.mxu0 %v9754_v46  ;;  %v9453_v46 = vld [vmem:[%s20567_s3 + $0x1c8] sm:$0xf]  ;;  %v618_v50 = vadd.f32 %v14733_v18, %v575_v49  ;;  %v9446_v18 = vor.u32 %v13511_v45, %v9445_v16  ;;  %v13529_v16 = vld [vmem:[%s20567_s3 + $0x264] sm:$0xf]  ;;  %v9497_v61 = vld [vmem:[%s20567_s3 + $0x200] sm:$0xf] }
 0x135   :  { %9728 = vmatmul.msk.bf16.vlgmr.msrb.gmra.mxu0 %vm526_vm0, %v15120_v62  ;;  %v9454_v43 = vor.u32 %v13512_v56, %v9453_v46  ;;  %v13601_v46 = vld [vmem:[%s20567_s3 + $0x4a4] sm:$0xf]  ;;  %v9935_v56 = vld [vmem:[%s20567_s3 + $0x4b0] sm:$0xf0] }
 0x136   :  { %v741_v39 = vpop.f32.mrf.mxu0  ;;  %1231 = vmatpush.bf16.msra.mxu2 %v9354_v55  ;;  %v1887_v55 = vld [vmem:[#allocation2 + $0xe] sm:$0x3]  ;;  %v661_v5 = vadd.f32 %v14741_v23, %v618_v50  ;;  %v9529_v50 = vld [vmem:[%s20567_s3 + $0x240] sm:$0xf]  ;;  %v9938_v36 = vor.u32 %v13601_v46, %v9935_v56  ;;  %v9553_v56 = vld [vmem:[%s20567_s3 + $0x268] sm:$0xf] }
 0x137   :  { %v742_v38 = vadd.f32 %v741_v39, %v699_v6  ;;  %1218 = vmatpush.bf16.msra.mxu1 %v9350_v60  ;;  %1244 = vmatpush.bf16.msra.mxu3 %v9358_v63  ;;  %v9429_v60 = vld [vmem:[%s20567_s3 + $0x1a0] sm:$0xf]  ;;  %v13609_v63 = vld [vmem:[%s20567_s3 + $0x4e4] sm:$0xf]  ;;  %v13530_v46 = vld [vmem:[%s20567_s3 + $0x26c] sm:$0xf] }
 0x138   :  { %2164 = vmatpush.bf16.msrb.mxu0 %v9886_v37  ;;  %v9450_v37 = vor.u32 %v13509_v32, %v9447_v22  ;;  %v704_v15 = vadd.f32 %v14743_v24, %v661_v5  ;;  %v9422_v32 = vor.u32 %v13504_v29, %v9421_v28  ;;  %v13531_v24 = vld [vmem:[%s20567_s3 + $0x26c] sm:$0xf0]  ;;  %v9471_v22 = vld [vmem:[%s20567_s3 + $0x1f8] sm:$0xf0]  ;;  %v13502_v28 = vld [vmem:[%s20567_s3 + $0x18c] sm:$0xf] }
 0x139   :  { %v768_v14 = vmax.f32 %v742_v38, 0.0  ;;  %v9415_v38 = vld [vmem:[%s20567_s3 + $0x190] sm:$0xf0] }
 0x13a   :  { %1232 = vmatpush.bf16.msra.mxu2 %v9338_v10  ;;  %v9970_v10 = vor.u32 %v13609_v63, %v9967_v0  ;;  %v2045_v0 = vld [vmem:[#allocation2 + $0x10] sm:$0x3] }
 0x13b   :  { %781 = vst.msk [vmem:[#allocation2 + $0x28] sm:$0xff] %vm526_vm0, %v768_v14  ;;  %1219 = vmatpush.bf16.msra.mxu1 %v9334_v54  ;;  %1245 = vmatpush.bf16.msra.mxu3 %v9342_v20  ;;  %v15236_v54 = vpack.c.bf16 %v1887_v55, %v1887_v55  ;;  %v9438_v20 = vor.u32 %v13508_v3, %v9437_v2  ;;  %v13523_v2 = vld [vmem:[%s20567_s3 + $0x22c] sm:$0xf0] }
 0x13c   :  { %2165 = vmatpush.bf16.msrb.mxu0 %v9870_v13  ;;  %v13501_v13 = vld [vmem:[%s20567_s3 + $0x184] sm:$0xf]  ;;  %v15350_v29 = vpack.c.bf16 %v2045_v0, %v2045_v0  ;;  %v13528_v0 = vld [vmem:[%s20567_s3 + $0x254] sm:$0xf0] }
 0x13d   :  { %9309 = vmatmul.msk.bf16.vlgmr.msrb.gmra.mxu1 %vm526_vm0, %v15054_v11  ;;  %9310 = vmatmul.msk.bf16.vlgmr.msrb.gmra.mxu2 %vm526_vm0, %v15054_v11  ;;  %v13505_v11 = vld [vmem:[%s20567_s3 + $0x1a4] sm:$0xf]  ;;  %v9418_v30 = vor.u32 %v13501_v13, %v9415_v38  ;;  %v9515_v38 = vld [vmem:[%s20567_s3 + $0x230] sm:$0xf0] }
 0x13e   :  { %9391 = vmatmul.msk.bf16.vlgmr.msrb.gmra.mxu3 %vm526_vm0, %v15176_v34  ;;  %v744_v51 = vpop.f32.mrf.mxu0  ;;  %1374 = vmatpush.bf16.msrb.mxu2 %v9466_v31  ;;  %v9434_v39 = vor.u32 %v13505_v11, %v9431_v58  ;;  %v9414_v31 = vor.u32 %v13503_v26, %v9413_v12  ;;  %v9455_v11 = vld [vmem:[%s20567_s3 + $0x1d8] sm:$0xf0]  ;;  %v13525_v58 = vld [vmem:[%s20567_s3 + $0x244] sm:$0xf]  ;;  %v13519_v26 = vld [vmem:[%s20567_s3 + $0x20c] sm:$0xf0] }
 0x13f   :  { %v745_v59 = vadd.f32 %v744_v51, %v14731_v17  ;;  %1361 = vmatpush.bf16.msrb.mxu1 %v9462_v33  ;;  %1387 = vmatpush.bf16.msrb.mxu3 %v9470_v57  ;;  %v13507_v17 = vld [vmem:[%s20567_s3 + $0x1ac] sm:$0xf0]  ;;  %v9545_v33 = vld [vmem:[%s20567_s3 + $0x260] sm:$0xf]  ;;  %v13514_v57 = vld [vmem:[%s20567_s3 + $0x1ec] sm:$0xf] }
 0x140   :  { %2166 = vmatpush.bf16.msrb.mxu0 %v9854_v35  ;;  %v9430_v23 = vor.u32 %v13507_v17, %v9429_v60  ;;  %v9547_v35 = vld [vmem:[%s20567_s3 + $0x270] sm:$0xf0]  ;;  %v9546_v48 = vor.u32 %v13531_v24, %v9545_v33  ;;  %v9474_v51 = vor.u32 %v13514_v57, %v9471_v22  ;;  %v623_v60 = vadd.f32 %v14760_v44, %v580_v47  ;;  %v9513_v17 = vld [vmem:[%s20567_s3 + $0x220] sm:$0xf]  ;;  %v13521_v13 = vld [vmem:[%s20567_s3 + $0x224] sm:$0xf] }
 0x141   :  { %v769_v6 = vmax.f32 %v745_v59, 0.0  ;;  %v9550_v55 = vor.u32 %v13529_v16, %v9547_v35  ;;  %v9531_v59 = vld [vmem:[%s20567_s3 + $0x250] sm:$0xf0]  ;;  %v9458_v44 = vor.u32 %v13510_v4, %v9455_v11  ;;  %v1255_v24 = vld [vmem:[#allocation2 + $0x6] sm:$0x3]  ;;  %v9498_v57 = vor.u32 %v13519_v26, %v9497_v61 }
 0x142   :  { %1375 = vmatpush.bf16.msrb.mxu2 %v9450_v37  ;;  %v13527_v37 = vld [vmem:[%s20567_s3 + $0x24c] sm:$0xf0]  ;;  %v9534_v5 = vor.u32 %v13525_v58, %v9531_v59  ;;  %v666_v12 = vadd.f32 %v14774_v52, %v623_v60  ;;  %v13532_v47 = vld [vmem:[%s20567_s3 + $0x274] sm:$0xf0]  ;;  %v14274_v4 = vld [vmem:[%s20566_s2] ss:$0 sm:$0xff]  ;;  %v15402_v59 = vpack.c.bf16 %v1255_v24, %v1255_v24 }
 0x143   :  { %782 = vst.msk [vmem:[#allocation2 + $0x30] sm:$0xff] %vm526_vm0, %v769_v6  ;;  %1362 = vmatpush.bf16.msrb.mxu1 %v9446_v18  ;;  %1388 = vmatpush.bf16.msrb.mxu3 %v9454_v43  ;;  %v13597_v18 = vld [vmem:[%s20567_s3 + $0x484] sm:$0xf]  ;;  %v9919_v43 = vld [vmem:[%s20567_s3 + $0x490] sm:$0xf0] }
 0x144   :  { %2167 = vmatpush.bf16.msrb.mxu0 %v9838_v1  ;;  %v9530_v1 = vor.u32 %v13527_v37, %v9529_v50  ;;  %v13625_v6 = vld [vmem:[%s20567_s3 + $0x564] sm:$0xf]  ;;  %v13547_v50 = vld [vmem:[%s20567_s3 + $0x2ec] sm:$0xf0]  ;;  %v10019_v37 = vld [vmem:[%s20567_s3 + $0x530] sm:$0xf0] }
 0x145   :  { %9812 = vmatmul.msk.bf16.vlgmr.msra.gmra.mxu0 %vm526_vm0, %v15236_v54  ;;  %v13526_v58 = vld [vmem:[%s20567_s3 + $0x24c] sm:$0xf]  ;;  %v9539_v60 = vld [vmem:[%s20567_s3 + $0x258] sm:$0xf0]  ;;  %v13539_v61 = vld [vmem:[%s20567_s3 + $0x2ac] sm:$0xf0] }
 0x146   :  { %v746_v14 = vpop.f32.mrf.mxu0  ;;  %1376 = vmatpush.bf16.msrb.mxu2 %v9434_v39  ;;  %v10051_v39 = vld [vmem:[%s20567_s3 + $0x570] sm:$0xf0]  ;;  %v13520_v24 = vld [vmem:[%s20567_s3 + $0x214] sm:$0xf0] }
 0x147   :  { %v747_v49 = vadd.f32 %v746_v14, %v704_v15  ;;  %1363 = vmatpush.bf16.msrb.mxu1 %v9430_v23  ;;  %1389 = vmatpush.bf16.msrb.mxu3 %v9438_v20  ;;  %v9514_v20 = vor.u32 %v13523_v2, %v9513_v17  ;;  %v10054_v25 = vor.u32 %v13625_v6, %v10051_v39  ;;  %v13621_v14 = vld [vmem:[%s20567_s3 + $0x544] sm:$0xf]  ;;  %v13543_v17 = vld [vmem:[%s20567_s3 + $0x2cc] sm:$0xf0]  ;;  %v13522_v39 = vld [vmem:[%s20567_s3 + $0x22c] sm:$0xf] }
 0x148   :  { %2322 = vmatpush.bf16.msra.mxu0 %v9970_v10  ;;  %v9922_v10 = vor.u32 %v13597_v18, %v9919_v43  ;;  %v9518_v15 = vor.u32 %v13521_v13, %v9515_v38  ;;  %v9554_v18 = vor.u32 %v13532_v47, %v9553_v56  ;;  %v13613_v2 = vld [vmem:[%s20567_s3 + $0x504] sm:$0xf]  ;;  %v9542_v6 = vor.u32 %v13526_v58, %v9539_v60  ;;  %v9521_v38 = vld [vmem:[%s20567_s3 + $0x228] sm:$0xf]  ;;  %v10103_v58 = vld [vmem:[%s20567_s3 + $0x5b0] sm:$0xf0] }
 0x149   :  { %v770_v45 = vmax.f32 %v747_v49, 0.0  ;;  %v13517_v49 = vld [vmem:[%s20567_s3 + $0x204] sm:$0xf] }
 0x14a   :  { %1377 = vmatpush.bf16.msrb.mxu2 %v9418_v30  ;;  %v10035_v30 = vld [vmem:[%s20567_s3 + $0x550] sm:$0xf0] }
 0x14b   :  { %783 = vst.msk [vmem:[#allocation2 + $0x38] sm:$0xff] %vm526_vm0, %v770_v45  ;;  %1364 = vmatpush.bf16.msrb.mxu1 %v9414_v31  ;;  %1390 = vmatpush.bf16.msrb.mxu3 %v9422_v32  ;;  %v9499_v31 = vld [vmem:[%s20567_s3 + $0x210] sm:$0xf0]  ;;  %v709_v32 = vadd.f32 %v14776_v53, %v666_v12  ;;  %v10038_v22 = vor.u32 %v13621_v14, %v10035_v30  ;;  %v9555_v53 = vld [vmem:[%s20567_s3 + $0x278] sm:$0xf0] }
 0x14c   :  { %2323 = vmatpush.bf16.msra.mxu0 %v9954_v21  ;;  %v9423_v21 = vld [vmem:[%s20567_s3 + $0x198] sm:$0xf0]  ;;  %v9502_v45 = vor.u32 %v13517_v49, %v9499_v31  ;;  %v9558_v11 = vor.u32 %v13530_v46, %v9555_v53  ;;  %v13641_v12 = vld [vmem:[%s20567_s3 + $0x5e4] sm:$0xf]  ;;  %v13518_v14 = vld [vmem:[%s20567_s3 + $0x20c] sm:$0xf] }
 0x14d   :  { %9392 = vmatmul.msk.bf16.vlgmr.msra.gmra.mxu1 %vm526_vm0, %v15176_v34  ;;  %9393 = vmatmul.msk.bf16.vlgmr.msra.gmra.mxu2 %vm526_vm0, %v15176_v34  ;;  %v9426_v35 = vor.u32 %v13502_v28, %v9423_v21  ;;  %v9507_v30 = vld [vmem:[%s20567_s3 + $0x218] sm:$0xf0]  ;;  %v9505_v21 = vld [vmem:[%s20567_s3 + $0x208] sm:$0xf] }
 0x14e   :  { %9394 = vmatmul.msk.bf16.vlgmr.msra.gmra.mxu3 %vm526_vm0, %v15176_v34  ;;  %v749_v63 = vpop.f32.mrf.mxu0  ;;  %1519 = vmatpush.bf16.msra.mxu2 %v9546_v48  ;;  %v13506_v34 = vld [vmem:[%s20567_s3 + $0x1ac] sm:$0xf]  ;;  %v9629_v48 = vld [vmem:[%s20567_s3 + $0x2e0] sm:$0xf]  ;;  %v9510_v46 = vor.u32 %v13518_v14, %v9507_v30  ;;  %v9506_v47 = vor.u32 %v13520_v24, %v9505_v21  ;;  %v9591_v14 = vld [vmem:[%s20567_s3 + $0x298] sm:$0xf0] }
 0x14f   :  { %v750_v3 = vadd.f32 %v749_v63, %v14758_v41  ;;  %1400 = vmatpush.bf16.msra.mxu1 %v9474_v51  ;;  %1532 = vmatpush.bf16.msra.mxu3 %v9550_v55  ;;  %v9439_v41 = vld [vmem:[%s20567_s3 + $0x1b8] sm:$0xf0]  ;;  %v13617_v55 = vld [vmem:[%s20567_s3 + $0x524] sm:$0xf]  ;;  %v9630_v43 = vor.u32 %v13547_v50, %v9629_v48  ;;  %v13546_v50 = vld [vmem:[%s20567_s3 + $0x2ec] sm:$0xf] }
 0x150   :  { %2324 = vmatpush.bf16.msra.mxu0 %v9938_v36  ;;  %v9442_v52 = vor.u32 %v13506_v34, %v9439_v41  ;;  %v585_v36 = vadd.f32 %v14274_v4, %v14786_v7  ;;  %v9537_v7 = vld [vmem:[%s20567_s3 + $0x248] sm:$0xf]  ;;  %v10022_v63 = vor.u32 %v13617_v55, %v10019_v37  ;;  %v2203_v34 = vld [vmem:[#allocation2 + $0x12] sm:$0x3]  ;;  %v13548_v55 = vld [vmem:[%s20567_s3 + $0x2f4] sm:$0xf0] }
 0x151   :  { %v771_v23 = vmax.f32 %v750_v3, 0.0  ;;  %v10003_v3 = vld [vmem:[%s20567_s3 + $0x510] sm:$0xf0]  ;;  %v15468_v49 = vpack.c.bf16 %v2203_v34, %v2203_v34  ;;  %v9713_v37 = vld [vmem:[%s20567_s3 + $0x360] sm:$0xf] }
 0x152   :  { %1520 = vmatpush.bf16.msra.mxu2 %v9530_v1  ;;  %v9613_v1 = vld [vmem:[%s20567_s3 + $0x2c0] sm:$0xf]  ;;  %v13563_v4 = vld [vmem:[%s20567_s3 + $0x36c] sm:$0xf0]  ;;  %v10087_v34 = vld [vmem:[%s20567_s3 + $0x590] sm:$0xf0] }
 0x153   :  { %784 = vst.msk [vmem:[#allocation2 + $0x40] sm:$0xff] %vm526_vm0, %v771_v23  ;;  %1401 = vmatpush.bf16.msra.mxu1 %v9458_v44  ;;  %1533 = vmatpush.bf16.msra.mxu3 %v9534_v5  ;;  %v628_v44 = vadd.f32 %v14790_v9, %v585_v36  ;;  %v9538_v9 = vor.u32 %v13528_v0, %v9537_v7  ;;  %v10135_v23 = vld [vmem:[%s20567_s3 + $0x5f0] sm:$0xf0]  ;;  %v9623_v0 = vld [vmem:[%s20567_s3 + $0x2d8] sm:$0xf0] }
 0x154   :  { %2325 = vmatpush.bf16.msra.mxu0 %v9922_v10  ;;  %v9523_v10 = vld [vmem:[%s20567_s3 + $0x238] sm:$0xf0]  ;;  %v9614_v13 = vor.u32 %v13543_v17, %v9613_v1  ;;  %v9621_v1 = vld [vmem:[%s20567_s3 + $0x2c8] sm:$0xf]  ;;  %v13536_v24 = vld [vmem:[%s20567_s3 + $0x294] sm:$0xf0] }
 0x155   :  { %9896 = vmatmul.msk.bf16.vlgmr.msrb.gmra.mxu0 %vm526_vm0, %v15350_v29  ;;  %v671_v26 = vadd.f32 %v14798_v19, %v628_v44  ;;  %v13559_v44 = vld [vmem:[%s20567_s3 + $0x34c] sm:$0xf0]  ;;  %v9589_v30 = vld [vmem:[%s20567_s3 + $0x288] sm:$0xf] }
 0x156   :  { %v751_v33 = vpop.f32.mrf.mxu0  ;;  %1521 = vmatpush.bf16.msra.mxu2 %v9514_v20  ;;  %v10006_v20 = vor.u32 %v13613_v2, %v10003_v3  ;;  %v13544_v2 = vld [vmem:[%s20567_s3 + $0x2d4] sm:$0xf0]  ;;  %v9697_v3 = vld [vmem:[%s20567_s3 + $0x340] sm:$0xf] }
 0x157   :  { %v752_v16 = vadd.f32 %v751_v33, %v709_v32  ;;  %1402 = vmatpush.bf16.msra.mxu1 %v9442_v52  ;;  %1534 = vmatpush.bf16.msra.mxu3 %v9518_v15  ;;  %v9526_v52 = vor.u32 %v13522_v39, %v9523_v10  ;;  %v10138_v15 = vor.u32 %v13641_v12, %v10135_v23  ;;  %v13637_v32 = vld [vmem:[%s20567_s3 + $0x5c4] sm:$0xf]  ;;  %v10119_v33 = vld [vmem:[%s20567_s3 + $0x5d0] sm:$0xf0]  ;;  %v9605_v12 = vld [vmem:[%s20567_s3 + $0x2a8] sm:$0xf] }
 0x158   :  { %2480 = vmatpush.bf16.msrb.mxu0 %v10054_v25  ;;  %v9597_v25 = vld [vmem:[%s20567_s3 + $0x2a0] sm:$0xf]  ;;  %v10122_v53 = vor.u32 %v13637_v32, %v10119_v33  ;;  %v2361_v39 = vld [vmem:[#allocation2 + $0x14] sm:$0x3]  ;;  %v13657_v23 = vld [vmem:[%s20567_s3 + $0x664] sm:$0xf] }
 0x159   :  { %v772_v51 = vmax.f32 %v752_v16, 0.0  ;;  %v9598_v31 = vor.u32 %v13539_v61, %v9597_v25  ;;  %v714_v16 = vadd.f32 %v14809_v27, %v671_v26  ;;  %v9639_v27 = vld [vmem:[%s20567_s3 + $0x2f8] sm:$0xf0]  ;;  %v9681_v25 = vld [vmem:[%s20567_s3 + $0x320] sm:$0xf]  ;;  %v15580_v21 = vpack.c.bf16 %v2361_v39, %v2361_v39 }
 0x15a   :  { %1522 = vmatpush.bf16.msra.mxu2 %v9498_v57  ;;  %v9581_v57 = vld [vmem:[%s20567_s3 + $0x280] sm:$0xf]  ;;  %v13555_v61 = vld [vmem:[%s20567_s3 + $0x32c] sm:$0xf0]  ;;  %v13653_v32 = vld [vmem:[%s20567_s3 + $0x644] sm:$0xf] }
 0x15b   :  { %785 = vst.msk [vmem:[#allocation2 + $0x48] sm:$0xff] %vm526_vm0, %v772_v51  ;;  %1403 = vmatpush.bf16.msra.mxu1 %v9426_v35  ;;  %1535 = vmatpush.bf16.msra.mxu3 %v9502_v45  ;;  %v1413_v45 = vld [vmem:[#allocation2 + $0x8] sm:$0x3]  ;;  %v10203_v33 = vld [vmem:[%s20567_s3 + $0x650] sm:$0xf0] }
 0x15c   :  { %2481 = vmatpush.bf16.msrb.mxu0 %v10038_v22  ;;  %v13535_v22 = vld [vmem:[%s20567_s3 + $0x28c] sm:$0xf0]  ;;  %v9637_v51 = vld [vmem:[%s20567_s3 + $0x2e8] sm:$0xf]  ;;  %v15516_v60 = vpack.c.bf16 %v1413_v45, %v1413_v45 }
 0x15d   :  { %9475 = vmatmul.msk.bf16.vlgmr.msrb.gmra.mxu1 %vm526_vm0, %v15402_v59  ;;  %9476 = vmatmul.msk.bf16.vlgmr.msrb.gmra.mxu2 %vm526_vm0, %v15402_v59  ;;  %v9582_v48 = vor.u32 %v13535_v22, %v9581_v57  ;;  %v9638_v7 = vor.u32 %v13548_v55, %v9637_v51  ;;  %v9665_v57 = vld [vmem:[%s20567_s3 + $0x300] sm:$0xf]  ;;  %v13551_v22 = vld [vmem:[%s20567_s3 + $0x30c] sm:$0xf0]  ;;  %v13649_v55 = vld [vmem:[%s20567_s3 + $0x624] sm:$0xf] }
 0x15e   :  { %9477 = vmatmul.msk.bf16.vlgmr.msrb.gmra.mxu3 %vm526_vm0, %v15402_v59  ;;  %v754_v5 = vpop.f32.mrf.mxu0  ;;  %1558 = vmatpush.bf16.msrb.mxu2 %v9558_v11  ;;  %v13633_v11 = vld [vmem:[%s20567_s3 + $0x5a4] sm:$0xf]  ;;  %v13579_v51 = vld [vmem:[%s20567_s3 + $0x3ec] sm:$0xf0]  ;;  %v9689_v39 = vld [vmem:[%s20567_s3 + $0x328] sm:$0xf] }
 0x15f   :  { %v755_v41 = vadd.f32 %v754_v5, %v14788_v8  ;;  %1545 = vmatpush.bf16.msrb.mxu1 %v9554_v18  ;;  %1677 = vmatpush.bf16.msrb.mxu3 %v9630_v43  ;;  %v13524_v8 = vld [vmem:[%s20567_s3 + $0x234] sm:$0xf0]  ;;  %v9642_v18 = vor.u32 %v13546_v50, %v9639_v27  ;;  %v13542_v43 = vld [vmem:[%s20567_s3 + $0x2cc] sm:$0xf]  ;;  %v10106_v17 = vor.u32 %v13633_v11, %v10103_v58  ;;  %v13629_v5 = vld [vmem:[%s20567_s3 + $0x584] sm:$0xf] }
 0x160   :  { %2482 = vmatpush.bf16.msrb.mxu0 %v10022_v63  ;;  %v9522_v19 = vor.u32 %v13524_v8, %v9521_v38  ;;  %v9714_v63 = vor.u32 %v13563_v4, %v9713_v37  ;;  %v9626_v10 = vor.u32 %v13542_v43, %v9623_v0  ;;  %v9698_v38 = vor.u32 %v13559_v44, %v9697_v3  ;;  %v13564_v50 = vld [vmem:[%s20567_s3 + $0x374] sm:$0xf0]  ;;  %v9797_v27 = vld [vmem:[%s20567_s3 + $0x3e0] sm:$0xf]  ;;  %v10187_v37 = vld [vmem:[%s20567_s3 + $0x630] sm:$0xf0] }
 0x161   :  { %v773_v28 = vmax.f32 %v755_v41, 0.0  ;;  %v9607_v41 = vld [vmem:[%s20567_s3 + $0x2b8] sm:$0xf0]  ;;  %v10090_v8 = vor.u32 %v13629_v5, %v10087_v34  ;;  %v9798_v11 = vor.u32 %v13579_v51, %v9797_v27  ;;  %v13558_v58 = vld [vmem:[%s20567_s3 + $0x34c] sm:$0xf] }
 0x162   :  { %1559 = vmatpush.bf16.msrb.mxu2 %v9542_v6  ;;  %v9705_v43 = vld [vmem:[%s20567_s3 + $0x348] sm:$0xf]  ;;  %v9781_v0 = vld [vmem:[%s20567_s3 + $0x3c0] sm:$0xf]  ;;  %v2519_v3 = vld [vmem:[#allocation2 + $0x16] sm:$0x3] }
 0x163   :  { %786 = vst.msk [vmem:[#allocation2 + $0x50] sm:$0xff] %vm526_vm0, %v773_v28  ;;  %1546 = vmatpush.bf16.msrb.mxu1 %v9538_v9  ;;  %1678 = vmatpush.bf16.msrb.mxu3 %v9614_v13  ;;  %v9622_v13 = vor.u32 %v13544_v2, %v9621_v1  ;;  %v13575_v1 = vld [vmem:[%s20567_s3 + $0x3cc] sm:$0xf0]  ;;  %v10171_v2 = vld [vmem:[%s20567_s3 + $0x610] sm:$0xf0] }
 0x164   :  { %2483 = vmatpush.bf16.msrb.mxu0 %v10006_v20  ;;  %v10219_v20 = vld [vmem:[%s20567_s3 + $0x670] sm:$0xf0]  ;;  %v13554_v5 = vld [vmem:[%s20567_s3 + $0x32c] sm:$0xf]  ;;  %v9791_v27 = vld [vmem:[%s20567_s3 + $0x3d8] sm:$0xf0] }
 0x165   :  { %9980 = vmatmul.msk.bf16.vlgmr.msra.gmra.mxu0 %vm526_vm0, %v15468_v49  ;;  %v9789_v51 = vld [vmem:[%s20567_s3 + $0x3c8] sm:$0xf] }
 0x166   :  { %v756_v35 = vpop.f32.mrf.mxu0  ;;  %1560 = vmatpush.bf16.msrb.mxu2 %v9526_v52  ;;  %v10222_v52 = vor.u32 %v13657_v23, %v10219_v20  ;;  %v13550_v20 = vld [vmem:[%s20567_s3 + $0x30c] sm:$0xf] }
 0x167   :  { %v757_v56 = vadd.f32 %v756_v35, %v714_v16  ;;  %1547 = vmatpush.bf16.msrb.mxu1 %v9522_v19  ;;  %1679 = vmatpush.bf16.msrb.mxu3 %v9598_v31  ;;  %v9682_v31 = vor.u32 %v13555_v61, %v9681_v25  ;;  %v10206_v35 = vor.u32 %v13653_v32, %v10203_v33 }
 0x168   :  { %2638 = vmatpush.bf16.msra.mxu0 %v10138_v15  ;;  %v13534_v15 = vld [vmem:[%s20567_s3 + $0x28c] sm:$0xf] }
 0x169   :  { %v774_v36 = vmax.f32 %v757_v56, 0.0  ;;  %v9594_v16 = vor.u32 %v13534_v15, %v9591_v14  ;;  %v13562_v56 = vld [vmem:[%s20567_s3 + $0x36c] sm:$0xf]  ;;  %v13552_v15 = vld [vmem:[%s20567_s3 + $0x314] sm:$0xf0] }
 0x16a   :  { %1561 = vmatpush.bf16.msrb.mxu2 %v9510_v46  ;;  %v9590_v46 = vor.u32 %v13536_v24, %v9589_v30  ;;  %v9749_v14 = vld [vmem:[%s20567_s3 + $0x380] sm:$0xf]  ;;  %v13567_v30 = vld [vmem:[%s20567_s3 + $0x38c] sm:$0xf0]  ;;  %v13578_v24 = vld [vmem:[%s20567_s3 + $0x3ec] sm:$0xf] }
 0x16b   :  { %787 = vst.msk [vmem:[#allocation2 + $0x58] sm:$0xff] %vm526_vm0, %v774_v36  ;;  %1548 = vmatpush.bf16.msrb.mxu1 %v9506_v47  ;;  %1680 = vmatpush.bf16.msrb.mxu3 %v9582_v48  ;;  %v9723_v47 = vld [vmem:[%s20567_s3 + $0x378] sm:$0xf0]  ;;  %v9721_v48 = vld [vmem:[%s20567_s3 + $0x368] sm:$0xf]  ;;  %v9750_v33 = vor.u32 %v13567_v30, %v9749_v14 }
 0x16c   :  { %2639 = vmatpush.bf16.msra.mxu0 %v10122_v53  ;;  %v9666_v53 = vor.u32 %v13551_v22, %v9665_v57  ;;  %v9726_v4 = vor.u32 %v13562_v56, %v9723_v47  ;;  %v9722_v36 = vor.u32 %v13564_v50, %v9721_v48  ;;  %v9807_v57 = vld [vmem:[%s20567_s3 + $0x3f8] sm:$0xf0]  ;;  %v9805_v22 = vld [vmem:[%s20567_s3 + $0x3e8] sm:$0xf]  ;;  %v13574_v50 = vld [vmem:[%s20567_s3 + $0x3cc] sm:$0xf] }
 0x16d   :  { %9478 = vmatmul.msk.bf16.vlgmr.msra.gmra.mxu1 %vm526_vm0, %v15402_v59  ;;  %9559 = vmatmul.msk.bf16.vlgmr.msra.gmra.mxu2 %vm526_vm0, %v15516_v60  ;;  %v13538_v59 = vld [vmem:[%s20567_s3 + $0x2ac] sm:$0xf]  ;;  %v9810_v56 = vor.u32 %v13578_v24, %v9807_v57  ;;  %v9889_v14 = vld [vmem:[%s20567_s3 + $0x468] sm:$0xf]  ;;  %v13596_v30 = vld [vmem:[%s20567_s3 + $0x474] sm:$0xf0] }
 0x16e   :  { %9560 = vmatmul.msk.bf16.vlgmr.msra.gmra.mxu3 %vm526_vm0, %v15516_v60  ;;  %v759_v6 = vpop.f32.mrf.mxu0  ;;  %1716 = vmatpush.bf16.msra.mxu2 %v9642_v18  ;;  %v9610_v28 = vor.u32 %v13538_v59, %v9607_v41  ;;  %v9707_v18 = vld [vmem:[%s20567_s3 + $0x358] sm:$0xf0]  ;;  %v10303_v59 = vld [vmem:[%s20567_s3 + $0x6f0] sm:$0xf0] }
 0x16f   :  { %v760_v9 = vadd.f32 %v759_v6, %v14875_v40  ;;  %1703 = vmatpush.bf16.msra.mxu1 %v9638_v7  ;;  %1835 = vmatpush.bf16.msra.mxu3 %v9714_v63  ;;  %v13540_v40 = vld [vmem:[%s20567_s3 + $0x2b4] sm:$0xf0]  ;;  %v10190_v7 = vor.u32 %v13649_v55, %v10187_v37  ;;  %v9710_v44 = vor.u32 %v13558_v58, %v9707_v18  ;;  %v10255_v58 = vld [vmem:[%s20567_s3 + $0x690] sm:$0xf0] }
 0x170   :  { %2640 = vmatpush.bf16.msra.mxu0 %v10106_v17  ;;  %v9606_v19 = vor.u32 %v13540_v40, %v9605_v12  ;;  %v13560_v63 = vld [vmem:[%s20567_s3 + $0x354] sm:$0xf0]  ;;  %v13645_v17 = vld [vmem:[%s20567_s3 + $0x604] sm:$0xf]  ;;  %v9782_v6 = vor.u32 %v13575_v1, %v9781_v0  ;;  %v15683_v40 = vpack.c.bf16 %v2519_v3, %v2519_v3  ;;  %v9773_v1 = vld [vmem:[%s20567_s3 + $0x3a8] sm:$0xf] }
 0x171   :  { %v775_v26 = vmax.f32 %v760_v9, 0.0  ;;  %v9706_v34 = vor.u32 %v13560_v63, %v9705_v43  ;;  %v10174_v41 = vor.u32 %v13645_v17, %v10171_v2  ;;  %v13556_v9 = vld [vmem:[%s20567_s3 + $0x334] sm:$0xf0]  ;;  %v9794_v43 = vor.u32 %v13574_v50, %v9791_v27  ;;  %v13689_v17 = vld [vmem:[%s20567_s3 + $0x764] sm:$0xf] }
 0x172   :  { %1717 = vmatpush.bf16.msra.mxu2 %v9626_v10  ;;  %v13673_v10 = vld [vmem:[%s20567_s3 + $0x6e4] sm:$0xf]  ;;  %v9690_v25 = vor.u32 %v13556_v9, %v9689_v39  ;;  %v13576_v37 = vld [vmem:[%s20567_s3 + $0x3d4] sm:$0xf0]  ;;  %v10387_v2 = vld [vmem:[%s20567_s3 + $0x770] sm:$0xf0] }
 0x173   :  { %789 = vst.msk [vmem:[#allocation2 + $0x60] sm:$0x3] %vm788_vm1, %v775_v26  ;;  %1704 = vmatpush.bf16.msra.mxu1 %v9622_v13  ;;  %1836 = vmatpush.bf16.msra.mxu3 %v9698_v38  ;;  %v9765_v13 = vld [vmem:[%s20567_s3 + $0x3a0] sm:$0xf]  ;;  %v13571_v38 = vld [vmem:[%s20567_s3 + $0x3ac] sm:$0xf0]  ;;  %v10306_v23 = vor.u32 %v13673_v10, %v10303_v59  ;;  %v9790_v63 = vor.u32 %v13576_v37, %v9789_v51 }
 0x174   :  { %2641 = vmatpush.bf16.msra.mxu0 %v10090_v8  ;;  %v9675_v8 = vld [vmem:[%s20567_s3 + $0x318] sm:$0xf0]  ;;  %v9766_v61 = vor.u32 %v13571_v38, %v9765_v13  ;;  %v9673_v26 = vld [vmem:[%s20567_s3 + $0x308] sm:$0xf]  ;;  %v2677_v18 = vld [vmem:[#allocation2 + $0x18] sm:$0x3] }
 0x175   :  { %10064 = vmatmul.msk.bf16.vlgmr.msrb.gmra.mxu0 %vm526_vm0, %v15580_v21  ;;  %v9674_v32 = vor.u32 %v13552_v15, %v9673_v26  ;;  %v13566_v39 = vld [vmem:[%s20567_s3 + $0x38c] sm:$0xf]  ;;  %v9759_v10 = vld [vmem:[%s20567_s3 + $0x398] sm:$0xf0]  ;;  %v15789_v59 = vpack.c.bf16 %v2677_v18, %v2677_v18  ;;  %v9757_v13 = vld [vmem:[%s20567_s3 + $0x388] sm:$0xf] }
 0x176   :  { %1718 = vmatpush.bf16.msra.mxu2 %v9610_v28  ;;  %v761_v45 = vpop.f32.mrf.mxu0  ;;  %v13669_v28 = vld [vmem:[%s20567_s3 + $0x6c4] sm:$0xf]  ;;  %v9891_v15 = vld [vmem:[%s20567_s3 + $0x478] sm:$0xf0]  ;;  %v10339_v27 = vld [vmem:[%s20567_s3 + $0x710] sm:$0xf0] }
 0x177   :  { %1705 = vmatpush.bf16.msra.mxu1 %v9606_v19  ;;  %1837 = vmatpush.bf16.msra.mxu3 %v9682_v31  ;;  %v9678_v19 = vor.u32 %v13550_v20, %v9675_v8  ;;  %v13595_v45 = vld [vmem:[%s20567_s3 + $0x46c] sm:$0xf0]  ;;  %v13685_v38 = vld [vmem:[%s20567_s3 + $0x744] sm:$0xf]  ;;  %v9833_v20 = vld [vmem:[%s20567_s3 + $0x400] sm:$0xf] }
 0x178   :  { %2796 = vmatpush.bf16.msrb.mxu0 %v10222_v52  ;;  %v10287_v52 = vld [vmem:[%s20567_s3 + $0x6d0] sm:$0xf0]  ;;  %v13583_v8 = vld [vmem:[%s20567_s3 + $0x40c] sm:$0xf0]  ;;  %v13677_v50 = vld [vmem:[%s20567_s3 + $0x704] sm:$0xf] }
 0x179   :  { %v10290_v31 = vor.u32 %v13669_v28, %v10287_v52  ;;  %v9834_v28 = vor.u32 %v13583_v8, %v9833_v20  ;;  %v13594_v52 = vld [vmem:[%s20567_s3 + $0x46c] sm:$0xf]  ;;  %v2835_v51 = vld [vmem:[#allocation2 + $0x1a] sm:$0x3]  ;;  %v10471_v18 = vld [vmem:[%s20567_s3 + $0x7f0] sm:$0xf0] }
 0x17a   :  { %1719 = vmatpush.bf16.msra.mxu2 %v9594_v16  ;;  %v13580_v16 = vld [vmem:[%s20567_s3 + $0x3f4] sm:$0xf0]  ;;  %v9894_v57 = vor.u32 %v13594_v52, %v9891_v15  ;;  %v13586_v37 = vld [vmem:[%s20567_s3 + $0x42c] sm:$0xf] }
 0x17b   :  { %1706 = vmatpush.bf16.msra.mxu1 %v9590_v46  ;;  %1838 = vmatpush.bf16.msra.mxu3 %v9666_v53  ;;  %v13665_v46 = vld [vmem:[%s20567_s3 + $0x6a4] sm:$0xf]  ;;  %v10271_v53 = vld [vmem:[%s20567_s3 + $0x6b0] sm:$0xf0]  ;;  %v9806_v47 = vor.u32 %v13580_v16, %v9805_v22  ;;  %v9890_v22 = vor.u32 %v13596_v30, %v9889_v14  ;;  %v13612_v15 = vld [vmem:[%s20567_s3 + $0x4f4] sm:$0xf0] }
 0x17c   :  { %2797 = vmatpush.bf16.msrb.mxu0 %v10206_v35  ;;  %v9881_v35 = vld [vmem:[%s20567_s3 + $0x460] sm:$0xf]  ;;  %v10274_v55 = vor.u32 %v13665_v46, %v10271_v53  ;;  %v9873_v46 = vld [vmem:[%s20567_s3 + $0x448] sm:$0xf]  ;;  %v13627_v30 = vld [vmem:[%s20567_s3 + $0x56c] sm:$0xf0] }
 0x17d   :  { %9561 = vmatmul.msk.bf16.vlgmr.msrb.gmra.mxu1 %vm526_vm0, %v15516_v60  ;;  %9562 = vmatmul.msk.bf16.vlgmr.msrb.gmra.mxu2 %vm526_vm0, %v15516_v60  ;;  %v9691_v60 = vld [vmem:[%s20567_s3 + $0x338] sm:$0xf0]  ;;  %v9882_v48 = vor.u32 %v13595_v45, %v9881_v35  ;;  %v13590_v35 = vld [vmem:[%s20567_s3 + $0x44c] sm:$0xf]  ;;  %v10049_v14 = vld [vmem:[%s20567_s3 + $0x560] sm:$0xf] }
 0x17e   :  { %9643 = vmatmul.msk.bf16.vlgmr.msrb.gmra.mxu3 %vm526_vm0, %v15004_v42  ;;  %1874 = vmatpush.bf16.msrb.mxu2 %v9726_v4  ;;  %v9694_v12 = vor.u32 %v13554_v5, %v9691_v60  ;;  %v9865_v4 = vld [vmem:[%s20567_s3 + $0x440] sm:$0xf]  ;;  %v13587_v60 = vld [vmem:[%s20567_s3 + $0x42c] sm:$0xf0]  ;;  %v9875_v45 = vld [vmem:[%s20567_s3 + $0x458] sm:$0xf0] }
 0x17f   :  { %1861 = vmatpush.bf16.msrb.mxu1 %v9722_v36  ;;  %1993 = vmatpush.bf16.msrb.mxu3 %v9798_v11  ;;  %v13591_v36 = vld [vmem:[%s20567_s3 + $0x44c] sm:$0xf0]  ;;  %v13661_v11 = vld [vmem:[%s20567_s3 + $0x684] sm:$0xf]  ;;  %v9849_v5 = vld [vmem:[%s20567_s3 + $0x420] sm:$0xf] }
 0x180   :  { %2798 = vmatpush.bf16.msrb.mxu0 %v10190_v7  ;;  %v13570_v7 = vld [vmem:[%s20567_s3 + $0x3ac] sm:$0xf]  ;;  %v9866_v0 = vor.u32 %v13591_v36, %v9865_v4  ;;  %v10258_v3 = vor.u32 %v13661_v11, %v10255_v58  ;;  %v9850_v9 = vor.u32 %v13587_v60, %v9849_v5  ;;  %v9857_v11 = vld [vmem:[%s20567_s3 + $0x428] sm:$0xf]  ;;  %v13705_v58 = vld [vmem:[%s20567_s3 + $0x7e4] sm:$0xf] }
 0x181   :  { %v13582_v5 = vld [vmem:[%s20567_s3 + $0x40c] sm:$0xf]  ;;  %v9843_v60 = vld [vmem:[%s20567_s3 + $0x418] sm:$0xf0] }
 0x182   :  { %1875 = vmatpush.bf16.msrb.mxu2 %v9710_v44  ;;  %v13572_v44 = vld [vmem:[%s20567_s3 + $0x3b4] sm:$0xf0] }
 0x183   :  { %1862 = vmatpush.bf16.msrb.mxu1 %v9706_v34  ;;  %1994 = vmatpush.bf16.msrb.mxu3 %v9782_v6  ;;  %v10390_v6 = vor.u32 %v13689_v17, %v10387_v2 }
 0x184   :  { %2799 = vmatpush.bf16.msrb.mxu0 %v10174_v41  ;;  %v9774_v41 = vor.u32 %v13572_v44, %v9773_v1  ;;  %v10474_v44 = vor.u32 %v13705_v58, %v10471_v18  ;;  %v13721_v58 = vld [vmem:[%s20567_s3 + $0x864] sm:$0xf]  ;;  %v10555_v18 = vld [vmem:[%s20567_s3 + $0x870] sm:$0xf0] }
 0x185   :  { %10148 = vmatmul.msk.bf16.vlgmr.msra.gmra.mxu0 %vm526_vm0, %v15683_v40 }
 0x186   :  { %1876 = vmatpush.bf16.msrb.mxu2 %v9694_v12  ;;  %v10371_v12 = vld [vmem:[%s20567_s3 + $0x750] sm:$0xf0] }
 0x187   :  { %1863 = vmatpush.bf16.msrb.mxu1 %v9690_v25  ;;  %1995 = vmatpush.bf16.msrb.mxu3 %v9766_v61  ;;  %v9762_v25 = vor.u32 %v13566_v39, %v9759_v10  ;;  %v10374_v61 = vor.u32 %v13685_v38, %v10371_v12  ;;  %v9841_v10 = vld [vmem:[%s20567_s3 + $0x408] sm:$0xf]  ;;  %v9917_v38 = vld [vmem:[%s20567_s3 + $0x480] sm:$0xf]  ;;  %v13599_v12 = vld [vmem:[%s20567_s3 + $0x48c] sm:$0xf0] }
 0x188   :  { %2954 = vmatpush.bf16.msra.mxu0 %v10306_v23  ;;  %v13568_v23 = vld [vmem:[%s20567_s3 + $0x394] sm:$0xf0] }
 0x189   :  { %v9758_v26 = vor.u32 %v13568_v23, %v9757_v13  ;;  %v13584_v13 = vld [vmem:[%s20567_s3 + $0x414] sm:$0xf0]  ;;  %v9846_v23 = vor.u32 %v13582_v5, %v9843_v60 }
 0x18a   :  { %1877 = vmatpush.bf16.msrb.mxu2 %v9678_v19  ;;  %v9965_v19 = vld [vmem:[%s20567_s3 + $0x4e0] sm:$0xf]  ;;  %v9842_v8 = vor.u32 %v13584_v13, %v9841_v10  ;;  %v10558_v10 = vor.u32 %v13721_v58, %v10555_v18  ;;  %v13618_v58 = vld [vmem:[%s20567_s3 + $0x52c] sm:$0xf] }
 0x18b   :  { %1864 = vmatpush.bf16.msrb.mxu1 %v9674_v32  ;;  %1996 = vmatpush.bf16.msrb.mxu3 %v9750_v33  ;;  %v13681_v32 = vld [vmem:[%s20567_s3 + $0x724] sm:$0xf]  ;;  %v10355_v33 = vld [vmem:[%s20567_s3 + $0x730] sm:$0xf0] }
 0x18c   :  { %2955 = vmatpush.bf16.msra.mxu0 %v10290_v31  ;;  %v13611_v31 = vld [vmem:[%s20567_s3 + $0x4ec] sm:$0xf0]  ;;  %v10358_v53 = vor.u32 %v13681_v32, %v10355_v33  ;;  %v10439_v32 = vld [vmem:[%s20567_s3 + $0x7b0] sm:$0xf0] }
 0x18d   :  { %9645 = vmatmul.msk.bf16.vlgmr.msra.gmra.mxu1 %vm526_vm0, %v15004_v42  ;;  %9646 = vmatmul.msk.bf16.vlgmr.msra.gmra.mxu2 %vm526_vm0, %v15004_v42  ;;  %v9775_v42 = vld [vmem:[%s20567_s3 + $0x3b8] sm:$0xf0]  ;;  %v9966_v16 = vor.u32 %v13611_v31, %v9965_v19  ;;  %v13697_v31 = vld [vmem:[%s20567_s3 + $0x7a4] sm:$0xf] }
 0x18e   :  { %9727 = vmatmul.msk.bf16.vlgmr.msra.gmra.mxu3 %vm526_vm0, %v15120_v62  ;;  %2032 = vmatpush.bf16.msra.mxu2 %v9810_v56  ;;  %v9778_v34 = vor.u32 %v13570_v7, %v9775_v42  ;;  %v13592_v56 = vld [vmem:[%s20567_s3 + $0x454] sm:$0xf0]  ;;  %v10342_v7 = vor.u32 %v13677_v50, %v10339_v27  ;;  %v13623_v50 = vld [vmem:[%s20567_s3 + $0x54c] sm:$0xf0]  ;;  %v13693_v27 = vld [vmem:[%s20567_s3 + $0x784] sm:$0xf] }
 0x18f   :  { %2019 = vmatpush.bf16.msra.mxu1 %v9806_v47  ;;  %2151 = vmatpush.bf16.msra.mxu3 %v9882_v48  ;;  %v9949_v47 = vld [vmem:[%s20567_s3 + $0x4c0] sm:$0xf]  ;;  %v13607_v48 = vld [vmem:[%s20567_s3 + $0x4cc] sm:$0xf0]  ;;  %v9874_v4 = vor.u32 %v13592_v56, %v9873_v46  ;;  %v13588_v42 = vld [vmem:[%s20567_s3 + $0x434] sm:$0xf0]  ;;  %v10442_v56 = vor.u32 %v13697_v31, %v10439_v32 }
 0x190   :  { %2956 = vmatpush.bf16.msra.mxu0 %v10274_v55  ;;  %v9878_v55 = vor.u32 %v13590_v35, %v9875_v45  ;;  %v9950_v36 = vor.u32 %v13607_v48, %v9949_v47  ;;  %v10050_v35 = vor.u32 %v13627_v30, %v10049_v14  ;;  %v13606_v45 = vld [vmem:[%s20567_s3 + $0x4cc] sm:$0xf]  ;;  %v9959_v46 = vld [vmem:[%s20567_s3 + $0x4d8] sm:$0xf0]  ;;  %v13608_v47 = vld [vmem:[%s20567_s3 + $0x4d4] sm:$0xf0] }
 0x191   :  { %v10033_v48 = vld [vmem:[%s20567_s3 + $0x540] sm:$0xf]  ;;  %v10059_v14 = vld [vmem:[%s20567_s3 + $0x578] sm:$0xf0]  ;;  %v10057_v30 = vld [vmem:[%s20567_s3 + $0x568] sm:$0xf] }
 0x192   :  { %2033 = vmatpush.bf16.msra.mxu2 %v9794_v43  ;;  %v13628_v31 = vld [vmem:[%s20567_s3 + $0x574] sm:$0xf0]  ;;  %v10133_v32 = vld [vmem:[%s20567_s3 + $0x5e0] sm:$0xf] }
 0x193   :  { %2020 = vmatpush.bf16.msra.mxu1 %v9790_v63  ;;  %2152 = vmatpush.bf16.msra.mxu3 %v9866_v0  ;;  %v9933_v63 = vld [vmem:[%s20567_s3 + $0x4a0] sm:$0xf]  ;;  %v13603_v0 = vld [vmem:[%s20567_s3 + $0x4ac] sm:$0xf0] }
 0x194   :  { %2957 = vmatpush.bf16.msra.mxu0 %v10258_v3  ;;  %v9934_v39 = vor.u32 %v13603_v0, %v9933_v63  ;;  %v13604_v63 = vld [vmem:[%s20567_s3 + $0x4b4] sm:$0xf0]  ;;  %v10017_v0 = vld [vmem:[%s20567_s3 + $0x520] sm:$0xf] }
 0x195   :  { %10232 = vmatmul.msk.bf16.vlgmr.msrb.gmra.mxu0 %vm526_vm0, %v15789_v59 }
 0x196   :  { %2034 = vmatpush.bf16.msra.mxu2 %v9778_v34  ;;  %v15903_v34 = vpack.c.bf16 %v2835_v51, %v2835_v51  ;;  %v10423_v51 = vld [vmem:[%s20567_s3 + $0x790] sm:$0xf0] }
 0x197   :  { %2021 = vmatpush.bf16.msra.mxu1 %v9774_v41  ;;  %2153 = vmatpush.bf16.msra.mxu3 %v9850_v9  ;;  %v13701_v41 = vld [vmem:[%s20567_s3 + $0x7c4] sm:$0xf]  ;;  %v10455_v9 = vld [vmem:[%s20567_s3 + $0x7d0] sm:$0xf0] }
 0x198   :  { %3112 = vmatpush.bf16.msrb.mxu0 %v10390_v6  ;;  %v9858_v6 = vor.u32 %v13588_v42, %v9857_v11  ;;  %v10458_v20 = vor.u32 %v13701_v41, %v10455_v9  ;;  %v9941_v11 = vld [vmem:[%s20567_s3 + $0x4a8] sm:$0xf]  ;;  %v10426_v42 = vor.u32 %v13693_v27, %v10423_v51  ;;  %v13598_v41 = vld [vmem:[%s20567_s3 + $0x48c] sm:$0xf]  ;;  %v9927_v9 = vld [vmem:[%s20567_s3 + $0x498] sm:$0xf0] }
 0x199   :  { %v10043_v27 = vld [vmem:[%s20567_s3 + $0x558] sm:$0xf0]  ;;  %v10041_v51 = vld [vmem:[%s20567_s3 + $0x548] sm:$0xf] }
 0x19a   :  { %v15835_v24 = vpop.f32.mrf.mxu1  ;;  %2035 = vmatpush.bf16.msra.mxu2 %v9762_v25  ;;  %v9918_v25 = vor.u32 %v13599_v12, %v9917_v38  ;;  %v9925_v38 = vld [vmem:[%s20567_s3 + $0x488] sm:$0xf]  ;;  %v13717_v12 = vld [vmem:[%s20567_s3 + $0x844] sm:$0xf] }
 0x19b   :  { %2022 = vmatpush.bf16.msra.mxu1 %v9758_v26  ;;  %2154 = vmatpush.bf16.msra.mxu3 %v9834_v28  ;;  %v9975_v26 = vld [vmem:[%s20567_s3 + $0x4f8] sm:$0xf0]  ;;  %v9973_v28 = vld [vmem:[%s20567_s3 + $0x4e8] sm:$0xf] }
 0x19c   :  { %3113 = vmatpush.bf16.msrb.mxu0 %v10374_v61  ;;  %v13610_v61 = vld [vmem:[%s20567_s3 + $0x4ec] sm:$0xf] }
 0x19d   :  { %9729 = vmatmul.msk.bf16.vlgmr.msrb.gmra.mxu1 %vm526_vm0, %v15120_v62  ;;  %9730 = vmatmul.msk.bf16.vlgmr.msrb.gmra.mxu2 %vm526_vm0, %v15120_v62  ;;  %v9859_v62 = vld [vmem:[%s20567_s3 + $0x438] sm:$0xf0] }
 0x19e   :  { %9811 = vmatmul.msk.bf16.vlgmr.msrb.gmra.mxu3 %vm526_vm0, %v15236_v54  ;;  %2190 = vmatpush.bf16.msrb.mxu2 %v9894_v57  ;;  %v9862_v3 = vor.u32 %v13586_v37, %v9859_v62  ;;  %v9962_v37 = vor.u32 %v13606_v45, %v9959_v46  ;;  %v13602_v62 = vld [vmem:[%s20567_s3 + $0x4ac] sm:$0xf] }
 0x19f   :  { %2177 = vmatpush.bf16.msrb.mxu1 %v9890_v22  ;;  %2309 = vmatpush.bf16.msrb.mxu3 %v9966_v16  ;;  %v9978_v22 = vor.u32 %v13610_v61, %v9975_v26  ;;  %v9974_v16 = vor.u32 %v13612_v15, %v9973_v28  ;;  %v9930_v61 = vor.u32 %v13598_v41, %v9927_v9  ;;  %v13626_v15 = vld [vmem:[%s20567_s3 + $0x56c] sm:$0xf] }
 0x1a0   :  { %v15882_v43 = vpop.f32.mrf.mxu2  ;;  %3114 = vmatpush.bf16.msrb.mxu0 %v10358_v53  ;;  %v9957_v53 = vld [vmem:[%s20567_s3 + $0x4c8] sm:$0xf] }
 0x1a1   :  { %v15893_v1 = vpop.f32.mrf.mxu3 }
 0x1a2   :  { %v921_v17 = vpop.f32.mrf.mxu1  ;;  %v15895_v2 = vpop.f32.mrf.mxu0  ;;  %2191 = vmatpush.bf16.msrb.mxu2 %v9878_v55  ;;  %v2993_v55 = vld [vmem:[#allocation2 + $0x1c] sm:$0x3] }
 0x1a3   :  { %2178 = vmatpush.bf16.msrb.mxu1 %v9874_v4  ;;  %2310 = vmatpush.bf16.msrb.mxu3 %v9950_v36  ;;  %v9958_v4 = vor.u32 %v13608_v47, %v9957_v53  ;;  %v10034_v36 = vor.u32 %v13623_v50, %v10033_v48  ;;  %v13619_v17 = vld [vmem:[%s20567_s3 + $0x52c] sm:$0xf0]  ;;  %v10062_v53 = vor.u32 %v13626_v15, %v10059_v14  ;;  %v13622_v50 = vld [vmem:[%s20567_s3 + $0x54c] sm:$0xf]  ;;  %v10085_v15 = vld [vmem:[%s20567_s3 + $0x580] sm:$0xf] }
 0x1a4   :  { %3115 = vmatpush.bf16.msrb.mxu0 %v10342_v7  ;;  %v10018_v13 = vor.u32 %v13619_v17, %v10017_v0  ;;  %v10058_v47 = vor.u32 %v13628_v31, %v10057_v30  ;;  %v10639_v0 = vld [vmem:[%s20567_s3 + $0x8f0] sm:$0xf0]  ;;  %v13631_v14 = vld [vmem:[%s20567_s3 + $0x58c] sm:$0xf0] }
 0x1a5   :  { %10316 = vmatmul.msk.bf16.vlgmr.msra.gmra.mxu0 %vm526_vm0, %v15903_v34 }
 0x1a6   :  { %2192 = vmatpush.bf16.msrb.mxu2 %v9862_v3 }
 0x1a7   :  { %2179 = vmatpush.bf16.msrb.mxu1 %v9858_v6  ;;  %2311 = vmatpush.bf16.msrb.mxu3 %v9934_v39 }
 0x1a8   :  { %3270 = vmatpush.bf16.msra.mxu0 %v10474_v44  ;;  %v934_v52 = vpop.f32.mrf.mxu2 }
 0x1a9   :  { %v947_v19 = vpop.f32.mrf.mxu3 }
 0x1aa   :  { %v15949_v33 = vpop.f32.mrf.mxu1  ;;  %v1697_v57 = vpop.f32.mrf.mxu0  ;;  %2193 = vmatpush.bf16.msrb.mxu2 %v9846_v23  ;;  %v10539_v23 = vld [vmem:[%s20567_s3 + $0x850] sm:$0xf0] }
 0x1ab   :  { %2180 = vmatpush.bf16.msrb.mxu1 %v9842_v8  ;;  %2312 = vmatpush.bf16.msrb.mxu3 %v9918_v25  ;;  %v10001_v8 = vld [vmem:[%s20567_s3 + $0x500] sm:$0xf]  ;;  %v13615_v25 = vld [vmem:[%s20567_s3 + $0x50c] sm:$0xf0]  ;;  %v10542_v26 = vor.u32 %v13717_v12, %v10539_v23 }
 0x1ac   :  { %3271 = vmatpush.bf16.msra.mxu0 %v10458_v20  ;;  %v13600_v20 = vld [vmem:[%s20567_s3 + $0x494] sm:$0xf0]  ;;  %v10002_v52 = vor.u32 %v13615_v25, %v10001_v8  ;;  %v13643_v57 = vld [vmem:[%s20567_s3 + $0x5ec] sm:$0xf0]  ;;  %v10011_v8 = vld [vmem:[%s20567_s3 + $0x518] sm:$0xf0] }
 0x1ad   :  { %9813 = vmatmul.msk.bf16.vlgmr.msra.gmra.mxu1 %vm526_vm0, %v15236_v54  ;;  %9814 = vmatmul.msk.bf16.vlgmr.msra.gmra.mxu2 %vm526_vm0, %v15236_v54  ;;  %v9943_v54 = vld [vmem:[%s20567_s3 + $0x4b8] sm:$0xf0]  ;;  %v9926_v28 = vor.u32 %v13600_v20, %v9925_v38  ;;  %v10134_v48 = vor.u32 %v13643_v57, %v10133_v32  ;;  %v13614_v20 = vld [vmem:[%s20567_s3 + $0x50c] sm:$0xf]  ;;  %v10086_v32 = vor.u32 %v13631_v14, %v10085_v15 }
 0x1ae   :  { %9895 = vmatmul.msk.bf16.vlgmr.msra.gmra.mxu3 %vm526_vm0, %v15350_v29  ;;  %2348 = vmatpush.bf16.msra.mxu2 %v9978_v22  ;;  %v9946_v39 = vor.u32 %v13602_v62, %v9943_v54  ;;  %v13639_v62 = vld [vmem:[%s20567_s3 + $0x5cc] sm:$0xf0]  ;;  %v13709_v54 = vld [vmem:[%s20567_s3 + $0x804] sm:$0xf]  ;;  %v10014_v30 = vor.u32 %v13614_v20, %v10011_v8  ;;  %v13642_v57 = vld [vmem:[%s20567_s3 + $0x5ec] sm:$0xf] }
 0x1af   :  { %2335 = vmatpush.bf16.msra.mxu1 %v9974_v16  ;;  %2467 = vmatpush.bf16.msra.mxu3 %v10050_v35  ;;  %v13713_v16 = vld [vmem:[%s20567_s3 + $0x824] sm:$0xf]  ;;  %v10523_v35 = vld [vmem:[%s20567_s3 + $0x830] sm:$0xf0]  ;;  %v13651_v20 = vld [vmem:[%s20567_s3 + $0x62c] sm:$0xf0] }
 0x1b0   :  { %v1054_v7 = vpop.f32.mrf.mxu2  ;;  %3272 = vmatpush.bf16.msra.mxu0 %v10442_v56  ;;  %v13630_v15 = vld [vmem:[%s20567_s3 + $0x58c] sm:$0xf]  ;;  %v10095_v14 = vld [vmem:[%s20567_s3 + $0x598] sm:$0xf0] }
 0x1b1   :  { %v16006_v3 = vadd.f32 %v1054_v7, %v15835_v24  ;;  %v1067_v44 = vpop.f32.mrf.mxu3  ;;  %v16019_v24 = vpack.c.bf16 %v2993_v55, %v2993_v55  ;;  %v10526_v55 = vor.u32 %v13713_v16, %v10523_v35  ;;  %v10141_v16 = vld [vmem:[%s20567_s3 + $0x5e8] sm:$0xf] }
 0x1b2   :  { %v16009_v5 = vadd.f32 %v1067_v44, %v15882_v43  ;;  %v960_v60 = vpop.f32.mrf.mxu1  ;;  %v16011_v6 = vpop.f32.mrf.mxu0  ;;  %2349 = vmatpush.bf16.msra.mxu2 %v9962_v37  ;;  %v9942_v43 = vor.u32 %v13604_v63, %v9941_v11  ;;  %v10117_v37 = vld [vmem:[%s20567_s3 + $0x5c0] sm:$0xf]  ;;  %v10046_v11 = vor.u32 %v13622_v50, %v10043_v27  ;;  %v13737_v63 = vld [vmem:[%s20567_s3 + $0x8e4] sm:$0xf]  ;;  %v10607_v50 = vld [vmem:[%s20567_s3 + $0x8b0] sm:$0xf0] }
 0x1b3   :  { %2336 = vmatpush.bf16.msra.mxu1 %v9958_v4  ;;  %2468 = vmatpush.bf16.msra.mxu3 %v10034_v36  ;;  %v10507_v4 = vld [vmem:[%s20567_s3 + $0x810] sm:$0xf0]  ;;  %v3151_v36 = vld [vmem:[#allocation2 + $0x1e] sm:$0x3]  ;;  %v10118_v7 = vor.u32 %v13639_v62, %v10117_v37  ;;  %v13620_v60 = vld [vmem:[%s20567_s3 + $0x534] sm:$0xf0]  ;;  %v10642_v23 = vor.u32 %v13737_v63, %v10639_v0 }
 0x1b4   :  { %3273 = vmatpush.bf16.msra.mxu0 %v10426_v42  ;;  %v10025_v42 = vld [vmem:[%s20567_s3 + $0x528] sm:$0xf]  ;;  %v10510_v44 = vor.u32 %v13709_v54, %v10507_v4  ;;  %v13638_v54 = vld [vmem:[%s20567_s3 + $0x5cc] sm:$0xf]  ;;  %v10127_v4 = vld [vmem:[%s20567_s3 + $0x5d8] sm:$0xf0] }
 0x1b5   :  { %10400 = vmatmul.msk.bf16.vlgmr.msrb.gmra.mxu0 %vm526_vm0, %v16019_v24  ;;  %v10130_v63 = vor.u32 %v13638_v54, %v10127_v4  ;;  %v13634_v0 = vld [vmem:[%s20567_s3 + $0x5ac] sm:$0xf]  ;;  %v13745_v54 = vld [vmem:[%s20567_s3 + $0x924] sm:$0xf]  ;;  %v10691_v4 = vld [vmem:[%s20567_s3 + $0x930] sm:$0xf0] }
 0x1b6   :  { %2350 = vmatpush.bf16.msra.mxu2 %v9946_v39  ;;  %v10101_v39 = vld [vmem:[%s20567_s3 + $0x5a0] sm:$0xf] }
 0x1b7   :  { %2337 = vmatpush.bf16.msra.mxu1 %v9942_v43  ;;  %2469 = vmatpush.bf16.msra.mxu3 %v10018_v13 }
 0x1b8   :  { %3428 = vmatpush.bf16.msrb.mxu0 %v10558_v10  ;;  %v1056_v19 = vpop.f32.mrf.mxu2  ;;  %v13635_v10 = vld [vmem:[%s20567_s3 + $0x5ac] sm:$0xf0] }
 0x1b9   :  { %v1069_v22 = vpop.f32.mrf.mxu3  ;;  %v10102_v25 = vor.u32 %v13635_v10, %v10101_v39  ;;  %v13753_v39 = vld [vmem:[%s20567_s3 + $0x964] sm:$0xf]  ;;  %v10723_v10 = vld [vmem:[%s20567_s3 + $0x970] sm:$0xf0] }
 0x1ba   :  { %v1080_v45 = vpop.f32.mrf.mxu1  ;;  %v1855_v46 = vpop.f32.mrf.mxu0  ;;  %2351 = vmatpush.bf16.msra.mxu2 %v9930_v61  ;;  %v10009_v61 = vld [vmem:[%s20567_s3 + $0x508] sm:$0xf]  ;;  %v10143_v22 = vld [vmem:[%s20567_s3 + $0x5f8] sm:$0xf0] }
 0x1bb   :  { %v16066_v56 = vadd.f32 %v1080_v45, %v15893_v1  ;;  %2338 = vmatpush.bf16.msra.mxu1 %v9926_v28  ;;  %2470 = vmatpush.bf16.msra.mxu3 %v10002_v52  ;;  %v13624_v1 = vld [vmem:[%s20567_s3 + $0x554] sm:$0xf0]  ;;  %v10623_v28 = vld [vmem:[%s20567_s3 + $0x8d0] sm:$0xf0]  ;;  %v10217_v46 = vld [vmem:[%s20567_s3 + $0x660] sm:$0xf] }
 0x1bc   :  { %3429 = vmatpush.bf16.msrb.mxu0 %v10542_v26  ;;  %v10042_v18 = vor.u32 %v13624_v1, %v10041_v51  ;;  %v13733_v26 = vld [vmem:[%s20567_s3 + $0x8c4] sm:$0xf]  ;;  %v13616_v52 = vld [vmem:[%s20567_s3 + $0x514] sm:$0xf0] }
 0x1bd   :  { %9897 = vmatmul.msk.bf16.vlgmr.msrb.gmra.mxu1 %vm526_vm0, %v15350_v29  ;;  %9898 = vmatmul.msk.bf16.vlgmr.msrb.gmra.mxu2 %vm526_vm0, %v15350_v29  ;;  %v10027_v29 = vld [vmem:[%s20567_s3 + $0x538] sm:$0xf0]  ;;  %v10626_v19 = vor.u32 %v13733_v26, %v10623_v28  ;;  %v10010_v31 = vor.u32 %v13616_v52, %v10009_v61  ;;  %v13644_v45 = vld [vmem:[%s20567_s3 + $0x5f4] sm:$0xf0]  ;;  %v10726_v52 = vor.u32 %v13753_v39, %v10723_v10  ;;  %v3467_v39 = vld [vmem:[#allocation2 + $0x22] sm:$0x3] }
 0x1be   :  { %9979 = vmatmul.msk.bf16.vlgmr.msrb.gmra.mxu3 %vm526_vm0, %v15468_v49  ;;  %2506 = vmatpush.bf16.msrb.mxu2 %v10062_v53  ;;  %v10030_v12 = vor.u32 %v13618_v58, %v10027_v29  ;;  %v13659_v53 = vld [vmem:[%s20567_s3 + $0x66c] sm:$0xf0]  ;;  %v10142_v37 = vor.u32 %v13644_v45, %v10141_v16  ;;  %v10201_v58 = vld [vmem:[%s20567_s3 + $0x640] sm:$0xf] }
 0x1bf   :  { %2493 = vmatpush.bf16.msrb.mxu1 %v10058_v47  ;;  %2625 = vmatpush.bf16.msrb.mxu3 %v10134_v48  ;;  %v13729_v48 = vld [vmem:[%s20567_s3 + $0x8a4] sm:$0xf]  ;;  %v10218_v62 = vor.u32 %v13659_v53, %v10217_v46  ;;  %v13655_v29 = vld [vmem:[%s20567_s3 + $0x64c] sm:$0xf0] }
 0x1c0   :  { %v1093_v17 = vpop.f32.mrf.mxu2  ;;  %3430 = vmatpush.bf16.msrb.mxu0 %v10526_v55  ;;  %v10146_v55 = vor.u32 %v13642_v57, %v10143_v22  ;;  %v13632_v57 = vld [vmem:[%s20567_s3 + $0x594] sm:$0xf0]  ;;  %v10169_v22 = vld [vmem:[%s20567_s3 + $0x600] sm:$0xf]  ;;  %v13647_v16 = vld [vmem:[%s20567_s3 + $0x60c] sm:$0xf0] }
 0x1c1   :  { %v16123_v41 = vadd.f32 %v1093_v17, %v15949_v33  ;;  %v1208_v9 = vpop.f32.mrf.mxu3  ;;  %v16136_v33 = vpack.c.bf16 %v3151_v36, %v3151_v36  ;;  %v10125_v36 = vld [vmem:[%s20567_s3 + $0x5c8] sm:$0xf]  ;;  %v10170_v53 = vor.u32 %v13647_v16, %v10169_v22  ;;  %v13646_v16 = vld [vmem:[%s20567_s3 + $0x60c] sm:$0xf] }
 0x1c2   :  { %v16126_v43 = vadd.f32 %v1208_v9, %v16006_v3  ;;  %v1082_v13 = vpop.f32.mrf.mxu1  ;;  %v16128_v38 = vpop.f32.mrf.mxu0  ;;  %2507 = vmatpush.bf16.msrb.mxu2 %v10046_v11  ;;  %v10026_v3 = vor.u32 %v13620_v60, %v10025_v42  ;;  %v10610_v11 = vor.u32 %v13729_v48, %v10607_v50  ;;  %v3309_v42 = vld [vmem:[#allocation2 + $0x20] sm:$0x3]  ;;  %v10109_v60 = vld [vmem:[%s20567_s3 + $0x5a8] sm:$0xf]  ;;  %v10227_v48 = vld [vmem:[%s20567_s3 + $0x678] sm:$0xf0] }
 0x1c3   :  { %2494 = vmatpush.bf16.msrb.mxu1 %v10042_v18  ;;  %2626 = vmatpush.bf16.msrb.mxu3 %v10118_v7  ;;  %v13725_v18 = vld [vmem:[%s20567_s3 + $0x884] sm:$0xf]  ;;  %v10591_v7 = vld [vmem:[%s20567_s3 + $0x890] sm:$0xf0]  ;;  %v10225_v50 = vld [vmem:[%s20567_s3 + $0x668] sm:$0xf] }
 0x1c4   :  { %3431 = vmatpush.bf16.msrb.mxu0 %v10510_v44  ;;  %v10202_v44 = vor.u32 %v13655_v29, %v10201_v58  ;;  %v10594_v13 = vor.u32 %v13725_v18, %v10591_v7  ;;  %v13654_v7 = vld [vmem:[%s20567_s3 + $0x64c] sm:$0xf] }
 0x1c5   :  { %10484 = vmatmul.msk.bf16.vlgmr.msra.gmra.mxu0 %vm526_vm0, %v16136_v33 }
 0x1c6   :  { %2508 = vmatpush.bf16.msrb.mxu2 %v10030_v12  ;;  %v13636_v12 = vld [vmem:[%s20567_s3 + $0x5b4] sm:$0xf0] }
 0x1c7   :  { %2495 = vmatpush.bf16.msrb.mxu1 %v10026_v3  ;;  %2627 = vmatpush.bf16.msrb.mxu3 %v10102_v25 }
 0x1c8   :  { %3586 = vmatpush.bf16.msra.mxu0 %v10642_v23  ;;  %v1095_v35 = vpop.f32.mrf.mxu2  ;;  %v10185_v23 = vld [vmem:[%s20567_s3 + $0x620] sm:$0xf] }
 0x1c9   :  { %v1210_v47 = vpop.f32.mrf.mxu3  ;;  %v10098_v35 = vor.u32 %v13630_v15, %v10095_v14  ;;  %v10269_v15 = vld [vmem:[%s20567_s3 + $0x6a0] sm:$0xf]  ;;  %v13667_v14 = vld [vmem:[%s20567_s3 + $0x6ac] sm:$0xf0] }
 0x1ca   :  { %v1221_v27 = vpop.f32.mrf.mxu1  ;;  %v2013_v51 = vpop.f32.mrf.mxu0  ;;  %2509 = vmatpush.bf16.msrb.mxu2 %v10014_v30  ;;  %v10186_v30 = vor.u32 %v13651_v20, %v10185_v23  ;;  %v13658_v47 = vld [vmem:[%s20567_s3 + $0x66c] sm:$0xf]  ;;  %v10193_v23 = vld [vmem:[%s20567_s3 + $0x628] sm:$0xf]  ;;  %v13769_v20 = vld [vmem:[%s20567_s3 + $0x9e4] sm:$0xf] }
 0x1cb   :  { %v16183_v1 = vadd.f32 %v1221_v27, %v16009_v5  ;;  %2496 = vmatpush.bf16.msrb.mxu1 %v10010_v31  ;;  %2628 = vmatpush.bf16.msrb.mxu3 %v10086_v32  ;;  %v13640_v5 = vld [vmem:[%s20567_s3 + $0x5d4] sm:$0xf0]  ;;  %v13749_v31 = vld [vmem:[%s20567_s3 + $0x944] sm:$0xf]  ;;  %v10707_v32 = vld [vmem:[%s20567_s3 + $0x950] sm:$0xf0] }
 0x1cc   :  { %3587 = vmatpush.bf16.msra.mxu0 %v10626_v19  ;;  %v10126_v17 = vor.u32 %v13640_v5, %v10125_v36  ;;  %v10093_v19 = vld [vmem:[%s20567_s3 + $0x588] sm:$0xf]  ;;  %v10710_v45 = vor.u32 %v13749_v31, %v10707_v32  ;;  %v13660_v51 = vld [vmem:[%s20567_s3 + $0x674] sm:$0xf0]  ;;  %v10230_v5 = vor.u32 %v13658_v47, %v10227_v48  ;;  %v10791_v47 = vld [vmem:[%s20567_s3 + $0x9d0] sm:$0xf0] }
 0x1cd   :  { %9981 = vmatmul.msk.bf16.vlgmr.msra.gmra.mxu1 %vm526_vm0, %v15468_v49  ;;  %9982 = vmatmul.msk.bf16.vlgmr.msra.gmra.mxu2 %vm526_vm0, %v15468_v49  ;;  %v10111_v49 = vld [vmem:[%s20567_s3 + $0x5b8] sm:$0xf0]  ;;  %v10094_v46 = vor.u32 %v13632_v57, %v10093_v19  ;;  %v10226_v29 = vor.u32 %v13660_v51, %v10225_v50  ;;  %v13648_v48 = vld [vmem:[%s20567_s3 + $0x614] sm:$0xf0]  ;;  %v10253_v50 = vld [vmem:[%s20567_s3 + $0x680] sm:$0xf] }
 0x1ce   :  { %10063 = vmatmul.msk.bf16.vlgmr.msra.gmra.mxu3 %vm526_vm0, %v15580_v21  ;;  %2664 = vmatpush.bf16.msra.mxu2 %v10146_v55  ;;  %v10114_v28 = vor.u32 %v13634_v0, %v10111_v49  ;;  %v10301_v55 = vld [vmem:[%s20567_s3 + $0x6e0] sm:$0xf]  ;;  %v10694_v0 = vor.u32 %v13745_v54, %v10691_v4  ;;  %v13674_v54 = vld [vmem:[%s20567_s3 + $0x6ec] sm:$0xf]  ;;  %v10311_v4 = vld [vmem:[%s20567_s3 + $0x6f8] sm:$0xf0] }
 0x1cf   :  { %2651 = vmatpush.bf16.msra.mxu1 %v10142_v37  ;;  %2783 = vmatpush.bf16.msra.mxu3 %v10218_v62  ;;  %v13675_v37 = vld [vmem:[%s20567_s3 + $0x6ec] sm:$0xf0]  ;;  %v10285_v49 = vld [vmem:[%s20567_s3 + $0x6c0] sm:$0xf] }
 0x1d0   :  { %v1234_v9 = vpop.f32.mrf.mxu2  ;;  %3588 = vmatpush.bf16.msra.mxu0 %v10610_v11  ;;  %v10302_v18 = vor.u32 %v13675_v37, %v10301_v55 }
 0x1d1   :  { %v16240_v8 = vadd.f32 %v1234_v9, %v16066_v56  ;;  %v1247_v3 = vpop.f32.mrf.mxu3  ;;  %v16253_v56 = vpack.c.bf16 %v3309_v42, %v3309_v42  ;;  %v10211_v42 = vld [vmem:[%s20567_s3 + $0x658] sm:$0xf0]  ;;  %v13650_v9 = vld [vmem:[%s20567_s3 + $0x62c] sm:$0xf] }
 0x1d2   :  { %v16243_v25 = vadd.f32 %v1247_v3, %v16123_v41  ;;  %v1223_v61 = vpop.f32.mrf.mxu1  ;;  %v16245_v26 = vpop.f32.mrf.mxu0  ;;  %2665 = vmatpush.bf16.msra.mxu2 %v10130_v63  ;;  %v10110_v41 = vor.u32 %v13636_v12, %v10109_v60  ;;  %v10209_v63 = vld [vmem:[%s20567_s3 + $0x648] sm:$0xf]  ;;  %v10675_v60 = vld [vmem:[%s20567_s3 + $0x910] sm:$0xf0]  ;;  %v10214_v10 = vor.u32 %v13654_v7, %v10211_v42  ;;  %v13761_v42 = vld [vmem:[%s20567_s3 + $0x9a4] sm:$0xf] }
 0x1d3   :  { %2652 = vmatpush.bf16.msra.mxu1 %v10126_v17  ;;  %2784 = vmatpush.bf16.msra.mxu3 %v10202_v44  ;;  %v13671_v17 = vld [vmem:[%s20567_s3 + $0x6cc] sm:$0xf0]  ;;  %v13741_v44 = vld [vmem:[%s20567_s3 + $0x904] sm:$0xf]  ;;  %v10807_v3 = vld [vmem:[%s20567_s3 + $0x9f0] sm:$0xf0] }
 0x1d4   :  { %3589 = vmatpush.bf16.msra.mxu0 %v10594_v13  ;;  %v10286_v12 = vor.u32 %v13671_v17, %v10285_v49  ;;  %v10810_v22 = vor.u32 %v13769_v20, %v10807_v3  ;;  %v10314_v49 = vor.u32 %v13674_v54, %v10311_v4  ;;  %v10759_v20 = vld [vmem:[%s20567_s3 + $0x990] sm:$0xf0]  ;;  %v3625_v3 = vld [vmem:[#allocation2 + $0x24] sm:$0x3] }
 0x1d5   :  { %10568 = vmatmul.msk.bf16.vlgmr.msrb.gmra.mxu0 %vm526_vm0, %v16253_v56  ;;  %v13781_v54 = vld [vmem:[%s20567_s3 + $0xa44] sm:$0xf]  ;;  %v10875_v4 = vld [vmem:[%s20567_s3 + $0xa50] sm:$0xf0] }
 0x1d6   :  { %2666 = vmatpush.bf16.msra.mxu2 %v10114_v28  ;;  %v10678_v28 = vor.u32 %v13741_v44, %v10675_v60 }
 0x1d7   :  { %2653 = vmatpush.bf16.msra.mxu1 %v10110_v41  ;;  %2785 = vmatpush.bf16.msra.mxu3 %v10186_v30 }
 0x1d8   :  { %3744 = vmatpush.bf16.msrb.mxu0 %v10726_v52  ;;  %v1236_v27 = vpop.f32.mrf.mxu2  ;;  %v13652_v52 = vld [vmem:[%s20567_s3 + $0x634] sm:$0xf0] }
 0x1d9   :  { %v1249_v62 = vpop.f32.mrf.mxu3  ;;  %v13663_v27 = vld [vmem:[%s20567_s3 + $0x68c] sm:$0xf0] }
 0x1da   :  { %v1366_v36 = vpop.f32.mrf.mxu1  ;;  %v2171_v11 = vpop.f32.mrf.mxu0  ;;  %2667 = vmatpush.bf16.msra.mxu2 %v10098_v35  ;;  %v10179_v35 = vld [vmem:[%s20567_s3 + $0x618] sm:$0xf0]  ;;  %v10254_v62 = vor.u32 %v13663_v27, %v10253_v50 }
 0x1db   :  { %v16300_v58 = vadd.f32 %v1366_v36, %v16126_v43  ;;  %2654 = vmatpush.bf16.msra.mxu1 %v10094_v46  ;;  %2786 = vmatpush.bf16.msra.mxu3 %v10170_v53  ;;  %v13656_v43 = vld [vmem:[%s20567_s3 + $0x654] sm:$0xf0]  ;;  %v10177_v46 = vld [vmem:[%s20567_s3 + $0x608] sm:$0xf]  ;;  %v13765_v53 = vld [vmem:[%s20567_s3 + $0x9c4] sm:$0xf]  ;;  %v10182_v51 = vor.u32 %v13646_v16, %v10179_v35 }
 0x1dc   :  { %3745 = vmatpush.bf16.msrb.mxu0 %v10710_v45  ;;  %v10210_v13 = vor.u32 %v13656_v43, %v10209_v63  ;;  %v10270_v45 = vor.u32 %v13667_v14, %v10269_v15  ;;  %v10794_v55 = vor.u32 %v13765_v53, %v10791_v47  ;;  %v10178_v37 = vor.u32 %v13648_v48, %v10177_v46  ;;  %v10309_v36 = vld [vmem:[%s20567_s3 + $0x6e8] sm:$0xf]  ;;  %v10775_v63 = vld [vmem:[%s20567_s3 + $0x9b0] sm:$0xf0]  ;;  %v13668_v16 = vld [vmem:[%s20567_s3 + $0x6b4] sm:$0xf0] }
 0x1dd   :  { %10065 = vmatmul.msk.bf16.vlgmr.msrb.gmra.mxu1 %vm526_vm0, %v15580_v21  ;;  %10066 = vmatmul.msk.bf16.vlgmr.msrb.gmra.mxu2 %vm526_vm0, %v15580_v21  ;;  %v10195_v21 = vld [vmem:[%s20567_s3 + $0x638] sm:$0xf0]  ;;  %v10277_v14 = vld [vmem:[%s20567_s3 + $0x6a8] sm:$0xf]  ;;  %v10353_v35 = vld [vmem:[%s20567_s3 + $0x720] sm:$0xf] }
 0x1de   :  { %10147 = vmatmul.msk.bf16.vlgmr.msrb.gmra.mxu3 %vm526_vm0, %v15683_v40  ;;  %2822 = vmatpush.bf16.msrb.mxu2 %v10230_v5  ;;  %v10198_v57 = vor.u32 %v13650_v9, %v10195_v21  ;;  %v13676_v5 = vld [vmem:[%s20567_s3 + $0x6f4] sm:$0xf0]  ;;  %v10293_v9 = vld [vmem:[%s20567_s3 + $0x6c8] sm:$0xf]  ;;  %v10778_v21 = vor.u32 %v13761_v42, %v10775_v63 }
 0x1df   :  { %2809 = vmatpush.bf16.msrb.mxu1 %v10226_v29  ;;  %2941 = vmatpush.bf16.msrb.mxu3 %v10302_v18  ;;  %v10385_v29 = vld [vmem:[%s20567_s3 + $0x760] sm:$0xf]  ;;  %v13691_v18 = vld [vmem:[%s20567_s3 + $0x76c] sm:$0xf0]  ;;  %v10310_v44 = vor.u32 %v13676_v5, %v10309_v36 }
 0x1e0   :  { %v1379_v61 = vpop.f32.mrf.mxu2  ;;  %3746 = vmatpush.bf16.msrb.mxu0 %v10694_v0  ;;  %v10386_v60 = vor.u32 %v13691_v18, %v10385_v29  ;;  %v10337_v5 = vld [vmem:[%s20567_s3 + $0x700] sm:$0xf]  ;;  %v13679_v29 = vld [vmem:[%s20567_s3 + $0x70c] sm:$0xf0] }
 0x1e1   :  { %v16357_v41 = vadd.f32 %v1379_v61, %v16183_v1  ;;  %v1392_v30 = vpop.f32.mrf.mxu3  ;;  %v16370_v1 = vpack.c.bf16 %v3467_v39, %v3467_v39  ;;  %v13670_v39 = vld [vmem:[%s20567_s3 + $0x6cc] sm:$0xf]  ;;  %v10338_v63 = vor.u32 %v13679_v29, %v10337_v5 }
 0x1e2   :  { %v16360_v19 = vadd.f32 %v1392_v30, %v16240_v8  ;;  %v1368_v31 = vpop.f32.mrf.mxu1  ;;  %v16362_v32 = vpop.f32.mrf.mxu0  ;;  %2823 = vmatpush.bf16.msrb.mxu2 %v10214_v10  ;;  %v10194_v8 = vor.u32 %v13652_v52, %v10193_v23  ;;  %v10295_v10 = vld [vmem:[%s20567_s3 + $0x6d8] sm:$0xf0]  ;;  %v13757_v23 = vld [vmem:[%s20567_s3 + $0x984] sm:$0xf] }
 0x1e3   :  { %2810 = vmatpush.bf16.msrb.mxu1 %v10210_v13  ;;  %2942 = vmatpush.bf16.msrb.mxu3 %v10286_v12  ;;  %v10369_v13 = vld [vmem:[%s20567_s3 + $0x740] sm:$0xf]  ;;  %v13687_v12 = vld [vmem:[%s20567_s3 + $0x74c] sm:$0xf0]  ;;  %v10298_v61 = vor.u32 %v13670_v39, %v10295_v10  ;;  %v13785_v30 = vld [vmem:[%s20567_s3 + $0xa64] sm:$0xf] }
 0x1e4   :  { %3747 = vmatpush.bf16.msrb.mxu0 %v10678_v28  ;;  %v13666_v28 = vld [vmem:[%s20567_s3 + $0x6ac] sm:$0xf]  ;;  %v10370_v15 = vor.u32 %v13687_v12, %v10369_v13  ;;  %v10891_v31 = vld [vmem:[%s20567_s3 + $0xa70] sm:$0xf0]  ;;  %v10469_v39 = vld [vmem:[%s20567_s3 + $0x7e0] sm:$0xf] }
 0x1e5   :  { %10652 = vmatmul.msk.bf16.vlgmr.msra.gmra.mxu0 %vm526_vm0, %v16370_v1  ;;  %v10894_v27 = vor.u32 %v13785_v30, %v10891_v31  ;;  %v13707_v10 = vld [vmem:[%s20567_s3 + $0x7ec] sm:$0xf0]  ;;  %v10843_v31 = vld [vmem:[%s20567_s3 + $0xa10] sm:$0xf0] }
 0x1e6   :  { %2824 = vmatpush.bf16.msrb.mxu2 %v10198_v57  ;;  %v13703_v30 = vld [vmem:[%s20567_s3 + $0x7cc] sm:$0xf0] }
 0x1e7   :  { %2811 = vmatpush.bf16.msrb.mxu1 %v10194_v8  ;;  %2943 = vmatpush.bf16.msrb.mxu3 %v10270_v45  ;;  %v13683_v8 = vld [vmem:[%s20567_s3 + $0x72c] sm:$0xf0] }
 0x1e8   :  { %3902 = vmatpush.bf16.msra.mxu0 %v10810_v22  ;;  %v1381_v11 = vpop.f32.mrf.mxu2  ;;  %v10762_v22 = vor.u32 %v13757_v23, %v10759_v20 }
 0x1e9   :  { %v1394_v7 = vpop.f32.mrf.mxu3  ;;  %v13664_v11 = vld [vmem:[%s20567_s3 + $0x694] sm:$0xf0] }
 0x1ea   :  { %v1405_v0 = vpop.f32.mrf.mxu1  ;;  %v2329_v43 = vpop.f32.mrf.mxu0  ;;  %2825 = vmatpush.bf16.msrb.mxu2 %v10182_v51  ;;  %v13662_v51 = vld [vmem:[%s20567_s3 + $0x68c] sm:$0xf]  ;;  %v10878_v7 = vor.u32 %v13781_v54, %v10875_v4 }
 0x1eb   :  { %v16417_v17 = vadd.f32 %v1405_v0, %v16243_v25  ;;  %2812 = vmatpush.bf16.msrb.mxu1 %v10178_v37  ;;  %2944 = vmatpush.bf16.msrb.mxu3 %v10254_v62  ;;  %v13672_v25 = vld [vmem:[%s20567_s3 + $0x6d4] sm:$0xf0]  ;;  %v16485_v37 = vpack.c.bf16 %v3625_v3, %v3625_v3  ;;  %v10261_v62 = vld [vmem:[%s20567_s3 + $0x688] sm:$0xf]  ;;  %v13690_v0 = vld [vmem:[%s20567_s3 + $0x76c] sm:$0xf] }
 0x1ec   :  { %3903 = vmatpush.bf16.msra.mxu0 %v10794_v55  ;;  %v10294_v52 = vor.u32 %v13672_v25, %v10293_v9  ;;  %v10263_v55 = vld [vmem:[%s20567_s3 + $0x698] sm:$0xf0]  ;;  %v10262_v42 = vor.u32 %v13664_v11, %v10261_v62 }
 0x1ed   :  { %10149 = vmatmul.msk.bf16.vlgmr.msra.gmra.mxu1 %vm526_vm0, %v15683_v40  ;;  %10150 = vmatmul.msk.bf16.vlgmr.msra.gmra.mxu2 %vm526_vm0, %v15683_v40  ;;  %v10279_v40 = vld [vmem:[%s20567_s3 + $0x6b8] sm:$0xf0] }
 0x1ee   :  { %10231 = vmatmul.msk.bf16.vlgmr.msra.gmra.mxu3 %vm526_vm0, %v15789_v59  ;;  %2980 = vmatpush.bf16.msra.mxu2 %v10314_v49  ;;  %v10282_v50 = vor.u32 %v13666_v28, %v10279_v40  ;;  %v10395_v43 = vld [vmem:[%s20567_s3 + $0x778] sm:$0xf0]  ;;  %v13686_v28 = vld [vmem:[%s20567_s3 + $0x74c] sm:$0xf]  ;;  %v10377_v40 = vld [vmem:[%s20567_s3 + $0x748] sm:$0xf] }
 0x1ef   :  { %2967 = vmatpush.bf16.msra.mxu1 %v10310_v44  ;;  %3099 = vmatpush.bf16.msra.mxu3 %v10386_v60  ;;  %v13692_v60 = vld [vmem:[%s20567_s3 + $0x774] sm:$0xf0]  ;;  %v10398_v23 = vor.u32 %v13690_v0, %v10395_v43  ;;  %v10959_v0 = vld [vmem:[%s20567_s3 + $0xad0] sm:$0xf0] }
 0x1f0   :  { %v1524_v57 = vpop.f32.mrf.mxu2  ;;  %3904 = vmatpush.bf16.msra.mxu0 %v10778_v21  ;;  %v13777_v21 = vld [vmem:[%s20567_s3 + $0xa24] sm:$0xf]  ;;  %v13680_v43 = vld [vmem:[%s20567_s3 + $0x714] sm:$0xf0] }
 0x1f1   :  { %v16474_v45 = vadd.f32 %v1524_v57, %v16300_v58  ;;  %v1537_v46 = vpop.f32.mrf.mxu3  ;;  %v10278_v58 = vor.u32 %v13668_v16, %v10277_v14  ;;  %v10453_v14 = vld [vmem:[%s20567_s3 + $0x7c0] sm:$0xf] }
 0x1f2   :  { %v1568_v53 = vadd.f32 %v1537_v46, %v16357_v41  ;;  %v1407_v47 = vpop.f32.mrf.mxu1  ;;  %v16477_v48 = vpop.f32.mrf.mxu0  ;;  %2981 = vmatpush.bf16.msra.mxu2 %v10298_v61  ;;  %v10354_v41 = vor.u32 %v13683_v8, %v10353_v35  ;;  %v10470_v61 = vor.u32 %v13707_v10, %v10469_v39  ;;  %v10363_v35 = vld [vmem:[%s20567_s3 + $0x738] sm:$0xf0]  ;;  %v10454_v46 = vor.u32 %v13703_v30, %v10453_v14  ;;  %v13702_v30 = vld [vmem:[%s20567_s3 + $0x7cc] sm:$0xf] }
 0x1f3   :  { %2968 = vmatpush.bf16.msra.mxu1 %v10294_v52  ;;  %3100 = vmatpush.bf16.msra.mxu3 %v10370_v15  ;;  %v13688_v15 = vld [vmem:[%s20567_s3 + $0x754] sm:$0xf0]  ;;  %v13801_v47 = vld [vmem:[%s20567_s3 + $0xae4] sm:$0xf] }
 0x1f4   :  { %v1726_v36 = vadd.f32 %v15895_v2, %v1568_v53  ;;  %3905 = vmatpush.bf16.msra.mxu0 %v10762_v22  ;;  %v10266_v2 = vor.u32 %v13662_v51, %v10263_v55  ;;  %v3783_v22 = vld [vmem:[#allocation2 + $0x26] sm:$0x3]  ;;  %v10378_v8 = vor.u32 %v13688_v15, %v10377_v40  ;;  %v10361_v53 = vld [vmem:[%s20567_s3 + $0x728] sm:$0xf]  ;;  %v13684_v51 = vld [vmem:[%s20567_s3 + $0x734] sm:$0xf0] }
 0x1f5   :  { %10736 = vmatmul.msk.bf16.vlgmr.msrb.gmra.mxu0 %vm526_vm0, %v16485_v37  ;;  %v10437_v55 = vld [vmem:[%s20567_s3 + $0x7a0] sm:$0xf]  ;;  %v16600_v11 = vpack.c.bf16 %v3783_v22, %v3783_v22 }
 0x1f6   :  { %v1884_v18 = vadd.f32 %v16011_v6, %v1726_v36  ;;  %2982 = vmatpush.bf16.msra.mxu2 %v10282_v50  ;;  %v10393_v6 = vld [vmem:[%s20567_s3 + $0x768] sm:$0xf]  ;;  %v10537_v22 = vld [vmem:[%s20567_s3 + $0x840] sm:$0xf] }
 0x1f7   :  { %2969 = vmatpush.bf16.msra.mxu1 %v10278_v58  ;;  %3101 = vmatpush.bf16.msra.mxu3 %v10354_v41  ;;  %v10394_v3 = vor.u32 %v13692_v60, %v10393_v6  ;;  %v13699_v58 = vld [vmem:[%s20567_s3 + $0x7ac] sm:$0xf0]  ;;  %v10421_v6 = vld [vmem:[%s20567_s3 + $0x780] sm:$0xf] }
 0x1f8   :  { %4060 = vmatpush.bf16.msrb.mxu0 %v10894_v27  ;;  %v2042_v49 = vadd.f32 %v16128_v38, %v1884_v18  ;;  %v1526_v44 = vpop.f32.mrf.mxu2  ;;  %v10859_v38 = vld [vmem:[%s20567_s3 + $0xa30] sm:$0xf0]  ;;  %v13678_v18 = vld [vmem:[%s20567_s3 + $0x70c] sm:$0xf] }
 0x1f9   :  { %v1539_v9 = vpop.f32.mrf.mxu3 }
 0x1fa   :  { %v2200_v25 = vadd.f32 %v16245_v26, %v2042_v49  ;;  %v1550_v13 = vpop.f32.mrf.mxu1  ;;  %v2487_v12 = vpop.f32.mrf.mxu0  ;;  %2983 = vmatpush.bf16.msra.mxu2 %v10266_v2  ;;  %v10379_v26 = vld [vmem:[%s20567_s3 + $0x758] sm:$0xf0]  ;;  %v13695_v49 = vld [vmem:[%s20567_s3 + $0x78c] sm:$0xf0]  ;;  %v13706_v9 = vld [vmem:[%s20567_s3 + $0x7ec] sm:$0xf] }
 0x1fb   :  { %v16536_v20 = vadd.f32 %v1550_v13, %v16360_v19  ;;  %2970 = vmatpush.bf16.msra.mxu1 %v10262_v42  ;;  %3102 = vmatpush.bf16.msra.mxu3 %v10338_v63  ;;  %v10862_v19 = vor.u32 %v13777_v21, %v10859_v38  ;;  %v10382_v16 = vor.u32 %v13686_v28, %v10379_v26  ;;  %v10345_v42 = vld [vmem:[%s20567_s3 + $0x708] sm:$0xf]  ;;  %v13797_v63 = vld [vmem:[%s20567_s3 + $0xac4] sm:$0xf]  ;;  %v10479_v21 = vld [vmem:[%s20567_s3 + $0x7f8] sm:$0xf0] }
 0x1fc   :  { %4061 = vmatpush.bf16.msrb.mxu0 %v10878_v7  ;;  %v2358_v52 = vadd.f32 %v16362_v32, %v2200_v25  ;;  %v13773_v32 = vld [vmem:[%s20567_s3 + $0xa04] sm:$0xf]  ;;  %v10438_v7 = vor.u32 %v13699_v58, %v10437_v55  ;;  %v10962_v60 = vor.u32 %v13797_v63, %v10959_v0  ;;  %v10346_v39 = vor.u32 %v13680_v43, %v10345_v42  ;;  %v10477_v38 = vld [vmem:[%s20567_s3 + $0x7e8] sm:$0xf]  ;;  %v13708_v13 = vld [vmem:[%s20567_s3 + $0x7f4] sm:$0xf0] }
 0x1fd   :  { %10233 = vmatmul.msk.bf16.vlgmr.msrb.gmra.mxu1 %vm526_vm0, %v15789_v59  ;;  %10234 = vmatmul.msk.bf16.vlgmr.msrb.gmra.mxu2 %vm526_vm0, %v15789_v59  ;;  %v13682_v59 = vld [vmem:[%s20567_s3 + $0x72c] sm:$0xf]  ;;  %v10846_v27 = vor.u32 %v13773_v32, %v10843_v31  ;;  %v10422_v10 = vor.u32 %v13695_v49, %v10421_v6  ;;  %v10553_v12 = vld [vmem:[%s20567_s3 + $0x860] sm:$0xf]  ;;  %v10943_v28 = vld [vmem:[%s20567_s3 + $0xab0] sm:$0xf0]  ;;  %v10478_v15 = vor.u32 %v13708_v13, %v10477_v38 }
 0x1fe   :  { %v2516_v57 = vadd.f32 %v16477_v48, %v2358_v52  ;;  %10315 = vmatmul.msk.bf16.vlgmr.msrb.gmra.mxu3 %vm526_vm0, %v15903_v34  ;;  %3138 = vmatpush.bf16.msrb.mxu2 %v10398_v23  ;;  %v10975_v48 = vld [vmem:[%s20567_s3 + $0xaf0] sm:$0xf0]  ;;  %v10366_v5 = vor.u32 %v13682_v59, %v10363_v35  ;;  %v13723_v23 = vld [vmem:[%s20567_s3 + $0x86c] sm:$0xf0]  ;;  %v10482_v52 = vor.u32 %v13706_v9, %v10479_v21  ;;  %v10463_v32 = vld [vmem:[%s20567_s3 + $0x7d8] sm:$0xf0] }
 0x1ff   :  { %3125 = vmatpush.bf16.msrb.mxu1 %v10394_v3  ;;  %3257 = vmatpush.bf16.msrb.mxu3 %v10470_v61  ;;  %v10978_v29 = vor.u32 %v13801_v47, %v10975_v48  ;;  %v13793_v61 = vld [vmem:[%s20567_s3 + $0xaa4] sm:$0xf]  ;;  %v10554_v14 = vor.u32 %v13723_v23, %v10553_v12  ;;  %v10461_v31 = vld [vmem:[%s20567_s3 + $0x7c8] sm:$0xf]  ;;  %v10927_v35 = vld [vmem:[%s20567_s3 + $0xa90] sm:$0xf0] }
 0x200   :  { %v1563_v50 = vpop.f32.mrf.mxu2  ;;  %4062 = vmatpush.bf16.msrb.mxu0 %v10862_v19  ;;  %v13789_v59 = vld [vmem:[%s20567_s3 + $0xa84] sm:$0xf]  ;;  %v13694_v0 = vld [vmem:[%s20567_s3 + $0x78c] sm:$0xf]  ;;  %v10429_v49 = vld [vmem:[%s20567_s3 + $0x788] sm:$0xf] }
 0x201   :  { %v16595_v41 = vadd.f32 %v1563_v50, %v16417_v17  ;;  %v1682_v62 = vpop.f32.mrf.mxu3  ;;  %v10347_v17 = vld [vmem:[%s20567_s3 + $0x718] sm:$0xf0]  ;;  %v10445_v50 = vld [vmem:[%s20567_s3 + $0x7a8] sm:$0xf]  ;;  %v10930_v58 = vor.u32 %v13789_v59, %v10927_v35  ;;  %v13722_v13 = vld [vmem:[%s20567_s3 + $0x86c] sm:$0xf] }
 0x202   :  { %v16598_v54 = vadd.f32 %v1682_v62, %v16474_v45  ;;  %v1552_v4 = vpop.f32.mrf.mxu1  ;;  %v2643_v36 = vpop.f32.mrf.mxu0  ;;  %3139 = vmatpush.bf16.msrb.mxu2 %v10382_v16  ;;  %v10362_v45 = vor.u32 %v13684_v51, %v10361_v53  ;;  %v10350_v44 = vor.u32 %v13678_v18, %v10347_v17  ;;  %v13719_v16 = vld [vmem:[%s20567_s3 + $0x84c] sm:$0xf0]  ;;  %v13698_v53 = vld [vmem:[%s20567_s3 + $0x7ac] sm:$0xf]  ;;  %v11059_v51 = vld [vmem:[%s20567_s3 + $0xb70] sm:$0xf0] }
 0x203   :  { %v16608_v2 = vadd.f32 %v2643_v36, %v2516_v57  ;;  %3126 = vmatpush.bf16.msrb.mxu1 %v10378_v8  ;;  %3258 = vmatpush.bf16.msrb.mxu3 %v10454_v46  ;;  %v10946_v57 = vor.u32 %v13793_v61, %v10943_v28  ;;  %v3941_v8 = vld [vmem:[#allocation2 + $0x28] sm:$0x3]  ;;  %v10466_v46 = vor.u32 %v13702_v30, %v10463_v32  ;;  %v13700_v62 = vld [vmem:[%s20567_s3 + $0x7b4] sm:$0xf0]  ;;  %v10521_v4 = vld [vmem:[%s20567_s3 + $0x820] sm:$0xf] }
 0x204   :  { %4063 = vmatpush.bf16.msrb.mxu0 %v10846_v27  ;;  %v10538_v48 = vor.u32 %v13719_v16, %v10537_v22  ;;  %v13817_v27 = vld [vmem:[%s20567_s3 + $0xb64] sm:$0xf]  ;;  %v13715_v36 = vld [vmem:[%s20567_s3 + $0x82c] sm:$0xf0]  ;;  %v10563_v12 = vld [vmem:[%s20567_s3 + $0x878] sm:$0xf0] }
 0x205   :  { %10820 = vmatmul.msk.bf16.vlgmr.msra.gmra.mxu0 %vm526_vm0, %v16600_v11  ;;  %v11062_v63 = vor.u32 %v13817_v27, %v11059_v51  ;;  %v10522_v6 = vor.u32 %v13715_v36, %v10521_v4  ;;  %v10561_v23 = vld [vmem:[%s20567_s3 + $0x868] sm:$0xf]  ;;  %v13724_v61 = vld [vmem:[%s20567_s3 + $0x874] sm:$0xf0]  ;;  %v10637_v28 = vld [vmem:[%s20567_s3 + $0x8e0] sm:$0xf]  ;;  %v10566_v32 = vor.u32 %v13722_v13, %v10563_v12 }
 0x206   :  { %3140 = vmatpush.bf16.msrb.mxu2 %v10366_v5  ;;  %v13718_v22 = vld [vmem:[%s20567_s3 + $0x84c] sm:$0xf]  ;;  %v10547_v16 = vld [vmem:[%s20567_s3 + $0x858] sm:$0xf0]  ;;  %v10545_v59 = vld [vmem:[%s20567_s3 + $0x848] sm:$0xf] }
 0x207   :  { %3127 = vmatpush.bf16.msrb.mxu1 %v10362_v45  ;;  %3259 = vmatpush.bf16.msrb.mxu3 %v10438_v7  ;;  %v16717_v7 = vpack.c.bf16 %v3941_v8, %v3941_v8  ;;  %v10621_v8 = vld [vmem:[%s20567_s3 + $0x8c0] sm:$0xf] }
 0x208   :  { %4218 = vmatpush.bf16.msra.mxu0 %v10978_v29  ;;  %v1565_v25 = vpop.f32.mrf.mxu2 }
 0x209   :  { %v1684_v3 = vpop.f32.mrf.mxu3 }
 0x20a   :  { %v1708_v26 = vpop.f32.mrf.mxu1  ;;  %v2645_v40 = vpop.f32.mrf.mxu0  ;;  %3141 = vmatpush.bf16.msrb.mxu2 %v10350_v44  ;;  %v13813_v44 = vld [vmem:[%s20567_s3 + $0xb44] sm:$0xf] }
 0x20b   :  { %v16655_v19 = vadd.f32 %v1708_v26, %v16536_v20  ;;  %3128 = vmatpush.bf16.msrb.mxu1 %v10346_v39  ;;  %3260 = vmatpush.bf16.msrb.mxu3 %v10422_v10  ;;  %v13704_v20 = vld [vmem:[%s20567_s3 + $0x7d4] sm:$0xf0]  ;;  %v10505_v39 = vld [vmem:[%s20567_s3 + $0x800] sm:$0xf]  ;;  %v13711_v10 = vld [vmem:[%s20567_s3 + $0x80c] sm:$0xf0] }
 0x20c   :  { %4219 = vmatpush.bf16.msra.mxu0 %v10962_v60  ;;  %v10462_v47 = vor.u32 %v13704_v20, %v10461_v31  ;;  %v11043_v60 = vld [vmem:[%s20567_s3 + $0xb50] sm:$0xf0]  ;;  %v10506_v25 = vor.u32 %v13711_v10, %v10505_v39  ;;  %v13739_v26 = vld [vmem:[%s20567_s3 + $0x8ec] sm:$0xf0]  ;;  %v10513_v10 = vld [vmem:[%s20567_s3 + $0x808] sm:$0xf] }
 0x20d   :  { %10317 = vmatmul.msk.bf16.vlgmr.msra.gmra.mxu1 %vm526_vm0, %v15903_v34  ;;  %10318 = vmatmul.msk.bf16.vlgmr.msra.gmra.mxu2 %vm526_vm0, %v15903_v34  ;;  %v10447_v34 = vld [vmem:[%s20567_s3 + $0x7b8] sm:$0xf0]  ;;  %v11046_v21 = vor.u32 %v13813_v44, %v11043_v60  ;;  %v10638_v20 = vor.u32 %v13739_v26, %v10637_v28  ;;  %v13710_v60 = vld [vmem:[%s20567_s3 + $0x80c] sm:$0xf]  ;;  %v10645_v26 = vld [vmem:[%s20567_s3 + $0x8e8] sm:$0xf] }
 0x20e   :  { %10399 = vmatmul.msk.bf16.vlgmr.msra.gmra.mxu3 %vm526_vm0, %v16019_v24  ;;  %3296 = vmatpush.bf16.msra.mxu2 %v10482_v52  ;;  %v10450_v42 = vor.u32 %v13698_v53, %v10447_v34  ;;  %v13809_v52 = vld [vmem:[%s20567_s3 + $0xb24] sm:$0xf]  ;;  %v11011_v34 = vld [vmem:[%s20567_s3 + $0xb10] sm:$0xf0]  ;;  %v10647_v28 = vld [vmem:[%s20567_s3 + $0x8f8] sm:$0xf0] }
 0x20f   :  { %3283 = vmatpush.bf16.msra.mxu1 %v10478_v15  ;;  %3415 = vmatpush.bf16.msra.mxu3 %v10554_v14  ;;  %v11027_v15 = vld [vmem:[%s20567_s3 + $0xb30] sm:$0xf0]  ;;  %v13805_v53 = vld [vmem:[%s20567_s3 + $0xb04] sm:$0xf] }
 0x210   :  { %v1721_v55 = vpop.f32.mrf.mxu2  ;;  %4220 = vmatpush.bf16.msra.mxu0 %v10946_v57  ;;  %v10562_v57 = vor.u32 %v13724_v61, %v10561_v23  ;;  %v11030_v35 = vor.u32 %v13809_v52, %v11027_v15  ;;  %v11014_v36 = vor.u32 %v13805_v53, %v11011_v34  ;;  %v13738_v61 = vld [vmem:[%s20567_s3 + $0x8ec] sm:$0xf]  ;;  %v13740_v52 = vld [vmem:[%s20567_s3 + $0x8f4] sm:$0xf0]  ;;  %v10721_v15 = vld [vmem:[%s20567_s3 + $0x960] sm:$0xf] }
 0x211   :  { %v16712_v5 = vadd.f32 %v1721_v55, %v16595_v41  ;;  %v1840_v29 = vpop.f32.mrf.mxu3  ;;  %v10431_v41 = vld [vmem:[%s20567_s3 + $0x798] sm:$0xf0]  ;;  %v10529_v55 = vld [vmem:[%s20567_s3 + $0x828] sm:$0xf] }
 0x212   :  { %v16715_v18 = vadd.f32 %v1840_v29, %v16598_v54  ;;  %v1710_v17 = vpop.f32.mrf.mxu1  ;;  %v2801_v45 = vpop.f32.mrf.mxu0  ;;  %3297 = vmatpush.bf16.msra.mxu2 %v10466_v46  ;;  %v10446_v54 = vor.u32 %v13700_v62, %v10445_v50  ;;  %v10434_v9 = vor.u32 %v13694_v0, %v10431_v41  ;;  %v13735_v46 = vld [vmem:[%s20567_s3 + $0x8cc] sm:$0xf0]  ;;  %v13714_v50 = vld [vmem:[%s20567_s3 + $0x82c] sm:$0xf]  ;;  %v11143_v62 = vld [vmem:[%s20567_s3 + $0xbf0] sm:$0xf0] }
 0x213   :  { %v16726_v43 = vadd.f32 %v2801_v45, %v16608_v2  ;;  %3284 = vmatpush.bf16.msra.mxu1 %v10462_v47  ;;  %3416 = vmatpush.bf16.msra.mxu3 %v10538_v48  ;;  %v13696_v2 = vld [vmem:[%s20567_s3 + $0x794] sm:$0xf0]  ;;  %v4099_v47 = vld [vmem:[#allocation2 + $0x2a] sm:$0x3]  ;;  %v10550_v48 = vor.u32 %v13718_v22, %v10547_v16  ;;  %v10622_v51 = vor.u32 %v13735_v46, %v10621_v8  ;;  %v10605_v17 = vld [vmem:[%s20567_s3 + $0x8a0] sm:$0xf] }
 0x214   :  { %4221 = vmatpush.bf16.msra.mxu0 %v10930_v58  ;;  %v10430_v38 = vor.u32 %v13696_v2, %v10429_v49  ;;  %v13833_v58 = vld [vmem:[%s20567_s3 + $0xbe4] sm:$0xf]  ;;  %v13716_v29 = vld [vmem:[%s20567_s3 + $0x834] sm:$0xf0]  ;;  %v13731_v45 = vld [vmem:[%s20567_s3 + $0x8ac] sm:$0xf0]  ;;  %v10650_v16 = vor.u32 %v13738_v61, %v10647_v28 }
 0x215   :  { %10904 = vmatmul.msk.bf16.vlgmr.msrb.gmra.mxu0 %vm526_vm0, %v16717_v7  ;;  %v11146_v44 = vor.u32 %v13833_v58, %v11143_v62  ;;  %v10606_v39 = vor.u32 %v13731_v45, %v10605_v17  ;;  %v13734_v8 = vld [vmem:[%s20567_s3 + $0x8cc] sm:$0xf]  ;;  %v10631_v46 = vld [vmem:[%s20567_s3 + $0x8d8] sm:$0xf0]  ;;  %v10629_v53 = vld [vmem:[%s20567_s3 + $0x8c8] sm:$0xf] }
 0x216   :  { %3298 = vmatpush.bf16.msra.mxu2 %v10450_v42 }
 0x217   :  { %3285 = vmatpush.bf16.msra.mxu1 %v10446_v54  ;;  %3417 = vmatpush.bf16.msra.mxu3 %v10522_v6  ;;  %v16835_v6 = vpack.c.bf16 %v4099_v47, %v4099_v47  ;;  %v10705_v47 = vld [vmem:[%s20567_s3 + $0x940] sm:$0xf] }
 0x218   :  { %4376 = vmatpush.bf16.msrb.mxu0 %v11062_v63  ;;  %v1723_v3 = vpop.f32.mrf.mxu2 }
 0x219   :  { %v1842_v40 = vpop.f32.mrf.mxu3 }
 0x21a   :  { %v1866_v14 = vpop.f32.mrf.mxu1  ;;  %v2803_v30 = vpop.f32.mrf.mxu0  ;;  %3299 = vmatpush.bf16.msra.mxu2 %v10434_v9  ;;  %v13829_v9 = vld [vmem:[%s20567_s3 + $0xbc4] sm:$0xf] }
 0x21b   :  { %v16773_v31 = vadd.f32 %v1866_v14, %v16655_v19  ;;  %3286 = vmatpush.bf16.msra.mxu1 %v10430_v38  ;;  %3418 = vmatpush.bf16.msra.mxu3 %v10506_v25  ;;  %v13720_v19 = vld [vmem:[%s20567_s3 + $0x854] sm:$0xf0]  ;;  %v10589_v38 = vld [vmem:[%s20567_s3 + $0x880] sm:$0xf]  ;;  %v13727_v25 = vld [vmem:[%s20567_s3 + $0x88c] sm:$0xf0] }
 0x21c   :  { %4377 = vmatpush.bf16.msrb.mxu0 %v11046_v21  ;;  %v10546_v27 = vor.u32 %v13720_v19, %v10545_v59  ;;  %v11127_v21 = vld [vmem:[%s20567_s3 + $0xbd0] sm:$0xf0]  ;;  %v10590_v3 = vor.u32 %v13727_v25, %v10589_v38  ;;  %v13755_v14 = vld [vmem:[%s20567_s3 + $0x96c] sm:$0xf0]  ;;  %v10597_v25 = vld [vmem:[%s20567_s3 + $0x888] sm:$0xf] }
 0x21d   :  { %10401 = vmatmul.msk.bf16.vlgmr.msrb.gmra.mxu1 %vm526_vm0, %v16019_v24  ;;  %10402 = vmatmul.msk.bf16.vlgmr.msrb.gmra.mxu2 %vm526_vm0, %v16019_v24  ;;  %v10531_v24 = vld [vmem:[%s20567_s3 + $0x838] sm:$0xf0]  ;;  %v11130_v12 = vor.u32 %v13829_v9, %v11127_v21  ;;  %v10722_v19 = vor.u32 %v13755_v14, %v10721_v15  ;;  %v13726_v21 = vld [vmem:[%s20567_s3 + $0x88c] sm:$0xf]  ;;  %v10729_v14 = vld [vmem:[%s20567_s3 + $0x968] sm:$0xf] }
 0x21e   :  { %10483 = vmatmul.msk.bf16.vlgmr.msrb.gmra.mxu3 %vm526_vm0, %v16136_v33  ;;  %3454 = vmatpush.bf16.msrb.mxu2 %v10566_v32  ;;  %v10534_v49 = vor.u32 %v13714_v50, %v10531_v24  ;;  %v13825_v32 = vld [vmem:[%s20567_s3 + $0xba4] sm:$0xf]  ;;  %v11095_v24 = vld [vmem:[%s20567_s3 + $0xb90] sm:$0xf0]  ;;  %v10731_v15 = vld [vmem:[%s20567_s3 + $0x978] sm:$0xf0] }
 0x21f   :  { %3441 = vmatpush.bf16.msrb.mxu1 %v10562_v57  ;;  %3573 = vmatpush.bf16.msrb.mxu3 %v10638_v20  ;;  %v11111_v57 = vld [vmem:[%s20567_s3 + $0xbb0] sm:$0xf0]  ;;  %v13821_v50 = vld [vmem:[%s20567_s3 + $0xb84] sm:$0xf] }
 0x220   :  { %v1879_v4 = vpop.f32.mrf.mxu2  ;;  %4378 = vmatpush.bf16.msrb.mxu0 %v11030_v35  ;;  %v10646_v35 = vor.u32 %v13740_v52, %v10645_v26  ;;  %v11114_v34 = vor.u32 %v13825_v32, %v11111_v57  ;;  %v11098_v45 = vor.u32 %v13821_v50, %v11095_v24  ;;  %v13754_v52 = vld [vmem:[%s20567_s3 + $0x96c] sm:$0xf]  ;;  %v13756_v32 = vld [vmem:[%s20567_s3 + $0x974] sm:$0xf0]  ;;  %v10805_v57 = vld [vmem:[%s20567_s3 + $0x9e0] sm:$0xf] }
 0x221   :  { %v16830_v42 = vadd.f32 %v1879_v4, %v16712_v5  ;;  %v1998_v63 = vpop.f32.mrf.mxu3  ;;  %v10515_v5 = vld [vmem:[%s20567_s3 + $0x818] sm:$0xf0]  ;;  %v10613_v4 = vld [vmem:[%s20567_s3 + $0x8a8] sm:$0xf] }
 0x222   :  { %v16833_v0 = vadd.f32 %v1998_v63, %v16715_v18  ;;  %v1868_v41 = vpop.f32.mrf.mxu1  ;;  %v2959_v54 = vpop.f32.mrf.mxu0  ;;  %3455 = vmatpush.bf16.msrb.mxu2 %v10550_v48  ;;  %v10530_v18 = vor.u32 %v13716_v29, %v10529_v55  ;;  %v10518_v13 = vor.u32 %v13710_v60, %v10515_v5  ;;  %v13751_v48 = vld [vmem:[%s20567_s3 + $0x94c] sm:$0xf0]  ;;  %v13730_v55 = vld [vmem:[%s20567_s3 + $0x8ac] sm:$0xf]  ;;  %v11227_v29 = vld [vmem:[%s20567_s3 + $0xc70] sm:$0xf0] }
 0x223   :  { %v16844_v2 = vadd.f32 %v2959_v54, %v16726_v43  ;;  %3442 = vmatpush.bf16.msrb.mxu1 %v10546_v27  ;;  %3574 = vmatpush.bf16.msrb.mxu3 %v10622_v51  ;;  %v13712_v43 = vld [vmem:[%s20567_s3 + $0x814] sm:$0xf0]  ;;  %v4257_v27 = vld [vmem:[#allocation2 + $0x2c] sm:$0x3]  ;;  %v10634_v51 = vor.u32 %v13734_v8, %v10631_v46  ;;  %v10706_v62 = vor.u32 %v13751_v48, %v10705_v47  ;;  %v10689_v41 = vld [vmem:[%s20567_s3 + $0x920] sm:$0xf] }
 0x224   :  { %4379 = vmatpush.bf16.msrb.mxu0 %v11014_v36  ;;  %v10514_v23 = vor.u32 %v13712_v43, %v10513_v10  ;;  %v13849_v36 = vld [vmem:[%s20567_s3 + $0xc64] sm:$0xf]  ;;  %v13732_v63 = vld [vmem:[%s20567_s3 + $0x8b4] sm:$0xf0]  ;;  %v13747_v54 = vld [vmem:[%s20567_s3 + $0x92c] sm:$0xf0]  ;;  %v10734_v46 = vor.u32 %v13754_v52, %v10731_v15 }
 0x225   :  { %10988 = vmatmul.msk.bf16.vlgmr.msra.gmra.mxu0 %vm526_vm0, %v16835_v6  ;;  %v11230_v9 = vor.u32 %v13849_v36, %v11227_v29  ;;  %v10690_v38 = vor.u32 %v13747_v54, %v10689_v41  ;;  %v13750_v47 = vld [vmem:[%s20567_s3 + $0x94c] sm:$0xf]  ;;  %v10715_v48 = vld [vmem:[%s20567_s3 + $0x958] sm:$0xf0]  ;;  %v10713_v50 = vld [vmem:[%s20567_s3 + $0x948] sm:$0xf] }
 0x226   :  { %3456 = vmatpush.bf16.msrb.mxu2 %v10534_v49 }
 0x227   :  { %3443 = vmatpush.bf16.msrb.mxu1 %v10530_v18  ;;  %3575 = vmatpush.bf16.msrb.mxu3 %v10606_v39  ;;  %v16953_v39 = vpack.c.bf16 %v4257_v27, %v4257_v27  ;;  %v10789_v27 = vld [vmem:[%s20567_s3 + $0x9c0] sm:$0xf] }
 0x228   :  { %4534 = vmatpush.bf16.msra.mxu0 %v11146_v44  ;;  %v1881_v40 = vpop.f32.mrf.mxu2 }
 0x229   :  { %v2000_v30 = vpop.f32.mrf.mxu3 }
 0x22a   :  { %v2024_v20 = vpop.f32.mrf.mxu1  ;;  %v2961_v22 = vpop.f32.mrf.mxu0  ;;  %3457 = vmatpush.bf16.msrb.mxu2 %v10518_v13  ;;  %v13845_v13 = vld [vmem:[%s20567_s3 + $0xc44] sm:$0xf] }
 0x22b   :  { %v16891_v59 = vadd.f32 %v2024_v20, %v16773_v31  ;;  %3444 = vmatpush.bf16.msrb.mxu1 %v10514_v23  ;;  %3576 = vmatpush.bf16.msrb.mxu3 %v10590_v3  ;;  %v13736_v31 = vld [vmem:[%s20567_s3 + $0x8d4] sm:$0xf0]  ;;  %v10673_v23 = vld [vmem:[%s20567_s3 + $0x900] sm:$0xf]  ;;  %v13743_v3 = vld [vmem:[%s20567_s3 + $0x90c] sm:$0xf0] }
 0x22c   :  { %4535 = vmatpush.bf16.msra.mxu0 %v11130_v12  ;;  %v10630_v58 = vor.u32 %v13736_v31, %v10629_v53  ;;  %v11211_v12 = vld [vmem:[%s20567_s3 + $0xc50] sm:$0xf0]  ;;  %v10674_v40 = vor.u32 %v13743_v3, %v10673_v23  ;;  %v13771_v20 = vld [vmem:[%s20567_s3 + $0x9ec] sm:$0xf0]  ;;  %v10681_v3 = vld [vmem:[%s20567_s3 + $0x908] sm:$0xf] }
 0x22d   :  { %10485 = vmatmul.msk.bf16.vlgmr.msra.gmra.mxu1 %vm526_vm0, %v16136_v33  ;;  %10486 = vmatmul.msk.bf16.vlgmr.msra.gmra.mxu2 %vm526_vm0, %v16136_v33  ;;  %v10615_v33 = vld [vmem:[%s20567_s3 + $0x8b8] sm:$0xf0]  ;;  %v11214_v28 = vor.u32 %v13845_v13, %v11211_v12  ;;  %v10806_v31 = vor.u32 %v13771_v20, %v10805_v57  ;;  %v13742_v12 = vld [vmem:[%s20567_s3 + $0x90c] sm:$0xf]  ;;  %v10813_v20 = vld [vmem:[%s20567_s3 + $0x9e8] sm:$0xf] }
 0x22e   :  { %10567 = vmatmul.msk.bf16.vlgmr.msra.gmra.mxu3 %vm526_vm0, %v16253_v56  ;;  %3612 = vmatpush.bf16.msra.mxu2 %v10650_v16  ;;  %v10618_v10 = vor.u32 %v13730_v55, %v10615_v33  ;;  %v13841_v16 = vld [vmem:[%s20567_s3 + $0xc24] sm:$0xf]  ;;  %v11179_v33 = vld [vmem:[%s20567_s3 + $0xc10] sm:$0xf0]  ;;  %v10815_v57 = vld [vmem:[%s20567_s3 + $0x9f8] sm:$0xf0] }
 0x22f   :  { %3599 = vmatpush.bf16.msra.mxu1 %v10646_v35  ;;  %3731 = vmatpush.bf16.msra.mxu3 %v10722_v19  ;;  %v11195_v35 = vld [vmem:[%s20567_s3 + $0xc30] sm:$0xf0]  ;;  %v13837_v55 = vld [vmem:[%s20567_s3 + $0xc04] sm:$0xf] }
 0x230   :  { %v2037_v17 = vpop.f32.mrf.mxu2  ;;  %4536 = vmatpush.bf16.msra.mxu0 %v11114_v34  ;;  %v10730_v34 = vor.u32 %v13756_v32, %v10729_v14  ;;  %v11198_v24 = vor.u32 %v13841_v16, %v11195_v35  ;;  %v11182_v54 = vor.u32 %v13837_v55, %v11179_v33  ;;  %v13770_v32 = vld [vmem:[%s20567_s3 + $0x9ec] sm:$0xf]  ;;  %v13772_v16 = vld [vmem:[%s20567_s3 + $0x9f4] sm:$0xf0]  ;;  %v10889_v35 = vld [vmem:[%s20567_s3 + $0xa60] sm:$0xf] }
 0x231   :  { %v16948_v49 = vadd.f32 %v2037_v17, %v16830_v42  ;;  %v2156_v44 = vpop.f32.mrf.mxu3  ;;  %v10599_v42 = vld [vmem:[%s20567_s3 + $0x898] sm:$0xf0]  ;;  %v10697_v17 = vld [vmem:[%s20567_s3 + $0x928] sm:$0xf] }
 0x232   :  { %v16951_v60 = vadd.f32 %v2156_v44, %v16833_v0  ;;  %v2026_v5 = vpop.f32.mrf.mxu1  ;;  %v3117_v18 = vpop.f32.mrf.mxu0  ;;  %3613 = vmatpush.bf16.msra.mxu2 %v10634_v51  ;;  %v10614_v0 = vor.u32 %v13732_v63, %v10613_v4  ;;  %v10602_v61 = vor.u32 %v13726_v21, %v10599_v42  ;;  %v13767_v51 = vld [vmem:[%s20567_s3 + $0x9cc] sm:$0xf0]  ;;  %v13746_v4 = vld [vmem:[%s20567_s3 + $0x92c] sm:$0xf]  ;;  %v11311_v63 = vld [vmem:[%s20567_s3 + $0xcf0] sm:$0xf0] }
 0x233   :  { %v16962_v43 = vadd.f32 %v3117_v18, %v16844_v2  ;;  %3600 = vmatpush.bf16.msra.mxu1 %v10630_v58  ;;  %3732 = vmatpush.bf16.msra.mxu3 %v10706_v62  ;;  %v13728_v2 = vld [vmem:[%s20567_s3 + $0x894] sm:$0xf0]  ;;  %v4415_v58 = vld [vmem:[#allocation2 + $0x2e] sm:$0x3]  ;;  %v10718_v62 = vor.u32 %v13750_v47, %v10715_v48  ;;  %v10790_v29 = vor.u32 %v13767_v51, %v10789_v27  ;;  %v10773_v5 = vld [vmem:[%s20567_s3 + $0x9a0] sm:$0xf] }
 0x234   :  { %4537 = vmatpush.bf16.msra.mxu0 %v11098_v45  ;;  %v10598_v26 = vor.u32 %v13728_v2, %v10597_v25  ;;  %v13865_v45 = vld [vmem:[%s20567_s3 + $0xce4] sm:$0xf]  ;;  %v13748_v44 = vld [vmem:[%s20567_s3 + $0x934] sm:$0xf0]  ;;  %v13763_v18 = vld [vmem:[%s20567_s3 + $0x9ac] sm:$0xf0]  ;;  %v10818_v48 = vor.u32 %v13770_v32, %v10815_v57 }
 0x235   :  { %11072 = vmatmul.msk.bf16.vlgmr.msrb.gmra.mxu0 %vm526_vm0, %v16953_v39  ;;  %v11314_v13 = vor.u32 %v13865_v45, %v11311_v63  ;;  %v10774_v23 = vor.u32 %v13763_v18, %v10773_v5  ;;  %v13766_v27 = vld [vmem:[%s20567_s3 + $0x9cc] sm:$0xf]  ;;  %v10799_v51 = vld [vmem:[%s20567_s3 + $0x9d8] sm:$0xf0]  ;;  %v10797_v55 = vld [vmem:[%s20567_s3 + $0x9c8] sm:$0xf] }
 0x236   :  { %3614 = vmatpush.bf16.msra.mxu2 %v10618_v10 }
 0x237   :  { %3601 = vmatpush.bf16.msra.mxu1 %v10614_v0  ;;  %3733 = vmatpush.bf16.msra.mxu3 %v10690_v38  ;;  %v17071_v38 = vpack.c.bf16 %v4415_v58, %v4415_v58  ;;  %v10873_v58 = vld [vmem:[%s20567_s3 + $0xa40] sm:$0xf] }
 0x238   :  { %4692 = vmatpush.bf16.msrb.mxu0 %v11230_v9  ;;  %v2039_v30 = vpop.f32.mrf.mxu2 }
 0x239   :  { %v2158_v22 = vpop.f32.mrf.mxu3 }
 0x23a   :  { %v2182_v19 = vpop.f32.mrf.mxu1  ;;  %v3119_v8 = vpop.f32.mrf.mxu0  ;;  %3615 = vmatpush.bf16.msra.mxu2 %v10602_v61  ;;  %v13861_v61 = vld [vmem:[%s20567_s3 + $0xcc4] sm:$0xf] }
 0x23b   :  { %v17009_v53 = vadd.f32 %v2182_v19, %v16891_v59  ;;  %3602 = vmatpush.bf16.msra.mxu1 %v10598_v26  ;;  %3734 = vmatpush.bf16.msra.mxu3 %v10674_v40  ;;  %v13752_v59 = vld [vmem:[%s20567_s3 + $0x954] sm:$0xf0]  ;;  %v10757_v26 = vld [vmem:[%s20567_s3 + $0x980] sm:$0xf]  ;;  %v13759_v40 = vld [vmem:[%s20567_s3 + $0x98c] sm:$0xf0] }
 0x23c   :  { %4693 = vmatpush.bf16.msrb.mxu0 %v11214_v28  ;;  %v10714_v36 = vor.u32 %v13752_v59, %v10713_v50  ;;  %v11295_v28 = vld [vmem:[%s20567_s3 + $0xcd0] sm:$0xf0]  ;;  %v10758_v30 = vor.u32 %v13759_v40, %v10757_v26  ;;  %v13787_v19 = vld [vmem:[%s20567_s3 + $0xa6c] sm:$0xf0]  ;;  %v10765_v40 = vld [vmem:[%s20567_s3 + $0x988] sm:$0xf] }
 0x23d   :  { %10569 = vmatmul.msk.bf16.vlgmr.msrb.gmra.mxu1 %vm526_vm0, %v16253_v56  ;;  %10570 = vmatmul.msk.bf16.vlgmr.msrb.gmra.mxu2 %vm526_vm0, %v16253_v56  ;;  %v10699_v56 = vld [vmem:[%s20567_s3 + $0x938] sm:$0xf0]  ;;  %v11298_v15 = vor.u32 %v13861_v61, %v11295_v28  ;;  %v10890_v59 = vor.u32 %v13787_v19, %v10889_v35  ;;  %v13758_v28 = vld [vmem:[%s20567_s3 + $0x98c] sm:$0xf]  ;;  %v10897_v19 = vld [vmem:[%s20567_s3 + $0xa68] sm:$0xf] }
 0x23e   :  { %10651 = vmatmul.msk.bf16.vlgmr.msrb.gmra.mxu3 %vm526_vm0, %v16370_v1  ;;  %3770 = vmatpush.bf16.msrb.mxu2 %v10734_v46  ;;  %v10702_v25 = vor.u32 %v13746_v4, %v10699_v56  ;;  %v13857_v46 = vld [vmem:[%s20567_s3 + $0xca4] sm:$0xf]  ;;  %v11263_v56 = vld [vmem:[%s20567_s3 + $0xc90] sm:$0xf0]  ;;  %v10899_v35 = vld [vmem:[%s20567_s3 + $0xa78] sm:$0xf0] }
 0x23f   :  { %3757 = vmatpush.bf16.msrb.mxu1 %v10730_v34  ;;  %3889 = vmatpush.bf16.msrb.mxu3 %v10806_v31  ;;  %v11279_v34 = vld [vmem:[%s20567_s3 + $0xcb0] sm:$0xf0]  ;;  %v13853_v4 = vld [vmem:[%s20567_s3 + $0xc84] sm:$0xf] }
 0x240   :  { %v2195_v41 = vpop.f32.mrf.mxu2  ;;  %4694 = vmatpush.bf16.msrb.mxu0 %v11198_v24  ;;  %v10814_v24 = vor.u32 %v13772_v16, %v10813_v20  ;;  %v11282_v33 = vor.u32 %v13857_v46, %v11279_v34  ;;  %v11266_v18 = vor.u32 %v13853_v4, %v11263_v56  ;;  %v13786_v16 = vld [vmem:[%s20567_s3 + $0xa6c] sm:$0xf]  ;;  %v13788_v46 = vld [vmem:[%s20567_s3 + $0xa74] sm:$0xf0]  ;;  %v10973_v34 = vld [vmem:[%s20567_s3 + $0xae0] sm:$0xf] }
 0x241   :  { %v17066_v10 = vadd.f32 %v2195_v41, %v16948_v49  ;;  %v2314_v9 = vpop.f32.mrf.mxu3  ;;  %v10683_v49 = vld [vmem:[%s20567_s3 + $0x918] sm:$0xf0]  ;;  %v10781_v41 = vld [vmem:[%s20567_s3 + $0x9a8] sm:$0xf] }
 0x242   :  { %v17069_v21 = vadd.f32 %v2314_v9, %v16951_v60  ;;  %v2184_v42 = vpop.f32.mrf.mxu1  ;;  %v3275_v0 = vpop.f32.mrf.mxu0  ;;  %3771 = vmatpush.bf16.msrb.mxu2 %v10718_v62  ;;  %v10698_v60 = vor.u32 %v13748_v44, %v10697_v17  ;;  %v10686_v52 = vor.u32 %v13742_v12, %v10683_v49  ;;  %v13783_v62 = vld [vmem:[%s20567_s3 + $0xa4c] sm:$0xf0]  ;;  %v13762_v17 = vld [vmem:[%s20567_s3 + $0x9ac] sm:$0xf]  ;;  %v11395_v44 = vld [vmem:[%s20567_s3 + $0xd70] sm:$0xf0] }
 0x243   :  { %v17080_v2 = vadd.f32 %v3275_v0, %v16962_v43  ;;  %3758 = vmatpush.bf16.msrb.mxu1 %v10714_v36  ;;  %3890 = vmatpush.bf16.msrb.mxu3 %v10790_v29  ;;  %v13744_v43 = vld [vmem:[%s20567_s3 + $0x914] sm:$0xf0]  ;;  %v4573_v36 = vld [vmem:[#allocation2 + $0x30] sm:$0x3]  ;;  %v10802_v29 = vor.u32 %v13766_v27, %v10799_v51  ;;  %v10874_v63 = vor.u32 %v13783_v62, %v10873_v58  ;;  %v10857_v42 = vld [vmem:[%s20567_s3 + $0xa20] sm:$0xf] }
 0x244   :  { %4695 = vmatpush.bf16.msrb.mxu0 %v11182_v54  ;;  %v10682_v14 = vor.u32 %v13744_v43, %v10681_v3  ;;  %v13881_v54 = vld [vmem:[%s20567_s3 + $0xd64] sm:$0xf]  ;;  %v13764_v9 = vld [vmem:[%s20567_s3 + $0x9b4] sm:$0xf0]  ;;  %v13779_v0 = vld [vmem:[%s20567_s3 + $0xa2c] sm:$0xf0]  ;;  %v10902_v51 = vor.u32 %v13786_v16, %v10899_v35 }
 0x245   :  { %11156 = vmatmul.msk.bf16.vlgmr.msra.gmra.mxu0 %vm526_vm0, %v17071_v38  ;;  %v11398_v61 = vor.u32 %v13881_v54, %v11395_v44  ;;  %v10858_v26 = vor.u32 %v13779_v0, %v10857_v42  ;;  %v13782_v58 = vld [vmem:[%s20567_s3 + $0xa4c] sm:$0xf]  ;;  %v10883_v62 = vld [vmem:[%s20567_s3 + $0xa58] sm:$0xf0]  ;;  %v10881_v4 = vld [vmem:[%s20567_s3 + $0xa48] sm:$0xf] }
 0x246   :  { %3772 = vmatpush.bf16.msrb.mxu2 %v10702_v25 }
 0x247   :  { %3759 = vmatpush.bf16.msrb.mxu1 %v10698_v60  ;;  %3891 = vmatpush.bf16.msrb.mxu3 %v10774_v23  ;;  %v17189_v23 = vpack.c.bf16 %v4573_v36, %v4573_v36  ;;  %v10957_v36 = vld [vmem:[%s20567_s3 + $0xac0] sm:$0xf] }
 0x248   :  { %4850 = vmatpush.bf16.msra.mxu0 %v11314_v13  ;;  %v2197_v22 = vpop.f32.mrf.mxu2 }
 0x249   :  { %v2316_v8 = vpop.f32.mrf.mxu3 }
 0x24a   :  { %v2340_v31 = vpop.f32.mrf.mxu1  ;;  %v3277_v47 = vpop.f32.mrf.mxu0  ;;  %3773 = vmatpush.bf16.msrb.mxu2 %v10686_v52  ;;  %v13877_v52 = vld [vmem:[%s20567_s3 + $0xd44] sm:$0xf] }
 0x24b   :  { %v17127_v50 = vadd.f32 %v2340_v31, %v17009_v53  ;;  %3760 = vmatpush.bf16.msrb.mxu1 %v10682_v14  ;;  %3892 = vmatpush.bf16.msrb.mxu3 %v10758_v30  ;;  %v13768_v53 = vld [vmem:[%s20567_s3 + $0x9d4] sm:$0xf0]  ;;  %v10841_v14 = vld [vmem:[%s20567_s3 + $0xa00] sm:$0xf]  ;;  %v13775_v30 = vld [vmem:[%s20567_s3 + $0xa0c] sm:$0xf0] }
 0x24c   :  { %4851 = vmatpush.bf16.msra.mxu0 %v11298_v15  ;;  %v10798_v45 = vor.u32 %v13768_v53, %v10797_v55  ;;  %v11379_v15 = vld [vmem:[%s20567_s3 + $0xd50] sm:$0xf0]  ;;  %v10842_v22 = vor.u32 %v13775_v30, %v10841_v14  ;;  %v13803_v31 = vld [vmem:[%s20567_s3 + $0xaec] sm:$0xf0]  ;;  %v10849_v30 = vld [vmem:[%s20567_s3 + $0xa08] sm:$0xf] }
 0x24d   :  { %10653 = vmatmul.msk.bf16.vlgmr.msra.gmra.mxu1 %vm526_vm0, %v16370_v1  ;;  %10654 = vmatmul.msk.bf16.vlgmr.msra.gmra.mxu2 %vm526_vm0, %v16370_v1  ;;  %v10783_v1 = vld [vmem:[%s20567_s3 + $0x9b8] sm:$0xf0]  ;;  %v11382_v57 = vor.u32 %v13877_v52, %v11379_v15  ;;  %v10974_v53 = vor.u32 %v13803_v31, %v10973_v34  ;;  %v13774_v15 = vld [vmem:[%s20567_s3 + $0xa0c] sm:$0xf]  ;;  %v10981_v31 = vld [vmem:[%s20567_s3 + $0xae8] sm:$0xf] }
 0x24e   :  { %10735 = vmatmul.msk.bf16.vlgmr.msra.gmra.mxu3 %vm526_vm0, %v16485_v37  ;;  %3928 = vmatpush.bf16.msra.mxu2 %v10818_v48  ;;  %v10786_v3 = vor.u32 %v13762_v17, %v10783_v1  ;;  %v13873_v48 = vld [vmem:[%s20567_s3 + $0xd24] sm:$0xf]  ;;  %v11347_v1 = vld [vmem:[%s20567_s3 + $0xd10] sm:$0xf0]  ;;  %v10983_v34 = vld [vmem:[%s20567_s3 + $0xaf8] sm:$0xf0] }
 0x24f   :  { %3915 = vmatpush.bf16.msra.mxu1 %v10814_v24  ;;  %4047 = vmatpush.bf16.msra.mxu3 %v10890_v59  ;;  %v11363_v24 = vld [vmem:[%s20567_s3 + $0xd30] sm:$0xf0]  ;;  %v13869_v17 = vld [vmem:[%s20567_s3 + $0xd04] sm:$0xf] }
 0x250   :  { %v2353_v5 = vpop.f32.mrf.mxu2  ;;  %4852 = vmatpush.bf16.msra.mxu0 %v11282_v33  ;;  %v10898_v33 = vor.u32 %v13788_v46, %v10897_v19  ;;  %v11366_v56 = vor.u32 %v13873_v48, %v11363_v24  ;;  %v11350_v0 = vor.u32 %v13869_v17, %v11347_v1  ;;  %v13802_v46 = vld [vmem:[%s20567_s3 + $0xaec] sm:$0xf]  ;;  %v13804_v48 = vld [vmem:[%s20567_s3 + $0xaf4] sm:$0xf0]  ;;  %v11057_v24 = vld [vmem:[%s20567_s3 + $0xb60] sm:$0xf] }
 0x251   :  { %v17184_v25 = vadd.f32 %v2353_v5, %v17066_v10  ;;  %v2472_v13 = vpop.f32.mrf.mxu3  ;;  %v10767_v10 = vld [vmem:[%s20567_s3 + $0x998] sm:$0xf0]  ;;  %v10865_v5 = vld [vmem:[%s20567_s3 + $0xa28] sm:$0xf] }
 0x252   :  { %v17187_v12 = vadd.f32 %v2472_v13, %v17069_v21  ;;  %v2342_v49 = vpop.f32.mrf.mxu1  ;;  %v3433_v60 = vpop.f32.mrf.mxu0  ;;  %3929 = vmatpush.bf16.msra.mxu2 %v10802_v29  ;;  %v10782_v21 = vor.u32 %v13764_v9, %v10781_v41  ;;  %v10770_v32 = vor.u32 %v13758_v28, %v10767_v10  ;;  %v13799_v29 = vld [vmem:[%s20567_s3 + $0xacc] sm:$0xf0]  ;;  %v13778_v41 = vld [vmem:[%s20567_s3 + $0xa2c] sm:$0xf]  ;;  %v11479_v9 = vld [vmem:[%s20567_s3 + $0xdf0] sm:$0xf0] }
 0x253   :  { %v17198_v43 = vadd.f32 %v3433_v60, %v17080_v2  ;;  %3916 = vmatpush.bf16.msra.mxu1 %v10798_v45  ;;  %4048 = vmatpush.bf16.msra.mxu3 %v10874_v63  ;;  %v13760_v2 = vld [vmem:[%s20567_s3 + $0x994] sm:$0xf0]  ;;  %v4731_v45 = vld [vmem:[#allocation2 + $0x32] sm:$0x3]  ;;  %v10886_v63 = vor.u32 %v13782_v58, %v10883_v62  ;;  %v10958_v44 = vor.u32 %v13799_v29, %v10957_v36  ;;  %v10941_v49 = vld [vmem:[%s20567_s3 + $0xaa0] sm:$0xf] }
 0x254   :  { %4853 = vmatpush.bf16.msra.mxu0 %v11266_v18  ;;  %v10766_v20 = vor.u32 %v13760_v2, %v10765_v40  ;;  %v13897_v18 = vld [vmem:[%s20567_s3 + $0xde4] sm:$0xf]  ;;  %v13780_v13 = vld [vmem:[%s20567_s3 + $0xa34] sm:$0xf0]  ;;  %v13795_v60 = vld [vmem:[%s20567_s3 + $0xaac] sm:$0xf0]  ;;  %v10986_v62 = vor.u32 %v13802_v46, %v10983_v34 }
 0x255   :  { %11240 = vmatmul.msk.bf16.vlgmr.msrb.gmra.mxu0 %vm526_vm0, %v17189_v23  ;;  %v11482_v52 = vor.u32 %v13897_v18, %v11479_v9  ;;  %v10942_v14 = vor.u32 %v13795_v60, %v10941_v49  ;;  %v13798_v36 = vld [vmem:[%s20567_s3 + $0xacc] sm:$0xf]  ;;  %v10967_v29 = vld [vmem:[%s20567_s3 + $0xad8] sm:$0xf0]  ;;  %v10965_v17 = vld [vmem:[%s20567_s3 + $0xac8] sm:$0xf] }
 0x256   :  { %3930 = vmatpush.bf16.msra.mxu2 %v10786_v3 }
 0x257   :  { %3917 = vmatpush.bf16.msra.mxu1 %v10782_v21  ;;  %4049 = vmatpush.bf16.msra.mxu3 %v10858_v26  ;;  %v17307_v26 = vpack.c.bf16 %v4731_v45, %v4731_v45  ;;  %v11041_v45 = vld [vmem:[%s20567_s3 + $0xb40] sm:$0xf] }
 0x258   :  { %5008 = vmatpush.bf16.msrb.mxu0 %v11398_v61  ;;  %v2355_v8 = vpop.f32.mrf.mxu2 }
 0x259   :  { %v2474_v47 = vpop.f32.mrf.mxu3 }
 0x25a   :  { %v2498_v59 = vpop.f32.mrf.mxu1  ;;  %v3435_v27 = vpop.f32.mrf.mxu0  ;;  %3931 = vmatpush.bf16.msra.mxu2 %v10770_v32  ;;  %v13893_v32 = vld [vmem:[%s20567_s3 + $0xdc4] sm:$0xf] }
 0x25b   :  { %v17245_v55 = vadd.f32 %v2498_v59, %v17127_v50  ;;  %3918 = vmatpush.bf16.msra.mxu1 %v10766_v20  ;;  %4050 = vmatpush.bf16.msra.mxu3 %v10842_v22  ;;  %v13784_v50 = vld [vmem:[%s20567_s3 + $0xa54] sm:$0xf0]  ;;  %v10925_v20 = vld [vmem:[%s20567_s3 + $0xa80] sm:$0xf]  ;;  %v13791_v22 = vld [vmem:[%s20567_s3 + $0xa8c] sm:$0xf0] }
 0x25c   :  { %5009 = vmatpush.bf16.msrb.mxu0 %v11382_v57  ;;  %v10882_v54 = vor.u32 %v13784_v50, %v10881_v4  ;;  %v11463_v57 = vld [vmem:[%s20567_s3 + $0xdd0] sm:$0xf0]  ;;  %v10926_v8 = vor.u32 %v13791_v22, %v10925_v20  ;;  %v13819_v59 = vld [vmem:[%s20567_s3 + $0xb6c] sm:$0xf0]  ;;  %v10933_v22 = vld [vmem:[%s20567_s3 + $0xa88] sm:$0xf] }
 0x25d   :  { %10737 = vmatmul.msk.bf16.vlgmr.msrb.gmra.mxu1 %vm526_vm0, %v16485_v37  ;;  %10738 = vmatmul.msk.bf16.vlgmr.msrb.gmra.mxu2 %vm526_vm0, %v16485_v37  ;;  %v10867_v37 = vld [vmem:[%s20567_s3 + $0xa38] sm:$0xf0]  ;;  %v11466_v35 = vor.u32 %v13893_v32, %v11463_v57  ;;  %v11058_v50 = vor.u32 %v13819_v59, %v11057_v24  ;;  %v13790_v57 = vld [vmem:[%s20567_s3 + $0xa8c] sm:$0xf]  ;;  %v11065_v59 = vld [vmem:[%s20567_s3 + $0xb68] sm:$0xf] }
 0x25e   :  { %10819 = vmatmul.msk.bf16.vlgmr.msrb.gmra.mxu3 %vm526_vm0, %v16600_v11  ;;  %4086 = vmatpush.bf16.msrb.mxu2 %v10902_v51  ;;  %v10870_v40 = vor.u32 %v13778_v41, %v10867_v37  ;;  %v13889_v51 = vld [vmem:[%s20567_s3 + $0xda4] sm:$0xf]  ;;  %v11431_v37 = vld [vmem:[%s20567_s3 + $0xd90] sm:$0xf0]  ;;  %v11067_v24 = vld [vmem:[%s20567_s3 + $0xb78] sm:$0xf0] }
 0x25f   :  { %4073 = vmatpush.bf16.msrb.mxu1 %v10898_v33  ;;  %4205 = vmatpush.bf16.msrb.mxu3 %v10974_v53  ;;  %v11447_v33 = vld [vmem:[%s20567_s3 + $0xdb0] sm:$0xf0]  ;;  %v13885_v41 = vld [vmem:[%s20567_s3 + $0xd84] sm:$0xf] }
 0x260   :  { %v2511_v42 = vpop.f32.mrf.mxu2  ;;  %5010 = vmatpush.bf16.msrb.mxu0 %v11366_v56  ;;  %v10982_v56 = vor.u32 %v13804_v48, %v10981_v31  ;;  %v11450_v1 = vor.u32 %v13889_v51, %v11447_v33  ;;  %v11434_v60 = vor.u32 %v13885_v41, %v11431_v37  ;;  %v13818_v48 = vld [vmem:[%s20567_s3 + $0xb6c] sm:$0xf]  ;;  %v13820_v51 = vld [vmem:[%s20567_s3 + $0xb74] sm:$0xf0]  ;;  %v11141_v33 = vld [vmem:[%s20567_s3 + $0xbe0] sm:$0xf] }
 0x261   :  { %v17302_v3 = vadd.f32 %v2511_v42, %v17184_v25  ;;  %v2630_v61 = vpop.f32.mrf.mxu3  ;;  %v10851_v25 = vld [vmem:[%s20567_s3 + $0xa18] sm:$0xf0]  ;;  %v10949_v42 = vld [vmem:[%s20567_s3 + $0xaa8] sm:$0xf] }
 0x262   :  { %v17305_v28 = vadd.f32 %v2630_v61, %v17187_v12  ;;  %v2500_v10 = vpop.f32.mrf.mxu1  ;;  %v3591_v21 = vpop.f32.mrf.mxu0  ;;  %4087 = vmatpush.bf16.msrb.mxu2 %v10886_v63  ;;  %v10866_v12 = vor.u32 %v13780_v13, %v10865_v5  ;;  %v10854_v16 = vor.u32 %v13774_v15, %v10851_v25  ;;  %v13815_v63 = vld [vmem:[%s20567_s3 + $0xb4c] sm:$0xf0]  ;;  %v13794_v5 = vld [vmem:[%s20567_s3 + $0xaac] sm:$0xf]  ;;  %v11563_v13 = vld [vmem:[%s20567_s3 + $0xe70] sm:$0xf0] }
 0x263   :  { %v17316_v2 = vadd.f32 %v3591_v21, %v17198_v43  ;;  %4074 = vmatpush.bf16.msrb.mxu1 %v10882_v54  ;;  %4206 = vmatpush.bf16.msrb.mxu3 %v10958_v44  ;;  %v13776_v43 = vld [vmem:[%s20567_s3 + $0xa14] sm:$0xf0]  ;;  %v4889_v54 = vld [vmem:[#allocation2 + $0x34] sm:$0x3]  ;;  %v10970_v44 = vor.u32 %v13798_v36, %v10967_v29  ;;  %v11042_v9 = vor.u32 %v13815_v63, %v11041_v45  ;;  %v11025_v10 = vld [vmem:[%s20567_s3 + $0xb20] sm:$0xf] }
 0x264   :  { %5011 = vmatpush.bf16.msrb.mxu0 %v11350_v0  ;;  %v10850_v19 = vor.u32 %v13776_v43, %v10849_v30  ;;  %v13913_v0 = vld [vmem:[%s20567_s3 + $0xe64] sm:$0xf]  ;;  %v13796_v61 = vld [vmem:[%s20567_s3 + $0xab4] sm:$0xf0]  ;;  %v13811_v21 = vld [vmem:[%s20567_s3 + $0xb2c] sm:$0xf0]  ;;  %v11070_v29 = vor.u32 %v13818_v48, %v11067_v24 }
 0x265   :  { %11324 = vmatmul.msk.bf16.vlgmr.msra.gmra.mxu0 %vm526_vm0, %v17307_v26  ;;  %v11566_v32 = vor.u32 %v13913_v0, %v11563_v13  ;;  %v11026_v20 = vor.u32 %v13811_v21, %v11025_v10  ;;  %v13814_v45 = vld [vmem:[%s20567_s3 + $0xb4c] sm:$0xf]  ;;  %v11051_v63 = vld [vmem:[%s20567_s3 + $0xb58] sm:$0xf0]  ;;  %v11049_v41 = vld [vmem:[%s20567_s3 + $0xb48] sm:$0xf] }
 0x266   :  { %4088 = vmatpush.bf16.msrb.mxu2 %v10870_v40 }
 0x267   :  { %4075 = vmatpush.bf16.msrb.mxu1 %v10866_v12  ;;  %4207 = vmatpush.bf16.msrb.mxu3 %v10942_v14  ;;  %v17425_v14 = vpack.c.bf16 %v4889_v54, %v4889_v54  ;;  %v11125_v54 = vld [vmem:[%s20567_s3 + $0xbc0] sm:$0xf] }
 0x268   :  { %5166 = vmatpush.bf16.msra.mxu0 %v11482_v52  ;;  %v2513_v47 = vpop.f32.mrf.mxu2 }
 0x269   :  { %v2632_v27 = vpop.f32.mrf.mxu3 }
 0x26a   :  { %v2656_v53 = vpop.f32.mrf.mxu1  ;;  %v3593_v58 = vpop.f32.mrf.mxu0  ;;  %4089 = vmatpush.bf16.msrb.mxu2 %v10854_v16  ;;  %v13909_v16 = vld [vmem:[%s20567_s3 + $0xe44] sm:$0xf] }
 0x26b   :  { %v17363_v4 = vadd.f32 %v2656_v53, %v17245_v55  ;;  %4076 = vmatpush.bf16.msrb.mxu1 %v10850_v19  ;;  %4208 = vmatpush.bf16.msrb.mxu3 %v10926_v8  ;;  %v13800_v55 = vld [vmem:[%s20567_s3 + $0xad4] sm:$0xf0]  ;;  %v11009_v19 = vld [vmem:[%s20567_s3 + $0xb00] sm:$0xf]  ;;  %v13807_v8 = vld [vmem:[%s20567_s3 + $0xb0c] sm:$0xf0] }
 0x26c   :  { %5167 = vmatpush.bf16.msra.mxu0 %v11466_v35  ;;  %v10966_v18 = vor.u32 %v13800_v55, %v10965_v17  ;;  %v11547_v35 = vld [vmem:[%s20567_s3 + $0xe50] sm:$0xf0]  ;;  %v11010_v47 = vor.u32 %v13807_v8, %v11009_v19  ;;  %v13835_v53 = vld [vmem:[%s20567_s3 + $0xbec] sm:$0xf0]  ;;  %v11017_v8 = vld [vmem:[%s20567_s3 + $0xb08] sm:$0xf] }
 0x26d   :  { %10821 = vmatmul.msk.bf16.vlgmr.msra.gmra.mxu1 %vm526_vm0, %v16600_v11  ;;  %10822 = vmatmul.msk.bf16.vlgmr.msra.gmra.mxu2 %vm526_vm0, %v16600_v11  ;;  %v10951_v11 = vld [vmem:[%s20567_s3 + $0xab8] sm:$0xf0]  ;;  %v11550_v34 = vor.u32 %v13909_v16, %v11547_v35  ;;  %v11142_v55 = vor.u32 %v13835_v53, %v11141_v33  ;;  %v13806_v35 = vld [vmem:[%s20567_s3 + $0xb0c] sm:$0xf]  ;;  %v11149_v53 = vld [vmem:[%s20567_s3 + $0xbe8] sm:$0xf] }
 0x26e   :  { %10903 = vmatmul.msk.bf16.vlgmr.msra.gmra.mxu3 %vm526_vm0, %v16717_v7  ;;  %4244 = vmatpush.bf16.msra.mxu2 %v10986_v62  ;;  %v10954_v30 = vor.u32 %v13794_v5, %v10951_v11  ;;  %v13905_v62 = vld [vmem:[%s20567_s3 + $0xe24] sm:$0xf]  ;;  %v11515_v11 = vld [vmem:[%s20567_s3 + $0xe10] sm:$0xf0]  ;;  %v11151_v33 = vld [vmem:[%s20567_s3 + $0xbf8] sm:$0xf0] }
 0x26f   :  { %4231 = vmatpush.bf16.msra.mxu1 %v10982_v56  ;;  %4363 = vmatpush.bf16.msra.mxu3 %v11058_v50  ;;  %v11531_v56 = vld [vmem:[%s20567_s3 + $0xe30] sm:$0xf0]  ;;  %v13901_v5 = vld [vmem:[%s20567_s3 + $0xe04] sm:$0xf] }
 0x270   :  { %v2669_v49 = vpop.f32.mrf.mxu2  ;;  %5168 = vmatpush.bf16.msra.mxu0 %v11450_v1  ;;  %v11066_v1 = vor.u32 %v13820_v51, %v11065_v59  ;;  %v11534_v37 = vor.u32 %v13905_v62, %v11531_v56  ;;  %v11518_v21 = vor.u32 %v13901_v5, %v11515_v11  ;;  %v13834_v51 = vld [vmem:[%s20567_s3 + $0xbec] sm:$0xf]  ;;  %v13836_v62 = vld [vmem:[%s20567_s3 + $0xbf4] sm:$0xf0]  ;;  %v11225_v56 = vld [vmem:[%s20567_s3 + $0xc60] sm:$0xf] }
 0x271   :  { %v17420_v40 = vadd.f32 %v2669_v49, %v17302_v3  ;;  %v2788_v52 = vpop.f32.mrf.mxu3  ;;  %v10935_v3 = vld [vmem:[%s20567_s3 + $0xa98] sm:$0xf0]  ;;  %v11033_v49 = vld [vmem:[%s20567_s3 + $0xb28] sm:$0xf] }
 0x272   :  { %v17423_v15 = vadd.f32 %v2788_v52, %v17305_v28  ;;  %v2658_v25 = vpop.f32.mrf.mxu1  ;;  %v3749_v12 = vpop.f32.mrf.mxu0  ;;  %4245 = vmatpush.bf16.msra.mxu2 %v10970_v44  ;;  %v10950_v28 = vor.u32 %v13796_v61, %v10949_v42  ;;  %v10938_v46 = vor.u32 %v13790_v57, %v10935_v3  ;;  %v13831_v44 = vld [vmem:[%s20567_s3 + $0xbcc] sm:$0xf0]  ;;  %v13810_v42 = vld [vmem:[%s20567_s3 + $0xb2c] sm:$0xf]  ;;  %v11647_v61 = vld [vmem:[%s20567_s3 + $0xef0] sm:$0xf0] }
 0x273   :  { %v17434_v43 = vadd.f32 %v3749_v12, %v17316_v2  ;;  %4232 = vmatpush.bf16.msra.mxu1 %v10966_v18  ;;  %4364 = vmatpush.bf16.msra.mxu3 %v11042_v9  ;;  %v13792_v2 = vld [vmem:[%s20567_s3 + $0xa94] sm:$0xf0]  ;;  %v5047_v18 = vld [vmem:[#allocation2 + $0x36] sm:$0x3]  ;;  %v11054_v9 = vor.u32 %v13814_v45, %v11051_v63  ;;  %v11126_v13 = vor.u32 %v13831_v44, %v11125_v54  ;;  %v11109_v25 = vld [vmem:[%s20567_s3 + $0xba0] sm:$0xf] }
 0x274   :  { %5169 = vmatpush.bf16.msra.mxu0 %v11434_v60  ;;  %v10934_v31 = vor.u32 %v13792_v2, %v10933_v22  ;;  %v13929_v60 = vld [vmem:[%s20567_s3 + $0xee4] sm:$0xf]  ;;  %v13812_v52 = vld [vmem:[%s20567_s3 + $0xb34] sm:$0xf0]  ;;  %v13827_v12 = vld [vmem:[%s20567_s3 + $0xbac] sm:$0xf0]  ;;  %v11154_v63 = vor.u32 %v13834_v51, %v11151_v33 }
 0x275   :  { %11408 = vmatmul.msk.bf16.vlgmr.msrb.gmra.mxu0 %vm526_vm0, %v17425_v14  ;;  %v11650_v16 = vor.u32 %v13929_v60, %v11647_v61  ;;  %v11110_v19 = vor.u32 %v13827_v12, %v11109_v25  ;;  %v13830_v54 = vld [vmem:[%s20567_s3 + $0xbcc] sm:$0xf]  ;;  %v11135_v44 = vld [vmem:[%s20567_s3 + $0xbd8] sm:$0xf0]  ;;  %v11133_v5 = vld [vmem:[%s20567_s3 + $0xbc8] sm:$0xf] }
 0x276   :  { %4246 = vmatpush.bf16.msra.mxu2 %v10954_v30 }
 0x277   :  { %4233 = vmatpush.bf16.msra.mxu1 %v10950_v28  ;;  %4365 = vmatpush.bf16.msra.mxu3 %v11026_v20  ;;  %v17543_v20 = vpack.c.bf16 %v5047_v18, %v5047_v18  ;;  %v11209_v18 = vld [vmem:[%s20567_s3 + $0xc40] sm:$0xf] }
 0x278   :  { %5324 = vmatpush.bf16.msrb.mxu0 %v11566_v32  ;;  %v2671_v27 = vpop.f32.mrf.mxu2 }
 0x279   :  { %v2790_v58 = vpop.f32.mrf.mxu3 }
 0x27a   :  { %v2814_v50 = vpop.f32.mrf.mxu1  ;;  %v3751_v36 = vpop.f32.mrf.mxu0  ;;  %4247 = vmatpush.bf16.msra.mxu2 %v10938_v46  ;;  %v13925_v46 = vld [vmem:[%s20567_s3 + $0xec4] sm:$0xf] }
 0x27b   :  { %v17481_v17 = vadd.f32 %v2814_v50, %v17363_v4  ;;  %4234 = vmatpush.bf16.msra.mxu1 %v10934_v31  ;;  %4366 = vmatpush.bf16.msra.mxu3 %v11010_v47  ;;  %v13816_v4 = vld [vmem:[%s20567_s3 + $0xb54] sm:$0xf0]  ;;  %v11093_v31 = vld [vmem:[%s20567_s3 + $0xb80] sm:$0xf]  ;;  %v13823_v47 = vld [vmem:[%s20567_s3 + $0xb8c] sm:$0xf0] }
 0x27c   :  { %5325 = vmatpush.bf16.msrb.mxu0 %v11550_v34  ;;  %v11050_v0 = vor.u32 %v13816_v4, %v11049_v41  ;;  %v11631_v34 = vld [vmem:[%s20567_s3 + $0xed0] sm:$0xf0]  ;;  %v11094_v27 = vor.u32 %v13823_v47, %v11093_v31  ;;  %v13851_v50 = vld [vmem:[%s20567_s3 + $0xc6c] sm:$0xf0]  ;;  %v11101_v47 = vld [vmem:[%s20567_s3 + $0xb88] sm:$0xf] }
 0x27d   :  { %10905 = vmatmul.msk.bf16.vlgmr.msrb.gmra.mxu1 %vm526_vm0, %v16717_v7  ;;  %10906 = vmatmul.msk.bf16.vlgmr.msrb.gmra.mxu2 %vm526_vm0, %v16717_v7  ;;  %v11035_v7 = vld [vmem:[%s20567_s3 + $0xb38] sm:$0xf0]  ;;  %v11634_v24 = vor.u32 %v13925_v46, %v11631_v34  ;;  %v11226_v4 = vor.u32 %v13851_v50, %v11225_v56  ;;  %v13822_v34 = vld [vmem:[%s20567_s3 + $0xb8c] sm:$0xf]  ;;  %v11233_v50 = vld [vmem:[%s20567_s3 + $0xc68] sm:$0xf] }
 0x27e   :  { %10987 = vmatmul.msk.bf16.vlgmr.msrb.gmra.mxu3 %vm526_vm0, %v16835_v6  ;;  %4402 = vmatpush.bf16.msrb.mxu2 %v11070_v29  ;;  %v11038_v22 = vor.u32 %v13810_v42, %v11035_v7  ;;  %v13921_v29 = vld [vmem:[%s20567_s3 + $0xea4] sm:$0xf]  ;;  %v11599_v7 = vld [vmem:[%s20567_s3 + $0xe90] sm:$0xf0]  ;;  %v11235_v56 = vld [vmem:[%s20567_s3 + $0xc78] sm:$0xf0] }
 0x27f   :  { %4389 = vmatpush.bf16.msrb.mxu1 %v11066_v1  ;;  %4521 = vmatpush.bf16.msrb.mxu3 %v11142_v55  ;;  %v11615_v1 = vld [vmem:[%s20567_s3 + $0xeb0] sm:$0xf0]  ;;  %v13917_v42 = vld [vmem:[%s20567_s3 + $0xe84] sm:$0xf] }
 0x280   :  { %v2827_v10 = vpop.f32.mrf.mxu2  ;;  %5326 = vmatpush.bf16.msrb.mxu0 %v11534_v37  ;;  %v11150_v37 = vor.u32 %v13836_v62, %v11149_v53  ;;  %v11618_v11 = vor.u32 %v13921_v29, %v11615_v1  ;;  %v11602_v12 = vor.u32 %v13917_v42, %v11599_v7  ;;  %v13850_v62 = vld [vmem:[%s20567_s3 + $0xc6c] sm:$0xf]  ;;  %v13852_v29 = vld [vmem:[%s20567_s3 + $0xc74] sm:$0xf0]  ;;  %v11309_v1 = vld [vmem:[%s20567_s3 + $0xce0] sm:$0xf] }
 0x281   :  { %v17538_v30 = vadd.f32 %v2827_v10, %v17420_v40  ;;  %v2946_v32 = vpop.f32.mrf.mxu3  ;;  %v11019_v40 = vld [vmem:[%s20567_s3 + $0xb18] sm:$0xf0]  ;;  %v11117_v10 = vld [vmem:[%s20567_s3 + $0xba8] sm:$0xf] }
 0x282   :  { %v17541_v57 = vadd.f32 %v2946_v32, %v17423_v15  ;;  %v2816_v3 = vpop.f32.mrf.mxu1  ;;  %v3907_v28 = vpop.f32.mrf.mxu0  ;;  %4403 = vmatpush.bf16.msrb.mxu2 %v11054_v9  ;;  %v11034_v15 = vor.u32 %v13812_v52, %v11033_v49  ;;  %v11022_v48 = vor.u32 %v13806_v35, %v11019_v40  ;;  %v13847_v9 = vld [vmem:[%s20567_s3 + $0xc4c] sm:$0xf0]  ;;  %v13826_v49 = vld [vmem:[%s20567_s3 + $0xbac] sm:$0xf]  ;;  %v11731_v52 = vld [vmem:[%s20567_s3 + $0xf70] sm:$0xf0] }
 0x283   :  { %v17552_v2 = vadd.f32 %v3907_v28, %v17434_v43  ;;  %4390 = vmatpush.bf16.msrb.mxu1 %v11050_v0  ;;  %4522 = vmatpush.bf16.msrb.mxu3 %v11126_v13  ;;  %v13808_v43 = vld [vmem:[%s20567_s3 + $0xb14] sm:$0xf0]  ;;  %v11138_v13 = vor.u32 %v13830_v54, %v11135_v44  ;;  %v11210_v61 = vor.u32 %v13847_v9, %v11209_v18  ;;  %v11193_v3 = vld [vmem:[%s20567_s3 + $0xc20] sm:$0xf]  ;;  %v13843_v28 = vld [vmem:[%s20567_s3 + $0xc2c] sm:$0xf0] }
 0x284   :  { %5327 = vmatpush.bf16.msrb.mxu0 %v11518_v21  ;;  %v11018_v59 = vor.u32 %v13808_v43, %v11017_v8  ;;  %v5205_v0 = vld [vmem:[#allocation2 + $0x38] sm:$0x3]  ;;  %v13945_v21 = vld [vmem:[%s20567_s3 + $0xf64] sm:$0xf]  ;;  %v11194_v31 = vor.u32 %v13843_v28, %v11193_v3  ;;  %v11238_v44 = vor.u32 %v13850_v62, %v11235_v56  ;;  %v13846_v18 = vld [vmem:[%s20567_s3 + $0xc4c] sm:$0xf] }
 0x285   :  { %11492 = vmatmul.msk.bf16.vlgmr.msra.gmra.mxu0 %vm526_vm0, %v17543_v20  ;;  %v13828_v32 = vld [vmem:[%s20567_s3 + $0xbb4] sm:$0xf0]  ;;  %v11734_v46 = vor.u32 %v13945_v21, %v11731_v52  ;;  %v11219_v9 = vld [vmem:[%s20567_s3 + $0xc58] sm:$0xf0]  ;;  %v11217_v42 = vld [vmem:[%s20567_s3 + $0xc48] sm:$0xf] }
 0x286   :  { %4404 = vmatpush.bf16.msrb.mxu2 %v11038_v22 }
 0x287   :  { %4391 = vmatpush.bf16.msrb.mxu1 %v11034_v15  ;;  %4523 = vmatpush.bf16.msrb.mxu3 %v11110_v19  ;;  %v17661_v19 = vpack.c.bf16 %v5205_v0, %v5205_v0  ;;  %v11293_v0 = vld [vmem:[%s20567_s3 + $0xcc0] sm:$0xf] }
 0x288   :  { %5482 = vmatpush.bf16.msra.mxu0 %v11650_v16  ;;  %v2829_v58 = vpop.f32.mrf.mxu2 }
 0x289   :  { %v2948_v36 = vpop.f32.mrf.mxu3 }
 0x28a   :  { %v2972_v55 = vpop.f32.mrf.mxu1  ;;  %v3909_v45 = vpop.f32.mrf.mxu0  ;;  %4405 = vmatpush.bf16.msrb.mxu2 %v11022_v48  ;;  %v13941_v48 = vld [vmem:[%s20567_s3 + $0xf44] sm:$0xf] }
 0x28b   :  { %v17599_v41 = vadd.f32 %v2972_v55, %v17481_v17  ;;  %4392 = vmatpush.bf16.msrb.mxu1 %v11018_v59  ;;  %4524 = vmatpush.bf16.msrb.mxu3 %v11094_v27  ;;  %v13832_v17 = vld [vmem:[%s20567_s3 + $0xbd4] sm:$0xf0]  ;;  %v11177_v59 = vld [vmem:[%s20567_s3 + $0xc00] sm:$0xf]  ;;  %v13839_v27 = vld [vmem:[%s20567_s3 + $0xc0c] sm:$0xf0] }
 0x28c   :  { %5483 = vmatpush.bf16.msra.mxu0 %v11634_v24  ;;  %v11134_v60 = vor.u32 %v13832_v17, %v11133_v5  ;;  %v11715_v24 = vld [vmem:[%s20567_s3 + $0xf50] sm:$0xf0]  ;;  %v11178_v58 = vor.u32 %v13839_v27, %v11177_v59  ;;  %v13867_v55 = vld [vmem:[%s20567_s3 + $0xcec] sm:$0xf0]  ;;  %v11185_v27 = vld [vmem:[%s20567_s3 + $0xc08] sm:$0xf] }
 0x28d   :  { %10989 = vmatmul.msk.bf16.vlgmr.msra.gmra.mxu1 %vm526_vm0, %v16835_v6  ;;  %10990 = vmatmul.msk.bf16.vlgmr.msra.gmra.mxu2 %vm526_vm0, %v16835_v6  ;;  %v11119_v6 = vld [vmem:[%s20567_s3 + $0xbb8] sm:$0xf0]  ;;  %v11718_v33 = vor.u32 %v13941_v48, %v11715_v24  ;;  %v11310_v17 = vor.u32 %v13867_v55, %v11309_v1  ;;  %v13838_v24 = vld [vmem:[%s20567_s3 + $0xc0c] sm:$0xf]  ;;  %v11317_v55 = vld [vmem:[%s20567_s3 + $0xce8] sm:$0xf] }
 0x28e   :  { %11071 = vmatmul.msk.bf16.vlgmr.msra.gmra.mxu3 %vm526_vm0, %v16953_v39  ;;  %4560 = vmatpush.bf16.msra.mxu2 %v11154_v63  ;;  %v11122_v8 = vor.u32 %v13826_v49, %v11119_v6  ;;  %v13937_v63 = vld [vmem:[%s20567_s3 + $0xf24] sm:$0xf]  ;;  %v11683_v6 = vld [vmem:[%s20567_s3 + $0xf10] sm:$0xf0]  ;;  %v11319_v1 = vld [vmem:[%s20567_s3 + $0xcf8] sm:$0xf0] }
 0x28f   :  { %4547 = vmatpush.bf16.msra.mxu1 %v11150_v37  ;;  %4679 = vmatpush.bf16.msra.mxu3 %v11226_v4  ;;  %v11699_v37 = vld [vmem:[%s20567_s3 + $0xf30] sm:$0xf0]  ;;  %v13933_v49 = vld [vmem:[%s20567_s3 + $0xf04] sm:$0xf] }
 0x290   :  { %v2985_v25 = vpop.f32.mrf.mxu2  ;;  %5484 = vmatpush.bf16.msra.mxu0 %v11618_v11  ;;  %v11234_v11 = vor.u32 %v13852_v29, %v11233_v50  ;;  %v11702_v7 = vor.u32 %v13937_v63, %v11699_v37  ;;  %v11686_v28 = vor.u32 %v13933_v49, %v11683_v6  ;;  %v13866_v29 = vld [vmem:[%s20567_s3 + $0xcec] sm:$0xf]  ;;  %v13868_v63 = vld [vmem:[%s20567_s3 + $0xcf4] sm:$0xf0]  ;;  %v11393_v37 = vld [vmem:[%s20567_s3 + $0xd60] sm:$0xf] }
 0x291   :  { %v17656_v22 = vadd.f32 %v2985_v25, %v17538_v30  ;;  %v3104_v16 = vpop.f32.mrf.mxu3  ;;  %v11103_v30 = vld [vmem:[%s20567_s3 + $0xb98] sm:$0xf0]  ;;  %v11201_v25 = vld [vmem:[%s20567_s3 + $0xc28] sm:$0xf] }
 0x292   :  { %v17659_v35 = vadd.f32 %v3104_v16, %v17541_v57  ;;  %v2974_v40 = vpop.f32.mrf.mxu1  ;;  %v4065_v15 = vpop.f32.mrf.mxu0  ;;  %4561 = vmatpush.bf16.msra.mxu2 %v11138_v13  ;;  %v11118_v57 = vor.u32 %v13828_v32, %v11117_v10  ;;  %v11106_v51 = vor.u32 %v13822_v34, %v11103_v30  ;;  %v13863_v13 = vld [vmem:[%s20567_s3 + $0xccc] sm:$0xf0]  ;;  %v13842_v10 = vld [vmem:[%s20567_s3 + $0xc2c] sm:$0xf]  ;;  %v11815_v32 = vld [vmem:[%s20567_s3 + $0xff0] sm:$0xf0] }
 0x293   :  { %v17670_v43 = vadd.f32 %v4065_v15, %v17552_v2  ;;  %4548 = vmatpush.bf16.msra.mxu1 %v11134_v60  ;;  %4680 = vmatpush.bf16.msra.mxu3 %v11210_v61  ;;  %v13824_v2 = vld [vmem:[%s20567_s3 + $0xb94] sm:$0xf0]  ;;  %v11222_v61 = vor.u32 %v13846_v18, %v11219_v9  ;;  %v11294_v52 = vor.u32 %v13863_v13, %v11293_v0  ;;  %v11277_v40 = vld [vmem:[%s20567_s3 + $0xca0] sm:$0xf]  ;;  %v13859_v15 = vld [vmem:[%s20567_s3 + $0xcac] sm:$0xf0] }
 0x294   :  { %5485 = vmatpush.bf16.msra.mxu0 %v11602_v12  ;;  %v11102_v53 = vor.u32 %v13824_v2, %v11101_v47  ;;  %v5363_v60 = vld [vmem:[#allocation2 + $0x3a] sm:$0x3]  ;;  %v13961_v12 = vld [vmem:[%s20567_s3 + $0xfe4] sm:$0xf]  ;;  %v11278_v59 = vor.u32 %v13859_v15, %v11277_v40  ;;  %v11322_v9 = vor.u32 %v13866_v29, %v11319_v1  ;;  %v13862_v0 = vld [vmem:[%s20567_s3 + $0xccc] sm:$0xf] }
 0x295   :  { %11576 = vmatmul.msk.bf16.vlgmr.msrb.gmra.mxu0 %vm526_vm0, %v17661_v19  ;;  %v13844_v16 = vld [vmem:[%s20567_s3 + $0xc34] sm:$0xf0]  ;;  %v11818_v48 = vor.u32 %v13961_v12, %v11815_v32  ;;  %v11303_v13 = vld [vmem:[%s20567_s3 + $0xcd8] sm:$0xf0]  ;;  %v11301_v49 = vld [vmem:[%s20567_s3 + $0xcc8] sm:$0xf] }
 0x296   :  { %4562 = vmatpush.bf16.msra.mxu2 %v11122_v8 }
 0x297   :  { %4549 = vmatpush.bf16.msra.mxu1 %v11118_v57  ;;  %4681 = vmatpush.bf16.msra.mxu3 %v11194_v31  ;;  %v17779_v31 = vpack.c.bf16 %v5363_v60, %v5363_v60  ;;  %v11377_v60 = vld [vmem:[%s20567_s3 + $0xd40] sm:$0xf] }
 0x298   :  { %5640 = vmatpush.bf16.msrb.mxu0 %v11734_v46  ;;  %v2987_v36 = vpop.f32.mrf.mxu2 }
 0x299   :  { %v3106_v45 = vpop.f32.mrf.mxu3 }
 0x29a   :  { %v3130_v4 = vpop.f32.mrf.mxu1  ;;  %v4067_v54 = vpop.f32.mrf.mxu0  ;;  %4563 = vmatpush.bf16.msra.mxu2 %v11106_v51  ;;  %v13957_v51 = vld [vmem:[%s20567_s3 + $0xfc4] sm:$0xf] }
 0x29b   :  { %v17717_v5 = vadd.f32 %v3130_v4, %v17599_v41  ;;  %4550 = vmatpush.bf16.msra.mxu1 %v11102_v53  ;;  %4682 = vmatpush.bf16.msra.mxu3 %v11178_v58  ;;  %v13848_v41 = vld [vmem:[%s20567_s3 + $0xc54] sm:$0xf0]  ;;  %v11261_v53 = vld [vmem:[%s20567_s3 + $0xc80] sm:$0xf]  ;;  %v13855_v58 = vld [vmem:[%s20567_s3 + $0xc8c] sm:$0xf0] }
 0x29c   :  { %5641 = vmatpush.bf16.msrb.mxu0 %v11718_v33  ;;  %v11218_v21 = vor.u32 %v13848_v41, %v11217_v42  ;;  %v11799_v33 = vld [vmem:[%s20567_s3 + $0xfd0] sm:$0xf0]  ;;  %v11262_v36 = vor.u32 %v13855_v58, %v11261_v53  ;;  %v13883_v4 = vld [vmem:[%s20567_s3 + $0xd6c] sm:$0xf0]  ;;  %v11269_v58 = vld [vmem:[%s20567_s3 + $0xc88] sm:$0xf] }
 0x29d   :  { %11073 = vmatmul.msk.bf16.vlgmr.msrb.gmra.mxu1 %vm526_vm0, %v16953_v39  ;;  %11074 = vmatmul.msk.bf16.vlgmr.msrb.gmra.mxu2 %vm526_vm0, %v16953_v39  ;;  %v11203_v39 = vld [vmem:[%s20567_s3 + $0xc38] sm:$0xf0]  ;;  %v11802_v56 = vor.u32 %v13957_v51, %v11799_v33  ;;  %v11394_v41 = vor.u32 %v13883_v4, %v11393_v37  ;;  %v13854_v33 = vld [vmem:[%s20567_s3 + $0xc8c] sm:$0xf]  ;;  %v11401_v4 = vld [vmem:[%s20567_s3 + $0xd68] sm:$0xf] }
 0x29e   :  { %11155 = vmatmul.msk.bf16.vlgmr.msrb.gmra.mxu3 %vm526_vm0, %v17071_v38  ;;  %4718 = vmatpush.bf16.msrb.mxu2 %v11238_v44  ;;  %v11206_v47 = vor.u32 %v13842_v10, %v11203_v39  ;;  %v13953_v44 = vld [vmem:[%s20567_s3 + $0xfa4] sm:$0xf]  ;;  %v11767_v39 = vld [vmem:[%s20567_s3 + $0xf90] sm:$0xf0]  ;;  %v11403_v37 = vld [vmem:[%s20567_s3 + $0xd78] sm:$0xf0] }
 0x29f   :  { %4705 = vmatpush.bf16.msrb.mxu1 %v11234_v11  ;;  %4837 = vmatpush.bf16.msrb.mxu3 %v11310_v17  ;;  %v11783_v11 = vld [vmem:[%s20567_s3 + $0xfb0] sm:$0xf0]  ;;  %v13949_v10 = vld [vmem:[%s20567_s3 + $0xf84] sm:$0xf] }
 0x2a0   :  { %v3143_v3 = vpop.f32.mrf.mxu2  ;;  %5642 = vmatpush.bf16.msrb.mxu0 %v11702_v7  ;;  %v11318_v7 = vor.u32 %v13868_v63, %v11317_v55  ;;  %v11786_v6 = vor.u32 %v13953_v44, %v11783_v11  ;;  %v11770_v15 = vor.u32 %v13949_v10, %v11767_v39  ;;  %v13882_v63 = vld [vmem:[%s20567_s3 + $0xd6c] sm:$0xf]  ;;  %v13884_v44 = vld [vmem:[%s20567_s3 + $0xd74] sm:$0xf0]  ;;  %v11477_v11 = vld [vmem:[%s20567_s3 + $0xde0] sm:$0xf] }
 0x2a1   :  { %v17774_v8 = vadd.f32 %v3143_v3, %v17656_v22  ;;  %v3262_v46 = vpop.f32.mrf.mxu3  ;;  %v11187_v22 = vld [vmem:[%s20567_s3 + $0xc18] sm:$0xf0]  ;;  %v11285_v3 = vld [vmem:[%s20567_s3 + $0xca8] sm:$0xf] }
 0x2a2   :  { %v17777_v34 = vadd.f32 %v3262_v46, %v17659_v35  ;;  %v3132_v30 = vpop.f32.mrf.mxu1  ;;  %v4223_v57 = vpop.f32.mrf.mxu0  ;;  %4719 = vmatpush.bf16.msrb.mxu2 %v11222_v61  ;;  %v11202_v35 = vor.u32 %v13844_v16, %v11201_v25  ;;  %v11190_v62 = vor.u32 %v13838_v24, %v11187_v22  ;;  %v13879_v61 = vld [vmem:[%s20567_s3 + $0xd4c] sm:$0xf0]  ;;  %v13858_v25 = vld [vmem:[%s20567_s3 + $0xcac] sm:$0xf]  ;;  %v11899_v16 = vld [vmem:[%s20567_s3 + $0x1070] sm:$0xf0] }
 0x2a3   :  { %v17788_v2 = vadd.f32 %v4223_v57, %v17670_v43  ;;  %4706 = vmatpush.bf16.msrb.mxu1 %v11218_v21  ;;  %4838 = vmatpush.bf16.msrb.mxu3 %v11294_v52  ;;  %v13840_v43 = vld [vmem:[%s20567_s3 + $0xc14] sm:$0xf0]  ;;  %v5521_v21 = vld [vmem:[#allocation2 + $0x3c] sm:$0x3]  ;;  %v11306_v52 = vor.u32 %v13862_v0, %v11303_v13  ;;  %v11378_v32 = vor.u32 %v13879_v61, %v11377_v60  ;;  %v11361_v30 = vld [vmem:[%s20567_s3 + $0xd20] sm:$0xf] }
 0x2a4   :  { %5643 = vmatpush.bf16.msrb.mxu0 %v11686_v28  ;;  %v11186_v50 = vor.u32 %v13840_v43, %v11185_v27  ;;  %v13977_v28 = vld [vmem:[%s20567_s3 + $0x1064] sm:$0xf]  ;;  %v13860_v46 = vld [vmem:[%s20567_s3 + $0xcb4] sm:$0xf0]  ;;  %v13875_v57 = vld [vmem:[%s20567_s3 + $0xd2c] sm:$0xf0]  ;;  %v11406_v13 = vor.u32 %v13882_v63, %v11403_v37 }
 0x2a5   :  { %11660 = vmatmul.msk.bf16.vlgmr.msra.gmra.mxu0 %vm526_vm0, %v17779_v31  ;;  %v11902_v51 = vor.u32 %v13977_v28, %v11899_v16  ;;  %v11362_v53 = vor.u32 %v13875_v57, %v11361_v30  ;;  %v13878_v60 = vld [vmem:[%s20567_s3 + $0xd4c] sm:$0xf]  ;;  %v11387_v61 = vld [vmem:[%s20567_s3 + $0xd58] sm:$0xf0]  ;;  %v11385_v10 = vld [vmem:[%s20567_s3 + $0xd48] sm:$0xf] }
 0x2a6   :  { %4720 = vmatpush.bf16.msrb.mxu2 %v11206_v47 }
 0x2a7   :  { %4707 = vmatpush.bf16.msrb.mxu1 %v11202_v35  ;;  %4839 = vmatpush.bf16.msrb.mxu3 %v11278_v59  ;;  %v17897_v59 = vpack.c.bf16 %v5521_v21, %v5521_v21  ;;  %v11461_v21 = vld [vmem:[%s20567_s3 + $0xdc0] sm:$0xf] }
 0x2a8   :  { %5798 = vmatpush.bf16.msra.mxu0 %v11818_v48  ;;  %v3145_v45 = vpop.f32.mrf.mxu2 }
 0x2a9   :  { %v3264_v54 = vpop.f32.mrf.mxu3 }
 0x2aa   :  { %v3288_v17 = vpop.f32.mrf.mxu1  ;;  %v4225_v18 = vpop.f32.mrf.mxu0  ;;  %4721 = vmatpush.bf16.msrb.mxu2 %v11190_v62  ;;  %v13973_v62 = vld [vmem:[%s20567_s3 + $0x1044] sm:$0xf] }
 0x2ab   :  { %v17835_v42 = vadd.f32 %v3288_v17, %v17717_v5  ;;  %4708 = vmatpush.bf16.msrb.mxu1 %v11186_v50  ;;  %4840 = vmatpush.bf16.msrb.mxu3 %v11262_v36  ;;  %v13864_v5 = vld [vmem:[%s20567_s3 + $0xcd4] sm:$0xf0]  ;;  %v11345_v50 = vld [vmem:[%s20567_s3 + $0xd00] sm:$0xf]  ;;  %v13871_v36 = vld [vmem:[%s20567_s3 + $0xd0c] sm:$0xf0] }
 0x2ac   :  { %5799 = vmatpush.bf16.msra.mxu0 %v11802_v56  ;;  %v11302_v12 = vor.u32 %v13864_v5, %v11301_v49  ;;  %v11883_v56 = vld [vmem:[%s20567_s3 + $0x1050] sm:$0xf0]  ;;  %v11346_v45 = vor.u32 %v13871_v36, %v11345_v50  ;;  %v13899_v17 = vld [vmem:[%s20567_s3 + $0xdec] sm:$0xf0]  ;;  %v11353_v36 = vld [vmem:[%s20567_s3 + $0xd08] sm:$0xf] }
 0x2ad   :  { %11157 = vmatmul.msk.bf16.vlgmr.msra.gmra.mxu1 %vm526_vm0, %v17071_v38  ;;  %11158 = vmatmul.msk.bf16.vlgmr.msra.gmra.mxu2 %vm526_vm0, %v17071_v38  ;;  %v11287_v38 = vld [vmem:[%s20567_s3 + $0xcb8] sm:$0xf0]  ;;  %v11886_v1 = vor.u32 %v13973_v62, %v11883_v56  ;;  %v11478_v5 = vor.u32 %v13899_v17, %v11477_v11  ;;  %v13870_v56 = vld [vmem:[%s20567_s3 + $0xd0c] sm:$0xf]  ;;  %v11485_v17 = vld [vmem:[%s20567_s3 + $0xde8] sm:$0xf] }
 0x2ae   :  { %11239 = vmatmul.msk.bf16.vlgmr.msra.gmra.mxu3 %vm526_vm0, %v17189_v23  ;;  %4876 = vmatpush.bf16.msra.mxu2 %v11322_v9  ;;  %v11290_v27 = vor.u32 %v13858_v25, %v11287_v38  ;;  %v13969_v9 = vld [vmem:[%s20567_s3 + $0x1024] sm:$0xf]  ;;  %v11851_v38 = vld [vmem:[%s20567_s3 + $0x1010] sm:$0xf0]  ;;  %v11487_v11 = vld [vmem:[%s20567_s3 + $0xdf8] sm:$0xf0] }
 0x2af   :  { %4863 = vmatpush.bf16.msra.mxu1 %v11318_v7  ;;  %4995 = vmatpush.bf16.msra.mxu3 %v11394_v41  ;;  %v11867_v7 = vld [vmem:[%s20567_s3 + $0x1030] sm:$0xf0]  ;;  %v13965_v25 = vld [vmem:[%s20567_s3 + $0x1004] sm:$0xf] }
 0x2b0   :  { %v3301_v40 = vpop.f32.mrf.mxu2  ;;  %5800 = vmatpush.bf16.msra.mxu0 %v11786_v6  ;;  %v11402_v6 = vor.u32 %v13884_v44, %v11401_v4  ;;  %v11870_v39 = vor.u32 %v13969_v9, %v11867_v7  ;;  %v11854_v57 = vor.u32 %v13965_v25, %v11851_v38  ;;  %v13898_v44 = vld [vmem:[%s20567_s3 + $0xdec] sm:$0xf]  ;;  %v13900_v9 = vld [vmem:[%s20567_s3 + $0xdf4] sm:$0xf0]  ;;  %v11561_v7 = vld [vmem:[%s20567_s3 + $0xe60] sm:$0xf] }
 0x2b1   :  { %v17892_v47 = vadd.f32 %v3301_v40, %v17774_v8  ;;  %v3420_v48 = vpop.f32.mrf.mxu3  ;;  %v11271_v8 = vld [vmem:[%s20567_s3 + $0xc98] sm:$0xf0]  ;;  %v11369_v40 = vld [vmem:[%s20567_s3 + $0xd28] sm:$0xf] }
 0x2b2   :  { %v17895_v24 = vadd.f32 %v3420_v48, %v17777_v34  ;;  %v3290_v22 = vpop.f32.mrf.mxu1  ;;  %v4381_v35 = vpop.f32.mrf.mxu0  ;;  %4877 = vmatpush.bf16.msra.mxu2 %v11306_v52  ;;  %v11286_v34 = vor.u32 %v13860_v46, %v11285_v3  ;;  %v11274_v29 = vor.u32 %v13854_v33, %v11271_v8  ;;  %v13895_v52 = vld [vmem:[%s20567_s3 + $0xdcc] sm:$0xf0]  ;;  %v13874_v3 = vld [vmem:[%s20567_s3 + $0xd2c] sm:$0xf]  ;;  %v11983_v46 = vld [vmem:[%s20567_s3 + $0x10f0] sm:$0xf0] }
 0x2b3   :  { %v17906_v43 = vadd.f32 %v4381_v35, %v17788_v2  ;;  %4864 = vmatpush.bf16.msra.mxu1 %v11302_v12  ;;  %4996 = vmatpush.bf16.msra.mxu3 %v11378_v32  ;;  %v13856_v2 = vld [vmem:[%s20567_s3 + $0xc94] sm:$0xf0]  ;;  %v5679_v12 = vld [vmem:[#allocation2 + $0x3e] sm:$0x3]  ;;  %v11390_v32 = vor.u32 %v13878_v60, %v11387_v61  ;;  %v11462_v16 = vor.u32 %v13895_v52, %v11461_v21  ;;  %v11445_v22 = vld [vmem:[%s20567_s3 + $0xda0] sm:$0xf] }
 0x2b4   :  { %5801 = vmatpush.bf16.msra.mxu0 %v11770_v15  ;;  %v11270_v55 = vor.u32 %v13856_v2, %v11269_v58  ;;  %v13993_v15 = vld [vmem:[%s20567_s3 + $0x10e4] sm:$0xf]  ;;  %v13876_v48 = vld [vmem:[%s20567_s3 + $0xd34] sm:$0xf0]  ;;  %v13891_v35 = vld [vmem:[%s20567_s3 + $0xdac] sm:$0xf0]  ;;  %v11490_v61 = vor.u32 %v13898_v44, %v11487_v11 }
 0x2b5   :  { %11744 = vmatmul.msk.bf16.vlgmr.msrb.gmra.mxu0 %vm526_vm0, %v17897_v59  ;;  %v11986_v62 = vor.u32 %v13993_v15, %v11983_v46  ;;  %v11446_v50 = vor.u32 %v13891_v35, %v11445_v22  ;;  %v13894_v21 = vld [vmem:[%s20567_s3 + $0xdcc] sm:$0xf]  ;;  %v11471_v52 = vld [vmem:[%s20567_s3 + $0xdd8] sm:$0xf0]  ;;  %v11469_v25 = vld [vmem:[%s20567_s3 + $0xdc8] sm:$0xf] }
 0x2b6   :  { %4878 = vmatpush.bf16.msra.mxu2 %v11290_v27 }
 0x2b7   :  { %4865 = vmatpush.bf16.msra.mxu1 %v11286_v34  ;;  %4997 = vmatpush.bf16.msra.mxu3 %v11362_v53  ;;  %v18015_v53 = vpack.c.bf16 %v5679_v12, %v5679_v12  ;;  %v11545_v12 = vld [vmem:[%s20567_s3 + $0xe40] sm:$0xf] }
 0x2b8   :  { %5956 = vmatpush.bf16.msrb.mxu0 %v11902_v51  ;;  %v3303_v54 = vpop.f32.mrf.mxu2 }
 0x2b9   :  { %v3422_v18 = vpop.f32.mrf.mxu3 }
 0x2ba   :  { %v3446_v41 = vpop.f32.mrf.mxu1  ;;  %v4383_v0 = vpop.f32.mrf.mxu0  ;;  %4879 = vmatpush.bf16.msra.mxu2 %v11274_v29  ;;  %v13989_v29 = vld [vmem:[%s20567_s3 + $0x10c4] sm:$0xf] }
 0x2bb   :  { %v17953_v49 = vadd.f32 %v3446_v41, %v17835_v42  ;;  %4866 = vmatpush.bf16.msra.mxu1 %v11270_v55  ;;  %4998 = vmatpush.bf16.msra.mxu3 %v11346_v45  ;;  %v13880_v42 = vld [vmem:[%s20567_s3 + $0xd54] sm:$0xf0]  ;;  %v11429_v55 = vld [vmem:[%s20567_s3 + $0xd80] sm:$0xf]  ;;  %v13887_v45 = vld [vmem:[%s20567_s3 + $0xd8c] sm:$0xf0] }
 0x2bc   :  { %5957 = vmatpush.bf16.msrb.mxu0 %v11886_v1  ;;  %v11386_v28 = vor.u32 %v13880_v42, %v11385_v10  ;;  %v11967_v1 = vld [vmem:[%s20567_s3 + $0x10d0] sm:$0xf0]  ;;  %v11430_v54 = vor.u32 %v13887_v45, %v11429_v55  ;;  %v13915_v41 = vld [vmem:[%s20567_s3 + $0xe6c] sm:$0xf0]  ;;  %v11437_v45 = vld [vmem:[%s20567_s3 + $0xd88] sm:$0xf] }
 0x2bd   :  { %11241 = vmatmul.msk.bf16.vlgmr.msrb.gmra.mxu1 %vm526_vm0, %v17189_v23  ;;  %11242 = vmatmul.msk.bf16.vlgmr.msrb.gmra.mxu2 %vm526_vm0, %v17189_v23  ;;  %v11371_v23 = vld [vmem:[%s20567_s3 + $0xd38] sm:$0xf0]  ;;  %v11970_v37 = vor.u32 %v13989_v29, %v11967_v1  ;;  %v11562_v42 = vor.u32 %v13915_v41, %v11561_v7  ;;  %v13886_v1 = vld [vmem:[%s20567_s3 + $0xd8c] sm:$0xf]  ;;  %v11569_v41 = vld [vmem:[%s20567_s3 + $0xe68] sm:$0xf] }
 0x2be   :  { %11323 = vmatmul.msk.bf16.vlgmr.msrb.gmra.mxu3 %vm526_vm0, %v17307_v26  ;;  %5034 = vmatpush.bf16.msrb.mxu2 %v11406_v13  ;;  %v11374_v58 = vor.u32 %v13874_v3, %v11371_v23  ;;  %v13985_v13 = vld [vmem:[%s20567_s3 + $0x10a4] sm:$0xf]  ;;  %v11935_v23 = vld [vmem:[%s20567_s3 + $0x1090] sm:$0xf0]  ;;  %v11571_v7 = vld [vmem:[%s20567_s3 + $0xe78] sm:$0xf0] }
 0x2bf   :  { %5021 = vmatpush.bf16.msrb.mxu1 %v11402_v6  ;;  %5153 = vmatpush.bf16.msrb.mxu3 %v11478_v5  ;;  %v11951_v6 = vld [vmem:[%s20567_s3 + $0x10b0] sm:$0xf0]  ;;  %v13981_v3 = vld [vmem:[%s20567_s3 + $0x1084] sm:$0xf] }
 0x2c0   :  { %v3459_v30 = vpop.f32.mrf.mxu2  ;;  %5958 = vmatpush.bf16.msrb.mxu0 %v11870_v39  ;;  %v11486_v39 = vor.u32 %v13900_v9, %v11485_v17  ;;  %v11954_v38 = vor.u32 %v13985_v13, %v11951_v6  ;;  %v11938_v35 = vor.u32 %v13981_v3, %v11935_v23  ;;  %v13914_v9 = vld [vmem:[%s20567_s3 + $0xe6c] sm:$0xf]  ;;  %v13916_v13 = vld [vmem:[%s20567_s3 + $0xe74] sm:$0xf0]  ;;  %v11645_v6 = vld [vmem:[%s20567_s3 + $0xee0] sm:$0xf] }
 0x2c1   :  { %v18010_v27 = vadd.f32 %v3459_v30, %v17892_v47  ;;  %v3578_v51 = vpop.f32.mrf.mxu3  ;;  %v11355_v47 = vld [vmem:[%s20567_s3 + $0xd18] sm:$0xf0]  ;;  %v11453_v30 = vld [vmem:[%s20567_s3 + $0xda8] sm:$0xf] }
 0x2c2   :  { %v18013_v33 = vadd.f32 %v3578_v51, %v17895_v24  ;;  %v3448_v8 = vpop.f32.mrf.mxu1  ;;  %v4539_v34 = vpop.f32.mrf.mxu0  ;;  %5035 = vmatpush.bf16.msrb.mxu2 %v11390_v32  ;;  %v11370_v24 = vor.u32 %v13876_v48, %v11369_v40  ;;  %v11358_v63 = vor.u32 %v13870_v56, %v11355_v47  ;;  %v13911_v32 = vld [vmem:[%s20567_s3 + $0xe4c] sm:$0xf0]  ;;  %v13890_v40 = vld [vmem:[%s20567_s3 + $0xdac] sm:$0xf]  ;;  %v12067_v48 = vld [vmem:[%s20567_s3 + $0x1170] sm:$0xf0] }
 0x2c3   :  { %v18024_v2 = vadd.f32 %v4539_v34, %v17906_v43  ;;  %5022 = vmatpush.bf16.msrb.mxu1 %v11386_v28  ;;  %5154 = vmatpush.bf16.msrb.mxu3 %v11462_v16  ;;  %v13872_v43 = vld [vmem:[%s20567_s3 + $0xd14] sm:$0xf0]  ;;  %v5837_v28 = vld [vmem:[#allocation2 + $0x40] sm:$0x3]  ;;  %v11474_v16 = vor.u32 %v13894_v21, %v11471_v52  ;;  %v11546_v46 = vor.u32 %v13911_v32, %v11545_v12  ;;  %v13907_v34 = vld [vmem:[%s20567_s3 + $0xe2c] sm:$0xf0] }
 0x2c4   :  { %5959 = vmatpush.bf16.msrb.mxu0 %v11854_v57  ;;  %v11354_v4 = vor.u32 %v13872_v43, %v11353_v36  ;;  %v14009_v57 = vld [vmem:[%s20567_s3 + $0x1164] sm:$0xf]  ;;  %v13892_v51 = vld [vmem:[%s20567_s3 + $0xdb4] sm:$0xf0]  ;;  %v11529_v8 = vld [vmem:[%s20567_s3 + $0xe20] sm:$0xf]  ;;  %v11574_v52 = vor.u32 %v13914_v9, %v11571_v7 }
 0x2c5   :  { %11828 = vmatmul.msk.bf16.vlgmr.msra.gmra.mxu0 %vm526_vm0, %v18015_v53  ;;  %v12070_v29 = vor.u32 %v14009_v57, %v12067_v48  ;;  %v11530_v55 = vor.u32 %v13907_v34, %v11529_v8  ;;  %v13910_v12 = vld [vmem:[%s20567_s3 + $0xe4c] sm:$0xf]  ;;  %v11555_v32 = vld [vmem:[%s20567_s3 + $0xe58] sm:$0xf0]  ;;  %v11553_v3 = vld [vmem:[%s20567_s3 + $0xe48] sm:$0xf] }
 0x2c6   :  { %5036 = vmatpush.bf16.msrb.mxu2 %v11374_v58 }
 0x2c7   :  { %5023 = vmatpush.bf16.msrb.mxu1 %v11370_v24  ;;  %5155 = vmatpush.bf16.msrb.mxu3 %v11446_v50  ;;  %v18133_v50 = vpack.c.bf16 %v5837_v28, %v5837_v28  ;;  %v11629_v28 = vld [vmem:[%s20567_s3 + $0xec0] sm:$0xf] }
 0x2c8   :  { %6114 = vmatpush.bf16.msra.mxu0 %v11986_v62  ;;  %v3461_v18 = vpop.f32.mrf.mxu2 }
 0x2c9   :  { %v3580_v0 = vpop.f32.mrf.mxu3 }
 0x2ca   :  { %v3604_v5 = vpop.f32.mrf.mxu1  ;;  %v4541_v60 = vpop.f32.mrf.mxu0  ;;  %5037 = vmatpush.bf16.msrb.mxu2 %v11358_v63  ;;  %v14005_v63 = vld [vmem:[%s20567_s3 + $0x1144] sm:$0xf] }
 0x2cb   :  { %v18071_v10 = vadd.f32 %v3604_v5, %v17953_v49  ;;  %5024 = vmatpush.bf16.msrb.mxu1 %v11354_v4  ;;  %5156 = vmatpush.bf16.msrb.mxu3 %v11430_v54  ;;  %v13896_v49 = vld [vmem:[%s20567_s3 + $0xdd4] sm:$0xf0]  ;;  %v11513_v4 = vld [vmem:[%s20567_s3 + $0xe00] sm:$0xf]  ;;  %v13903_v54 = vld [vmem:[%s20567_s3 + $0xe0c] sm:$0xf0] }
 0x2cc   :  { %6115 = vmatpush.bf16.msra.mxu0 %v11970_v37  ;;  %v11470_v15 = vor.u32 %v13896_v49, %v11469_v25  ;;  %v12051_v37 = vld [vmem:[%s20567_s3 + $0x1150] sm:$0xf0]  ;;  %v11514_v18 = vor.u32 %v13903_v54, %v11513_v4  ;;  %v13931_v5 = vld [vmem:[%s20567_s3 + $0xeec] sm:$0xf0]  ;;  %v11521_v54 = vld [vmem:[%s20567_s3 + $0xe08] sm:$0xf] }
 0x2cd   :  { %11325 = vmatmul.msk.bf16.vlgmr.msra.gmra.mxu1 %vm526_vm0, %v17307_v26  ;;  %11326 = vmatmul.msk.bf16.vlgmr.msra.gmra.mxu2 %vm526_vm0, %v17307_v26  ;;  %v11455_v26 = vld [vmem:[%s20567_s3 + $0xdb8] sm:$0xf0]  ;;  %v12054_v11 = vor.u32 %v14005_v63, %v12051_v37  ;;  %v11646_v49 = vor.u32 %v13931_v5, %v11645_v6  ;;  %v13902_v37 = vld [vmem:[%s20567_s3 + $0xe0c] sm:$0xf]  ;;  %v11653_v5 = vld [vmem:[%s20567_s3 + $0xee8] sm:$0xf] }
 0x2ce   :  { %11407 = vmatmul.msk.bf16.vlgmr.msra.gmra.mxu3 %vm526_vm0, %v17425_v14  ;;  %5192 = vmatpush.bf16.msra.mxu2 %v11490_v61  ;;  %v11458_v36 = vor.u32 %v13890_v40, %v11455_v26  ;;  %v14001_v61 = vld [vmem:[%s20567_s3 + $0x1124] sm:$0xf]  ;;  %v12019_v26 = vld [vmem:[%s20567_s3 + $0x1110] sm:$0xf0]  ;;  %v11655_v6 = vld [vmem:[%s20567_s3 + $0xef8] sm:$0xf0] }
 0x2cf   :  { %5179 = vmatpush.bf16.msra.mxu1 %v11486_v39  ;;  %5311 = vmatpush.bf16.msra.mxu3 %v11562_v42  ;;  %v12035_v39 = vld [vmem:[%s20567_s3 + $0x1130] sm:$0xf0]  ;;  %v13997_v40 = vld [vmem:[%s20567_s3 + $0x1104] sm:$0xf] }
 0x2d0   :  { %v3617_v22 = vpop.f32.mrf.mxu2  ;;  %6116 = vmatpush.bf16.msra.mxu0 %v11954_v38  ;;  %v11570_v38 = vor.u32 %v13916_v13, %v11569_v41  ;;  %v12038_v23 = vor.u32 %v14001_v61, %v12035_v39  ;;  %v12022_v34 = vor.u32 %v13997_v40, %v12019_v26  ;;  %v13930_v13 = vld [vmem:[%s20567_s3 + $0xeec] sm:$0xf]  ;;  %v13932_v61 = vld [vmem:[%s20567_s3 + $0xef4] sm:$0xf0]  ;;  %v11729_v39 = vld [vmem:[%s20567_s3 + $0xf60] sm:$0xf] }
 0x2d1   :  { %v18128_v58 = vadd.f32 %v3617_v22, %v18010_v27  ;;  %v3736_v62 = vpop.f32.mrf.mxu3  ;;  %v11439_v27 = vld [vmem:[%s20567_s3 + $0xd98] sm:$0xf0]  ;;  %v11537_v22 = vld [vmem:[%s20567_s3 + $0xe28] sm:$0xf] }
 0x2d2   :  { %v18131_v56 = vadd.f32 %v3736_v62, %v18013_v33  ;;  %v3606_v47 = vpop.f32.mrf.mxu1  ;;  %v4697_v24 = vpop.f32.mrf.mxu0  ;;  %5193 = vmatpush.bf16.msra.mxu2 %v11474_v16  ;;  %v11454_v33 = vor.u32 %v13892_v51, %v11453_v30  ;;  %v11442_v44 = vor.u32 %v13886_v1, %v11439_v27  ;;  %v13927_v16 = vld [vmem:[%s20567_s3 + $0xecc] sm:$0xf0]  ;;  %v13906_v30 = vld [vmem:[%s20567_s3 + $0xe2c] sm:$0xf]  ;;  %v12151_v51 = vld [vmem:[%s20567_s3 + $0x11f0] sm:$0xf0] }
 0x2d3   :  { %v18142_v43 = vadd.f32 %v4697_v24, %v18024_v2  ;;  %5180 = vmatpush.bf16.msra.mxu1 %v11470_v15  ;;  %5312 = vmatpush.bf16.msra.mxu3 %v11546_v46  ;;  %v13888_v2 = vld [vmem:[%s20567_s3 + $0xd94] sm:$0xf0]  ;;  %v5995_v15 = vld [vmem:[#allocation2 + $0x42] sm:$0x3]  ;;  %v11558_v46 = vor.u32 %v13910_v12, %v11555_v32  ;;  %v11630_v48 = vor.u32 %v13927_v16, %v11629_v28  ;;  %v13923_v24 = vld [vmem:[%s20567_s3 + $0xeac] sm:$0xf0] }
 0x2d4   :  { %6117 = vmatpush.bf16.msra.mxu0 %v11938_v35  ;;  %v11438_v17 = vor.u32 %v13888_v2, %v11437_v45  ;;  %v14025_v35 = vld [vmem:[%s20567_s3 + $0x11e4] sm:$0xf]  ;;  %v13908_v62 = vld [vmem:[%s20567_s3 + $0xe34] sm:$0xf0]  ;;  %v11613_v47 = vld [vmem:[%s20567_s3 + $0xea0] sm:$0xf]  ;;  %v11658_v32 = vor.u32 %v13930_v13, %v11655_v6 }
 0x2d5   :  { %11912 = vmatmul.msk.bf16.vlgmr.msrb.gmra.mxu0 %vm526_vm0, %v18133_v50  ;;  %v12154_v63 = vor.u32 %v14025_v35, %v12151_v51  ;;  %v11614_v4 = vor.u32 %v13923_v24, %v11613_v47  ;;  %v13926_v28 = vld [vmem:[%s20567_s3 + $0xecc] sm:$0xf]  ;;  %v11639_v16 = vld [vmem:[%s20567_s3 + $0xed8] sm:$0xf0]  ;;  %v11637_v40 = vld [vmem:[%s20567_s3 + $0xec8] sm:$0xf] }
 0x2d6   :  { %5194 = vmatpush.bf16.msra.mxu2 %v11458_v36 }
 0x2d7   :  { %5181 = vmatpush.bf16.msra.mxu1 %v11454_v33  ;;  %5313 = vmatpush.bf16.msra.mxu3 %v11530_v55  ;;  %v18251_v55 = vpack.c.bf16 %v5995_v15, %v5995_v15  ;;  %v11713_v15 = vld [vmem:[%s20567_s3 + $0xf40] sm:$0xf] }
 0x2d8   :  { %6272 = vmatpush.bf16.msrb.mxu0 %v12070_v29  ;;  %v3619_v0 = vpop.f32.mrf.mxu2 }
 0x2d9   :  { %v3738_v60 = vpop.f32.mrf.mxu3 }
 0x2da   :  { %v3762_v42 = vpop.f32.mrf.mxu1  ;;  %v4699_v21 = vpop.f32.mrf.mxu0  ;;  %5195 = vmatpush.bf16.msra.mxu2 %v11442_v44  ;;  %v14021_v44 = vld [vmem:[%s20567_s3 + $0x11c4] sm:$0xf] }
 0x2db   :  { %v18189_v25 = vadd.f32 %v3762_v42, %v18071_v10  ;;  %5182 = vmatpush.bf16.msra.mxu1 %v11438_v17  ;;  %5314 = vmatpush.bf16.msra.mxu3 %v11514_v18  ;;  %v13912_v10 = vld [vmem:[%s20567_s3 + $0xe54] sm:$0xf0]  ;;  %v11597_v17 = vld [vmem:[%s20567_s3 + $0xe80] sm:$0xf]  ;;  %v13919_v18 = vld [vmem:[%s20567_s3 + $0xe8c] sm:$0xf0] }
 0x2dc   :  { %6273 = vmatpush.bf16.msrb.mxu0 %v12054_v11  ;;  %v11554_v57 = vor.u32 %v13912_v10, %v11553_v3  ;;  %v12135_v11 = vld [vmem:[%s20567_s3 + $0x11d0] sm:$0xf0]  ;;  %v11598_v0 = vor.u32 %v13919_v18, %v11597_v17  ;;  %v13947_v42 = vld [vmem:[%s20567_s3 + $0xf6c] sm:$0xf0]  ;;  %v11605_v18 = vld [vmem:[%s20567_s3 + $0xe88] sm:$0xf] }
 0x2dd   :  { %11409 = vmatmul.msk.bf16.vlgmr.msrb.gmra.mxu1 %vm526_vm0, %v17425_v14  ;;  %11410 = vmatmul.msk.bf16.vlgmr.msrb.gmra.mxu2 %vm526_vm0, %v17425_v14  ;;  %v11539_v14 = vld [vmem:[%s20567_s3 + $0xe38] sm:$0xf0]  ;;  %v12138_v7 = vor.u32 %v14021_v44, %v12135_v11  ;;  %v11730_v10 = vor.u32 %v13947_v42, %v11729_v39  ;;  %v13918_v11 = vld [vmem:[%s20567_s3 + $0xe8c] sm:$0xf]  ;;  %v11737_v42 = vld [vmem:[%s20567_s3 + $0xf68] sm:$0xf] }
 0x2de   :  { %11491 = vmatmul.msk.bf16.vlgmr.msrb.gmra.mxu3 %vm526_vm0, %v17543_v20  ;;  %5350 = vmatpush.bf16.msrb.mxu2 %v11574_v52  ;;  %v11542_v45 = vor.u32 %v13906_v30, %v11539_v14  ;;  %v14017_v52 = vld [vmem:[%s20567_s3 + $0x11a4] sm:$0xf]  ;;  %v12103_v14 = vld [vmem:[%s20567_s3 + $0x1190] sm:$0xf0]  ;;  %v11739_v39 = vld [vmem:[%s20567_s3 + $0xf78] sm:$0xf0] }
 0x2df   :  { %5337 = vmatpush.bf16.msrb.mxu1 %v11570_v38  ;;  %5469 = vmatpush.bf16.msrb.mxu3 %v11646_v49  ;;  %v12119_v38 = vld [vmem:[%s20567_s3 + $0x11b0] sm:$0xf0]  ;;  %v14013_v30 = vld [vmem:[%s20567_s3 + $0x1184] sm:$0xf] }
 0x2e0   :  { %v3775_v8 = vpop.f32.mrf.mxu2  ;;  %6274 = vmatpush.bf16.msrb.mxu0 %v12038_v23  ;;  %v11654_v23 = vor.u32 %v13932_v61, %v11653_v5  ;;  %v12122_v26 = vor.u32 %v14017_v52, %v12119_v38  ;;  %v12106_v24 = vor.u32 %v14013_v30, %v12103_v14  ;;  %v13946_v61 = vld [vmem:[%s20567_s3 + $0xf6c] sm:$0xf]  ;;  %v13948_v52 = vld [vmem:[%s20567_s3 + $0xf74] sm:$0xf0]  ;;  %v11813_v38 = vld [vmem:[%s20567_s3 + $0xfe0] sm:$0xf] }
 0x2e1   :  { %v18246_v36 = vadd.f32 %v3775_v8, %v18128_v58  ;;  %v3894_v29 = vpop.f32.mrf.mxu3  ;;  %v11523_v58 = vld [vmem:[%s20567_s3 + $0xe18] sm:$0xf0]  ;;  %v11621_v8 = vld [vmem:[%s20567_s3 + $0xea8] sm:$0xf] }
 0x2e2   :  { %v18249_v1 = vadd.f32 %v3894_v29, %v18131_v56  ;;  %v3764_v27 = vpop.f32.mrf.mxu1  ;;  %v4855_v33 = vpop.f32.mrf.mxu0  ;;  %5351 = vmatpush.bf16.msrb.mxu2 %v11558_v46  ;;  %v11538_v56 = vor.u32 %v13908_v62, %v11537_v22  ;;  %v11526_v9 = vor.u32 %v13902_v37, %v11523_v58  ;;  %v13943_v46 = vld [vmem:[%s20567_s3 + $0xf4c] sm:$0xf0]  ;;  %v13922_v22 = vld [vmem:[%s20567_s3 + $0xeac] sm:$0xf]  ;;  %v12235_v62 = vld [vmem:[%s20567_s3 + $0x1270] sm:$0xf0] }
 0x2e3   :  { %v18260_v2 = vadd.f32 %v4855_v33, %v18142_v43  ;;  %5338 = vmatpush.bf16.msrb.mxu1 %v11554_v57  ;;  %5470 = vmatpush.bf16.msrb.mxu3 %v11630_v48  ;;  %v13904_v43 = vld [vmem:[%s20567_s3 + $0xe14] sm:$0xf0]  ;;  %v6153_v57 = vld [vmem:[#allocation2 + $0x44] sm:$0x3]  ;;  %v11642_v48 = vor.u32 %v13926_v28, %v11639_v16  ;;  %v11714_v51 = vor.u32 %v13943_v46, %v11713_v15  ;;  %v11697_v27 = vld [vmem:[%s20567_s3 + $0xf20] sm:$0xf] }
 0x2e4   :  { %6275 = vmatpush.bf16.msrb.mxu0 %v12022_v34  ;;  %v11522_v41 = vor.u32 %v13904_v43, %v11521_v54  ;;  %v14041_v34 = vld [vmem:[%s20567_s3 + $0x1264] sm:$0xf]  ;;  %v13924_v29 = vld [vmem:[%s20567_s3 + $0xeb4] sm:$0xf0]  ;;  %v13939_v33 = vld [vmem:[%s20567_s3 + $0xf2c] sm:$0xf0]  ;;  %v11742_v16 = vor.u32 %v13946_v61, %v11739_v39 }
 0x2e5   :  { %11996 = vmatmul.msk.bf16.vlgmr.msra.gmra.mxu0 %vm526_vm0, %v18251_v55  ;;  %v12238_v44 = vor.u32 %v14041_v34, %v12235_v62  ;;  %v11698_v17 = vor.u32 %v13939_v33, %v11697_v27  ;;  %v13942_v15 = vld [vmem:[%s20567_s3 + $0xf4c] sm:$0xf]  ;;  %v11723_v46 = vld [vmem:[%s20567_s3 + $0xf58] sm:$0xf0]  ;;  %v11721_v30 = vld [vmem:[%s20567_s3 + $0xf48] sm:$0xf] }
 0x2e6   :  { %5352 = vmatpush.bf16.msrb.mxu2 %v11542_v45 }
 0x2e7   :  { %5339 = vmatpush.bf16.msrb.mxu1 %v11538_v56  ;;  %5471 = vmatpush.bf16.msrb.mxu3 %v11614_v4  ;;  %v18369_v4 = vpack.c.bf16 %v6153_v57, %v6153_v57  ;;  %v11797_v57 = vld [vmem:[%s20567_s3 + $0xfc0] sm:$0xf] }
 0x2e8   :  { %6430 = vmatpush.bf16.msra.mxu0 %v12154_v63  ;;  %v3777_v60 = vpop.f32.mrf.mxu2 }
 0x2e9   :  { %v3896_v21 = vpop.f32.mrf.mxu3 }
 0x2ea   :  { %v3920_v49 = vpop.f32.mrf.mxu1  ;;  %v4857_v12 = vpop.f32.mrf.mxu0  ;;  %5353 = vmatpush.bf16.msrb.mxu2 %v11526_v9  ;;  %v14037_v9 = vld [vmem:[%s20567_s3 + $0x1244] sm:$0xf] }
 0x2eb   :  { %v18307_v3 = vadd.f32 %v3920_v49, %v18189_v25  ;;  %5340 = vmatpush.bf16.msrb.mxu1 %v11522_v41  ;;  %5472 = vmatpush.bf16.msrb.mxu3 %v11598_v0  ;;  %v13928_v25 = vld [vmem:[%s20567_s3 + $0xed4] sm:$0xf0]  ;;  %v11681_v41 = vld [vmem:[%s20567_s3 + $0xf00] sm:$0xf]  ;;  %v13935_v0 = vld [vmem:[%s20567_s3 + $0xf0c] sm:$0xf0] }
 0x2ec   :  { %6431 = vmatpush.bf16.msra.mxu0 %v12138_v7  ;;  %v11638_v35 = vor.u32 %v13928_v25, %v11637_v40  ;;  %v12219_v7 = vld [vmem:[%s20567_s3 + $0x1250] sm:$0xf0]  ;;  %v11682_v60 = vor.u32 %v13935_v0, %v11681_v41  ;;  %v13963_v49 = vld [vmem:[%s20567_s3 + $0xfec] sm:$0xf0]  ;;  %v11689_v0 = vld [vmem:[%s20567_s3 + $0xf08] sm:$0xf] }
 0x2ed   :  { %11493 = vmatmul.msk.bf16.vlgmr.msra.gmra.mxu1 %vm526_vm0, %v17543_v20  ;;  %11494 = vmatmul.msk.bf16.vlgmr.msra.gmra.mxu2 %vm526_vm0, %v17543_v20  ;;  %v11623_v20 = vld [vmem:[%s20567_s3 + $0xeb8] sm:$0xf0]  ;;  %v12222_v6 = vor.u32 %v14037_v9, %v12219_v7  ;;  %v11814_v25 = vor.u32 %v13963_v49, %v11813_v38  ;;  %v13934_v7 = vld [vmem:[%s20567_s3 + $0xf0c] sm:$0xf]  ;;  %v11821_v49 = vld [vmem:[%s20567_s3 + $0xfe8] sm:$0xf] }
 0x2ee   :  { %11575 = vmatmul.msk.bf16.vlgmr.msra.gmra.mxu3 %vm526_vm0, %v17661_v19  ;;  %5508 = vmatpush.bf16.msra.mxu2 %v11658_v32  ;;  %v11626_v54 = vor.u32 %v13922_v22, %v11623_v20  ;;  %v14033_v32 = vld [vmem:[%s20567_s3 + $0x1224] sm:$0xf]  ;;  %v12187_v20 = vld [vmem:[%s20567_s3 + $0x1210] sm:$0xf0]  ;;  %v11823_v38 = vld [vmem:[%s20567_s3 + $0xff8] sm:$0xf0] }
 0x2ef   :  { %5495 = vmatpush.bf16.msra.mxu1 %v11654_v23  ;;  %5627 = vmatpush.bf16.msra.mxu3 %v11730_v10  ;;  %v12203_v23 = vld [vmem:[%s20567_s3 + $0x1230] sm:$0xf0]  ;;  %v14029_v22 = vld [vmem:[%s20567_s3 + $0x1204] sm:$0xf] }
 0x2f0   :  { %v3933_v47 = vpop.f32.mrf.mxu2  ;;  %6432 = vmatpush.bf16.msra.mxu0 %v12122_v26  ;;  %v11738_v26 = vor.u32 %v13948_v52, %v11737_v42  ;;  %v12206_v14 = vor.u32 %v14033_v32, %v12203_v23  ;;  %v12190_v33 = vor.u32 %v14029_v22, %v12187_v20  ;;  %v13962_v52 = vld [vmem:[%s20567_s3 + $0xfec] sm:$0xf]  ;;  %v13964_v32 = vld [vmem:[%s20567_s3 + $0xff4] sm:$0xf0]  ;;  %v11897_v23 = vld [vmem:[%s20567_s3 + $0x1060] sm:$0xf] }
 0x2f1   :  { %v18364_v45 = vadd.f32 %v3933_v47, %v18246_v36  ;;  %v4052_v63 = vpop.f32.mrf.mxu3  ;;  %v11607_v36 = vld [vmem:[%s20567_s3 + $0xe98] sm:$0xf0]  ;;  %v11705_v47 = vld [vmem:[%s20567_s3 + $0xf28] sm:$0xf] }
 0x2f2   :  { %v18367_v37 = vadd.f32 %v4052_v63, %v18249_v1  ;;  %v3922_v58 = vpop.f32.mrf.mxu1  ;;  %v5013_v56 = vpop.f32.mrf.mxu0  ;;  %5509 = vmatpush.bf16.msra.mxu2 %v11642_v48  ;;  %v11622_v1 = vor.u32 %v13924_v29, %v11621_v8  ;;  %v11610_v13 = vor.u32 %v13918_v11, %v11607_v36  ;;  %v13959_v48 = vld [vmem:[%s20567_s3 + $0xfcc] sm:$0xf0]  ;;  %v13938_v8 = vld [vmem:[%s20567_s3 + $0xf2c] sm:$0xf]  ;;  %v12319_v29 = vld [vmem:[%s20567_s3 + $0x12f0] sm:$0xf0] }
 0x2f3   :  { %v18378_v43 = vadd.f32 %v5013_v56, %v18260_v2  ;;  %5496 = vmatpush.bf16.msra.mxu1 %v11638_v35  ;;  %5628 = vmatpush.bf16.msra.mxu3 %v11714_v51  ;;  %v13920_v2 = vld [vmem:[%s20567_s3 + $0xe94] sm:$0xf0]  ;;  %v6311_v35 = vld [vmem:[#allocation2 + $0x46] sm:$0x3]  ;;  %v11726_v51 = vor.u32 %v13942_v15, %v11723_v46  ;;  %v11798_v62 = vor.u32 %v13959_v48, %v11797_v57  ;;  %v11781_v58 = vld [vmem:[%s20567_s3 + $0xfa0] sm:$0xf] }
 0x2f4   :  { %6433 = vmatpush.bf16.msra.mxu0 %v12106_v24  ;;  %v11606_v5 = vor.u32 %v13920_v2, %v11605_v18  ;;  %v14057_v24 = vld [vmem:[%s20567_s3 + $0x12e4] sm:$0xf]  ;;  %v13940_v63 = vld [vmem:[%s20567_s3 + $0xf34] sm:$0xf0]  ;;  %v13955_v56 = vld [vmem:[%s20567_s3 + $0xfac] sm:$0xf0]  ;;  %v11826_v46 = vor.u32 %v13962_v52, %v11823_v38 }
 0x2f5   :  { %12080 = vmatmul.msk.bf16.vlgmr.msrb.gmra.mxu0 %vm526_vm0, %v18369_v4  ;;  %v12322_v9 = vor.u32 %v14057_v24, %v12319_v29  ;;  %v11782_v41 = vor.u32 %v13955_v56, %v11781_v58  ;;  %v13958_v57 = vld [vmem:[%s20567_s3 + $0xfcc] sm:$0xf]  ;;  %v11807_v48 = vld [vmem:[%s20567_s3 + $0xfd8] sm:$0xf0]  ;;  %v11805_v22 = vld [vmem:[%s20567_s3 + $0xfc8] sm:$0xf] }
 0x2f6   :  { %5510 = vmatpush.bf16.msra.mxu2 %v11626_v54 }
 0x2f7   :  { %5497 = vmatpush.bf16.msra.mxu1 %v11622_v1  ;;  %5629 = vmatpush.bf16.msra.mxu3 %v11698_v17  ;;  %v18487_v17 = vpack.c.bf16 %v6311_v35, %v6311_v35  ;;  %v11881_v35 = vld [vmem:[%s20567_s3 + $0x1040] sm:$0xf] }
 0x2f8   :  { %6588 = vmatpush.bf16.msrb.mxu0 %v12238_v44  ;;  %v3935_v21 = vpop.f32.mrf.mxu2 }
 0x2f9   :  { %v4054_v12 = vpop.f32.mrf.mxu3 }
 0x2fa   :  { %v4078_v10 = vpop.f32.mrf.mxu1  ;;  %v5015_v28 = vpop.f32.mrf.mxu0  ;;  %5511 = vmatpush.bf16.msra.mxu2 %v11610_v13  ;;  %v14053_v13 = vld [vmem:[%s20567_s3 + $0x12c4] sm:$0xf] }
 0x2fb   :  { %v18425_v40 = vadd.f32 %v4078_v10, %v18307_v3  ;;  %5498 = vmatpush.bf16.msra.mxu1 %v11606_v5  ;;  %5630 = vmatpush.bf16.msra.mxu3 %v11682_v60  ;;  %v13944_v3 = vld [vmem:[%s20567_s3 + $0xf54] sm:$0xf0]  ;;  %v11765_v5 = vld [vmem:[%s20567_s3 + $0xf80] sm:$0xf]  ;;  %v13951_v60 = vld [vmem:[%s20567_s3 + $0xf8c] sm:$0xf0] }
 0x2fc   :  { %6589 = vmatpush.bf16.msrb.mxu0 %v12222_v6  ;;  %v11722_v34 = vor.u32 %v13944_v3, %v11721_v30  ;;  %v12303_v6 = vld [vmem:[%s20567_s3 + $0x12d0] sm:$0xf0]  ;;  %v11766_v21 = vor.u32 %v13951_v60, %v11765_v5  ;;  %v13979_v10 = vld [vmem:[%s20567_s3 + $0x106c] sm:$0xf0]  ;;  %v11773_v60 = vld [vmem:[%s20567_s3 + $0xf88] sm:$0xf] }
 0x2fd   :  { %11577 = vmatmul.msk.bf16.vlgmr.msrb.gmra.mxu1 %vm526_vm0, %v17661_v19  ;;  %11578 = vmatmul.msk.bf16.vlgmr.msrb.gmra.mxu2 %vm526_vm0, %v17661_v19  ;;  %v11707_v19 = vld [vmem:[%s20567_s3 + $0xf38] sm:$0xf0]  ;;  %v12306_v39 = vor.u32 %v14053_v13, %v12303_v6  ;;  %v11898_v3 = vor.u32 %v13979_v10, %v11897_v23  ;;  %v13950_v6 = vld [vmem:[%s20567_s3 + $0xf8c] sm:$0xf]  ;;  %v11905_v10 = vld [vmem:[%s20567_s3 + $0x1068] sm:$0xf] }
 0x2fe   :  { %11659 = vmatmul.msk.bf16.vlgmr.msrb.gmra.mxu3 %vm526_vm0, %v17779_v31  ;;  %5666 = vmatpush.bf16.msrb.mxu2 %v11742_v16  ;;  %v11710_v18 = vor.u32 %v13938_v8, %v11707_v19  ;;  %v14049_v16 = vld [vmem:[%s20567_s3 + $0x12a4] sm:$0xf]  ;;  %v12271_v19 = vld [vmem:[%s20567_s3 + $0x1290] sm:$0xf0]  ;;  %v11907_v23 = vld [vmem:[%s20567_s3 + $0x1078] sm:$0xf0] }
 0x2ff   :  { %5653 = vmatpush.bf16.msrb.mxu1 %v11738_v26  ;;  %5785 = vmatpush.bf16.msrb.mxu3 %v11814_v25  ;;  %v12287_v26 = vld [vmem:[%s20567_s3 + $0x12b0] sm:$0xf0]  ;;  %v14045_v8 = vld [vmem:[%s20567_s3 + $0x1284] sm:$0xf] }
 0x300   :  { %v4091_v27 = vpop.f32.mrf.mxu2  ;;  %6590 = vmatpush.bf16.msrb.mxu0 %v12206_v14  ;;  %v11822_v14 = vor.u32 %v13964_v32, %v11821_v49  ;;  %v12290_v20 = vor.u32 %v14049_v16, %v12287_v26  ;;  %v12274_v56 = vor.u32 %v14045_v8, %v12271_v19  ;;  %v13978_v32 = vld [vmem:[%s20567_s3 + $0x106c] sm:$0xf]  ;;  %v13980_v16 = vld [vmem:[%s20567_s3 + $0x1074] sm:$0xf0]  ;;  %v11981_v26 = vld [vmem:[%s20567_s3 + $0x10e0] sm:$0xf] }
 0x301   :  { %v18482_v54 = vadd.f32 %v4091_v27, %v18364_v45  ;;  %v4210_v44 = vpop.f32.mrf.mxu3  ;;  %v11691_v45 = vld [vmem:[%s20567_s3 + $0xf18] sm:$0xf0]  ;;  %v11789_v27 = vld [vmem:[%s20567_s3 + $0xfa8] sm:$0xf] }
 0x302   :  { %v18485_v11 = vadd.f32 %v4210_v44, %v18367_v37  ;;  %v4080_v36 = vpop.f32.mrf.mxu1  ;;  %v5171_v1 = vpop.f32.mrf.mxu0  ;;  %5667 = vmatpush.bf16.msrb.mxu2 %v11726_v51  ;;  %v11706_v37 = vor.u32 %v13940_v63, %v11705_v47  ;;  %v11694_v61 = vor.u32 %v13934_v7, %v11691_v45  ;;  %v13975_v51 = vld [vmem:[%s20567_s3 + $0x104c] sm:$0xf0]  ;;  %v13954_v47 = vld [vmem:[%s20567_s3 + $0xfac] sm:$0xf]  ;;  %v12403_v63 = vld [vmem:[%s20567_s3 + $0x1370] sm:$0xf0] }
 0x303   :  { %v18496_v2 = vadd.f32 %v5171_v1, %v18378_v43  ;;  %5654 = vmatpush.bf16.msrb.mxu1 %v11722_v34  ;;  %5786 = vmatpush.bf16.msrb.mxu3 %v11798_v62  ;;  %v13936_v43 = vld [vmem:[%s20567_s3 + $0xf14] sm:$0xf0]  ;;  %v6469_v34 = vld [vmem:[#allocation2 + $0x48] sm:$0x3]  ;;  %v11810_v62 = vor.u32 %v13958_v57, %v11807_v48  ;;  %v11882_v29 = vor.u32 %v13975_v51, %v11881_v35  ;;  %v11865_v36 = vld [vmem:[%s20567_s3 + $0x1020] sm:$0xf] }
 0x304   :  { %6591 = vmatpush.bf16.msrb.mxu0 %v12190_v33  ;;  %v11690_v42 = vor.u32 %v13936_v43, %v11689_v0  ;;  %v14073_v33 = vld [vmem:[%s20567_s3 + $0x1364] sm:$0xf]  ;;  %v13956_v44 = vld [vmem:[%s20567_s3 + $0xfb4] sm:$0xf0]  ;;  %v13971_v1 = vld [vmem:[%s20567_s3 + $0x102c] sm:$0xf0]  ;;  %v11910_v48 = vor.u32 %v13978_v32, %v11907_v23 }
 0x305   :  { %12164 = vmatmul.msk.bf16.vlgmr.msra.gmra.mxu0 %vm526_vm0, %v18487_v17  ;;  %v12406_v13 = vor.u32 %v14073_v33, %v12403_v63  ;;  %v11866_v5 = vor.u32 %v13971_v1, %v11865_v36  ;;  %v13974_v35 = vld [vmem:[%s20567_s3 + $0x104c] sm:$0xf]  ;;  %v11891_v51 = vld [vmem:[%s20567_s3 + $0x1058] sm:$0xf0]  ;;  %v11889_v8 = vld [vmem:[%s20567_s3 + $0x1048] sm:$0xf] }
 0x306   :  { %5668 = vmatpush.bf16.msrb.mxu2 %v11710_v18 }
 0x307   :  { %5655 = vmatpush.bf16.msrb.mxu1 %v11706_v37  ;;  %5787 = vmatpush.bf16.msrb.mxu3 %v11782_v41  ;;  %v18605_v41 = vpack.c.bf16 %v6469_v34, %v6469_v34  ;;  %v11965_v34 = vld [vmem:[%s20567_s3 + $0x10c0] sm:$0xf] }
 0x308   :  { %6746 = vmatpush.bf16.msra.mxu0 %v12322_v9  ;;  %v4093_v12 = vpop.f32.mrf.mxu2 }
 0x309   :  { %v4212_v28 = vpop.f32.mrf.mxu3 }
 0x30a   :  { %v4236_v25 = vpop.f32.mrf.mxu1  ;;  %v5173_v15 = vpop.f32.mrf.mxu0  ;;  %5669 = vmatpush.bf16.msrb.mxu2 %v11694_v61  ;;  %v14069_v61 = vld [vmem:[%s20567_s3 + $0x1344] sm:$0xf] }
 0x30b   :  { %v18543_v30 = vadd.f32 %v4236_v25, %v18425_v40  ;;  %5656 = vmatpush.bf16.msrb.mxu1 %v11690_v42  ;;  %5788 = vmatpush.bf16.msrb.mxu3 %v11766_v21  ;;  %v13960_v40 = vld [vmem:[%s20567_s3 + $0xfd4] sm:$0xf0]  ;;  %v11849_v42 = vld [vmem:[%s20567_s3 + $0x1000] sm:$0xf]  ;;  %v13967_v21 = vld [vmem:[%s20567_s3 + $0x100c] sm:$0xf0] }
 0x30c   :  { %6747 = vmatpush.bf16.msra.mxu0 %v12306_v39  ;;  %v11806_v24 = vor.u32 %v13960_v40, %v11805_v22  ;;  %v12387_v39 = vld [vmem:[%s20567_s3 + $0x1350] sm:$0xf0]  ;;  %v11850_v12 = vor.u32 %v13967_v21, %v11849_v42  ;;  %v13995_v25 = vld [vmem:[%s20567_s3 + $0x10ec] sm:$0xf0]  ;;  %v11857_v21 = vld [vmem:[%s20567_s3 + $0x1008] sm:$0xf] }
 0x30d   :  { %11661 = vmatmul.msk.bf16.vlgmr.msra.gmra.mxu1 %vm526_vm0, %v17779_v31  ;;  %11662 = vmatmul.msk.bf16.vlgmr.msra.gmra.mxu2 %vm526_vm0, %v17779_v31  ;;  %v11791_v31 = vld [vmem:[%s20567_s3 + $0xfb8] sm:$0xf0]  ;;  %v12390_v38 = vor.u32 %v14069_v61, %v12387_v39  ;;  %v11982_v40 = vor.u32 %v13995_v25, %v11981_v26  ;;  %v13966_v39 = vld [vmem:[%s20567_s3 + $0x100c] sm:$0xf]  ;;  %v11989_v25 = vld [vmem:[%s20567_s3 + $0x10e8] sm:$0xf] }
 0x30e   :  { %11743 = vmatmul.msk.bf16.vlgmr.msra.gmra.mxu3 %vm526_vm0, %v17897_v59  ;;  %5824 = vmatpush.bf16.msra.mxu2 %v11826_v46  ;;  %v11794_v0 = vor.u32 %v13954_v47, %v11791_v31  ;;  %v14065_v46 = vld [vmem:[%s20567_s3 + $0x1324] sm:$0xf]  ;;  %v12355_v31 = vld [vmem:[%s20567_s3 + $0x1310] sm:$0xf0]  ;;  %v11991_v26 = vld [vmem:[%s20567_s3 + $0x10f8] sm:$0xf0] }
 0x30f   :  { %5811 = vmatpush.bf16.msra.mxu1 %v11822_v14  ;;  %5943 = vmatpush.bf16.msra.mxu3 %v11898_v3  ;;  %v12371_v14 = vld [vmem:[%s20567_s3 + $0x1330] sm:$0xf0]  ;;  %v14061_v47 = vld [vmem:[%s20567_s3 + $0x1304] sm:$0xf] }
 0x310   :  { %v4249_v58 = vpop.f32.mrf.mxu2  ;;  %6748 = vmatpush.bf16.msra.mxu0 %v12290_v20  ;;  %v11906_v20 = vor.u32 %v13980_v16, %v11905_v10  ;;  %v12374_v19 = vor.u32 %v14065_v46, %v12371_v14  ;;  %v12358_v1 = vor.u32 %v14061_v47, %v12355_v31  ;;  %v13994_v16 = vld [vmem:[%s20567_s3 + $0x10ec] sm:$0xf]  ;;  %v13996_v46 = vld [vmem:[%s20567_s3 + $0x10f4] sm:$0xf0]  ;;  %v12065_v14 = vld [vmem:[%s20567_s3 + $0x1160] sm:$0xf] }
 0x311   :  { %v18600_v18 = vadd.f32 %v4249_v58, %v18482_v54  ;;  %v4368_v9 = vpop.f32.mrf.mxu3  ;;  %v11775_v54 = vld [vmem:[%s20567_s3 + $0xf98] sm:$0xf0]  ;;  %v11873_v58 = vld [vmem:[%s20567_s3 + $0x1028] sm:$0xf] }
 0x312   :  { %v18603_v7 = vadd.f32 %v4368_v9, %v18485_v11  ;;  %v4238_v45 = vpop.f32.mrf.mxu1  ;;  %v5329_v37 = vpop.f32.mrf.mxu0  ;;  %5825 = vmatpush.bf16.msra.mxu2 %v11810_v62  ;;  %v11790_v11 = vor.u32 %v13956_v44, %v11789_v27  ;;  %v11778_v52 = vor.u32 %v13950_v6, %v11775_v54  ;;  %v13991_v62 = vld [vmem:[%s20567_s3 + $0x10cc] sm:$0xf0]  ;;  %v13970_v27 = vld [vmem:[%s20567_s3 + $0x102c] sm:$0xf]  ;;  %v12487_v44 = vld [vmem:[%s20567_s3 + $0x13f0] sm:$0xf0] }
 0x313   :  { %v18614_v43 = vadd.f32 %v5329_v37, %v18496_v2  ;;  %5812 = vmatpush.bf16.msra.mxu1 %v11806_v24  ;;  %5944 = vmatpush.bf16.msra.mxu3 %v11882_v29  ;;  %v13952_v2 = vld [vmem:[%s20567_s3 + $0xf94] sm:$0xf0]  ;;  %v6627_v24 = vld [vmem:[#allocation2 + $0x4a] sm:$0x3]  ;;  %v11894_v29 = vor.u32 %v13974_v35, %v11891_v51  ;;  %v11966_v63 = vor.u32 %v13991_v62, %v11965_v34  ;;  %v11949_v45 = vld [vmem:[%s20567_s3 + $0x10a0] sm:$0xf] }
 0x314   :  { %6749 = vmatpush.bf16.msra.mxu0 %v12274_v56  ;;  %v11774_v49 = vor.u32 %v13952_v2, %v11773_v60  ;;  %v14089_v56 = vld [vmem:[%s20567_s3 + $0x13e4] sm:$0xf]  ;;  %v13972_v9 = vld [vmem:[%s20567_s3 + $0x1034] sm:$0xf0]  ;;  %v13987_v37 = vld [vmem:[%s20567_s3 + $0x10ac] sm:$0xf0]  ;;  %v11994_v51 = vor.u32 %v13994_v16, %v11991_v26 }
 0x315   :  { %12248 = vmatmul.msk.bf16.vlgmr.msrb.gmra.mxu0 %vm526_vm0, %v18605_v41  ;;  %v12490_v61 = vor.u32 %v14089_v56, %v12487_v44  ;;  %v11950_v42 = vor.u32 %v13987_v37, %v11949_v45  ;;  %v13990_v34 = vld [vmem:[%s20567_s3 + $0x10cc] sm:$0xf]  ;;  %v11975_v62 = vld [vmem:[%s20567_s3 + $0x10d8] sm:$0xf0]  ;;  %v11973_v47 = vld [vmem:[%s20567_s3 + $0x10c8] sm:$0xf] }
 0x316   :  { %5826 = vmatpush.bf16.msra.mxu2 %v11794_v0 }
 0x317   :  { %5813 = vmatpush.bf16.msra.mxu1 %v11790_v11  ;;  %5945 = vmatpush.bf16.msra.mxu3 %v11866_v5  ;;  %v18723_v5 = vpack.c.bf16 %v6627_v24, %v6627_v24  ;;  %v12049_v24 = vld [vmem:[%s20567_s3 + $0x1140] sm:$0xf] }
 0x318   :  { %6904 = vmatpush.bf16.msrb.mxu0 %v12406_v13  ;;  %v4251_v28 = vpop.f32.mrf.mxu2 }
 0x319   :  { %v4370_v15 = vpop.f32.mrf.mxu3 }
 0x31a   :  { %v4394_v3 = vpop.f32.mrf.mxu1  ;;  %v5331_v57 = vpop.f32.mrf.mxu0  ;;  %5827 = vmatpush.bf16.msra.mxu2 %v11778_v52  ;;  %v14085_v52 = vld [vmem:[%s20567_s3 + $0x13c4] sm:$0xf] }
 0x31b   :  { %v18661_v22 = vadd.f32 %v4394_v3, %v18543_v30  ;;  %5814 = vmatpush.bf16.msra.mxu1 %v11774_v49  ;;  %5946 = vmatpush.bf16.msra.mxu3 %v11850_v12  ;;  %v13976_v30 = vld [vmem:[%s20567_s3 + $0x1054] sm:$0xf0]  ;;  %v11933_v49 = vld [vmem:[%s20567_s3 + $0x1080] sm:$0xf]  ;;  %v13983_v12 = vld [vmem:[%s20567_s3 + $0x108c] sm:$0xf0] }
 0x31c   :  { %6905 = vmatpush.bf16.msrb.mxu0 %v12390_v38  ;;  %v11890_v33 = vor.u32 %v13976_v30, %v11889_v8  ;;  %v12471_v38 = vld [vmem:[%s20567_s3 + $0x13d0] sm:$0xf0]  ;;  %v11934_v28 = vor.u32 %v13983_v12, %v11933_v49  ;;  %v14011_v3 = vld [vmem:[%s20567_s3 + $0x116c] sm:$0xf0]  ;;  %v11941_v12 = vld [vmem:[%s20567_s3 + $0x1088] sm:$0xf] }
 0x31d   :  { %11745 = vmatmul.msk.bf16.vlgmr.msrb.gmra.mxu1 %vm526_vm0, %v17897_v59  ;;  %11746 = vmatmul.msk.bf16.vlgmr.msrb.gmra.mxu2 %vm526_vm0, %v17897_v59  ;;  %v11875_v59 = vld [vmem:[%s20567_s3 + $0x1038] sm:$0xf0]  ;;  %v12474_v23 = vor.u32 %v14085_v52, %v12471_v38  ;;  %v12066_v30 = vor.u32 %v14011_v3, %v12065_v14  ;;  %v13982_v38 = vld [vmem:[%s20567_s3 + $0x108c] sm:$0xf]  ;;  %v12073_v3 = vld [vmem:[%s20567_s3 + $0x1168] sm:$0xf] }
 0x31e   :  { %11827 = vmatmul.msk.bf16.vlgmr.msrb.gmra.mxu3 %vm526_vm0, %v18015_v53  ;;  %5982 = vmatpush.bf16.msrb.mxu2 %v11910_v48  ;;  %v11878_v60 = vor.u32 %v13970_v27, %v11875_v59  ;;  %v14081_v48 = vld [vmem:[%s20567_s3 + $0x13a4] sm:$0xf]  ;;  %v12439_v59 = vld [vmem:[%s20567_s3 + $0x1390] sm:$0xf0]  ;;  %v12075_v14 = vld [vmem:[%s20567_s3 + $0x1178] sm:$0xf0] }
 0x31f   :  { %5969 = vmatpush.bf16.msrb.mxu1 %v11906_v20  ;;  %6101 = vmatpush.bf16.msrb.mxu3 %v11982_v40  ;;  %v12455_v20 = vld [vmem:[%s20567_s3 + $0x13b0] sm:$0xf0]  ;;  %v14077_v27 = vld [vmem:[%s20567_s3 + $0x1384] sm:$0xf] }
 0x320   :  { %v4407_v36 = vpop.f32.mrf.mxu2  ;;  %6906 = vmatpush.bf16.msrb.mxu0 %v12374_v19  ;;  %v11990_v19 = vor.u32 %v13996_v46, %v11989_v25  ;;  %v12458_v31 = vor.u32 %v14081_v48, %v12455_v20  ;;  %v12442_v37 = vor.u32 %v14077_v27, %v12439_v59  ;;  %v14010_v46 = vld [vmem:[%s20567_s3 + $0x116c] sm:$0xf]  ;;  %v14012_v48 = vld [vmem:[%s20567_s3 + $0x1174] sm:$0xf0]  ;;  %v12149_v20 = vld [vmem:[%s20567_s3 + $0x11e0] sm:$0xf] }
 0x321   :  { %v18718_v0 = vadd.f32 %v4407_v36, %v18600_v18  ;;  %v4526_v13 = vpop.f32.mrf.mxu3  ;;  %v11859_v18 = vld [vmem:[%s20567_s3 + $0x1018] sm:$0xf0]  ;;  %v11957_v36 = vld [vmem:[%s20567_s3 + $0x10a8] sm:$0xf] }
 0x322   :  { %v18721_v6 = vadd.f32 %v4526_v13, %v18603_v7  ;;  %v4396_v54 = vpop.f32.mrf.mxu1  ;;  %v5487_v11 = vpop.f32.mrf.mxu0  ;;  %5983 = vmatpush.bf16.msrb.mxu2 %v11894_v29  ;;  %v11874_v7 = vor.u32 %v13972_v9, %v11873_v58  ;;  %v11862_v32 = vor.u32 %v13966_v39, %v11859_v18  ;;  %v14007_v29 = vld [vmem:[%s20567_s3 + $0x114c] sm:$0xf0]  ;;  %v13986_v58 = vld [vmem:[%s20567_s3 + $0x10ac] sm:$0xf]  ;;  %v12571_v9 = vld [vmem:[%s20567_s3 + $0x1470] sm:$0xf0] }
 0x323   :  { %v18732_v2 = vadd.f32 %v5487_v11, %v18614_v43  ;;  %5970 = vmatpush.bf16.msrb.mxu1 %v11890_v33  ;;  %6102 = vmatpush.bf16.msrb.mxu3 %v11966_v63  ;;  %v13968_v43 = vld [vmem:[%s20567_s3 + $0x1014] sm:$0xf0]  ;;  %v6785_v33 = vld [vmem:[#allocation2 + $0x4c] sm:$0x3]  ;;  %v11978_v63 = vor.u32 %v13990_v34, %v11975_v62  ;;  %v12050_v44 = vor.u32 %v14007_v29, %v12049_v24  ;;  %v12033_v54 = vld [vmem:[%s20567_s3 + $0x1120] sm:$0xf] }
 0x324   :  { %6907 = vmatpush.bf16.msrb.mxu0 %v12358_v1  ;;  %v11858_v10 = vor.u32 %v13968_v43, %v11857_v21  ;;  %v14105_v1 = vld [vmem:[%s20567_s3 + $0x1464] sm:$0xf]  ;;  %v13988_v13 = vld [vmem:[%s20567_s3 + $0x10b4] sm:$0xf0]  ;;  %v14003_v11 = vld [vmem:[%s20567_s3 + $0x112c] sm:$0xf0]  ;;  %v12078_v62 = vor.u32 %v14010_v46, %v12075_v14 }
 0x325   :  { %12332 = vmatmul.msk.bf16.vlgmr.msra.gmra.mxu0 %vm526_vm0, %v18723_v5  ;;  %v12574_v52 = vor.u32 %v14105_v1, %v12571_v9  ;;  %v12034_v49 = vor.u32 %v14003_v11, %v12033_v54  ;;  %v14006_v24 = vld [vmem:[%s20567_s3 + $0x114c] sm:$0xf]  ;;  %v12059_v29 = vld [vmem:[%s20567_s3 + $0x1158] sm:$0xf0]  ;;  %v12057_v27 = vld [vmem:[%s20567_s3 + $0x1148] sm:$0xf] }
 0x326   :  { %5984 = vmatpush.bf16.msrb.mxu2 %v11878_v60 }
 0x327   :  { %5971 = vmatpush.bf16.msrb.mxu1 %v11874_v7  ;;  %6103 = vmatpush.bf16.msrb.mxu3 %v11950_v42  ;;  %v18841_v42 = vpack.c.bf16 %v6785_v33, %v6785_v33  ;;  %v12133_v33 = vld [vmem:[%s20567_s3 + $0x11c0] sm:$0xf] }
 0x328   :  { %7062 = vmatpush.bf16.msra.mxu0 %v12490_v61  ;;  %v4409_v15 = vpop.f32.mrf.mxu2 }
 0x329   :  { %v4528_v57 = vpop.f32.mrf.mxu3 }
 0x32a   :  { %v4552_v40 = vpop.f32.mrf.mxu1  ;;  %v5489_v35 = vpop.f32.mrf.mxu0  ;;  %5985 = vmatpush.bf16.msrb.mxu2 %v11862_v32  ;;  %v14101_v32 = vld [vmem:[%s20567_s3 + $0x1444] sm:$0xf] }
 0x32b   :  { %v18779_v8 = vadd.f32 %v4552_v40, %v18661_v22  ;;  %5972 = vmatpush.bf16.msrb.mxu1 %v11858_v10  ;;  %6104 = vmatpush.bf16.msrb.mxu3 %v11934_v28  ;;  %v13992_v22 = vld [vmem:[%s20567_s3 + $0x10d4] sm:$0xf0]  ;;  %v12017_v10 = vld [vmem:[%s20567_s3 + $0x1100] sm:$0xf]  ;;  %v13999_v28 = vld [vmem:[%s20567_s3 + $0x110c] sm:$0xf0] }
 0x32c   :  { %7063 = vmatpush.bf16.msra.mxu0 %v12474_v23  ;;  %v11974_v56 = vor.u32 %v13992_v22, %v11973_v47  ;;  %v12555_v23 = vld [vmem:[%s20567_s3 + $0x1450] sm:$0xf0]  ;;  %v12018_v15 = vor.u32 %v13999_v28, %v12017_v10  ;;  %v14027_v40 = vld [vmem:[%s20567_s3 + $0x11ec] sm:$0xf0]  ;;  %v12025_v28 = vld [vmem:[%s20567_s3 + $0x1108] sm:$0xf] }
 0x32d   :  { %11829 = vmatmul.msk.bf16.vlgmr.msra.gmra.mxu1 %vm526_vm0, %v18015_v53  ;;  %11830 = vmatmul.msk.bf16.vlgmr.msra.gmra.mxu2 %vm526_vm0, %v18015_v53  ;;  %v11959_v53 = vld [vmem:[%s20567_s3 + $0x10b8] sm:$0xf0]  ;;  %v12558_v26 = vor.u32 %v14101_v32, %v12555_v23  ;;  %v12150_v22 = vor.u32 %v14027_v40, %v12149_v20  ;;  %v13998_v23 = vld [vmem:[%s20567_s3 + $0x110c] sm:$0xf]  ;;  %v12157_v40 = vld [vmem:[%s20567_s3 + $0x11e8] sm:$0xf] }
 0x32e   :  { %11911 = vmatmul.msk.bf16.vlgmr.msra.gmra.mxu3 %vm526_vm0, %v18133_v50  ;;  %6140 = vmatpush.bf16.msra.mxu2 %v11994_v51  ;;  %v11962_v21 = vor.u32 %v13986_v58, %v11959_v53  ;;  %v14097_v51 = vld [vmem:[%s20567_s3 + $0x1424] sm:$0xf]  ;;  %v12523_v53 = vld [vmem:[%s20567_s3 + $0x1410] sm:$0xf0]  ;;  %v12159_v20 = vld [vmem:[%s20567_s3 + $0x11f8] sm:$0xf0] }
 0x32f   :  { %6127 = vmatpush.bf16.msra.mxu1 %v11990_v19  ;;  %6259 = vmatpush.bf16.msra.mxu3 %v12066_v30  ;;  %v12539_v19 = vld [vmem:[%s20567_s3 + $0x1430] sm:$0xf0]  ;;  %v14093_v58 = vld [vmem:[%s20567_s3 + $0x1404] sm:$0xf] }
 0x330   :  { %v4565_v45 = vpop.f32.mrf.mxu2  ;;  %7064 = vmatpush.bf16.msra.mxu0 %v12458_v31  ;;  %v12074_v31 = vor.u32 %v14012_v48, %v12073_v3  ;;  %v12542_v59 = vor.u32 %v14097_v51, %v12539_v19  ;;  %v12526_v11 = vor.u32 %v14093_v58, %v12523_v53  ;;  %v14026_v48 = vld [vmem:[%s20567_s3 + $0x11ec] sm:$0xf]  ;;  %v14028_v51 = vld [vmem:[%s20567_s3 + $0x11f4] sm:$0xf0]  ;;  %v12233_v19 = vld [vmem:[%s20567_s3 + $0x1260] sm:$0xf] }
 0x331   :  { %v18836_v60 = vadd.f32 %v4565_v45, %v18718_v0  ;;  %v4684_v61 = vpop.f32.mrf.mxu3  ;;  %v11943_v0 = vld [vmem:[%s20567_s3 + $0x1098] sm:$0xf0]  ;;  %v12041_v45 = vld [vmem:[%s20567_s3 + $0x1128] sm:$0xf] }
 0x332   :  { %v18839_v39 = vadd.f32 %v4684_v61, %v18721_v6  ;;  %v4554_v18 = vpop.f32.mrf.mxu1  ;;  %v5645_v7 = vpop.f32.mrf.mxu0  ;;  %6141 = vmatpush.bf16.msra.mxu2 %v11978_v63  ;;  %v11958_v6 = vor.u32 %v13988_v13, %v11957_v36  ;;  %v11946_v16 = vor.u32 %v13982_v38, %v11943_v0  ;;  %v14023_v63 = vld [vmem:[%s20567_s3 + $0x11cc] sm:$0xf0]  ;;  %v14002_v36 = vld [vmem:[%s20567_s3 + $0x112c] sm:$0xf]  ;;  %v12655_v13 = vld [vmem:[%s20567_s3 + $0x14f0] sm:$0xf0] }
 0x333   :  { %v18850_v43 = vadd.f32 %v5645_v7, %v18732_v2  ;;  %6128 = vmatpush.bf16.msra.mxu1 %v11974_v56  ;;  %6260 = vmatpush.bf16.msra.mxu3 %v12050_v44  ;;  %v13984_v2 = vld [vmem:[%s20567_s3 + $0x1094] sm:$0xf0]  ;;  %v6943_v56 = vld [vmem:[#allocation2 + $0x4e] sm:$0x3]  ;;  %v12062_v44 = vor.u32 %v14006_v24, %v12059_v29  ;;  %v12134_v9 = vor.u32 %v14023_v63, %v12133_v33  ;;  %v12117_v18 = vld [vmem:[%s20567_s3 + $0x11a0] sm:$0xf] }
 0x334   :  { %7065 = vmatpush.bf16.msra.mxu0 %v12442_v37  ;;  %v11942_v25 = vor.u32 %v13984_v2, %v11941_v12  ;;  %v14121_v37 = vld [vmem:[%s20567_s3 + $0x14e4] sm:$0xf]  ;;  %v14004_v61 = vld [vmem:[%s20567_s3 + $0x1134] sm:$0xf0]  ;;  %v14019_v7 = vld [vmem:[%s20567_s3 + $0x11ac] sm:$0xf0]  ;;  %v12162_v29 = vor.u32 %v14026_v48, %v12159_v20 }
 0x335   :  { %12416 = vmatmul.msk.bf16.vlgmr.msrb.gmra.mxu0 %vm526_vm0, %v18841_v42  ;;  %v12658_v32 = vor.u32 %v14121_v37, %v12655_v13  ;;  %v12118_v10 = vor.u32 %v14019_v7, %v12117_v18  ;;  %v14022_v33 = vld [vmem:[%s20567_s3 + $0x11cc] sm:$0xf]  ;;  %v12143_v63 = vld [vmem:[%s20567_s3 + $0x11d8] sm:$0xf0]  ;;  %v12141_v58 = vld [vmem:[%s20567_s3 + $0x11c8] sm:$0xf] }
 0x336   :  { %6142 = vmatpush.bf16.msra.mxu2 %v11962_v21 }
 0x337   :  { %6129 = vmatpush.bf16.msra.mxu1 %v11958_v6  ;;  %6261 = vmatpush.bf16.msra.mxu3 %v12034_v49  ;;  %v18959_v49 = vpack.c.bf16 %v6943_v56, %v6943_v56  ;;  %v12217_v56 = vld [vmem:[%s20567_s3 + $0x1240] sm:$0xf] }
 0x338   :  { %7220 = vmatpush.bf16.msrb.mxu0 %v12574_v52  ;;  %v4567_v57 = vpop.f32.mrf.mxu2 }
 0x339   :  { %v4686_v35 = vpop.f32.mrf.mxu3 }
 0x33a   :  { %v4710_v30 = vpop.f32.mrf.mxu1  ;;  %v5647_v34 = vpop.f32.mrf.mxu0  ;;  %6143 = vmatpush.bf16.msra.mxu2 %v11946_v16  ;;  %v14117_v16 = vld [vmem:[%s20567_s3 + $0x14c4] sm:$0xf] }
 0x33b   :  { %v18897_v47 = vadd.f32 %v4710_v30, %v18779_v8  ;;  %6130 = vmatpush.bf16.msra.mxu1 %v11942_v25  ;;  %6262 = vmatpush.bf16.msra.mxu3 %v12018_v15  ;;  %v14008_v8 = vld [vmem:[%s20567_s3 + $0x1154] sm:$0xf0]  ;;  %v12101_v25 = vld [vmem:[%s20567_s3 + $0x1180] sm:$0xf]  ;;  %v14015_v15 = vld [vmem:[%s20567_s3 + $0x118c] sm:$0xf0] }
 0x33c   :  { %7221 = vmatpush.bf16.msrb.mxu0 %v12558_v26  ;;  %v12058_v1 = vor.u32 %v14008_v8, %v12057_v27  ;;  %v12639_v26 = vld [vmem:[%s20567_s3 + $0x14d0] sm:$0xf0]  ;;  %v12102_v57 = vor.u32 %v14015_v15, %v12101_v25  ;;  %v14043_v30 = vld [vmem:[%s20567_s3 + $0x126c] sm:$0xf0]  ;;  %v12109_v15 = vld [vmem:[%s20567_s3 + $0x1188] sm:$0xf] }
 0x33d   :  { %11913 = vmatmul.msk.bf16.vlgmr.msrb.gmra.mxu1 %vm526_vm0, %v18133_v50  ;;  %11914 = vmatmul.msk.bf16.vlgmr.msrb.gmra.mxu2 %vm526_vm0, %v18133_v50  ;;  %v12043_v50 = vld [vmem:[%s20567_s3 + $0x1138] sm:$0xf0]  ;;  %v12642_v14 = vor.u32 %v14117_v16, %v12639_v26  ;;  %v12234_v8 = vor.u32 %v14043_v30, %v12233_v19  ;;  %v14014_v26 = vld [vmem:[%s20567_s3 + $0x118c] sm:$0xf]  ;;  %v12241_v30 = vld [vmem:[%s20567_s3 + $0x1268] sm:$0xf] }
 0x33e   :  { %11995 = vmatmul.msk.bf16.vlgmr.msrb.gmra.mxu3 %vm526_vm0, %v18251_v55  ;;  %6298 = vmatpush.bf16.msrb.mxu2 %v12078_v62  ;;  %v12046_v12 = vor.u32 %v14002_v36, %v12043_v50  ;;  %v14113_v62 = vld [vmem:[%s20567_s3 + $0x14a4] sm:$0xf]  ;;  %v12607_v50 = vld [vmem:[%s20567_s3 + $0x1490] sm:$0xf0]  ;;  %v12243_v19 = vld [vmem:[%s20567_s3 + $0x1278] sm:$0xf0] }
 0x33f   :  { %6285 = vmatpush.bf16.msrb.mxu1 %v12074_v31  ;;  %6417 = vmatpush.bf16.msrb.mxu3 %v12150_v22  ;;  %v12623_v31 = vld [vmem:[%s20567_s3 + $0x14b0] sm:$0xf0]  ;;  %v14109_v36 = vld [vmem:[%s20567_s3 + $0x1484] sm:$0xf] }
 0x340   :  { %v4723_v54 = vpop.f32.mrf.mxu2  ;;  %7222 = vmatpush.bf16.msrb.mxu0 %v12542_v59  ;;  %v12158_v59 = vor.u32 %v14028_v51, %v12157_v40  ;;  %v12626_v53 = vor.u32 %v14113_v62, %v12623_v31  ;;  %v12610_v7 = vor.u32 %v14109_v36, %v12607_v50  ;;  %v14042_v51 = vld [vmem:[%s20567_s3 + $0x126c] sm:$0xf]  ;;  %v14044_v62 = vld [vmem:[%s20567_s3 + $0x1274] sm:$0xf0]  ;;  %v12317_v31 = vld [vmem:[%s20567_s3 + $0x12e0] sm:$0xf] }
 0x341   :  { %v18954_v21 = vadd.f32 %v4723_v54, %v18836_v60  ;;  %v4842_v52 = vpop.f32.mrf.mxu3  ;;  %v12027_v60 = vld [vmem:[%s20567_s3 + $0x1118] sm:$0xf0]  ;;  %v12125_v54 = vld [vmem:[%s20567_s3 + $0x11a8] sm:$0xf] }
 0x342   :  { %v18957_v38 = vadd.f32 %v4842_v52, %v18839_v39  ;;  %v4712_v0 = vpop.f32.mrf.mxu1  ;;  %v5803_v6 = vpop.f32.mrf.mxu0  ;;  %6299 = vmatpush.bf16.msrb.mxu2 %v12062_v44  ;;  %v12042_v39 = vor.u32 %v14004_v61, %v12041_v45  ;;  %v12030_v46 = vor.u32 %v13998_v23, %v12027_v60  ;;  %v14039_v44 = vld [vmem:[%s20567_s3 + $0x124c] sm:$0xf0]  ;;  %v14018_v45 = vld [vmem:[%s20567_s3 + $0x11ac] sm:$0xf]  ;;  %v12739_v61 = vld [vmem:[%s20567_s3 + $0x1570] sm:$0xf0] }
 0x343   :  { %v18968_v2 = vadd.f32 %v5803_v6, %v18850_v43  ;;  %6286 = vmatpush.bf16.msrb.mxu1 %v12058_v1  ;;  %6418 = vmatpush.bf16.msrb.mxu3 %v12134_v9  ;;  %v14000_v43 = vld [vmem:[%s20567_s3 + $0x1114] sm:$0xf0]  ;;  %v7101_v1 = vld [vmem:[#allocation2 + $0x50] sm:$0x3]  ;;  %v12146_v9 = vor.u32 %v14022_v33, %v12143_v63  ;;  %v12218_v13 = vor.u32 %v14039_v44, %v12217_v56  ;;  %v12201_v0 = vld [vmem:[%s20567_s3 + $0x1220] sm:$0xf] }
 0x344   :  { %7223 = vmatpush.bf16.msrb.mxu0 %v12526_v11  ;;  %v12026_v3 = vor.u32 %v14000_v43, %v12025_v28  ;;  %v14137_v11 = vld [vmem:[%s20567_s3 + $0x1564] sm:$0xf]  ;;  %v14020_v52 = vld [vmem:[%s20567_s3 + $0x11b4] sm:$0xf0]  ;;  %v14035_v6 = vld [vmem:[%s20567_s3 + $0x122c] sm:$0xf0]  ;;  %v12246_v63 = vor.u32 %v14042_v51, %v12243_v19 }
 0x345   :  { %12500 = vmatmul.msk.bf16.vlgmr.msra.gmra.mxu0 %vm526_vm0, %v18959_v49  ;;  %v12742_v16 = vor.u32 %v14137_v11, %v12739_v61  ;;  %v12202_v25 = vor.u32 %v14035_v6, %v12201_v0  ;;  %v14038_v56 = vld [vmem:[%s20567_s3 + $0x124c] sm:$0xf]  ;;  %v12227_v44 = vld [vmem:[%s20567_s3 + $0x1258] sm:$0xf0]  ;;  %v12225_v36 = vld [vmem:[%s20567_s3 + $0x1248] sm:$0xf] }
 0x346   :  { %6300 = vmatpush.bf16.msrb.mxu2 %v12046_v12 }
 0x347   :  { %6287 = vmatpush.bf16.msrb.mxu1 %v12042_v39  ;;  %6419 = vmatpush.bf16.msrb.mxu3 %v12118_v10  ;;  %v19077_v10 = vpack.c.bf16 %v7101_v1, %v7101_v1  ;;  %v12301_v1 = vld [vmem:[%s20567_s3 + $0x12c0] sm:$0xf] }
 0x348   :  { %7378 = vmatpush.bf16.msra.mxu0 %v12658_v32  ;;  %v4725_v35 = vpop.f32.mrf.mxu2 }
 0x349   :  { %v4844_v34 = vpop.f32.mrf.mxu3 }
 0x34a   :  { %v4868_v22 = vpop.f32.mrf.mxu1  ;;  %v5805_v24 = vpop.f32.mrf.mxu0  ;;  %6301 = vmatpush.bf16.msrb.mxu2 %v12030_v46  ;;  %v14133_v46 = vld [vmem:[%s20567_s3 + $0x1544] sm:$0xf] }
 0x34b   :  { %v19015_v27 = vadd.f32 %v4868_v22, %v18897_v47  ;;  %6288 = vmatpush.bf16.msrb.mxu1 %v12026_v3  ;;  %6420 = vmatpush.bf16.msrb.mxu3 %v12102_v57  ;;  %v14024_v47 = vld [vmem:[%s20567_s3 + $0x11d4] sm:$0xf0]  ;;  %v12185_v3 = vld [vmem:[%s20567_s3 + $0x1200] sm:$0xf]  ;;  %v14031_v57 = vld [vmem:[%s20567_s3 + $0x120c] sm:$0xf0] }
 0x34c   :  { %7379 = vmatpush.bf16.msra.mxu0 %v12642_v14  ;;  %v12142_v37 = vor.u32 %v14024_v47, %v12141_v58  ;;  %v12723_v14 = vld [vmem:[%s20567_s3 + $0x1550] sm:$0xf0]  ;;  %v12186_v35 = vor.u32 %v14031_v57, %v12185_v3  ;;  %v14059_v22 = vld [vmem:[%s20567_s3 + $0x12ec] sm:$0xf0]  ;;  %v12193_v57 = vld [vmem:[%s20567_s3 + $0x1208] sm:$0xf] }
 0x34d   :  { %11997 = vmatmul.msk.bf16.vlgmr.msra.gmra.mxu1 %vm526_vm0, %v18251_v55  ;;  %11998 = vmatmul.msk.bf16.vlgmr.msra.gmra.mxu2 %vm526_vm0, %v18251_v55  ;;  %v12127_v55 = vld [vmem:[%s20567_s3 + $0x11b8] sm:$0xf0]  ;;  %v12726_v20 = vor.u32 %v14133_v46, %v12723_v14  ;;  %v12318_v47 = vor.u32 %v14059_v22, %v12317_v31  ;;  %v14030_v14 = vld [vmem:[%s20567_s3 + $0x120c] sm:$0xf]  ;;  %v12325_v22 = vld [vmem:[%s20567_s3 + $0x12e8] sm:$0xf] }
 0x34e   :  { %12079 = vmatmul.msk.bf16.vlgmr.msra.gmra.mxu3 %vm526_vm0, %v18369_v4  ;;  %6456 = vmatpush.bf16.msra.mxu2 %v12162_v29  ;;  %v12130_v28 = vor.u32 %v14018_v45, %v12127_v55  ;;  %v14129_v29 = vld [vmem:[%s20567_s3 + $0x1524] sm:$0xf]  ;;  %v12691_v55 = vld [vmem:[%s20567_s3 + $0x1510] sm:$0xf0]  ;;  %v12327_v31 = vld [vmem:[%s20567_s3 + $0x12f8] sm:$0xf0] }
 0x34f   :  { %6443 = vmatpush.bf16.msra.mxu1 %v12158_v59  ;;  %6575 = vmatpush.bf16.msra.mxu3 %v12234_v8  ;;  %v12707_v59 = vld [vmem:[%s20567_s3 + $0x1530] sm:$0xf0]  ;;  %v14125_v45 = vld [vmem:[%s20567_s3 + $0x1504] sm:$0xf] }
 0x350   :  { %v4881_v18 = vpop.f32.mrf.mxu2  ;;  %7380 = vmatpush.bf16.msra.mxu0 %v12626_v53  ;;  %v12242_v53 = vor.u32 %v14044_v62, %v12241_v30  ;;  %v12710_v50 = vor.u32 %v14129_v29, %v12707_v59  ;;  %v12694_v6 = vor.u32 %v14125_v45, %v12691_v55  ;;  %v14058_v62 = vld [vmem:[%s20567_s3 + $0x12ec] sm:$0xf]  ;;  %v14060_v29 = vld [vmem:[%s20567_s3 + $0x12f4] sm:$0xf0]  ;;  %v12401_v59 = vld [vmem:[%s20567_s3 + $0x1360] sm:$0xf] }
 0x351   :  { %v19072_v12 = vadd.f32 %v4881_v18, %v18954_v21  ;;  %v5000_v32 = vpop.f32.mrf.mxu3  ;;  %v12111_v21 = vld [vmem:[%s20567_s3 + $0x1198] sm:$0xf0]  ;;  %v12209_v18 = vld [vmem:[%s20567_s3 + $0x1228] sm:$0xf] }
 0x352   :  { %v19075_v23 = vadd.f32 %v5000_v32, %v18957_v38  ;;  %v4870_v60 = vpop.f32.mrf.mxu1  ;;  %v5961_v39 = vpop.f32.mrf.mxu0  ;;  %6457 = vmatpush.bf16.msra.mxu2 %v12146_v9  ;;  %v12126_v38 = vor.u32 %v14020_v52, %v12125_v54  ;;  %v12114_v48 = vor.u32 %v14014_v26, %v12111_v21  ;;  %v14055_v9 = vld [vmem:[%s20567_s3 + $0x12cc] sm:$0xf0]  ;;  %v14034_v54 = vld [vmem:[%s20567_s3 + $0x122c] sm:$0xf]  ;;  %v12823_v52 = vld [vmem:[%s20567_s3 + $0x15f0] sm:$0xf0] }
 0x353   :  { %v19086_v43 = vadd.f32 %v5961_v39, %v18968_v2  ;;  %6444 = vmatpush.bf16.msra.mxu1 %v12142_v37  ;;  %6576 = vmatpush.bf16.msra.mxu3 %v12218_v13  ;;  %v14016_v2 = vld [vmem:[%s20567_s3 + $0x1194] sm:$0xf0]  ;;  %v7259_v37 = vld [vmem:[#allocation2 + $0x52] sm:$0x3]  ;;  %v12230_v13 = vor.u32 %v14038_v56, %v12227_v44  ;;  %v12302_v61 = vor.u32 %v14055_v9, %v12301_v1  ;;  %v12285_v60 = vld [vmem:[%s20567_s3 + $0x12a0] sm:$0xf] }
 0x354   :  { %7381 = vmatpush.bf16.msra.mxu0 %v12610_v7  ;;  %v12110_v40 = vor.u32 %v14016_v2, %v12109_v15  ;;  %v14153_v7 = vld [vmem:[%s20567_s3 + $0x15e4] sm:$0xf]  ;;  %v14036_v32 = vld [vmem:[%s20567_s3 + $0x1234] sm:$0xf0]  ;;  %v14051_v39 = vld [vmem:[%s20567_s3 + $0x12ac] sm:$0xf0]  ;;  %v12330_v44 = vor.u32 %v14058_v62, %v12327_v31 }
 0x355   :  { %12584 = vmatmul.msk.bf16.vlgmr.msrb.gmra.mxu0 %vm526_vm0, %v19077_v10  ;;  %v12826_v46 = vor.u32 %v14153_v7, %v12823_v52  ;;  %v12286_v3 = vor.u32 %v14051_v39, %v12285_v60  ;;  %v14054_v1 = vld [vmem:[%s20567_s3 + $0x12cc] sm:$0xf]  ;;  %v12311_v9 = vld [vmem:[%s20567_s3 + $0x12d8] sm:$0xf0]  ;;  %v12309_v45 = vld [vmem:[%s20567_s3 + $0x12c8] sm:$0xf] }
 0x356   :  { %6458 = vmatpush.bf16.msra.mxu2 %v12130_v28 }
 0x357   :  { %6445 = vmatpush.bf16.msra.mxu1 %v12126_v38  ;;  %6577 = vmatpush.bf16.msra.mxu3 %v12202_v25  ;;  %v19195_v25 = vpack.c.bf16 %v7259_v37, %v7259_v37  ;;  %v12385_v37 = vld [vmem:[%s20567_s3 + $0x1340] sm:$0xf] }
 0x358   :  { %7536 = vmatpush.bf16.msrb.mxu0 %v12742_v16  ;;  %v4883_v34 = vpop.f32.mrf.mxu2 }
 0x359   :  { %v5002_v24 = vpop.f32.mrf.mxu3 }
 0x35a   :  { %v5026_v8 = vpop.f32.mrf.mxu1  ;;  %v5963_v33 = vpop.f32.mrf.mxu0  ;;  %6459 = vmatpush.bf16.msra.mxu2 %v12114_v48  ;;  %v14149_v48 = vld [vmem:[%s20567_s3 + $0x15c4] sm:$0xf] }
 0x35b   :  { %v19133_v58 = vadd.f32 %v5026_v8, %v19015_v27  ;;  %6446 = vmatpush.bf16.msra.mxu1 %v12110_v40  ;;  %6578 = vmatpush.bf16.msra.mxu3 %v12186_v35  ;;  %v14040_v27 = vld [vmem:[%s20567_s3 + $0x1254] sm:$0xf0]  ;;  %v12269_v40 = vld [vmem:[%s20567_s3 + $0x1280] sm:$0xf]  ;;  %v14047_v35 = vld [vmem:[%s20567_s3 + $0x128c] sm:$0xf0] }
 0x35c   :  { %7537 = vmatpush.bf16.msrb.mxu0 %v12726_v20  ;;  %v12226_v11 = vor.u32 %v14040_v27, %v12225_v36  ;;  %v12807_v20 = vld [vmem:[%s20567_s3 + $0x15d0] sm:$0xf0]  ;;  %v12270_v34 = vor.u32 %v14047_v35, %v12269_v40  ;;  %v14075_v8 = vld [vmem:[%s20567_s3 + $0x136c] sm:$0xf0]  ;;  %v12277_v35 = vld [vmem:[%s20567_s3 + $0x1288] sm:$0xf] }
 0x35d   :  { %12081 = vmatmul.msk.bf16.vlgmr.msrb.gmra.mxu1 %vm526_vm0, %v18369_v4  ;;  %12082 = vmatmul.msk.bf16.vlgmr.msrb.gmra.mxu2 %vm526_vm0, %v18369_v4  ;;  %v12211_v4 = vld [vmem:[%s20567_s3 + $0x1238] sm:$0xf0]  ;;  %v12810_v19 = vor.u32 %v14149_v48, %v12807_v20  ;;  %v12402_v27 = vor.u32 %v14075_v8, %v12401_v59  ;;  %v14046_v20 = vld [vmem:[%s20567_s3 + $0x128c] sm:$0xf]  ;;  %v12409_v8 = vld [vmem:[%s20567_s3 + $0x1368] sm:$0xf] }
 0x35e   :  { %12163 = vmatmul.msk.bf16.vlgmr.msrb.gmra.mxu3 %vm526_vm0, %v18487_v17  ;;  %6614 = vmatpush.bf16.msrb.mxu2 %v12246_v63  ;;  %v12214_v15 = vor.u32 %v14034_v54, %v12211_v4  ;;  %v14145_v63 = vld [vmem:[%s20567_s3 + $0x15a4] sm:$0xf]  ;;  %v12775_v4 = vld [vmem:[%s20567_s3 + $0x1590] sm:$0xf0]  ;;  %v12411_v59 = vld [vmem:[%s20567_s3 + $0x1378] sm:$0xf0] }
 0x35f   :  { %6601 = vmatpush.bf16.msrb.mxu1 %v12242_v53  ;;  %6733 = vmatpush.bf16.msrb.mxu3 %v12318_v47  ;;  %v12791_v53 = vld [vmem:[%s20567_s3 + $0x15b0] sm:$0xf0]  ;;  %v14141_v54 = vld [vmem:[%s20567_s3 + $0x1584] sm:$0xf] }
 0x360   :  { %v5039_v0 = vpop.f32.mrf.mxu2  ;;  %7538 = vmatpush.bf16.msrb.mxu0 %v12710_v50  ;;  %v12326_v50 = vor.u32 %v14060_v29, %v12325_v22  ;;  %v12794_v55 = vor.u32 %v14145_v63, %v12791_v53  ;;  %v12778_v39 = vor.u32 %v14141_v54, %v12775_v4  ;;  %v14074_v29 = vld [vmem:[%s20567_s3 + $0x136c] sm:$0xf]  ;;  %v14076_v63 = vld [vmem:[%s20567_s3 + $0x1374] sm:$0xf0]  ;;  %v12485_v53 = vld [vmem:[%s20567_s3 + $0x13e0] sm:$0xf] }
 0x361   :  { %v19190_v28 = vadd.f32 %v5039_v0, %v19072_v12  ;;  %v5158_v16 = vpop.f32.mrf.mxu3  ;;  %v12195_v12 = vld [vmem:[%s20567_s3 + $0x1218] sm:$0xf0]  ;;  %v12293_v0 = vld [vmem:[%s20567_s3 + $0x12a8] sm:$0xf] }
 0x362   :  { %v19193_v26 = vadd.f32 %v5158_v16, %v19075_v23  ;;  %v5028_v21 = vpop.f32.mrf.mxu1  ;;  %v6119_v38 = vpop.f32.mrf.mxu0  ;;  %6615 = vmatpush.bf16.msrb.mxu2 %v12230_v13  ;;  %v12210_v23 = vor.u32 %v14036_v32, %v12209_v18  ;;  %v12198_v51 = vor.u32 %v14030_v14, %v12195_v12  ;;  %v14071_v13 = vld [vmem:[%s20567_s3 + $0x134c] sm:$0xf0]  ;;  %v14050_v18 = vld [vmem:[%s20567_s3 + $0x12ac] sm:$0xf]  ;;  %v12907_v32 = vld [vmem:[%s20567_s3 + $0x1670] sm:$0xf0] }
 0x363   :  { %v19204_v2 = vadd.f32 %v6119_v38, %v19086_v43  ;;  %6602 = vmatpush.bf16.msrb.mxu1 %v12226_v11  ;;  %6734 = vmatpush.bf16.msrb.mxu3 %v12302_v61  ;;  %v14032_v43 = vld [vmem:[%s20567_s3 + $0x1214] sm:$0xf0]  ;;  %v7417_v11 = vld [vmem:[#allocation2 + $0x54] sm:$0x3]  ;;  %v12314_v61 = vor.u32 %v14054_v1, %v12311_v9  ;;  %v12386_v52 = vor.u32 %v14071_v13, %v12385_v37  ;;  %v12369_v21 = vld [vmem:[%s20567_s3 + $0x1320] sm:$0xf] }
 0x364   :  { %7539 = vmatpush.bf16.msrb.mxu0 %v12694_v6  ;;  %v12194_v30 = vor.u32 %v14032_v43, %v12193_v57  ;;  %v14169_v6 = vld [vmem:[%s20567_s3 + $0x1664] sm:$0xf]  ;;  %v14052_v16 = vld [vmem:[%s20567_s3 + $0x12b4] sm:$0xf0]  ;;  %v14067_v38 = vld [vmem:[%s20567_s3 + $0x132c] sm:$0xf0]  ;;  %v12414_v9 = vor.u32 %v14074_v29, %v12411_v59 }
 0x365   :  { %12668 = vmatmul.msk.bf16.vlgmr.msra.gmra.mxu0 %vm526_vm0, %v19195_v25  ;;  %v12910_v48 = vor.u32 %v14169_v6, %v12907_v32  ;;  %v12370_v40 = vor.u32 %v14067_v38, %v12369_v21  ;;  %v14070_v37 = vld [vmem:[%s20567_s3 + $0x134c] sm:$0xf]  ;;  %v12395_v13 = vld [vmem:[%s20567_s3 + $0x1358] sm:$0xf0]  ;;  %v12393_v54 = vld [vmem:[%s20567_s3 + $0x1348] sm:$0xf] }
 0x366   :  { %6616 = vmatpush.bf16.msrb.mxu2 %v12214_v15 }
 0x367   :  { %6603 = vmatpush.bf16.msrb.mxu1 %v12210_v23  ;;  %6735 = vmatpush.bf16.msrb.mxu3 %v12286_v3  ;;  %v19313_v3 = vpack.c.bf16 %v7417_v11, %v7417_v11  ;;  %v12469_v11 = vld [vmem:[%s20567_s3 + $0x13c0] sm:$0xf] }
 0x368   :  { %7694 = vmatpush.bf16.msra.mxu0 %v12826_v46  ;;  %v5041_v24 = vpop.f32.mrf.mxu2 }
 0x369   :  { %v5160_v33 = vpop.f32.mrf.mxu3 }
 0x36a   :  { %v5184_v47 = vpop.f32.mrf.mxu1  ;;  %v6121_v56 = vpop.f32.mrf.mxu0  ;;  %6617 = vmatpush.bf16.msrb.mxu2 %v12198_v51  ;;  %v14165_v51 = vld [vmem:[%s20567_s3 + $0x1644] sm:$0xf] }
 0x36b   :  { %v19251_v36 = vadd.f32 %v5184_v47, %v19133_v58  ;;  %6604 = vmatpush.bf16.msrb.mxu1 %v12194_v30  ;;  %6736 = vmatpush.bf16.msrb.mxu3 %v12270_v34  ;;  %v14056_v58 = vld [vmem:[%s20567_s3 + $0x12d4] sm:$0xf0]  ;;  %v12353_v30 = vld [vmem:[%s20567_s3 + $0x1300] sm:$0xf]  ;;  %v14063_v34 = vld [vmem:[%s20567_s3 + $0x130c] sm:$0xf0] }
 0x36c   :  { %7695 = vmatpush.bf16.msra.mxu0 %v12810_v19  ;;  %v12310_v7 = vor.u32 %v14056_v58, %v12309_v45  ;;  %v12891_v19 = vld [vmem:[%s20567_s3 + $0x1650] sm:$0xf0]  ;;  %v12354_v24 = vor.u32 %v14063_v34, %v12353_v30  ;;  %v14091_v47 = vld [vmem:[%s20567_s3 + $0x13ec] sm:$0xf0]  ;;  %v12361_v34 = vld [vmem:[%s20567_s3 + $0x1308] sm:$0xf] }
 0x36d   :  { %12165 = vmatmul.msk.bf16.vlgmr.msra.gmra.mxu1 %vm526_vm0, %v18487_v17  ;;  %12166 = vmatmul.msk.bf16.vlgmr.msra.gmra.mxu2 %vm526_vm0, %v18487_v17  ;;  %v12295_v17 = vld [vmem:[%s20567_s3 + $0x12b8] sm:$0xf0]  ;;  %v12894_v31 = vor.u32 %v14165_v51, %v12891_v19  ;;  %v12486_v58 = vor.u32 %v14091_v47, %v12485_v53  ;;  %v14062_v19 = vld [vmem:[%s20567_s3 + $0x130c] sm:$0xf]  ;;  %v12493_v47 = vld [vmem:[%s20567_s3 + $0x13e8] sm:$0xf] }
 0x36e   :  { %12247 = vmatmul.msk.bf16.vlgmr.msra.gmra.mxu3 %vm526_vm0, %v18605_v41  ;;  %6772 = vmatpush.bf16.msra.mxu2 %v12330_v44  ;;  %v12298_v57 = vor.u32 %v14050_v18, %v12295_v17  ;;  %v14161_v44 = vld [vmem:[%s20567_s3 + $0x1624] sm:$0xf]  ;;  %v12859_v17 = vld [vmem:[%s20567_s3 + $0x1610] sm:$0xf0]  ;;  %v12495_v53 = vld [vmem:[%s20567_s3 + $0x13f8] sm:$0xf0] }
 0x36f   :  { %6759 = vmatpush.bf16.msra.mxu1 %v12326_v50  ;;  %6891 = vmatpush.bf16.msra.mxu3 %v12402_v27  ;;  %v12875_v50 = vld [vmem:[%s20567_s3 + $0x1630] sm:$0xf0]  ;;  %v14157_v18 = vld [vmem:[%s20567_s3 + $0x1604] sm:$0xf] }
 0x370   :  { %v5197_v60 = vpop.f32.mrf.mxu2  ;;  %7696 = vmatpush.bf16.msra.mxu0 %v12794_v55  ;;  %v12410_v55 = vor.u32 %v14076_v63, %v12409_v8  ;;  %v12878_v4 = vor.u32 %v14161_v44, %v12875_v50  ;;  %v12862_v38 = vor.u32 %v14157_v18, %v12859_v17  ;;  %v14090_v63 = vld [vmem:[%s20567_s3 + $0x13ec] sm:$0xf]  ;;  %v14092_v44 = vld [vmem:[%s20567_s3 + $0x13f4] sm:$0xf0]  ;;  %v12569_v50 = vld [vmem:[%s20567_s3 + $0x1460] sm:$0xf] }
 0x371   :  { %v19308_v15 = vadd.f32 %v5197_v60, %v19190_v28  ;;  %v5316_v46 = vpop.f32.mrf.mxu3  ;;  %v12279_v28 = vld [vmem:[%s20567_s3 + $0x1298] sm:$0xf0]  ;;  %v12377_v60 = vld [vmem:[%s20567_s3 + $0x1328] sm:$0xf] }
 0x372   :  { %v19311_v14 = vadd.f32 %v5316_v46, %v19193_v26  ;;  %v5186_v12 = vpop.f32.mrf.mxu1  ;;  %v6277_v23 = vpop.f32.mrf.mxu0  ;;  %6773 = vmatpush.bf16.msra.mxu2 %v12314_v61  ;;  %v12294_v26 = vor.u32 %v14052_v16, %v12293_v0  ;;  %v12282_v62 = vor.u32 %v14046_v20, %v12279_v28  ;;  %v14087_v61 = vld [vmem:[%s20567_s3 + $0x13cc] sm:$0xf0]  ;;  %v14066_v0 = vld [vmem:[%s20567_s3 + $0x132c] sm:$0xf]  ;;  %v12991_v16 = vld [vmem:[%s20567_s3 + $0x16f0] sm:$0xf0] }
 0x373   :  { %v19322_v43 = vadd.f32 %v6277_v23, %v19204_v2  ;;  %6760 = vmatpush.bf16.msra.mxu1 %v12310_v7  ;;  %6892 = vmatpush.bf16.msra.mxu3 %v12386_v52  ;;  %v14048_v2 = vld [vmem:[%s20567_s3 + $0x1294] sm:$0xf0]  ;;  %v7575_v7 = vld [vmem:[#allocation2 + $0x56] sm:$0x3]  ;;  %v12398_v52 = vor.u32 %v14070_v37, %v12395_v13  ;;  %v12470_v32 = vor.u32 %v14087_v61, %v12469_v11  ;;  %v12453_v12 = vld [vmem:[%s20567_s3 + $0x13a0] sm:$0xf] }
 0x374   :  { %7697 = vmatpush.bf16.msra.mxu0 %v12778_v39  ;;  %v12278_v22 = vor.u32 %v14048_v2, %v12277_v35  ;;  %v14185_v39 = vld [vmem:[%s20567_s3 + $0x16e4] sm:$0xf]  ;;  %v14068_v46 = vld [vmem:[%s20567_s3 + $0x1334] sm:$0xf0]  ;;  %v14083_v23 = vld [vmem:[%s20567_s3 + $0x13ac] sm:$0xf0]  ;;  %v12498_v13 = vor.u32 %v14090_v63, %v12495_v53 }
 0x375   :  { %12752 = vmatmul.msk.bf16.vlgmr.msrb.gmra.mxu0 %vm526_vm0, %v19313_v3  ;;  %v12994_v51 = vor.u32 %v14185_v39, %v12991_v16  ;;  %v12454_v30 = vor.u32 %v14083_v23, %v12453_v12  ;;  %v14086_v11 = vld [vmem:[%s20567_s3 + $0x13cc] sm:$0xf]  ;;  %v12479_v61 = vld [vmem:[%s20567_s3 + $0x13d8] sm:$0xf0]  ;;  %v12477_v18 = vld [vmem:[%s20567_s3 + $0x13c8] sm:$0xf] }
 0x376   :  { %6774 = vmatpush.bf16.msra.mxu2 %v12298_v57 }
 0x377   :  { %6761 = vmatpush.bf16.msra.mxu1 %v12294_v26  ;;  %6893 = vmatpush.bf16.msra.mxu3 %v12370_v40  ;;  %v19431_v40 = vpack.c.bf16 %v7575_v7, %v7575_v7  ;;  %v12553_v7 = vld [vmem:[%s20567_s3 + $0x1440] sm:$0xf] }
 0x378   :  { %7852 = vmatpush.bf16.msrb.mxu0 %v12910_v48  ;;  %v5199_v33 = vpop.f32.mrf.mxu2 }
 0x379   :  { %v5318_v56 = vpop.f32.mrf.mxu3 }
 0x37a   :  { %v5342_v27 = vpop.f32.mrf.mxu1  ;;  %v6279_v1 = vpop.f32.mrf.mxu0  ;;  %6775 = vmatpush.bf16.msra.mxu2 %v12282_v62  ;;  %v14181_v62 = vld [vmem:[%s20567_s3 + $0x16c4] sm:$0xf] }
 0x37b   :  { %v19369_v45 = vadd.f32 %v5342_v27, %v19251_v36  ;;  %6762 = vmatpush.bf16.msra.mxu1 %v12278_v22  ;;  %6894 = vmatpush.bf16.msra.mxu3 %v12354_v24  ;;  %v14072_v36 = vld [vmem:[%s20567_s3 + $0x1354] sm:$0xf0]  ;;  %v12437_v22 = vld [vmem:[%s20567_s3 + $0x1380] sm:$0xf]  ;;  %v14079_v24 = vld [vmem:[%s20567_s3 + $0x138c] sm:$0xf0] }
 0x37c   :  { %7853 = vmatpush.bf16.msrb.mxu0 %v12894_v31  ;;  %v12394_v6 = vor.u32 %v14072_v36, %v12393_v54  ;;  %v12975_v31 = vld [vmem:[%s20567_s3 + $0x16d0] sm:$0xf0]  ;;  %v12438_v33 = vor.u32 %v14079_v24, %v12437_v22  ;;  %v14107_v27 = vld [vmem:[%s20567_s3 + $0x146c] sm:$0xf0]  ;;  %v12445_v24 = vld [vmem:[%s20567_s3 + $0x1388] sm:$0xf] }
 0x37d   :  { %12249 = vmatmul.msk.bf16.vlgmr.msrb.gmra.mxu1 %vm526_vm0, %v18605_v41  ;;  %12250 = vmatmul.msk.bf16.vlgmr.msrb.gmra.mxu2 %vm526_vm0, %v18605_v41  ;;  %v12379_v41 = vld [vmem:[%s20567_s3 + $0x1338] sm:$0xf0]  ;;  %v12978_v59 = vor.u32 %v14181_v62, %v12975_v31  ;;  %v12570_v36 = vor.u32 %v14107_v27, %v12569_v50  ;;  %v14078_v31 = vld [vmem:[%s20567_s3 + $0x138c] sm:$0xf]  ;;  %v12577_v27 = vld [vmem:[%s20567_s3 + $0x1468] sm:$0xf] }
 0x37e   :  { %12331 = vmatmul.msk.bf16.vlgmr.msrb.gmra.mxu3 %vm526_vm0, %v18723_v5  ;;  %6930 = vmatpush.bf16.msrb.mxu2 %v12414_v9  ;;  %v12382_v35 = vor.u32 %v14066_v0, %v12379_v41  ;;  %v14177_v9 = vld [vmem:[%s20567_s3 + $0x16a4] sm:$0xf]  ;;  %v12943_v41 = vld [vmem:[%s20567_s3 + $0x1690] sm:$0xf0]  ;;  %v12579_v50 = vld [vmem:[%s20567_s3 + $0x1478] sm:$0xf0] }
 0x37f   :  { %6917 = vmatpush.bf16.msrb.mxu1 %v12410_v55  ;;  %7049 = vmatpush.bf16.msrb.mxu3 %v12486_v58  ;;  %v12959_v55 = vld [vmem:[%s20567_s3 + $0x16b0] sm:$0xf0]  ;;  %v14173_v0 = vld [vmem:[%s20567_s3 + $0x1684] sm:$0xf] }
 0x380   :  { %v5355_v21 = vpop.f32.mrf.mxu2  ;;  %7854 = vmatpush.bf16.msrb.mxu0 %v12878_v4  ;;  %v12494_v4 = vor.u32 %v14092_v44, %v12493_v47  ;;  %v12962_v17 = vor.u32 %v14177_v9, %v12959_v55  ;;  %v12946_v23 = vor.u32 %v14173_v0, %v12943_v41  ;;  %v14106_v44 = vld [vmem:[%s20567_s3 + $0x146c] sm:$0xf]  ;;  %v14108_v9 = vld [vmem:[%s20567_s3 + $0x1474] sm:$0xf0]  ;;  %v12653_v55 = vld [vmem:[%s20567_s3 + $0x14e0] sm:$0xf] }
 0x381   :  { %v19426_v57 = vadd.f32 %v5355_v21, %v19308_v15  ;;  %v5474_v48 = vpop.f32.mrf.mxu3  ;;  %v12363_v15 = vld [vmem:[%s20567_s3 + $0x1318] sm:$0xf0]  ;;  %v12461_v21 = vld [vmem:[%s20567_s3 + $0x13a8] sm:$0xf] }
 0x382   :  { %v19429_v20 = vadd.f32 %v5474_v48, %v19311_v14  ;;  %v5344_v28 = vpop.f32.mrf.mxu1  ;;  %v6435_v26 = vpop.f32.mrf.mxu0  ;;  %6931 = vmatpush.bf16.msrb.mxu2 %v12398_v52  ;;  %v12378_v14 = vor.u32 %v14068_v46, %v12377_v60  ;;  %v12366_v29 = vor.u32 %v14062_v19, %v12363_v15  ;;  %v14103_v52 = vld [vmem:[%s20567_s3 + $0x144c] sm:$0xf0]  ;;  %v14082_v60 = vld [vmem:[%s20567_s3 + $0x13ac] sm:$0xf]  ;;  %v13075_v46 = vld [vmem:[%s20567_s3 + $0x1770] sm:$0xf0] }
 0x383   :  { %v19440_v2 = vadd.f32 %v6435_v26, %v19322_v43  ;;  %6918 = vmatpush.bf16.msrb.mxu1 %v12394_v6  ;;  %7050 = vmatpush.bf16.msrb.mxu3 %v12470_v32  ;;  %v14064_v43 = vld [vmem:[%s20567_s3 + $0x1314] sm:$0xf0]  ;;  %v12482_v32 = vor.u32 %v14086_v11, %v12479_v61  ;;  %v12554_v16 = vor.u32 %v14103_v52, %v12553_v7  ;;  %v12537_v28 = vld [vmem:[%s20567_s3 + $0x1420] sm:$0xf]  ;;  %v14099_v26 = vld [vmem:[%s20567_s3 + $0x142c] sm:$0xf0] }
 0x384   :  { %7855 = vmatpush.bf16.msrb.mxu0 %v12862_v38  ;;  %v12362_v8 = vor.u32 %v14064_v43, %v12361_v34  ;;  %v7733_v6 = vld [vmem:[#allocation2 + $0x58] sm:$0x3]  ;;  %v14201_v38 = vld [vmem:[%s20567_s3 + $0x1764] sm:$0xf]  ;;  %v12538_v22 = vor.u32 %v14099_v26, %v12537_v28  ;;  %v12582_v61 = vor.u32 %v14106_v44, %v12579_v50  ;;  %v14102_v7 = vld [vmem:[%s20567_s3 + $0x144c] sm:$0xf] }
 0x385   :  { %12836 = vmatmul.msk.bf16.vlgmr.msra.gmra.mxu0 %vm526_vm0, %v19431_v40  ;;  %v14084_v48 = vld [vmem:[%s20567_s3 + $0x13b4] sm:$0xf0]  ;;  %v13078_v62 = vor.u32 %v14201_v38, %v13075_v46  ;;  %v12563_v52 = vld [vmem:[%s20567_s3 + $0x1458] sm:$0xf0]  ;;  %v12561_v0 = vld [vmem:[%s20567_s3 + $0x1448] sm:$0xf] }
 0x386   :  { %6932 = vmatpush.bf16.msrb.mxu2 %v12382_v35 }
 0x387   :  { %6919 = vmatpush.bf16.msrb.mxu1 %v12378_v14  ;;  %7051 = vmatpush.bf16.msrb.mxu3 %v12454_v30  ;;  %v19549_v30 = vpack.c.bf16 %v7733_v6, %v7733_v6  ;;  %v12637_v6 = vld [vmem:[%s20567_s3 + $0x14c0] sm:$0xf] }
 0x388   :  { %8010 = vmatpush.bf16.msra.mxu0 %v12994_v51  ;;  %v5357_v56 = vpop.f32.mrf.mxu2 }
 0x389   :  { %v5476_v1 = vpop.f32.mrf.mxu3 }
 0x38a   :  { %v5500_v58 = vpop.f32.mrf.mxu1  ;;  %v6437_v37 = vpop.f32.mrf.mxu0  ;;  %6933 = vmatpush.bf16.msrb.mxu2 %v12366_v29  ;;  %v14197_v29 = vld [vmem:[%s20567_s3 + $0x1744] sm:$0xf] }
 0x38b   :  { %v19487_v54 = vadd.f32 %v5500_v58, %v19369_v45  ;;  %6920 = vmatpush.bf16.msrb.mxu1 %v12362_v8  ;;  %7052 = vmatpush.bf16.msrb.mxu3 %v12438_v33  ;;  %v14088_v45 = vld [vmem:[%s20567_s3 + $0x13d4] sm:$0xf0]  ;;  %v12521_v8 = vld [vmem:[%s20567_s3 + $0x1400] sm:$0xf]  ;;  %v14095_v33 = vld [vmem:[%s20567_s3 + $0x140c] sm:$0xf0] }
 0x38c   :  { %8011 = vmatpush.bf16.msra.mxu0 %v12978_v59  ;;  %v12478_v39 = vor.u32 %v14088_v45, %v12477_v18  ;;  %v13059_v59 = vld [vmem:[%s20567_s3 + $0x1750] sm:$0xf0]  ;;  %v12522_v56 = vor.u32 %v14095_v33, %v12521_v8  ;;  %v14123_v58 = vld [vmem:[%s20567_s3 + $0x14ec] sm:$0xf0]  ;;  %v12529_v33 = vld [vmem:[%s20567_s3 + $0x1408] sm:$0xf] }
 0x38d   :  { %12333 = vmatmul.msk.bf16.vlgmr.msra.gmra.mxu1 %vm526_vm0, %v18723_v5  ;;  %12334 = vmatmul.msk.bf16.vlgmr.msra.gmra.mxu2 %vm526_vm0, %v18723_v5  ;;  %v12463_v5 = vld [vmem:[%s20567_s3 + $0x13b8] sm:$0xf0]  ;;  %v13062_v53 = vor.u32 %v14197_v29, %v13059_v59  ;;  %v12654_v45 = vor.u32 %v14123_v58, %v12653_v55  ;;  %v14094_v59 = vld [vmem:[%s20567_s3 + $0x140c] sm:$0xf]  ;;  %v12661_v58 = vld [vmem:[%s20567_s3 + $0x14e8] sm:$0xf] }
 0x38e   :  { %12415 = vmatmul.msk.bf16.vlgmr.msra.gmra.mxu3 %vm526_vm0, %v18841_v42  ;;  %7088 = vmatpush.bf16.msra.mxu2 %v12498_v13  ;;  %v12466_v34 = vor.u32 %v14082_v60, %v12463_v5  ;;  %v14193_v13 = vld [vmem:[%s20567_s3 + $0x1724] sm:$0xf]  ;;  %v13027_v5 = vld [vmem:[%s20567_s3 + $0x1710] sm:$0xf0]  ;;  %v12663_v55 = vld [vmem:[%s20567_s3 + $0x14f8] sm:$0xf0] }
 0x38f   :  { %7075 = vmatpush.bf16.msra.mxu1 %v12494_v4  ;;  %7207 = vmatpush.bf16.msra.mxu3 %v12570_v36  ;;  %v13043_v4 = vld [vmem:[%s20567_s3 + $0x1730] sm:$0xf0]  ;;  %v14189_v60 = vld [vmem:[%s20567_s3 + $0x1704] sm:$0xf] }
 0x390   :  { %v5513_v12 = vpop.f32.mrf.mxu2  ;;  %8012 = vmatpush.bf16.msra.mxu0 %v12962_v17  ;;  %v12578_v17 = vor.u32 %v14108_v9, %v12577_v27  ;;  %v13046_v41 = vor.u32 %v14193_v13, %v13043_v4  ;;  %v13030_v26 = vor.u32 %v14189_v60, %v13027_v5  ;;  %v14122_v9 = vld [vmem:[%s20567_s3 + $0x14ec] sm:$0xf]  ;;  %v14124_v13 = vld [vmem:[%s20567_s3 + $0x14f4] sm:$0xf0]  ;;  %v12737_v4 = vld [vmem:[%s20567_s3 + $0x1560] sm:$0xf] }
 0x391   :  { %v19544_v35 = vadd.f32 %v5513_v12, %v19426_v57  ;;  %v5632_v51 = vpop.f32.mrf.mxu3  ;;  %v12447_v57 = vld [vmem:[%s20567_s3 + $0x1398] sm:$0xf0]  ;;  %v12545_v12 = vld [vmem:[%s20567_s3 + $0x1428] sm:$0xf] }
 0x392   :  { %v19547_v19 = vadd.f32 %v5632_v51, %v19429_v20  ;;  %v5502_v15 = vpop.f32.mrf.mxu1  ;;  %v6593_v14 = vpop.f32.mrf.mxu0  ;;  %7089 = vmatpush.bf16.msra.mxu2 %v12482_v32  ;;  %v12462_v20 = vor.u32 %v14084_v48, %v12461_v21  ;;  %v12450_v63 = vor.u32 %v14078_v31, %v12447_v57  ;;  %v14119_v32 = vld [vmem:[%s20567_s3 + $0x14cc] sm:$0xf0]  ;;  %v14098_v21 = vld [vmem:[%s20567_s3 + $0x142c] sm:$0xf]  ;;  %v13159_v48 = vld [vmem:[%s20567_s3 + $0x17f0] sm:$0xf0] }
 0x393   :  { %v19558_v43 = vadd.f32 %v6593_v14, %v19440_v2  ;;  %7076 = vmatpush.bf16.msra.mxu1 %v12478_v39  ;;  %7208 = vmatpush.bf16.msra.mxu3 %v12554_v16  ;;  %v14080_v2 = vld [vmem:[%s20567_s3 + $0x1394] sm:$0xf0]  ;;  %v12566_v16 = vor.u32 %v14102_v7, %v12563_v52  ;;  %v12638_v46 = vor.u32 %v14119_v32, %v12637_v6  ;;  %v12621_v15 = vld [vmem:[%s20567_s3 + $0x14a0] sm:$0xf]  ;;  %v14115_v14 = vld [vmem:[%s20567_s3 + $0x14ac] sm:$0xf0] }
 0x394   :  { %8013 = vmatpush.bf16.msra.mxu0 %v12946_v23  ;;  %v12446_v47 = vor.u32 %v14080_v2, %v12445_v24  ;;  %v7891_v39 = vld [vmem:[#allocation2 + $0x5a] sm:$0x3]  ;;  %v14217_v23 = vld [vmem:[%s20567_s3 + $0x17e4] sm:$0xf]  ;;  %v12622_v8 = vor.u32 %v14115_v14, %v12621_v15  ;;  %v12666_v52 = vor.u32 %v14122_v9, %v12663_v55  ;;  %v14118_v6 = vld [vmem:[%s20567_s3 + $0x14cc] sm:$0xf] }
 0x395   :  { %12920 = vmatmul.msk.bf16.vlgmr.msrb.gmra.mxu0 %vm526_vm0, %v19549_v30  ;;  %v14100_v51 = vld [vmem:[%s20567_s3 + $0x1434] sm:$0xf0]  ;;  %v13162_v29 = vor.u32 %v14217_v23, %v13159_v48  ;;  %v12647_v32 = vld [vmem:[%s20567_s3 + $0x14d8] sm:$0xf0]  ;;  %v12645_v60 = vld [vmem:[%s20567_s3 + $0x14c8] sm:$0xf] }
 0x396   :  { %7090 = vmatpush.bf16.msra.mxu2 %v12466_v34 }
 0x397   :  { %7077 = vmatpush.bf16.msra.mxu1 %v12462_v20  ;;  %7209 = vmatpush.bf16.msra.mxu3 %v12538_v22  ;;  %v19667_v22 = vpack.c.bf16 %v7891_v39, %v7891_v39  ;;  %v12721_v39 = vld [vmem:[%s20567_s3 + $0x1540] sm:$0xf] }
 0x398   :  { %8168 = vmatpush.bf16.msrb.mxu0 %v13078_v62  ;;  %v5515_v1 = vpop.f32.mrf.mxu2 }
 0x399   :  { %v5634_v37 = vpop.f32.mrf.mxu3 }
 0x39a   :  { %v5658_v36 = vpop.f32.mrf.mxu1  ;;  %v6595_v11 = vpop.f32.mrf.mxu0  ;;  %7091 = vmatpush.bf16.msra.mxu2 %v12450_v63  ;;  %v14213_v63 = vld [vmem:[%s20567_s3 + $0x17c4] sm:$0xf] }
 0x39b   :  { %v19605_v18 = vadd.f32 %v5658_v36, %v19487_v54  ;;  %7078 = vmatpush.bf16.msra.mxu1 %v12446_v47  ;;  %7210 = vmatpush.bf16.msra.mxu3 %v12522_v56  ;;  %v14104_v54 = vld [vmem:[%s20567_s3 + $0x1454] sm:$0xf0]  ;;  %v12605_v47 = vld [vmem:[%s20567_s3 + $0x1480] sm:$0xf]  ;;  %v14111_v56 = vld [vmem:[%s20567_s3 + $0x148c] sm:$0xf0] }
 0x39c   :  { %8169 = vmatpush.bf16.msrb.mxu0 %v13062_v53  ;;  %v12562_v38 = vor.u32 %v14104_v54, %v12561_v0  ;;  %v13143_v53 = vld [vmem:[%s20567_s3 + $0x17d0] sm:$0xf0]  ;;  %v12606_v1 = vor.u32 %v14111_v56, %v12605_v47  ;;  %v14139_v36 = vld [vmem:[%s20567_s3 + $0x156c] sm:$0xf0]  ;;  %v12613_v56 = vld [vmem:[%s20567_s3 + $0x1488] sm:$0xf] }
 0x39d   :  { %12417 = vmatmul.msk.bf16.vlgmr.msrb.gmra.mxu1 %vm526_vm0, %v18841_v42  ;;  %12418 = vmatmul.msk.bf16.vlgmr.msrb.gmra.mxu2 %vm526_vm0, %v18841_v42  ;;  %v12547_v42 = vld [vmem:[%s20567_s3 + $0x1438] sm:$0xf0]  ;;  %v13146_v50 = vor.u32 %v14213_v63, %v13143_v53  ;;  %v12738_v54 = vor.u32 %v14139_v36, %v12737_v4  ;;  %v14110_v53 = vld [vmem:[%s20567_s3 + $0x148c] sm:$0xf]  ;;  %v12745_v36 = vld [vmem:[%s20567_s3 + $0x1568] sm:$0xf] }
 0x39e   :  { %12499 = vmatmul.msk.bf16.vlgmr.msrb.gmra.mxu3 %vm526_vm0, %v18959_v49  ;;  %7246 = vmatpush.bf16.msrb.mxu2 %v12582_v61  ;;  %v12550_v24 = vor.u32 %v14098_v21, %v12547_v42  ;;  %v14209_v61 = vld [vmem:[%s20567_s3 + $0x17a4] sm:$0xf]  ;;  %v13111_v42 = vld [vmem:[%s20567_s3 + $0x1790] sm:$0xf0]  ;;  %v12747_v4 = vld [vmem:[%s20567_s3 + $0x1578] sm:$0xf0] }
 0x39f   :  { %7233 = vmatpush.bf16.msrb.mxu1 %v12578_v17  ;;  %7365 = vmatpush.bf16.msrb.mxu3 %v12654_v45  ;;  %v13127_v17 = vld [vmem:[%s20567_s3 + $0x17b0] sm:$0xf0]  ;;  %v14205_v21 = vld [vmem:[%s20567_s3 + $0x1784] sm:$0xf] }
 0x3a0   :  { %v5671_v28 = vpop.f32.mrf.mxu2  ;;  %8170 = vmatpush.bf16.msrb.mxu0 %v13046_v41  ;;  %v12662_v41 = vor.u32 %v14124_v13, %v12661_v58  ;;  %v13130_v5 = vor.u32 %v14209_v61, %v13127_v17  ;;  %v13114_v14 = vor.u32 %v14205_v21, %v13111_v42  ;;  %v14138_v13 = vld [vmem:[%s20567_s3 + $0x156c] sm:$0xf]  ;;  %v14140_v61 = vld [vmem:[%s20567_s3 + $0x1574] sm:$0xf0]  ;;  %v12821_v17 = vld [vmem:[%s20567_s3 + $0x15e0] sm:$0xf] }
 0x3a1   :  { %v19662_v34 = vadd.f32 %v5671_v28, %v19544_v35  ;;  %v5790_v62 = vpop.f32.mrf.mxu3  ;;  %v12531_v35 = vld [vmem:[%s20567_s3 + $0x1418] sm:$0xf0]  ;;  %v12629_v28 = vld [vmem:[%s20567_s3 + $0x14a8] sm:$0xf] }
 0x3a2   :  { %v19665_v31 = vadd.f32 %v5790_v62, %v19547_v19  ;;  %v5660_v57 = vpop.f32.mrf.mxu1  ;;  %v6751_v20 = vpop.f32.mrf.mxu0  ;;  %7247 = vmatpush.bf16.msrb.mxu2 %v12566_v16  ;;  %v12546_v19 = vor.u32 %v14100_v51, %v12545_v12  ;;  %v12534_v44 = vor.u32 %v14094_v59, %v12531_v35  ;;  %v14135_v16 = vld [vmem:[%s20567_s3 + $0x154c] sm:$0xf0]  ;;  %v14114_v12 = vld [vmem:[%s20567_s3 + $0x14ac] sm:$0xf]  ;;  %v13243_v51 = vld [vmem:[%s20567_s3 + $0x1870] sm:$0xf0] }
 0x3a3   :  { %v19676_v2 = vadd.f32 %v6751_v20, %v19558_v43  ;;  %7234 = vmatpush.bf16.msrb.mxu1 %v12562_v38  ;;  %7366 = vmatpush.bf16.msrb.mxu3 %v12638_v46  ;;  %v14096_v43 = vld [vmem:[%s20567_s3 + $0x1414] sm:$0xf0]  ;;  %v8049_v38 = vld [vmem:[#allocation2 + $0x5c] sm:$0x3]  ;;  %v12650_v46 = vor.u32 %v14118_v6, %v12647_v32  ;;  %v12722_v48 = vor.u32 %v14135_v16, %v12721_v39  ;;  %v12705_v57 = vld [vmem:[%s20567_s3 + $0x1520] sm:$0xf] }
 0x3a4   :  { %8171 = vmatpush.bf16.msrb.mxu0 %v13030_v26  ;;  %v12530_v27 = vor.u32 %v14096_v43, %v12529_v33  ;;  %v14233_v26 = vld [vmem:[%s20567_s3 + $0x1864] sm:$0xf]  ;;  %v14116_v62 = vld [vmem:[%s20567_s3 + $0x14b4] sm:$0xf0]  ;;  %v14131_v20 = vld [vmem:[%s20567_s3 + $0x152c] sm:$0xf0]  ;;  %v12750_v32 = vor.u32 %v14138_v13, %v12747_v4 }
 0x3a5   :  { %13004 = vmatmul.msk.bf16.vlgmr.msra.gmra.mxu0 %vm526_vm0, %v19667_v22  ;;  %v13246_v63 = vor.u32 %v14233_v26, %v13243_v51  ;;  %v12706_v47 = vor.u32 %v14131_v20, %v12705_v57  ;;  %v14134_v39 = vld [vmem:[%s20567_s3 + $0x154c] sm:$0xf]  ;;  %v12731_v16 = vld [vmem:[%s20567_s3 + $0x1558] sm:$0xf0]  ;;  %v12729_v21 = vld [vmem:[%s20567_s3 + $0x1548] sm:$0xf] }
 0x3a6   :  { %7248 = vmatpush.bf16.msrb.mxu2 %v12550_v24  ;;  %v12715_v51 = vld [vmem:[%s20567_s3 + $0x1538] sm:$0xf0]  ;;  %v14132_v57 = vld [vmem:[%s20567_s3 + $0x1534] sm:$0xf0]  ;;  %v12789_v20 = vld [vmem:[%s20567_s3 + $0x15a0] sm:$0xf] }
 0x3a7   :  { %7235 = vmatpush.bf16.msrb.mxu1 %v12546_v19  ;;  %7367 = vmatpush.bf16.msrb.mxu3 %v12622_v8  ;;  %v19785_v8 = vpack.c.bf16 %v8049_v38, %v8049_v38  ;;  %v12805_v38 = vld [vmem:[%s20567_s3 + $0x15c0] sm:$0xf]  ;;  %v12829_v13 = vld [vmem:[%s20567_s3 + $0x15e8] sm:$0xf] }
 0x3a8   :  { %8326 = vmatpush.bf16.msra.mxu0 %v13162_v29  ;;  %v5673_v37 = vpop.f32.mrf.mxu2 }
 0x3a9   :  { %v5792_v11 = vpop.f32.mrf.mxu3 }
 0x3aa   :  { %v5816_v45 = vpop.f32.mrf.mxu1  ;;  %v6753_v7 = vpop.f32.mrf.mxu0  ;;  %7249 = vmatpush.bf16.msrb.mxu2 %v12534_v44  ;;  %v14229_v44 = vld [vmem:[%s20567_s3 + $0x1844] sm:$0xf] }
 0x3ab   :  { %v19723_v0 = vadd.f32 %v5816_v45, %v19605_v18  ;;  %7236 = vmatpush.bf16.msrb.mxu1 %v12530_v27  ;;  %7368 = vmatpush.bf16.msrb.mxu3 %v12606_v1  ;;  %v14120_v18 = vld [vmem:[%s20567_s3 + $0x14d4] sm:$0xf0]  ;;  %v12689_v27 = vld [vmem:[%s20567_s3 + $0x1500] sm:$0xf]  ;;  %v14127_v1 = vld [vmem:[%s20567_s3 + $0x150c] sm:$0xf0] }
 0x3ac   :  { %8327 = vmatpush.bf16.msra.mxu0 %v13146_v50  ;;  %v12646_v23 = vor.u32 %v14120_v18, %v12645_v60  ;;  %v13227_v50 = vld [vmem:[%s20567_s3 + $0x1850] sm:$0xf0]  ;;  %v12690_v37 = vor.u32 %v14127_v1, %v12689_v27  ;;  %v14155_v45 = vld [vmem:[%s20567_s3 + $0x15ec] sm:$0xf0] }
 0x3ad   :  { %12501 = vmatmul.msk.bf16.vlgmr.msra.gmra.mxu1 %vm526_vm0, %v18959_v49  ;;  %12502 = vmatmul.msk.bf16.vlgmr.msra.gmra.mxu2 %vm526_vm0, %v18959_v49  ;;  %v12631_v49 = vld [vmem:[%s20567_s3 + $0x14b8] sm:$0xf0]  ;;  %v13230_v55 = vor.u32 %v14229_v44, %v13227_v50  ;;  %v12822_v18 = vor.u32 %v14155_v45, %v12821_v17  ;;  %v12697_v50 = vld [vmem:[%s20567_s3 + $0x1508] sm:$0xf]  ;;  %v14143_v27 = vld [vmem:[%s20567_s3 + $0x158c] sm:$0xf0] }
 0x3ae   :  { %12583 = vmatmul.msk.bf16.vlgmr.msra.gmra.mxu3 %vm526_vm0, %v19077_v10  ;;  %7404 = vmatpush.bf16.msra.mxu2 %v12666_v52  ;;  %v12634_v33 = vor.u32 %v14114_v12, %v12631_v49  ;;  %v14225_v52 = vld [vmem:[%s20567_s3 + $0x1824] sm:$0xf]  ;;  %v13195_v49 = vld [vmem:[%s20567_s3 + $0x1810] sm:$0xf0] }
 0x3af   :  { %7391 = vmatpush.bf16.msra.mxu1 %v12662_v41  ;;  %7523 = vmatpush.bf16.msra.mxu3 %v12738_v54  ;;  %v13211_v41 = vld [vmem:[%s20567_s3 + $0x1830] sm:$0xf0]  ;;  %v14221_v12 = vld [vmem:[%s20567_s3 + $0x1804] sm:$0xf] }
 0x3b0   :  { %v5829_v15 = vpop.f32.mrf.mxu2  ;;  %8328 = vmatpush.bf16.msra.mxu0 %v13130_v5  ;;  %v12746_v5 = vor.u32 %v14140_v61, %v12745_v36  ;;  %v13214_v42 = vor.u32 %v14225_v52, %v13211_v41  ;;  %v14156_v36 = vld [vmem:[%s20567_s3 + $0x15f4] sm:$0xf0]  ;;  %v14171_v61 = vld [vmem:[%s20567_s3 + $0x166c] sm:$0xf0] }
 0x3b1   :  { %v19780_v24 = vadd.f32 %v5829_v15, %v19662_v34  ;;  %v5948_v29 = vpop.f32.mrf.mxu3  ;;  %v12615_v34 = vld [vmem:[%s20567_s3 + $0x1498] sm:$0xf0]  ;;  %v12713_v15 = vld [vmem:[%s20567_s3 + $0x1528] sm:$0xf] }
 0x3b2   :  { %v19783_v59 = vadd.f32 %v5948_v29, %v19665_v31  ;;  %v5818_v35 = vpop.f32.mrf.mxu1  ;;  %v6909_v19 = vpop.f32.mrf.mxu0  ;;  %7405 = vmatpush.bf16.msra.mxu2 %v12650_v46  ;;  %v12630_v31 = vor.u32 %v14116_v62, %v12629_v28  ;;  %v12618_v9 = vor.u32 %v14110_v53, %v12615_v34  ;;  %v14151_v46 = vld [vmem:[%s20567_s3 + $0x15cc] sm:$0xf0]  ;;  %v13198_v62 = vor.u32 %v14221_v12, %v13195_v49  ;;  %v12799_v12 = vld [vmem:[%s20567_s3 + $0x15b8] sm:$0xf0] }
 0x3b3   :  { %v19794_v43 = vadd.f32 %v6909_v19, %v19676_v2  ;;  %7392 = vmatpush.bf16.msra.mxu1 %v12646_v23  ;;  %7524 = vmatpush.bf16.msra.mxu3 %v12722_v48  ;;  %v14112_v2 = vld [vmem:[%s20567_s3 + $0x1494] sm:$0xf0]  ;;  %v8207_v23 = vld [vmem:[#allocation2 + $0x5e] sm:$0x3]  ;;  %v12734_v48 = vor.u32 %v14134_v39, %v12731_v16  ;;  %v12806_v26 = vor.u32 %v14151_v46, %v12805_v38  ;;  %v14147_v29 = vld [vmem:[%s20567_s3 + $0x15ac] sm:$0xf0] }
 0x3b4   :  { %8329 = vmatpush.bf16.msra.mxu0 %v13114_v14  ;;  %v12614_v58 = vor.u32 %v14112_v2, %v12613_v56  ;;  %v19897_v34 = vpack.c.bf16 %v8207_v23, %v8207_v23  ;;  %v12714_v56 = vor.u32 %v14132_v57, %v12713_v15  ;;  %v12790_v44 = vor.u32 %v14147_v29, %v12789_v20  ;;  %v12773_v2 = vld [vmem:[%s20567_s3 + $0x1580] sm:$0xf]  ;;  %v14167_v16 = vld [vmem:[%s20567_s3 + $0x164c] sm:$0xf0]  ;;  %v14146_v46 = vld [vmem:[%s20567_s3 + $0x15ac] sm:$0xf] }
 0x3b5   :  { %13088 = vmatmul.msk.bf16.vlgmr.msrb.gmra.mxu0 %vm526_vm0, %v19785_v8  ;;  %v12889_v39 = vld [vmem:[%s20567_s3 + $0x1640] sm:$0xf]  ;;  %v14148_v23 = vld [vmem:[%s20567_s3 + $0x15b4] sm:$0xf0]  ;;  %v12802_v57 = vor.u32 %v14146_v46, %v12799_v12 }
 0x3b6   :  { %7406 = vmatpush.bf16.msra.mxu2 %v12634_v33  ;;  %v12890_v38 = vor.u32 %v14167_v16, %v12889_v39  ;;  %v14164_v39 = vld [vmem:[%s20567_s3 + $0x1634] sm:$0xf0]  ;;  %v12957_v16 = vld [vmem:[%s20567_s3 + $0x16a0] sm:$0xf] }
 0x3b7   :  { %7393 = vmatpush.bf16.msra.mxu1 %v12630_v31  ;;  %7525 = vmatpush.bf16.msra.mxu3 %v12706_v47 }
 0x3b8   :  { %8484 = vmatpush.bf16.msrb.mxu0 %v13246_v63  ;;  %v5831_v11 = vpop.f32.mrf.mxu2 }
 0x3b9   :  { %v5950_v7 = vpop.f32.mrf.mxu3  ;;  %v12905_v11 = vld [vmem:[%s20567_s3 + $0x1660] sm:$0xf] }
 0x3ba   :  { %v5974_v54 = vpop.f32.mrf.mxu1  ;;  %v6911_v6 = vpop.f32.mrf.mxu0  ;;  %7407 = vmatpush.bf16.msra.mxu2 %v12618_v9 }
 0x3bb   :  { %v19841_v60 = vadd.f32 %v5974_v54, %v19723_v0  ;;  %7394 = vmatpush.bf16.msra.mxu1 %v12614_v58  ;;  %7526 = vmatpush.bf16.msra.mxu3 %v12690_v37  ;;  %v14136_v0 = vld [vmem:[%s20567_s3 + $0x1554] sm:$0xf0]  ;;  %v14154_v58 = vld [vmem:[%s20567_s3 + $0x15ec] sm:$0xf]  ;;  %v12831_v37 = vld [vmem:[%s20567_s3 + $0x15f8] sm:$0xf0]  ;;  %v12830_v54 = vor.u32 %v14156_v36, %v12829_v13  ;;  %v12906_v6 = vor.u32 %v14171_v61, %v12905_v11 }
 0x3bc   :  { %8485 = vmatpush.bf16.msrb.mxu0 %v13230_v55  ;;  %v12730_v28 = vor.u32 %v14136_v0, %v12729_v21  ;;  %v12774_v55 = vor.u32 %v14143_v27, %v12773_v2  ;;  %v12834_v52 = vor.u32 %v14154_v58, %v12831_v37  ;;  %v8365_v21 = vld [vmem:[#allocation2 + $0x60] sm:$0x3]  ;;  %v14172_v27 = vld [vmem:[%s20567_s3 + $0x1674] sm:$0xf0]  ;;  %v14166_v61 = vld [vmem:[%s20567_s3 + $0x164c] sm:$0xf] }
 0x3bd   :  { %12585 = vmatmul.msk.bf16.vlgmr.msrb.gmra.mxu1 %vm526_vm0, %v19077_v10  ;;  %12586 = vmatmul.msk.bf16.vlgmr.msrb.gmra.mxu2 %vm526_vm0, %v19077_v10  ;;  %v14130_v10 = vld [vmem:[%s20567_s3 + $0x152c] sm:$0xf] }
 0x3be   :  { %12667 = vmatmul.msk.bf16.vlgmr.msrb.gmra.mxu3 %vm526_vm0, %v19195_v25  ;;  %7562 = vmatpush.bf16.msrb.mxu2 %v12750_v32  ;;  %v12718_v31 = vor.u32 %v14130_v10, %v12715_v51  ;;  %v14150_v32 = vld [vmem:[%s20567_s3 + $0x15cc] sm:$0xf] }
 0x3bf   :  { %7549 = vmatpush.bf16.msrb.mxu1 %v12746_v5  ;;  %7681 = vmatpush.bf16.msrb.mxu3 %v12822_v18  ;;  %v12815_v5 = vld [vmem:[%s20567_s3 + $0x15d8] sm:$0xf0]  ;;  %v12813_v18 = vld [vmem:[%s20567_s3 + $0x15c8] sm:$0xf] }
 0x3c0   :  { %v5987_v14 = vpop.f32.mrf.mxu2  ;;  %8486 = vmatpush.bf16.msrb.mxu0 %v13214_v42  ;;  %v12818_v42 = vor.u32 %v14150_v32, %v12815_v5  ;;  %v14162_v5 = vld [vmem:[%s20567_s3 + $0x162c] sm:$0xf] }
 0x3c1   :  { %v19892_v35 = vadd.f32 %v5987_v14, %v19780_v24  ;;  %v6106_v19 = vpop.f32.mrf.mxu3  ;;  %v14126_v24 = vld [vmem:[%s20567_s3 + $0x150c] sm:$0xf] }
 0x3c2   :  { %v19895_v33 = vadd.f32 %v6106_v19, %v19783_v59  ;;  %v5976_v63 = vpop.f32.mrf.mxu1  ;;  %v7067_v53 = vpop.f32.mrf.mxu0  ;;  %7563 = vmatpush.bf16.msrb.mxu2 %v12734_v48  ;;  %v12699_v59 = vld [vmem:[%s20567_s3 + $0x1518] sm:$0xf0]  ;;  %v12873_v48 = vld [vmem:[%s20567_s3 + $0x1620] sm:$0xf] }
 0x3c3   :  { %v19900_v47 = vadd.f32 %v7067_v53, %v19794_v43  ;;  %7550 = vmatpush.bf16.msrb.mxu1 %v12730_v28  ;;  %7682 = vmatpush.bf16.msrb.mxu3 %v12806_v26  ;;  %v14128_v43 = vld [vmem:[%s20567_s3 + $0x1514] sm:$0xf0]  ;;  %v12702_v1 = vor.u32 %v14126_v24, %v12699_v59  ;;  %v14163_v28 = vld [vmem:[%s20567_s3 + $0x162c] sm:$0xf0]  ;;  %v12781_v63 = vld [vmem:[%s20567_s3 + $0x1588] sm:$0xf] }
 0x3c4   :  { %8487 = vmatpush.bf16.msrb.mxu0 %v13198_v62  ;;  %v12698_v9 = vor.u32 %v14128_v43, %v12697_v50  ;;  %v19991_v62 = vpack.c.bf16 %v8365_v21, %v8365_v21  ;;  %v12874_v19 = vor.u32 %v14163_v28, %v12873_v48  ;;  %v14144_v53 = vld [vmem:[%s20567_s3 + $0x1594] sm:$0xf0]  ;;  %v14170_v59 = vld [vmem:[%s20567_s3 + $0x166c] sm:$0xf]  ;;  %v12915_v50 = vld [vmem:[%s20567_s3 + $0x1678] sm:$0xf0] }
 0x3c5   :  { %13172 = vmatmul.msk.bf16.vlgmr.msra.gmra.mxu0 %vm526_vm0, %v19897_v34  ;;  %v12913_v43 = vld [vmem:[%s20567_s3 + $0x1668] sm:$0xf]  ;;  %v12918_v13 = vor.u32 %v14170_v59, %v12915_v50  ;;  %v14179_v21 = vld [vmem:[%s20567_s3 + $0x16ac] sm:$0xf0]  ;;  %v14158_v28 = vld [vmem:[%s20567_s3 + $0x160c] sm:$0xf] }
 0x3c6   :  { %7564 = vmatpush.bf16.msrb.mxu2 %v12718_v31  ;;  %v12857_v31 = vld [vmem:[%s20567_s3 + $0x1600] sm:$0xf]  ;;  %v12914_v36 = vor.u32 %v14172_v27, %v12913_v43  ;;  %v12958_v48 = vor.u32 %v14179_v21, %v12957_v16  ;;  %v14182_v27 = vld [vmem:[%s20567_s3 + $0x16cc] sm:$0xf]  ;;  %v12951_v21 = vld [vmem:[%s20567_s3 + $0x1698] sm:$0xf0] }
 0x3c7   :  { %7551 = vmatpush.bf16.msrb.mxu1 %v12714_v56  ;;  %7683 = vmatpush.bf16.msrb.mxu3 %v12790_v44  ;;  %v12782_v44 = vor.u32 %v14144_v53, %v12781_v63  ;;  %v14188_v53 = vld [vmem:[%s20567_s3 + $0x16f4] sm:$0xf0]  ;;  %v14174_v16 = vld [vmem:[%s20567_s3 + $0x168c] sm:$0xf] }
 0x3c8   :  { %v5989_v4 = vpop.f32.mrf.mxu2 }
 0x3c9   :  { %v6108_v17 = vpop.f32.mrf.mxu3 }
 0x3ca   :  { %v6132_v45 = vpop.f32.mrf.mxu1  ;;  %v7069_v7 = vpop.f32.mrf.mxu0  ;;  %7565 = vmatpush.bf16.msrb.mxu2 %v12702_v1  ;;  %v12989_v1 = vld [vmem:[%s20567_s3 + $0x16e0] sm:$0xf]  ;;  %v12899_v17 = vld [vmem:[%s20567_s3 + $0x1658] sm:$0xf0] }
 0x3cb   :  { %v19941_v41 = vadd.f32 %v6132_v45, %v19841_v60  ;;  %7552 = vmatpush.bf16.msrb.mxu1 %v12698_v9  ;;  %7684 = vmatpush.bf16.msrb.mxu3 %v12774_v55  ;;  %v14152_v60 = vld [vmem:[%s20567_s3 + $0x15d4] sm:$0xf0]  ;;  %v14187_v9 = vld [vmem:[%s20567_s3 + $0x16ec] sm:$0xf0]  ;;  %v12897_v45 = vld [vmem:[%s20567_s3 + $0x1648] sm:$0xf] }
 0x3cc   :  { %v12814_v0 = vor.u32 %v14152_v60, %v12813_v18  ;;  %v12990_v11 = vor.u32 %v14187_v9, %v12989_v1  ;;  %v14168_v7 = vld [vmem:[%s20567_s3 + $0x1654] sm:$0xf0]  ;;  %v12883_v18 = vld [vmem:[%s20567_s3 + $0x1638] sm:$0xf0]  ;;  %v12981_v9 = vld [vmem:[%s20567_s3 + $0x16c8] sm:$0xf] }
 0x3cd   :  { %12669 = vmatmul.msk.bf16.vlgmr.msra.gmra.mxu1 %vm526_vm0, %v19195_v25  ;;  %12670 = vmatmul.msk.bf16.vlgmr.msra.gmra.mxu2 %vm526_vm0, %v19195_v25  ;;  %v12797_v25 = vld [vmem:[%s20567_s3 + $0x15a8] sm:$0xf]  ;;  %v12983_v1 = vld [vmem:[%s20567_s3 + $0x16d8] sm:$0xf0] }
 0x3ce   :  { %12751 = vmatmul.msk.bf16.vlgmr.msra.gmra.mxu3 %vm526_vm0, %v19313_v3  ;;  %7720 = vmatpush.bf16.msra.mxu2 %v12834_v52  ;;  %v12798_v29 = vor.u32 %v14148_v23, %v12797_v25  ;;  %v12973_v52 = vld [vmem:[%s20567_s3 + $0x16c0] sm:$0xf]  ;;  %v12886_v25 = vor.u32 %v14162_v5, %v12883_v18 }
 0x3cf   :  { %7707 = vmatpush.bf16.msra.mxu1 %v12830_v54  ;;  %7839 = vmatpush.bf16.msra.mxu3 %v12906_v6  ;;  %v12902_v54 = vor.u32 %v14166_v61, %v12899_v17  ;;  %v12898_v6 = vor.u32 %v14168_v7, %v12897_v45  ;;  %v12967_v61 = vld [vmem:[%s20567_s3 + $0x16b8] sm:$0xf0]  ;;  %v14180_v45 = vld [vmem:[%s20567_s3 + $0x16b4] sm:$0xf0]  ;;  %v13041_v7 = vld [vmem:[%s20567_s3 + $0x1720] sm:$0xf] }
 0x3d0   :  { %v6145_v49 = vpop.f32.mrf.mxu2 }
 0x3d1   :  { %v19986_v26 = vadd.f32 %v6145_v49, %v19892_v35  ;;  %v6264_v10 = vpop.f32.mrf.mxu3  ;;  %v14142_v35 = vld [vmem:[%s20567_s3 + $0x158c] sm:$0xf] }
 0x3d2   :  { %v19989_v51 = vadd.f32 %v6264_v10, %v19895_v33  ;;  %v6134_v15 = vpop.f32.mrf.mxu1  ;;  %v7225_v14 = vpop.f32.mrf.mxu0  ;;  %7721 = vmatpush.bf16.msra.mxu2 %v12818_v42  ;;  %v12783_v33 = vld [vmem:[%s20567_s3 + $0x1598] sm:$0xf0]  ;;  %v12865_v10 = vld [vmem:[%s20567_s3 + $0x1608] sm:$0xf] }
 0x3d3   :  { %v19994_v20 = vadd.f32 %v7225_v14, %v19900_v47  ;;  %7708 = vmatpush.bf16.msra.mxu1 %v12814_v0  ;;  %7840 = vmatpush.bf16.msra.mxu3 %v12890_v38  ;;  %v14159_v47 = vld [vmem:[%s20567_s3 + $0x160c] sm:$0xf0]  ;;  %v12786_v56 = vor.u32 %v14142_v35, %v12783_v33  ;;  %v12941_v15 = vld [vmem:[%s20567_s3 + $0x1680] sm:$0xf]  ;;  %v12999_v35 = vld [vmem:[%s20567_s3 + $0x16f8] sm:$0xf0] }
 0x3d4   :  { %v12858_v24 = vor.u32 %v14159_v47, %v12857_v31  ;;  %v14175_v14 = vld [vmem:[%s20567_s3 + $0x168c] sm:$0xf0]  ;;  %v12997_v33 = vld [vmem:[%s20567_s3 + $0x16e8] sm:$0xf]  ;;  %v13073_v31 = vld [vmem:[%s20567_s3 + $0x1760] sm:$0xf] }
 0x3d5   :  { %13256 = vmatmul.msk.bf16.vlgmr.msrb.gmra.mxu0 %vm526_vm0, %v19991_v62  ;;  %v14203_v47 = vld [vmem:[%s20567_s3 + $0x176c] sm:$0xf0]  ;;  %v12998_v43 = vor.u32 %v14188_v53, %v12997_v33  ;;  %v13067_v53 = vld [vmem:[%s20567_s3 + $0x1758] sm:$0xf0] }
 0x3d6   :  { %7722 = vmatpush.bf16.msra.mxu2 %v12802_v57 }
 0x3d7   :  { %7709 = vmatpush.bf16.msra.mxu1 %v12798_v29  ;;  %7841 = vmatpush.bf16.msra.mxu3 %v12874_v19  ;;  %v12942_v29 = vor.u32 %v14175_v14, %v12941_v15  ;;  %v14186_v19 = vld [vmem:[%s20567_s3 + $0x16ec] sm:$0xf]  ;;  %v14219_v15 = vld [vmem:[%s20567_s3 + $0x17ec] sm:$0xf0] }
 0x3d8   :  { %v6147_v2 = vpop.f32.mrf.mxu2  ;;  %v13002_v59 = vor.u32 %v14186_v19, %v12999_v35 }
 0x3d9   :  { %v6266_v55 = vpop.f32.mrf.mxu3  ;;  %v13074_v2 = vor.u32 %v14203_v47, %v13073_v31  ;;  %v13065_v31 = vld [vmem:[%s20567_s3 + $0x1748] sm:$0xf]  ;;  %v14200_v47 = vld [vmem:[%s20567_s3 + $0x1754] sm:$0xf0] }
 0x3da   :  { %v6290_v58 = vpop.f32.mrf.mxu1  ;;  %v7227_v37 = vpop.f32.mrf.mxu0  ;;  %7723 = vmatpush.bf16.msra.mxu2 %v12786_v56  ;;  %v14184_v55 = vld [vmem:[%s20567_s3 + $0x16d4] sm:$0xf0] }
 0x3db   :  { %v20035_v4 = vadd.f32 %v6290_v58, %v19941_v41  ;;  %7710 = vmatpush.bf16.msra.mxu1 %v12782_v44  ;;  %7842 = vmatpush.bf16.msra.mxu3 %v12858_v24  ;;  %v14183_v41 = vld [vmem:[%s20567_s3 + $0x16cc] sm:$0xf0]  ;;  %v13057_v58 = vld [vmem:[%s20567_s3 + $0x1740] sm:$0xf] }
 0x3dc   :  { %v12974_v32 = vor.u32 %v14183_v41, %v12973_v52  ;;  %v14199_v37 = vld [vmem:[%s20567_s3 + $0x174c] sm:$0xf0] }
 0x3dd   :  { %12753 = vmatmul.msk.bf16.vlgmr.msrb.gmra.mxu1 %vm526_vm0, %v19313_v3  ;;  %12754 = vmatmul.msk.bf16.vlgmr.msrb.gmra.mxu2 %vm526_vm0, %v19313_v3  ;;  %v12881_v3 = vld [vmem:[%s20567_s3 + $0x1628] sm:$0xf]  ;;  %v14195_v52 = vld [vmem:[%s20567_s3 + $0x172c] sm:$0xf0] }
 0x3de   :  { %12835 = vmatmul.msk.bf16.vlgmr.msrb.gmra.mxu3 %vm526_vm0, %v19431_v40  ;;  %7878 = vmatpush.bf16.msrb.mxu2 %v12918_v13  ;;  %v12882_v23 = vor.u32 %v14164_v39, %v12881_v3  ;;  %v12986_v13 = vor.u32 %v14182_v27, %v12983_v1  ;;  %v13042_v39 = vor.u32 %v14195_v52, %v13041_v7  ;;  %v14196_v1 = vld [vmem:[%s20567_s3 + $0x1734] sm:$0xf0]  ;;  %v13035_v7 = vld [vmem:[%s20567_s3 + $0x1718] sm:$0xf0]  ;;  %v13033_v52 = vld [vmem:[%s20567_s3 + $0x1708] sm:$0xf] }
 0x3df   :  { %7865 = vmatpush.bf16.msrb.mxu1 %v12914_v36  ;;  %7997 = vmatpush.bf16.msrb.mxu3 %v12990_v11  ;;  %v13058_v36 = vor.u32 %v14199_v37, %v13057_v58  ;;  %v14178_v11 = vld [vmem:[%s20567_s3 + $0x16ac] sm:$0xf] }
 0x3e0   :  { %v6303_v60 = vpop.f32.mrf.mxu2  ;;  %v12970_v18 = vor.u32 %v14178_v11, %v12967_v61 }
 0x3e1   :  { %v20080_v42 = vadd.f32 %v6303_v60, %v19986_v26  ;;  %v6422_v0 = vpop.f32.mrf.mxu3  ;;  %v12867_v26 = vld [vmem:[%s20567_s3 + $0x1618] sm:$0xf0] }
 0x3e2   :  { %v20083_v38 = vadd.f32 %v6422_v0, %v19989_v51  ;;  %v6292_v46 = vpop.f32.mrf.mxu1  ;;  %v7383_v12 = vpop.f32.mrf.mxu0  ;;  %7879 = vmatpush.bf16.msrb.mxu2 %v12902_v54  ;;  %v14160_v51 = vld [vmem:[%s20567_s3 + $0x1614] sm:$0xf0]  ;;  %v12870_v57 = vor.u32 %v14158_v28, %v12867_v26  ;;  %v13081_v28 = vld [vmem:[%s20567_s3 + $0x1768] sm:$0xf] }
 0x3e3   :  { %v20086_v49 = vadd.f32 %v7383_v12, %v19994_v20  ;;  %7866 = vmatpush.bf16.msrb.mxu1 %v12898_v6  ;;  %7998 = vmatpush.bf16.msrb.mxu3 %v12974_v32  ;;  %v12866_v20 = vor.u32 %v14160_v51, %v12865_v10  ;;  %v14176_v0 = vld [vmem:[%s20567_s3 + $0x1694] sm:$0xf0]  ;;  %v14191_v46 = vld [vmem:[%s20567_s3 + $0x170c] sm:$0xf0]  ;;  %v12954_v12 = vor.u32 %v14174_v16, %v12951_v21  ;;  %v13157_v51 = vld [vmem:[%s20567_s3 + $0x17e0] sm:$0xf] }
 0x3e4   :  { %v14204_v10 = vld [vmem:[%s20567_s3 + $0x1774] sm:$0xf0]  ;;  %v13158_v33 = vor.u32 %v14219_v15, %v13157_v51  ;;  %v13225_v15 = vld [vmem:[%s20567_s3 + $0x1840] sm:$0xf] }
 0x3e5   :  { %v13082_v35 = vor.u32 %v14204_v10, %v13081_v28  ;;  %v14220_v21 = vld [vmem:[%s20567_s3 + $0x17f4] sm:$0xf0]  ;;  %v14214_v28 = vld [vmem:[%s20567_s3 + $0x17cc] sm:$0xf]  ;;  %v13149_v10 = vld [vmem:[%s20567_s3 + $0x17c8] sm:$0xf] }
 0x3e6   :  { %7880 = vmatpush.bf16.msrb.mxu2 %v12886_v25  ;;  %v14216_v51 = vld [vmem:[%s20567_s3 + $0x17d4] sm:$0xf0] }
 0x3e7   :  { %7867 = vmatpush.bf16.msrb.mxu1 %v12882_v23  ;;  %7999 = vmatpush.bf16.msrb.mxu3 %v12958_v48  ;;  %v14202_v23 = vld [vmem:[%s20567_s3 + $0x176c] sm:$0xf]  ;;  %v13083_v48 = vld [vmem:[%s20567_s3 + $0x1778] sm:$0xf0] }
 0x3e8   :  { %v6305_v63 = vpop.f32.mrf.mxu2 }
 0x3e9   :  { %v6424_v56 = vpop.f32.mrf.mxu3  ;;  %v14198_v63 = vld [vmem:[%s20567_s3 + $0x174c] sm:$0xf] }
 0x3ea   :  { %v6448_v44 = vpop.f32.mrf.mxu1  ;;  %v7385_v24 = vpop.f32.mrf.mxu0  ;;  %7881 = vmatpush.bf16.msrb.mxu2 %v12870_v57  ;;  %v13141_v56 = vld [vmem:[%s20567_s3 + $0x17c0] sm:$0xf] }
 0x3eb   :  { %v20125_v50 = vadd.f32 %v6448_v44, %v20035_v4  ;;  %7868 = vmatpush.bf16.msrb.mxu1 %v12866_v20  ;;  %8000 = vmatpush.bf16.msrb.mxu3 %v12942_v29  ;;  %v12982_v4 = vor.u32 %v14184_v55, %v12981_v9  ;;  %v13086_v29 = vor.u32 %v14202_v23, %v13083_v48  ;;  %v14215_v44 = vld [vmem:[%s20567_s3 + $0x17cc] sm:$0xf0]  ;;  %v13125_v9 = vld [vmem:[%s20567_s3 + $0x17a0] sm:$0xf] }
 0x3ec   :  { %v13070_v24 = vor.u32 %v14198_v63, %v13067_v53  ;;  %v14211_v55 = vld [vmem:[%s20567_s3 + $0x17ac] sm:$0xf0]  ;;  %v14212_v63 = vld [vmem:[%s20567_s3 + $0x17b4] sm:$0xf0]  ;;  %v13209_v53 = vld [vmem:[%s20567_s3 + $0x1820] sm:$0xf] }
 0x3ed   :  { %12837 = vmatmul.msk.bf16.vlgmr.msra.gmra.mxu1 %vm526_vm0, %v19431_v40  ;;  %12838 = vmatmul.msk.bf16.vlgmr.msra.gmra.mxu2 %vm526_vm0, %v19431_v40  ;;  %v12965_v40 = vld [vmem:[%s20567_s3 + $0x16a8] sm:$0xf] }
 0x3ee   :  { %12919 = vmatmul.msk.bf16.vlgmr.msra.gmra.mxu3 %vm526_vm0, %v19549_v30  ;;  %8036 = vmatpush.bf16.msra.mxu2 %v13002_v59  ;;  %v12966_v60 = vor.u32 %v14180_v45, %v12965_v40  ;;  %v13066_v59 = vor.u32 %v14200_v47, %v13065_v31  ;;  %v14190_v45 = vld [vmem:[%s20567_s3 + $0x170c] sm:$0xf]  ;;  %v14227_v31 = vld [vmem:[%s20567_s3 + $0x182c] sm:$0xf0] }
 0x3ef   :  { %8023 = vmatpush.bf16.msra.mxu1 %v12998_v43  ;;  %8155 = vmatpush.bf16.msra.mxu3 %v13074_v2  ;;  %v14194_v43 = vld [vmem:[%s20567_s3 + $0x172c] sm:$0xf]  ;;  %v13051_v2 = vld [vmem:[%s20567_s3 + $0x1738] sm:$0xf0] }
 0x3f0   :  { %v6461_v17 = vpop.f32.mrf.mxu2  ;;  %v13054_v11 = vor.u32 %v14194_v43, %v13051_v2  ;;  %v13210_v2 = vor.u32 %v14227_v31, %v13209_v53 }
 0x3f1   :  { %v20170_v41 = vadd.f32 %v6461_v17, %v20080_v42  ;;  %v6580_v54 = vpop.f32.mrf.mxu3  ;;  %v12949_v42 = vld [vmem:[%s20567_s3 + $0x1688] sm:$0xf]  ;;  %v13126_v17 = vor.u32 %v14211_v55, %v13125_v9  ;;  %v14208_v9 = vld [vmem:[%s20567_s3 + $0x1794] sm:$0xf0]  ;;  %v13193_v55 = vld [vmem:[%s20567_s3 + $0x1800] sm:$0xf] }
 0x3f2   :  { %v20173_v6 = vadd.f32 %v6580_v54, %v20083_v38  ;;  %v6450_v32 = vpop.f32.mrf.mxu1  ;;  %v7541_v5 = vpop.f32.mrf.mxu0  ;;  %8037 = vmatpush.bf16.msra.mxu2 %v12986_v13  ;;  %v13025_v38 = vld [vmem:[%s20567_s3 + $0x1700] sm:$0xf]  ;;  %v12950_v25 = vor.u32 %v14176_v0, %v12949_v42  ;;  %v14235_v0 = vld [vmem:[%s20567_s3 + $0x186c] sm:$0xf0] }
 0x3f3   :  { %v20176_v3 = vadd.f32 %v7541_v5, %v20086_v49  ;;  %8024 = vmatpush.bf16.msra.mxu1 %v12982_v4  ;;  %8156 = vmatpush.bf16.msra.mxu3 %v13058_v36  ;;  %v13026_v49 = vor.u32 %v14191_v46, %v13025_v38  ;;  %v13109_v54 = vld [vmem:[%s20567_s3 + $0x1780] sm:$0xf]  ;;  %v13038_v32 = vor.u32 %v14190_v45, %v13035_v7  ;;  %v14236_v45 = vld [vmem:[%s20567_s3 + $0x1874] sm:$0xf0] }
 0x3f4   :  { %v13241_v42 = vld [vmem:[%s20567_s3 + $0x1860] sm:$0xf] }
 0x3f5   :  { %v13242_v48 = vor.u32 %v14235_v0, %v13241_v42  ;;  %v14226_v42 = vld [vmem:[%s20567_s3 + $0x182c] sm:$0xf]  ;;  %v13219_v0 = vld [vmem:[%s20567_s3 + $0x1838] sm:$0xf0] }
 0x3f6   :  { %8038 = vmatpush.bf16.msra.mxu2 %v12970_v18 }
 0x3f7   :  { %8025 = vmatpush.bf16.msra.mxu1 %v12966_v60  ;;  %8157 = vmatpush.bf16.msra.mxu3 %v13042_v39  ;;  %v13167_v60 = vld [vmem:[%s20567_s3 + $0x17f8] sm:$0xf0]  ;;  %v13165_v39 = vld [vmem:[%s20567_s3 + $0x17e8] sm:$0xf] }
 0x3f8   :  { %v6463_v26 = vpop.f32.mrf.mxu2  ;;  %v13166_v23 = vor.u32 %v14220_v21, %v13165_v39  ;;  %v14232_v39 = vld [vmem:[%s20567_s3 + $0x1854] sm:$0xf0] }
 0x3f9   :  { %v6582_v14 = vpop.f32.mrf.mxu3  ;;  %v13151_v26 = vld [vmem:[%s20567_s3 + $0x17d8] sm:$0xf0] }
 0x3fa   :  { %v6606_v57 = vpop.f32.mrf.mxu1  ;;  %v7543_v20 = vpop.f32.mrf.mxu0  ;;  %8039 = vmatpush.bf16.msra.mxu2 %v12954_v12  ;;  %v14231_v14 = vld [vmem:[%s20567_s3 + $0x184c] sm:$0xf0] }
 0x3fb   :  { %v20215_v19 = vadd.f32 %v6606_v57, %v20125_v50  ;;  %8026 = vmatpush.bf16.msra.mxu1 %v12950_v25  ;;  %8158 = vmatpush.bf16.msra.mxu3 %v13026_v49  ;;  %v13142_v50 = vor.u32 %v14215_v44, %v13141_v56  ;;  %v13154_v57 = vor.u32 %v14214_v28, %v13151_v26  ;;  %v14251_v26 = vld [vmem:[%s20569_s5 + $0x70] sm:$0xff] }
 0x3fc   :  { %v13150_v20 = vor.u32 %v14216_v51, %v13149_v10  ;;  %v13222_v28 = vor.u32 %v14226_v42, %v13219_v0  ;;  %v14222_v51 = vld [vmem:[%s20567_s3 + $0x180c] sm:$0xf] }
 0x3fd   :  { %12921 = vmatmul.msk.bf16.vlgmr.msrb.gmra.mxu1 %vm526_vm0, %v19549_v30  ;;  %12922 = vmatmul.msk.bf16.vlgmr.msrb.gmra.mxu2 %vm526_vm0, %v19549_v30  ;;  %v13049_v30 = vld [vmem:[%s20567_s3 + $0x1728] sm:$0xf] }
 0x3fe   :  { %13003 = vmatmul.msk.bf16.vlgmr.msrb.gmra.mxu3 %vm526_vm0, %v19667_v22  ;;  %8194 = vmatpush.bf16.msrb.mxu2 %v13086_v29  ;;  %v13050_v40 = vor.u32 %v14196_v1, %v13049_v30  ;;  %v13226_v29 = vor.u32 %v14231_v14, %v13225_v15  ;;  %v14206_v30 = vld [vmem:[%s20567_s3 + $0x178c] sm:$0xf]  ;;  %v13117_v1 = vld [vmem:[%s20567_s3 + $0x1788] sm:$0xf]  ;;  %v13203_v15 = vld [vmem:[%s20567_s3 + $0x1818] sm:$0xf0] }
 0x3ff   :  { %8181 = vmatpush.bf16.msrb.mxu1 %v13082_v35  ;;  %8313 = vmatpush.bf16.msrb.mxu3 %v13158_v33  ;;  %v13135_v35 = vld [vmem:[%s20567_s3 + $0x17b8] sm:$0xf0]  ;;  %v13201_v14 = vld [vmem:[%s20567_s3 + $0x1808] sm:$0xf] }
 0x400   :  { %v6619_v27 = vpop.f32.mrf.mxu2 }
 0x401   :  { %v20260_v58 = vadd.f32 %v6619_v27, %v20170_v41  ;;  %v6738_v37 = vpop.f32.mrf.mxu3  ;;  %v14192_v41 = vld [vmem:[%s20567_s3 + $0x1714] sm:$0xf0]  ;;  %v13119_v27 = vld [vmem:[%s20567_s3 + $0x1798] sm:$0xf0] }
 0x402   :  { %v20263_v13 = vadd.f32 %v6738_v37, %v20173_v6  ;;  %v6608_v4 = vpop.f32.mrf.mxu1  ;;  %v7699_v36 = vpop.f32.mrf.mxu0  ;;  %8195 = vmatpush.bf16.msrb.mxu2 %v13070_v24  ;;  %v14207_v6 = vld [vmem:[%s20567_s3 + $0x178c] sm:$0xf0]  ;;  %v13034_v5 = vor.u32 %v14192_v41, %v13033_v52  ;;  %v13122_v37 = vor.u32 %v14206_v30, %v13119_v27 }
 0x403   :  { %v20266_v61 = vadd.f32 %v7699_v36, %v20176_v3  ;;  %8182 = vmatpush.bf16.msrb.mxu1 %v13066_v59  ;;  %8314 = vmatpush.bf16.msrb.mxu3 %v13142_v50  ;;  %v13110_v18 = vor.u32 %v14207_v6, %v13109_v54  ;;  %v14218_v3 = vld [vmem:[%s20567_s3 + $0x17ec] sm:$0xf]  ;;  %v14247_v30 = vld [vmem:[%s20569_s5 + $0x50] sm:$0xff] }
 0x404   :  { %v13170_v25 = vor.u32 %v14218_v3, %v13167_v60  ;;  %v14234_v36 = vld [vmem:[%s20567_s3 + $0x186c] sm:$0xf]  ;;  %v14252_v3 = vld [vmem:[%s20569_s5 + $0x78] sm:$0xff]  ;;  %v13233_v60 = vld [vmem:[%s20567_s3 + $0x1848] sm:$0xf] }
 0x405   :  { %v13234_v21 = vor.u32 %v14232_v39, %v13233_v60  ;;  %8818 = vmatpush.bf16.msra.mxu0 %v14252_v3 }
 0x406   :  { %8196 = vmatpush.bf16.msrb.mxu2 %v13054_v11  ;;  %v13251_v11 = vld [vmem:[%s20567_s3 + $0x1878] sm:$0xf0] }
 0x407   :  { %8183 = vmatpush.bf16.msrb.mxu1 %v13050_v40  ;;  %8315 = vmatpush.bf16.msrb.mxu3 %v13126_v17  ;;  %v13249_v17 = vld [vmem:[%s20567_s3 + $0x1868] sm:$0xf]  ;;  %v13254_v54 = vor.u32 %v14234_v36, %v13251_v11 }
 0x408   :  { %v6621_v16 = vpop.f32.mrf.mxu2 }
 0x409   :  { %v6740_v38 = vpop.f32.mrf.mxu3  ;;  %8819 = vmatpush.bf16.msra.mxu0 %v14251_v26 }
 0x40a   :  { %v6764_v46 = vpop.f32.mrf.mxu1  ;;  %v7701_v12 = vpop.f32.mrf.mxu0  ;;  %8197 = vmatpush.bf16.msrb.mxu2 %v13038_v32  ;;  %v13250_v32 = vor.u32 %v14236_v45, %v13249_v17 }
 0x40b   :  { %v6783_v49 = vadd.f32 %v6764_v46, %v20215_v19  ;;  %8184 = vmatpush.bf16.msrb.mxu1 %v13034_v5  ;;  %8316 = vmatpush.bf16.msrb.mxu3 %v13110_v18  ;;  %v14210_v19 = vld [vmem:[%s20567_s3 + $0x17ac] sm:$0xf]  ;;  %v13235_v18 = vld [vmem:[%s20567_s3 + $0x1858] sm:$0xf0]  ;;  %v14228_v46 = vld [vmem:[%s20567_s3 + $0x1834] sm:$0xf0] }
 0x40c   :  { %v13138_v50 = vor.u32 %v14210_v19, %v13135_v35  ;;  %v14230_v5 = vld [vmem:[%s20567_s3 + $0x184c] sm:$0xf] }
 0x40d   :  { %13005 = vmatmul.msk.bf16.vlgmr.msra.gmra.mxu1 %vm526_vm0, %v19667_v22  ;;  %13006 = vmatmul.msk.bf16.vlgmr.msra.gmra.mxu2 %vm526_vm0, %v19667_v22  ;;  %v13133_v22 = vld [vmem:[%s20567_s3 + $0x17a8] sm:$0xf]  ;;  %v13238_v16 = vor.u32 %v14230_v5, %v13235_v18 }
 0x40e   :  { %13087 = vmatmul.msk.bf16.vlgmr.msra.gmra.mxu3 %vm526_vm0, %v19785_v8  ;;  %8352 = vmatpush.bf16.msra.mxu2 %v13170_v25  ;;  %v13134_v43 = vor.u32 %v14212_v63, %v13133_v22 }
 0x40f   :  { %8339 = vmatpush.bf16.msra.mxu1 %v13166_v23  ;;  %8471 = vmatpush.bf16.msra.mxu3 %v13242_v48 }
 0x410   :  { %v6777_v33 = vpop.f32.mrf.mxu2 }
 0x411   :  { %v6784_v47 = vadd.f32 %v6777_v33, %v20260_v58  ;;  %v6896_v56 = vpop.f32.mrf.mxu3  ;;  %v14223_v58 = vld [vmem:[%s20567_s3 + $0x180c] sm:$0xf0]  ;;  %v14249_v33 = vld [vmem:[%s20569_s5 + $0x60] sm:$0xff] }
 0x412   :  { %v6939_v44 = vadd.f32 %v6896_v56, %v20263_v13  ;;  %v6766_v24 = vpop.f32.mrf.mxu1  ;;  %v20349_v59 = vpop.f32.mrf.mxu0  ;;  %8353 = vmatpush.bf16.msra.mxu2 %v13154_v57  ;;  %v13118_v13 = vor.u32 %v14208_v9, %v13117_v1  ;;  %v13194_v4 = vor.u32 %v14223_v58, %v13193_v55  ;;  %v14224_v57 = vld [vmem:[%s20567_s3 + $0x1814] sm:$0xf0] }
 0x413   :  { %8340 = vmatpush.bf16.msra.mxu1 %v13150_v20  ;;  %8472 = vmatpush.bf16.msra.mxu3 %v13226_v29  ;;  %v14250_v20 = vld [vmem:[%s20569_s5 + $0x68] sm:$0xff]  ;;  %v13206_v29 = vor.u32 %v14222_v51, %v13203_v15  ;;  %v13202_v19 = vor.u32 %v14224_v57, %v13201_v14 }
 0x414   :  { %8820 = vmatpush.bf16.msra.mxu0 %v14250_v20 }
 0x416   :  { %8354 = vmatpush.bf16.msra.mxu2 %v13138_v50 }
 0x417   :  { %8341 = vmatpush.bf16.msra.mxu1 %v13134_v43  ;;  %8473 = vmatpush.bf16.msra.mxu3 %v13210_v2 }
 0x418   :  { %v6779_v40 = vpop.f32.mrf.mxu2  ;;  %8821 = vmatpush.bf16.msra.mxu0 %v14249_v33 }
 0x419   :  { %v6898_v7 = vpop.f32.mrf.mxu3 }
 0x41a   :  { %v6922_v52 = vpop.f32.mrf.mxu1  ;;  %v7859_v41 = vpop.f32.mrf.mxu0  ;;  %8355 = vmatpush.bf16.msra.mxu2 %v13122_v37  ;;  %v14245_v37 = vld [vmem:[%s20569_s5 + $0x40] sm:$0xff] }
 0x41b   :  { %v6941_v6 = vadd.f32 %v6922_v52, %v6783_v49  ;;  %8342 = vmatpush.bf16.msra.mxu1 %v13118_v13  ;;  %8474 = vmatpush.bf16.msra.mxu3 %v13194_v4 }
 0x41d   :  { %13089 = vmatmul.msk.bf16.vlgmr.msrb.gmra.mxu1 %vm526_vm0, %v19785_v8  ;;  %13090 = vmatmul.msk.bf16.vlgmr.msrb.gmra.mxu2 %vm526_vm0, %v19785_v8  ;;  %v13217_v8 = vld [vmem:[%s20567_s3 + $0x1828] sm:$0xf] }
 0x41e   :  { %13171 = vmatmul.msk.bf16.vlgmr.msrb.gmra.mxu3 %vm526_vm0, %v19897_v34  ;;  %8510 = vmatpush.bf16.msrb.mxu2 %v13254_v54  ;;  %v13218_v10 = vor.u32 %v14228_v46, %v13217_v8  ;;  %v7888_v54 = vadd.f32 %v20349_v59, %v20266_v61 }
 0x41f   :  { %8497 = vmatpush.bf16.msrb.mxu1 %v13250_v32 }
 0x420   :  { %v6935_v38 = vpop.f32.mrf.mxu2 }
 0x421   :  { %v6942_v12 = vadd.f32 %v6935_v38, %v6784_v47  ;;  %v7054_v25 = vpop.f32.mrf.mxu3  ;;  %v14248_v47 = vld [vmem:[%s20569_s5 + $0x58] sm:$0xff] }
 0x422   :  { %v7097_v49 = vadd.f32 %v7054_v25, %v6939_v44  ;;  %v6924_v23 = vpop.f32.mrf.mxu1  ;;  %v8015_v48 = vpop.f32.mrf.mxu0  ;;  %8511 = vmatpush.bf16.msrb.mxu2 %v13238_v16  ;;  %8822 = vmatpush.bf16.msra.mxu0 %v14248_v47  ;;  %v14243_v47 = vld [vmem:[%s20569_s5 + $0x30] sm:$0xff] }
 0x423   :  { %8498 = vmatpush.bf16.msrb.mxu1 %v13234_v21  ;;  %v8046_v32 = vadd.f32 %v8015_v48, %v7888_v54  ;;  %v14256_v54 = vld [vmem:[%s20569_s5 + $0x98] sm:$0xff] }
 0x426   :  { %8512 = vmatpush.bf16.msrb.mxu2 %v13222_v28  ;;  %8823 = vmatpush.bf16.msra.mxu0 %v14247_v30 }
 0x427   :  { %8499 = vmatpush.bf16.msrb.mxu1 %v13218_v10 }
 0x428   :  { %v6937_v35 = vpop.f32.mrf.mxu2 }
 0x429   :  { %v7056_v22 = vpop.f32.mrf.mxu3 }
 0x42a   :  { %v7080_v63 = vpop.f32.mrf.mxu1  ;;  %v8017_v53 = vpop.f32.mrf.mxu0  ;;  %8513 = vmatpush.bf16.msrb.mxu2 %v13206_v29 }
 0x42b   :  { %v7099_v31 = vadd.f32 %v7080_v63, %v6941_v6  ;;  %8500 = vmatpush.bf16.msrb.mxu1 %v13202_v19 }
 0x42d   :  { %13173 = vmatmul.msk.bf16.vlgmr.msra.gmra.mxu1 %vm526_vm0, %v19897_v34  ;;  %13174 = vmatmul.msk.bf16.vlgmr.msra.gmra.mxu2 %vm526_vm0, %v19897_v34  ;;  %v14246_v34 = vld [vmem:[%s20569_s5 + $0x48] sm:$0xff] }
 0x42e   :  { %13255 = vmatmul.msk.bf16.vlgmr.msra.gmra.mxu3 %vm526_vm0, %v19991_v62  ;;  %8824 = vmatpush.bf16.msra.mxu0 %v14246_v34 }
 0x430   :  { %v7093_v56 = vpop.f32.mrf.mxu2 }
 0x431   :  { %v7100_v44 = vadd.f32 %v7093_v56, %v6942_v12  ;;  %v7212_v24 = vpop.f32.mrf.mxu3 }
 0x432   :  { %v7255_v50 = vadd.f32 %v7212_v24, %v7097_v49  ;;  %v7082_v43 = vpop.f32.mrf.mxu1  ;;  %v8173_v2 = vpop.f32.mrf.mxu0  ;;  %8825 = vmatpush.bf16.msra.mxu0 %v14245_v37  ;;  %v14239_v37 = vld [vmem:[%s20569_s5 + $0x10] sm:$0xff] }
 0x433   :  { %v8204_v5 = vadd.f32 %v8173_v2, %v8046_v32  ;;  %v14260_v43 = vld [vmem:[%s20569_s5 + $0xb8] sm:$0xff]  ;;  %v14241_v2 = vld [vmem:[%s20569_s5 + $0x20] sm:$0xff] }
 0x434   :  { %8831 = vmatpush.bf16.msra.mxu1 %v14260_v43  ;;  %v14265_v32 = vld [vmem:[%s20569_s5 + $0xe0] sm:$0xff] }
 0x438   :  { %v7095_v27 = vpop.f32.mrf.mxu2 }
 0x439   :  { %v7214_v1 = vpop.f32.mrf.mxu3 }
 0x43a   :  { %v7238_v9 = vpop.f32.mrf.mxu1  ;;  %v8175_v55 = vpop.f32.mrf.mxu0  ;;  %v14259_v1 = vld [vmem:[%s20569_s5 + $0xb0] sm:$0xff] }
 0x43b   :  { %v7257_v58 = vadd.f32 %v7238_v9, %v7099_v31  ;;  %v14244_v31 = vld [vmem:[%s20569_s5 + $0x38] sm:$0xff]  ;;  %8832 = vmatpush.bf16.msra.mxu1 %v14259_v1 }
 0x43c   :  { %8805 = vmatpush.bf16.msrb.mxu3 %v14244_v31  ;;  %v14240_v9 = vld [vmem:[%s20569_s5 + $0x18] sm:$0xff] }
 0x43d   :  { %13257 = vmatmul.msk.bf16.vlgmr.msrb.gmra.mxu1 %vm526_vm0, %v19991_v62  ;;  %13258 = vmatmul.msk.bf16.vlgmr.msrb.gmra.mxu2 %vm526_vm0, %v19991_v62  ;;  %v20462_v62 = vld [vmem:[%s20568_s4] sm:$0xf]  ;;  %v14268_v55 = vld [vmem:[%s20569_s5 + $0xf8] sm:$0xff] }
 0x43e   :  { %v8526_v16 = vperm.slane %v20462_v62, 1  ;;  %8844 = vmatpush.bf16.msra.mxu2 %v14268_v55 }
 0x440   :  { %v7251_v13 = vpop.f32.mrf.mxu2  ;;  %8806 = vmatpush.bf16.msrb.mxu3 %v14243_v47  ;;  %v8527_v47 = vperm.slane %v20462_v62, 2 }
 0x441   :  { %v7258_v4 = vadd.f32 %v7251_v13, %v7100_v44  ;;  %v7370_v36 = vpop.f32.mrf.mxu3  ;;  %v14267_v13 = vld [vmem:[%s20569_s5 + $0xf0] sm:$0xff] }
 0x442   :  { %v7413_v11 = vadd.f32 %v7370_v36, %v7255_v50  ;;  %v7240_v40 = vpop.f32.mrf.mxu1  ;;  %v8331_v17 = vpop.f32.mrf.mxu0  ;;  %v14242_v50 = vld [vmem:[%s20569_s5 + $0x28] sm:$0xff]  ;;  %8845 = vmatpush.bf16.msra.mxu2 %v14267_v13 }
 0x443   :  { %v8362_v3 = vadd.f32 %v8331_v17, %v8204_v5  ;;  %v14257_v17 = vld [vmem:[%s20569_s5 + $0xa0] sm:$0xff]  ;;  %v14255_v5 = vld [vmem:[%s20569_s5 + $0x90] sm:$0xff] }
 0x444   :  { %8807 = vmatpush.bf16.msrb.mxu3 %v14242_v50 }
 0x448   :  { %v7253_v45 = vpop.f32.mrf.mxu2  ;;  %8808 = vmatpush.bf16.msrb.mxu3 %v14241_v2 }
 0x449   :  { %v7372_v7 = vpop.f32.mrf.mxu3  ;;  %v14238_v45 = vld [vmem:[%s20569_s5 + $0x8] sm:$0xff] }
 0x44a   :  { %v7396_v52 = vpop.f32.mrf.mxu1  ;;  %v8333_v41 = vpop.f32.mrf.mxu0  ;;  %v14266_v7 = vld [vmem:[%s20569_s5 + $0xe8] sm:$0xff] }
 0x44b   :  { %v7415_v6 = vadd.f32 %v7396_v52, %v7257_v58  ;;  %v14258_v58 = vld [vmem:[%s20569_s5 + $0xa8] sm:$0xff]  ;;  %8846 = vmatpush.bf16.msra.mxu2 %v14266_v7 }
 0x44c   :  { %8809 = vmatpush.bf16.msrb.mxu3 %v14240_v9  ;;  %8833 = vmatpush.bf16.msra.mxu1 %v14258_v58 }
 0x44f   :  { %8847 = vmatpush.bf16.msra.mxu2 %v14265_v32 }
 0x450   :  { %v7409_v18 = vpop.f32.mrf.mxu2  ;;  %8810 = vmatpush.bf16.msrb.mxu3 %v14239_v37  ;;  %8834 = vmatpush.bf16.msra.mxu1 %v14257_v17 }
 0x451   :  { %v7416_v60 = vadd.f32 %v7409_v18, %v7258_v4  ;;  %v7528_v39 = vpop.f32.mrf.mxu3 }
 0x452   :  { %v7571_v21 = vadd.f32 %v7528_v39, %v7413_v11  ;;  %v7398_v42 = vpop.f32.mrf.mxu1  ;;  %v8489_v0 = vpop.f32.mrf.mxu0 }
 0x453   :  { %v8520_v38 = vadd.f32 %v8489_v0, %v8362_v3  ;;  %v14253_v42 = vld [vmem:[%s20569_s5 + $0x80] sm:$0xff]  ;;  %v14262_v0 = vld [vmem:[%s20569_s5 + $0xc8] sm:$0xff] }
 0x454   :  { %8811 = vmatpush.bf16.msrb.mxu3 %v14238_v45  ;;  %8835 = vmatpush.bf16.msra.mxu1 %v14256_v54 }
 0x455   :  { %v8534_v8 = vadd.f32 %v8526_v16, %v8520_v38  ;;  %v14254_v16 = vld [vmem:[%s20569_s5 + $0x88] sm:$0xff] }
 0x457   :  { %v8538_v61 = vmax.f32 %v8534_v8, 0.0 }
 0x458   :  { %v7411_v59 = vpop.f32.mrf.mxu2  ;;  %8836 = vmatpush.bf16.msra.mxu1 %v14255_v5 }
 0x459   :  { %v8542_v46 = vpack.c.bf16 %v8538_v61, %v8538_v61  ;;  %v7530_v12 = vpop.f32.mrf.mxu3 }
 0x45a   :  { %v7554_v25 = vpop.f32.mrf.mxu1  ;;  %v8491_v49 = vpop.f32.mrf.mxu0 }
 0x45b   :  { %v7573_v23 = vadd.f32 %v7554_v25, %v7415_v6  ;;  %8826 = vmatmul.bf16.vlgmr.msra.gmra.mxu0 %v8542_v46  ;;  %v14237_v6 = vld [vmem:[%s20569_s5] sm:$0xff] }
 0x45c   :  { %8812 = vmatpush.bf16.msrb.mxu3 %v14237_v6  ;;  %8837 = vmatpush.bf16.msra.mxu1 %v14254_v16  ;;  %v14261_v46 = vld [vmem:[%s20569_s5 + $0xc0] sm:$0xff] }
 0x460   :  { %v7567_v48 = vpop.f32.mrf.mxu2  ;;  %8838 = vmatpush.bf16.msra.mxu1 %v14253_v42 }
 0x461   :  { %v7574_v28 = vadd.f32 %v7567_v48, %v7416_v60  ;;  %v7686_v26 = vpop.f32.mrf.mxu3  ;;  %v14264_v60 = vld [vmem:[%s20569_s5 + $0xd8] sm:$0xff]  ;;  %v8525_v48 = vperm.slane %v20462_v62, 0 }
 0x462   :  { %v20465_v10 = vadd.f32 %v7686_v26, %v7571_v21  ;;  %v7556_v51 = vpop.f32.mrf.mxu1  ;;  %8848 = vmatpush.bf16.msra.mxu2 %v14264_v60  ;;  %v14263_v21 = vld [vmem:[%s20569_s5 + $0xd0] sm:$0xff] }
 0x466   :  { %8849 = vmatpush.bf16.msra.mxu2 %v14263_v21 }
 0x468   :  { %v7569_v15 = vpop.f32.mrf.mxu2 }
 0x469   :  { %v7688_v14 = vpop.f32.mrf.mxu3 }
 0x46a   :  { %v7712_v57 = vpop.f32.mrf.mxu1  ;;  %8850 = vmatpush.bf16.msra.mxu2 %v14262_v0 }
 0x46b   :  { %v20467_v20 = vadd.f32 %v7712_v57, %v7573_v23 }
 0x46e   :  { %8851 = vmatpush.bf16.msra.mxu2 %v14261_v46 }
 0x470   :  { %v7725_v29 = vpop.f32.mrf.mxu2 }
 0x471   :  { %v20469_v19 = vadd.f32 %v7725_v29, %v7574_v28  ;;  %v20471_v35 = vpop.f32.mrf.mxu3 }
 0x472   :  { %v7714_v22 = vpop.f32.mrf.mxu1  ;;  %v7887_v61 = vadd.f32 %v20471_v35, %v20465_v10 }
 0x478   :  { %v7727_v33 = vpop.f32.mrf.mxu2 }
 0x479   :  { %v7846_v63 = vpop.f32.mrf.mxu3 }
 0x47a   :  { %v20473_v53 = vpop.f32.mrf.mxu1 }
 0x47b   :  { %v7889_v10 = vadd.f32 %v20473_v53, %v20467_v20 }
 0x480   :  { %v20481_v56 = vpop.f32.mrf.mxu2 }
 0x481   :  { %v8002_v44 = vpop.f32.mrf.mxu3  ;;  %v7890_v33 = vadd.f32 %v20481_v56, %v20469_v19 }
 0x482   :  { %v7872_v24 = vpop.f32.mrf.mxu1  ;;  %v8045_v12 = vadd.f32 %v8002_v44, %v7887_v61 }
 0x488   :  { %v7885_v30 = vpop.f32.mrf.mxu2 }
 0x489   :  { %v8004_v27 = vpop.f32.mrf.mxu3  ;;  %v8528_v30 = vperm.slane %v20462_v62, 3 }
 0x48a   :  { %v8028_v34 = vpop.f32.mrf.mxu1 }
 0x48b   :  { %v8047_v14 = vadd.f32 %v8028_v34, %v7889_v10 }
 0x490   :  { %v8041_v4 = vpop.f32.mrf.mxu2 }
 0x491   :  { %v8160_v36 = vpop.f32.mrf.mxu3  ;;  %v8048_v24 = vadd.f32 %v8041_v4, %v7890_v33  ;;  %v14301_v4 = vmov 6  }
 0x492   :  { %v8030_v11 = vpop.f32.mrf.mxu1  ;;  %v8203_v25 = vadd.f32 %v8160_v36, %v8045_v12  ;;  %14271 = vset.pattern.permute.xlu0 %v14301_v4 }
 0x493   :  { %v14273_v11 = vld [vmem:[%s20570_s6] ss:$0 sm:$0xff] }
 0x498   :  { %v8043_v40 = vpop.f32.mrf.mxu2 }
 0x499   :  { %v8162_v52 = vpop.f32.mrf.mxu3 }
 0x49a   :  { %v8186_v41 = vpop.f32.mrf.mxu1 }
 0x49b   :  { %v8205_v29 = vadd.f32 %v8186_v41, %v8047_v14 }
 0x4a0   :  { %v8199_v18 = vpop.f32.mrf.mxu2 }
 0x4a1   :  { %v8318_v3 = vpop.f32.mrf.mxu3  ;;  %v8206_v43 = vadd.f32 %v8199_v18, %v8048_v24 }
 0x4a2   :  { %v8188_v39 = vpop.f32.mrf.mxu1  ;;  %v8361_v49 = vadd.f32 %v8318_v3, %v8203_v25 }
 0x4a8   :  { %v8201_v38 = vpop.f32.mrf.mxu2 }
 0x4a9   :  { %v8320_v8 = vpop.f32.mrf.mxu3 }
 0x4aa   :  { %v8344_v59 = vpop.f32.mrf.mxu1 }
 0x4ab   :  { %v8363_v63 = vadd.f32 %v8344_v59, %v8205_v29 }
 0x4b0   :  { %v8357_v23 = vpop.f32.mrf.mxu2 }
 0x4b1   :  { %v8476_v28 = vpop.f32.mrf.mxu3  ;;  %v8364_v20 = vadd.f32 %v8357_v23, %v8206_v43 }
 0x4b2   :  { %v8519_v26 = vadd.f32 %v8476_v28, %v8361_v49  ;;  %v8346_v51 = vpop.f32.mrf.mxu1 }
 0x4b4   :  { %v8533_v15 = vadd.f32 %v8525_v48, %v8519_v26 }
 0x4b6   :  { %v8537_v57 = vmax.f32 %v8533_v15, 0.0 }
 0x4b8   :  { %v8541_v35 = vpack.c.bf16 %v8537_v57, %v8537_v57  ;;  %v8359_v22 = vpop.f32.mrf.mxu2 }
 0x4b9   :  { %v8478_v31 = vpop.f32.mrf.mxu3 }
 0x4ba   :  { %8813 = vmatmul.bf16.vlgmr.msrb.gmra.mxu3 %v8541_v35  ;;  %v8502_v44 = vpop.f32.mrf.mxu1 }
 0x4bb   :  { %v8521_v50 = vadd.f32 %v8502_v44, %v8363_v63 }
 0x4bd   :  { %v8535_v2 = vadd.f32 %v8527_v47, %v8521_v50 }
 0x4bf   :  { %v8539_v53 = vmax.f32 %v8535_v2, 0.0 }
 0x4c0   :  { %v8515_v27 = vpop.f32.mrf.mxu2 }
 0x4c1   :  { %v8543_v1 = vpack.c.bf16 %v8539_v53, %v8539_v53  ;;  %v8522_v34 = vadd.f32 %v8515_v27, %v8364_v20 }
 0x4c2   :  { %v8504_v9 = vpop.f32.mrf.mxu1 }
 0x4c3   :  { %v8536_v55 = vadd.f32 %v8528_v30, %v8522_v34  ;;  %8839 = vmatmul.bf16.vlgmr.msra.gmra.mxu1 %v8543_v1 }
 0x4c5   :  { %v8540_v19 = vmax.f32 %v8536_v55, 0.0 }
 0x4c7   :  { %v8544_v56 = vpack.c.bf16 %v8540_v19, %v8540_v19 }
 0x4c8   :  { %v8517_v58 = vpop.f32.mrf.mxu2 }
 0x4c9   :  { %8852 = vmatmul.bf16.vlgmr.msra.gmra.mxu2 %v8544_v56 }
 0x4d8   :  { %v8827_v37 = vpop.f32.mrf.mxu0 }
 0x4e0   :  { %v8829_v13 = vpop.f32.mrf.mxu0 }
 0x53d   :  { %v8814_v36 = vpop.f32.mrf.mxu3 }
 0x53e   :  { %v8815_v40 = vadd.f32 %v14273_v11, %v8814_v36 }
 0x540   :  { %v8840_v62 = vpop.f32.mrf.mxu1  ;;  %v8828_v45 = vadd.f32 %v8827_v37, %v8815_v40 }
 0x542   :  { %v8841_v52 = vadd.f32 %v8840_v62, %v8828_v45 }
 0x545   :  { %v8816_v17 = vpop.f32.mrf.mxu3 }
 0x548   :  { %v8842_v7 = vpop.f32.mrf.mxu1 }
 0x54c   :  { %v8853_v41 = vpop.f32.mrf.mxu2 }
 0x54d   :  { %v8854_v54 = vadd.f32 %v8853_v41, %v8841_v52 }
 0x54f   :  { %8859 = vperm.xlu0 %14271, %v8854_v54  }
 0x554   :  { %v8855_v6 = vpop.f32.mrf.mxu2 }
 0x557   :  { %8866 = vperm.xlu0 %14271, %v8854_v54  }
 0x5c1   :  { %v8860_v32 = vpop.permute.xlu0 %8859 }
 0x5c2   :  { %v8862_v5 = vadd.f32 %v8860_v32, %v8854_v54 }
 0x5c9   :  { %v8867_v18 = vpop.permute.xlu0 %8866 }
 0x5ca   :  { %v8869_v3 = vsub.f32 %v8862_v5, %v8867_v18 }
 0x5cc   :  { %8871 = vst.msk [vmem:[#allocation3] sm:$0x3] %vm8870_vm2, %v8869_v3 }
 0x5cd   :  { %8882 = dma.vmem_to_hbm [thread:$0]  %s8878_s9, 32, %s8880_s12, [#allocation4]  }
 0x5ce   :  { %14299 = dma.done.wait [#allocation4], 32  }
 0x5cf   :  { %14300 = vsyncadd [#allocation4], 4294967264 }
 0x5d0   :  { %8887 = vsyncpa [#allocation4], 1 }

</bundles_post_ra>
